<compile_context>
chip_gen: v6e
topology: v6e:2x2x1
jax: 0.10.0
libtpu: 0.0.40
codegen_flags: <defaults>
</compile_context>

<pallas_src>
import functools

import jax
import jax.numpy as jnp
from jax.experimental import pallas as pl
from jax.experimental.pallas import tpu as pltpu


# ------------------------- Pallas kernel -------------------------

def _linear_kernel(x_ref, w_ref, b_ref, o_ref, *, apply_relu, compute_dtype):
    """One (tm, tn) output tile: full-K dot + bias (+ ReLU)."""
    x = x_ref[...].astype(compute_dtype)            # bf16 feed to the MXU
    acc = jnp.dot(x, w_ref[...], preferred_element_type=jnp.float32)
    acc = acc + b_ref[...]                          # f32 bias, broadcast rows
    if apply_relu:
        acc = jnp.maximum(acc, 0.0)
    o_ref[...] = acc.astype(o_ref.dtype)


def linear_pallas(x, w, b, *, apply_relu, tm, tn):
    """y = relu?(x @ w + b) with pre-padded operands.

    x: (Mp, Kp) f32, w: (Kp, Np) bf16/f32, b: (1, Np) f32 -> (Mp, Np) f32.
    Mp % tm == 0, Np % tn == 0, Kp is a multiple of 256 (pre-padded at init).
    """
    Mp, Kp = x.shape
    Kp2, Np = w.shape
    assert Kp == Kp2 and b.shape == (1, Np)
    assert Mp % tm == 0 and Np % tn == 0

    grid = (Mp // tm, Np // tn)

    return pl.pallas_call(
        functools.partial(
            _linear_kernel, apply_relu=apply_relu, compute_dtype=w.dtype
        ),
        out_shape=jax.ShapeDtypeStruct((Mp, Np), jnp.float32),
        grid_spec=pltpu.PrefetchScalarGridSpec(
            num_scalar_prefetch=0,
            grid=grid,
            in_specs=[
                pl.BlockSpec((tm, Kp), lambda i, j: (i, 0)),   # full-K act row
                pl.BlockSpec((Kp, tn), lambda i, j: (0, j)),   # weight column
                pl.BlockSpec((1, tn), lambda i, j: (0, j)),    # bias slice
            ],
            out_specs=pl.BlockSpec((tm, tn), lambda i, j: (i, j)),
        ),
        compiler_params=pltpu.CompilerParams(
            dimension_semantics=("parallel", "parallel"),
            vmem_limit_bytes=32 * 1024 * 1024,
        ),
    )(x, w, b)


# ------------------------- Encoder2 -------------------------

_LAYER_DIMS = [(3072, 2048), (2048, 1024), (1024, 784),
               (784, 512), (512, 364), (364, 256)]


def _round_up(x, m):
    return (x + m - 1) // m * m


def init_params(key, weight_dtype=jnp.bfloat16):
    """Torch-like uniform(-1/sqrt(fan_in), 1/sqrt(fan_in)) init.

    Weights are stored transposed to (in, out), zero-padded once to multiples
    of 256 on both dims, and cast to `weight_dtype`; biases stay f32, padded
    and shaped (1, Np).
    """
    params = []
    for fan_in, fan_out in _LAYER_DIMS:
        key, kw, kb = jax.random.split(key, 3)
        bound = 1.0 / (fan_in ** 0.5)
        w = jax.random.uniform(kw, (fan_in, fan_out), jnp.float32, -bound, bound)
        b = jax.random.uniform(kb, (fan_out,), jnp.float32, -bound, bound)

        kp = _round_up(fan_in, 256)
        np_ = _round_up(fan_out, 256)
        w_p = jnp.zeros((kp, np_), weight_dtype)
        w_p = w_p.at[:fan_in, :fan_out].set(w.astype(weight_dtype))
        b_p = jnp.zeros((1, np_), jnp.float32)
        b_p = b_p.at[0, :fan_out].set(b)
        params.append((w_p, b_p))
    return params


@jax.jit
def encoder2_forward(x, params):
    """x: (B, 3, 32, 32) NCHW f32 -> (B, 256) f32 (row-major flatten, like torch)."""
    B = x.shape[0]
    h = x.reshape(B, -1)                           # (B, 3072)

    tm = 8 if B <= 8 else 128
    mp = _round_up(B, tm)
    h = jnp.pad(h, ((0, mp - B), (0, 0)))          # tiny activation pad only

    n_layers = len(params)
    for idx, (w_p, b_p) in enumerate(params):
        np_ = w_p.shape[1]
        tn = min(512, np_)
        h = linear_pallas(h, w_p, b_p,
                          apply_relu=(idx < n_layers - 1), tm=tm, tn=tn)

    return h[:B, :_LAYER_DIMS[-1][1]]


def encoder2_ref(x, params):
    """Pure-JAX reference with identical numerics (bf16 weights, f32 accum)."""
    B = x.shape[0]
    h = x.reshape(B, -1)
    n_layers = len(params)
    for idx, ((w_p, b_p), (fan_in, fan_out)) in enumerate(zip(params, _LAYER_DIMS)):
        w = w_p[:fan_in, :fan_out]
        b = b_p[0, :fan_out]
        h = jnp.dot(h.astype(w.dtype), w, preferred_element_type=jnp.float32) + b
        if idx < n_layers - 1:
            h = jnp.maximum(h, 0.0)
    return h


if __name__ == "__main__":
    key = jax.random.PRNGKey(0)
    key, kx = jax.random.split(key)

    B = 2
    x = jax.random.normal(kx, (B, 3, 32, 32), jnp.float32)
    params = init_params(key)

    y = encoder2_forward(x, params)
    y = jax.block_until_ready(y)

    assert y.shape == (B, 256), y.shape

    y_ref = encoder2_ref(x, params)
    assert jnp.allclose(y, y_ref, atol=1e-2, rtol=1e-2), "mismatch vs reference"

    print("KERNEL_OK")
</pallas_src>

<mosaic_0001>
module attributes {stable_mosaic.version = 11 : i64} {
  func.func @_linear_kernel(%arg0: i32, %arg1: i32, %arg2: memref<8x2048xf32, #tpu.memory_space<vmem>>, %arg3: memref<2048x512xbf16, #tpu.memory_space<vmem>>, %arg4: memref<1x512xf32, #tpu.memory_space<vmem>>, %arg5: memref<8x512xf32, #tpu.memory_space<vmem>>) attributes {dimension_semantics = [#tpu.dimension_semantics<parallel>, #tpu.dimension_semantics<parallel>], iteration_bounds = array<i64: 1, 2>, scalar_prefetch = 0 : i64, scratch_operands = 0 : i64, tpu.core_type = #tpu.core_type<tc>, window_params = [{transform_indices = @transform_0, window_bounds = array<i64: 8, 2048>}, {transform_indices = @transform_1, window_bounds = array<i64: 2048, 512>}, {transform_indices = @transform_2, window_bounds = array<i64: 1, 512>}, {transform_indices = @transform_3, window_bounds = array<i64: 8, 512>}]} {
    %c0 = arith.constant 0 : index
    %c0_0 = arith.constant 0 : index
    %0 = vector.load %arg2[%c0, %c0_0] : memref<8x2048xf32, #tpu.memory_space<vmem>>, vector<8x2048xf32>
    %1 = arith.truncf %0 : vector<8x2048xf32> to vector<8x2048xbf16>
    %c0_1 = arith.constant 0 : index
    %c0_2 = arith.constant 0 : index
    %2 = vector.load %arg3[%c0_1, %c0_2] : memref<2048x512xbf16, #tpu.memory_space<vmem>>, vector<2048x512xbf16>
    %cst = arith.constant dense<0.000000e+00> : vector<8x512xf32>
    %3 = tpu.matmul %1, %2, %cst {dimension_numbers = #tpu.dot_dimension_numbers<[1], [0], [0], [1], [0, 0, 1, 1], [], []>} : vector<8x2048xbf16>, vector<2048x512xbf16>, vector<8x512xf32> -> vector<8x512xf32>
    %c0_3 = arith.constant 0 : index
    %c0_4 = arith.constant 0 : index
    %4 = vector.load %arg4[%c0_3, %c0_4] : memref<1x512xf32, #tpu.memory_space<vmem>>, vector<1x512xf32>
    %5 = vector.broadcast %4 : vector<1x512xf32> to vector<8x512xf32>
    %6 = arith.addf %3, %5 : vector<8x512xf32>
    %cst_5 = arith.constant 0.000000e+00 : f32
    %7 = vector.broadcast %cst_5 : f32 to vector<8x512xf32>
    %8 = arith.maximumf %6, %7 : vector<8x512xf32>
    %c0_6 = arith.constant 0 : index
    %c0_7 = arith.constant 0 : index
    %9 = vector.load %arg5[%c0_6, %c0_7] : memref<8x512xf32, #tpu.memory_space<vmem>>, vector<8x512xf32>
    tpu.vector_store %arg5[%c0_6, %c0_7], %8 {strides = array<i32>} : memref<8x512xf32, #tpu.memory_space<vmem>>, vector<8x512xf32>,
    return
  }
  func.func @transform_0(%arg0: i32, %arg1: i32) -> (i32, i32) {
    %c0_i32 = arith.constant 0 : i32
    %c0_i32_0 = arith.constant 0 : i32
    return %arg0, %c0_i32 : i32, i32
  }
  func.func @transform_1(%arg0: i32, %arg1: i32) -> (i32, i32) {
    %c0_i32 = arith.constant 0 : i32
    %c0_i32_0 = arith.constant 0 : i32
    return %c0_i32, %arg1 : i32, i32
  }
  func.func @transform_2(%arg0: i32, %arg1: i32) -> (i32, i32) {
    %c0_i32 = arith.constant 0 : i32
    %c0_i32_0 = arith.constant 0 : i32
    return %c0_i32, %arg1 : i32, i32
  }
  func.func @transform_3(%arg0: i32, %arg1: i32) -> (i32, i32) {
    %c0_i32 = arith.constant 0 : i32
    return %arg0, %arg1 : i32, i32
  }
}

module attributes {stable_mosaic.version = 11 : i64} {
  func.func @_linear_kernel(%arg0: i32, %arg1: i32, %arg2: memref<8x3072xf32, #tpu.memory_space<vmem>>, %arg3: memref<3072x512xbf16, #tpu.memory_space<vmem>>, %arg4: memref<1x512xf32, #tpu.memory_space<vmem>>, %arg5: memref<8x512xf32, #tpu.memory_space<vmem>>) attributes {dimension_semantics = [#tpu.dimension_semantics<parallel>, #tpu.dimension_semantics<parallel>], iteration_bounds = array<i64: 1, 4>, scalar_prefetch = 0 : i64, scratch_operands = 0 : i64, tpu.core_type = #tpu.core_type<tc>, window_params = [{transform_indices = @transform_0, window_bounds = array<i64: 8, 3072>}, {transform_indices = @transform_1, window_bounds = array<i64: 3072, 512>}, {transform_indices = @transform_2, window_bounds = array<i64: 1, 512>}, {transform_indices = @transform_3, window_bounds = array<i64: 8, 512>}]} {
    %c0 = arith.constant 0 : index
    %c0_0 = arith.constant 0 : index
    %0 = vector.load %arg2[%c0, %c0_0] : memref<8x3072xf32, #tpu.memory_space<vmem>>, vector<8x3072xf32>
    %1 = arith.truncf %0 : vector<8x3072xf32> to vector<8x3072xbf16>
    %c0_1 = arith.constant 0 : index
    %c0_2 = arith.constant 0 : index
    %2 = vector.load %arg3[%c0_1, %c0_2] : memref<3072x512xbf16, #tpu.memory_space<vmem>>, vector<3072x512xbf16>
    %cst = arith.constant dense<0.000000e+00> : vector<8x512xf32>
    %3 = tpu.matmul %1, %2, %cst {dimension_numbers = #tpu.dot_dimension_numbers<[1], [0], [0], [1], [0, 0, 1, 1], [], []>} : vector<8x3072xbf16>, vector<3072x512xbf16>, vector<8x512xf32> -> vector<8x512xf32>
    %c0_3 = arith.constant 0 : index
    %c0_4 = arith.constant 0 : index
    %4 = vector.load %arg4[%c0_3, %c0_4] : memref<1x512xf32, #tpu.memory_space<vmem>>, vector<1x512xf32>
    %5 = vector.broadcast %4 : vector<1x512xf32> to vector<8x512xf32>
    %6 = arith.addf %3, %5 : vector<8x512xf32>
    %cst_5 = arith.constant 0.000000e+00 : f32
    %7 = vector.broadcast %cst_5 : f32 to vector<8x512xf32>
    %8 = arith.maximumf %6, %7 : vector<8x512xf32>
    %c0_6 = arith.constant 0 : index
    %c0_7 = arith.constant 0 : index
    %9 = vector.load %arg5[%c0_6, %c0_7] : memref<8x512xf32, #tpu.memory_space<vmem>>, vector<8x512xf32>
    tpu.vector_store %arg5[%c0_6, %c0_7], %8 {strides = array<i32>} : memref<8x512xf32, #tpu.memory_space<vmem>>, vector<8x512xf32>,
    return
  }
  func.func @transform_0(%arg0: i32, %arg1: i32) -> (i32, i32) {
    %c0_i32 = arith.constant 0 : i32
    %c0_i32_0 = arith.constant 0 : i32
    return %arg0, %c0_i32 : i32, i32
  }
  func.func @transform_1(%arg0: i32, %arg1: i32) -> (i32, i32) {
    %c0_i32 = arith.constant 0 : i32
    %c0_i32_0 = arith.constant 0 : i32
    return %c0_i32, %arg1 : i32, i32
  }
  func.func @transform_2(%arg0: i32, %arg1: i32) -> (i32, i32) {
    %c0_i32 = arith.constant 0 : i32
    %c0_i32_0 = arith.constant 0 : i32
    return %c0_i32, %arg1 : i32, i32
  }
  func.func @transform_3(%arg0: i32, %arg1: i32) -> (i32, i32) {
    %c0_i32 = arith.constant 0 : i32
    return %arg0, %arg1 : i32, i32
  }
}

module attributes {stable_mosaic.version = 11 : i64} {
  func.func @_linear_kernel(%arg0: i32, %arg1: i32, %arg2: memref<8x1024xf32, #tpu.memory_space<vmem>>, %arg3: memref<1024x512xbf16, #tpu.memory_space<vmem>>, %arg4: memref<1x512xf32, #tpu.memory_space<vmem>>, %arg5: memref<8x512xf32, #tpu.memory_space<vmem>>) attributes {dimension_semantics = [#tpu.dimension_semantics<parallel>, #tpu.dimension_semantics<parallel>], iteration_bounds = array<i64: 1, 2>, scalar_prefetch = 0 : i64, scratch_operands = 0 : i64, tpu.core_type = #tpu.core_type<tc>, window_params = [{transform_indices = @transform_0, window_bounds = array<i64: 8, 1024>}, {transform_indices = @transform_1, window_bounds = array<i64: 1024, 512>}, {transform_indices = @transform_2, window_bounds = array<i64: 1, 512>}, {transform_indices = @transform_3, window_bounds = array<i64: 8, 512>}]} {
    %c0 = arith.constant 0 : index
    %c0_0 = arith.constant 0 : index
    %0 = vector.load %arg2[%c0, %c0_0] : memref<8x1024xf32, #tpu.memory_space<vmem>>, vector<8x1024xf32>
    %1 = arith.truncf %0 : vector<8x1024xf32> to vector<8x1024xbf16>
    %c0_1 = arith.constant 0 : index
    %c0_2 = arith.constant 0 : index
    %2 = vector.load %arg3[%c0_1, %c0_2] : memref<1024x512xbf16, #tpu.memory_space<vmem>>, vector<1024x512xbf16>
    %cst = arith.constant dense<0.000000e+00> : vector<8x512xf32>
    %3 = tpu.matmul %1, %2, %cst {dimension_numbers = #tpu.dot_dimension_numbers<[1], [0], [0], [1], [0, 0, 1, 1], [], []>} : vector<8x1024xbf16>, vector<1024x512xbf16>, vector<8x512xf32> -> vector<8x512xf32>
    %c0_3 = arith.constant 0 : index
    %c0_4 = arith.constant 0 : index
    %4 = vector.load %arg4[%c0_3, %c0_4] : memref<1x512xf32, #tpu.memory_space<vmem>>, vector<1x512xf32>
    %5 = vector.broadcast %4 : vector<1x512xf32> to vector<8x512xf32>
    %6 = arith.addf %3, %5 : vector<8x512xf32>
    %cst_5 = arith.constant 0.000000e+00 : f32
    %7 = vector.broadcast %cst_5 : f32 to vector<8x512xf32>
    %8 = arith.maximumf %6, %7 : vector<8x512xf32>
    %c0_6 = arith.constant 0 : index
    %c0_7 = arith.constant 0 : index
    %9 = vector.load %arg5[%c0_6, %c0_7] : memref<8x512xf32, #tpu.memory_space<vmem>>, vector<8x512xf32>
    tpu.vector_store %arg5[%c0_6, %c0_7], %8 {strides = array<i32>} : memref<8x512xf32, #tpu.memory_space<vmem>>, vector<8x512xf32>,
    return
  }
  func.func @transform_0(%arg0: i32, %arg1: i32) -> (i32, i32) {
    %c0_i32 = arith.constant 0 : i32
    %c0_i32_0 = arith.constant 0 : i32
    return %arg0, %c0_i32 : i32, i32
  }
  func.func @transform_1(%arg0: i32, %arg1: i32) -> (i32, i32) {
    %c0_i32 = arith.constant 0 : i32
    %c0_i32_0 = arith.constant 0 : i32
    return %c0_i32, %arg1 : i32, i32
  }
  func.func @transform_2(%arg0: i32, %arg1: i32) -> (i32, i32) {
    %c0_i32 = arith.constant 0 : i32
    %c0_i32_0 = arith.constant 0 : i32
    return %c0_i32, %arg1 : i32, i32
  }
  func.func @transform_3(%arg0: i32, %arg1: i32) -> (i32, i32) {
    %c0_i32 = arith.constant 0 : i32
    return %arg0, %arg1 : i32, i32
  }
}

module attributes {stable_mosaic.version = 11 : i64} {
  func.func @_linear_kernel(%arg0: i32, %arg1: i32, %arg2: memref<8x1024xf32, #tpu.memory_space<vmem>>, %arg3: memref<1024x512xbf16, #tpu.memory_space<vmem>>, %arg4: memref<1x512xf32, #tpu.memory_space<vmem>>, %arg5: memref<8x512xf32, #tpu.memory_space<vmem>>) attributes {dimension_semantics = [#tpu.dimension_semantics<parallel>, #tpu.dimension_semantics<parallel>], iteration_bounds = array<i64: 1, 1>, scalar_prefetch = 0 : i64, scratch_operands = 0 : i64, tpu.core_type = #tpu.core_type<tc>, window_params = [{transform_indices = @transform_0, window_bounds = array<i64: 8, 1024>}, {transform_indices = @transform_1, window_bounds = array<i64: 1024, 512>}, {transform_indices = @transform_2, window_bounds = array<i64: 1, 512>}, {transform_indices = @transform_3, window_bounds = array<i64: 8, 512>}]} {
    %c0 = arith.constant 0 : index
    %c0_0 = arith.constant 0 : index
    %0 = vector.load %arg2[%c0, %c0_0] : memref<8x1024xf32, #tpu.memory_space<vmem>>, vector<8x1024xf32>
    %1 = arith.truncf %0 : vector<8x1024xf32> to vector<8x1024xbf16>
    %c0_1 = arith.constant 0 : index
    %c0_2 = arith.constant 0 : index
    %2 = vector.load %arg3[%c0_1, %c0_2] : memref<1024x512xbf16, #tpu.memory_space<vmem>>, vector<1024x512xbf16>
    %cst = arith.constant dense<0.000000e+00> : vector<8x512xf32>
    %3 = tpu.matmul %1, %2, %cst {dimension_numbers = #tpu.dot_dimension_numbers<[1], [0], [0], [1], [0, 0, 1, 1], [], []>} : vector<8x1024xbf16>, vector<1024x512xbf16>, vector<8x512xf32> -> vector<8x512xf32>
    %c0_3 = arith.constant 0 : index
    %c0_4 = arith.constant 0 : index
    %4 = vector.load %arg4[%c0_3, %c0_4] : memref<1x512xf32, #tpu.memory_space<vmem>>, vector<1x512xf32>
    %5 = vector.broadcast %4 : vector<1x512xf32> to vector<8x512xf32>
    %6 = arith.addf %3, %5 : vector<8x512xf32>
    %cst_5 = arith.constant 0.000000e+00 : f32
    %7 = vector.broadcast %cst_5 : f32 to vector<8x512xf32>
    %8 = arith.maximumf %6, %7 : vector<8x512xf32>
    %c0_6 = arith.constant 0 : index
    %c0_7 = arith.constant 0 : index
    %9 = vector.load %arg5[%c0_6, %c0_7] : memref<8x512xf32, #tpu.memory_space<vmem>>, vector<8x512xf32>
    tpu.vector_store %arg5[%c0_6, %c0_7], %8 {strides = array<i32>} : memref<8x512xf32, #tpu.memory_space<vmem>>, vector<8x512xf32>,
    return
  }
  func.func @transform_0(%arg0: i32, %arg1: i32) -> (i32, i32) {
    %c0_i32 = arith.constant 0 : i32
    %c0_i32_0 = arith.constant 0 : i32
    return %arg0, %c0_i32 : i32, i32
  }
  func.func @transform_1(%arg0: i32, %arg1: i32) -> (i32, i32) {
    %c0_i32 = arith.constant 0 : i32
    %c0_i32_0 = arith.constant 0 : i32
    return %c0_i32, %arg1 : i32, i32
  }
  func.func @transform_2(%arg0: i32, %arg1: i32) -> (i32, i32) {
    %c0_i32 = arith.constant 0 : i32
    %c0_i32_0 = arith.constant 0 : i32
    return %c0_i32, %arg1 : i32, i32
  }
  func.func @transform_3(%arg0: i32, %arg1: i32) -> (i32, i32) {
    %c0_i32 = arith.constant 0 : i32
    return %arg0, %arg1 : i32, i32
  }
}

module attributes {stable_mosaic.version = 11 : i64} {
  func.func @_linear_kernel(%arg0: i32, %arg1: i32, %arg2: memref<8x512xf32, #tpu.memory_space<vmem>>, %arg3: memref<512x512xbf16, #tpu.memory_space<vmem>>, %arg4: memref<1x512xf32, #tpu.memory_space<vmem>>, %arg5: memref<8x512xf32, #tpu.memory_space<vmem>>) attributes {dimension_semantics = [#tpu.dimension_semantics<parallel>, #tpu.dimension_semantics<parallel>], iteration_bounds = array<i64: 1, 1>, scalar_prefetch = 0 : i64, scratch_operands = 0 : i64, tpu.core_type = #tpu.core_type<tc>, window_params = [{transform_indices = @transform_0, window_bounds = array<i64: 8, 512>}, {transform_indices = @transform_1, window_bounds = array<i64: 512, 512>}, {transform_indices = @transform_2, window_bounds = array<i64: 1, 512>}, {transform_indices = @transform_3, window_bounds = array<i64: 8, 512>}]} {
    %c0 = arith.constant 0 : index
    %c0_0 = arith.constant 0 : index
    %0 = vector.load %arg2[%c0, %c0_0] : memref<8x512xf32, #tpu.memory_space<vmem>>, vector<8x512xf32>
    %1 = arith.truncf %0 : vector<8x512xf32> to vector<8x512xbf16>
    %c0_1 = arith.constant 0 : index
    %c0_2 = arith.constant 0 : index
    %2 = vector.load %arg3[%c0_1, %c0_2] : memref<512x512xbf16, #tpu.memory_space<vmem>>, vector<512x512xbf16>
    %cst = arith.constant dense<0.000000e+00> : vector<8x512xf32>
    %3 = tpu.matmul %1, %2, %cst {dimension_numbers = #tpu.dot_dimension_numbers<[1], [0], [0], [1], [0, 0, 1, 1], [], []>} : vector<8x512xbf16>, vector<512x512xbf16>, vector<8x512xf32> -> vector<8x512xf32>
    %c0_3 = arith.constant 0 : index
    %c0_4 = arith.constant 0 : index
    %4 = vector.load %arg4[%c0_3, %c0_4] : memref<1x512xf32, #tpu.memory_space<vmem>>, vector<1x512xf32>
    %5 = vector.broadcast %4 : vector<1x512xf32> to vector<8x512xf32>
    %6 = arith.addf %3, %5 : vector<8x512xf32>
    %cst_5 = arith.constant 0.000000e+00 : f32
    %7 = vector.broadcast %cst_5 : f32 to vector<8x512xf32>
    %8 = arith.maximumf %6, %7 : vector<8x512xf32>
    %c0_6 = arith.constant 0 : index
    %c0_7 = arith.constant 0 : index
    %9 = vector.load %arg5[%c0_6, %c0_7] : memref<8x512xf32, #tpu.memory_space<vmem>>, vector<8x512xf32>
    tpu.vector_store %arg5[%c0_6, %c0_7], %8 {strides = array<i32>} : memref<8x512xf32, #tpu.memory_space<vmem>>, vector<8x512xf32>,
    return
  }
  func.func @transform_0(%arg0: i32, %arg1: i32) -> (i32, i32) {
    %c0_i32 = arith.constant 0 : i32
    %c0_i32_0 = arith.constant 0 : i32
    return %arg0, %c0_i32 : i32, i32
  }
  func.func @transform_1(%arg0: i32, %arg1: i32) -> (i32, i32) {
    %c0_i32 = arith.constant 0 : i32
    %c0_i32_0 = arith.constant 0 : i32
    return %c0_i32, %arg1 : i32, i32
  }
  func.func @transform_2(%arg0: i32, %arg1: i32) -> (i32, i32) {
    %c0_i32 = arith.constant 0 : i32
    %c0_i32_0 = arith.constant 0 : i32
    return %c0_i32, %arg1 : i32, i32
  }
  func.func @transform_3(%arg0: i32, %arg1: i32) -> (i32, i32) {
    %c0_i32 = arith.constant 0 : i32
    return %arg0, %arg1 : i32, i32
  }
}

module attributes {stable_mosaic.version = 11 : i64} {
  func.func @_linear_kernel(%arg0: i32, %arg1: i32, %arg2: memref<8x512xf32, #tpu.memory_space<vmem>>, %arg3: memref<512x256xbf16, #tpu.memory_space<vmem>>, %arg4: memref<1x256xf32, #tpu.memory_space<vmem>>, %arg5: memref<8x256xf32, #tpu.memory_space<vmem>>) attributes {dimension_semantics = [#tpu.dimension_semantics<parallel>, #tpu.dimension_semantics<parallel>], iteration_bounds = array<i64: 1, 1>, scalar_prefetch = 0 : i64, scratch_operands = 0 : i64, tpu.core_type = #tpu.core_type<tc>, window_params = [{transform_indices = @transform_0, window_bounds = array<i64: 8, 512>}, {transform_indices = @transform_1, window_bounds = array<i64: 512, 256>}, {transform_indices = @transform_2, window_bounds = array<i64: 1, 256>}, {transform_indices = @transform_3, window_bounds = array<i64: 8, 256>}]} {
    %c0 = arith.constant 0 : index
    %c0_0 = arith.constant 0 : index
    %0 = vector.load %arg2[%c0, %c0_0] : memref<8x512xf32, #tpu.memory_space<vmem>>, vector<8x512xf32>
    %1 = arith.truncf %0 : vector<8x512xf32> to vector<8x512xbf16>
    %c0_1 = arith.constant 0 : index
    %c0_2 = arith.constant 0 : index
    %2 = vector.load %arg3[%c0_1, %c0_2] : memref<512x256xbf16, #tpu.memory_space<vmem>>, vector<512x256xbf16>
    %cst = arith.constant dense<0.000000e+00> : vector<8x256xf32>
    %3 = tpu.matmul %1, %2, %cst {dimension_numbers = #tpu.dot_dimension_numbers<[1], [0], [0], [1], [0, 0, 1, 1], [], []>} : vector<8x512xbf16>, vector<512x256xbf16>, vector<8x256xf32> -> vector<8x256xf32>
    %c0_3 = arith.constant 0 : index
    %c0_4 = arith.constant 0 : index
    %4 = vector.load %arg4[%c0_3, %c0_4] : memref<1x256xf32, #tpu.memory_space<vmem>>, vector<1x256xf32>
    %5 = vector.broadcast %4 : vector<1x256xf32> to vector<8x256xf32>
    %6 = arith.addf %3, %5 : vector<8x256xf32>
    %c0_5 = arith.constant 0 : index
    %c0_6 = arith.constant 0 : index
    %7 = vector.load %arg5[%c0_5, %c0_6] : memref<8x256xf32, #tpu.memory_space<vmem>>, vector<8x256xf32>
    tpu.vector_store %arg5[%c0_5, %c0_6], %6 {strides = array<i32>} : memref<8x256xf32, #tpu.memory_space<vmem>>, vector<8x256xf32>,
    return
  }
  func.func @transform_0(%arg0: i32, %arg1: i32) -> (i32, i32) {
    %c0_i32 = arith.constant 0 : i32
    %c0_i32_0 = arith.constant 0 : i32
    return %arg0, %c0_i32 : i32, i32
  }
  func.func @transform_1(%arg0: i32, %arg1: i32) -> (i32, i32) {
    %c0_i32 = arith.constant 0 : i32
    %c0_i32_0 = arith.constant 0 : i32
    return %c0_i32, %arg1 : i32, i32
  }
  func.func @transform_2(%arg0: i32, %arg1: i32) -> (i32, i32) {
    %c0_i32 = arith.constant 0 : i32
    %c0_i32_0 = arith.constant 0 : i32
    return %c0_i32, %arg1 : i32, i32
  }
  func.func @transform_3(%arg0: i32, %arg1: i32) -> (i32, i32) {
    %c0_i32 = arith.constant 0 : i32
    return %arg0, %arg1 : i32, i32
  }
}

</mosaic_0001>

<bundles_post_ra>
// kernel: encoder2_forward.8
= control target key start
LH: loop header
LB: loop body
LE: loop exit
PB: predicated region body
PF: predicated region fallthrough
CT: control target
= control target key end

     0   :  { %s3541_s12 = smov 0   ;;  %s3543_s13 = smov 0   ;;  %s4445_s0 = inlined_call_operand.vmem [shape: f32[8,1024], index: 0, kind: input, shape index: {}]   ;;  %s4446_s1 = inlined_call_operand.vmem [shape: bf16[1024,1024], index: 1, kind: input, shape index: {}]   ;;  %s4447_s2 = inlined_call_operand.vmem [shape: f32[1,1024], index: 2, kind: input, shape index: {}]   ;;  %s4448_s3 = inlined_call_operand.vmem [shape: f32[8,1024], index: 3, kind: output, shape index: {}]  }
   0x1   :  { %s3545_s14 = smov 0   ;;  %s3547_s15 = smov 0  }
   0x2   :  { %s3549_s16 = smov 0  }
   0x3 LB: > { %s22_s17 = sadd.s32 1, %s3515_s15  ;;  %p65_p1 = scmp.ne.s32.totalorder %s3507_s13, %s3503_s12  ;;  %s3519_s16 = sphi %s3549_s16, %s13_s16   ;;  %s3515_s15 = sphi %s3547_s15, %s4452_s15   ;;  %s3511_s14 = sphi %s3545_s14, %s4451_s14   ;;  %s3507_s13 = sphi %s3543_s13, %s4450_s13   ;;  %s3503_s12 = sphi %s3541_s12, %s4449_s12  }
   0x4   : > { %p23_p0 = scmp.ge.s32.totalorder %s22_s17, 2  ;;  %p66_p2 = scmp.eq.s32.totalorder %s3519_s16, 0 }
   0x5   : > { %s58_s19 = sadd.s32 1, %s3507_s13  ;;  %p2789_p5 = scmp.ge.s32.totalorder %s3519_s16, 2 }
   0x6   : > { %s4454_s17 = smov (%p23_p0, %s22_s17), 0  ;;  %p67_p3 = por %p66_p2, %p65_p1 }
   0x7   : > { %s55_s18 = ssub.s32 %s3515_s15, %s4454_s17  ;;  %153 = sbr.rel (%p2789_p5) target bundleno = 144 (0x90), region = 20 }
   0x8   : > { %p56_p4 = scmp.eq.s32.totalorder %s55_s18, 0 }
   0xa   : > { %s3576_s20 = scalar_select %p56_p4, %s3507_s13, %s58_s19  }
   0xc   : > { %156 = sbr.rel (!%p67_p3) target bundleno = 144 (0x90), region = 24  ;;  %s158_s21 = sand.u32 (%p67_p3), 1, %s3507_s13  }
   0xd   : > { %s3056_s22 = sshll.u32 (%p67_p3), %s3515_s15, 4  ;;  %s2790_s23 = sshll.u32 (%p67_p3), %s158_s21, 11 }
   0xe   : > { %s3584_s26 = scalar_lea.vmem (%p67_p3), %s4446_s1, %s3056_s22  ;;  %s3589_s27 = scalar_lea.vmem (%p67_p3), [#allocation2], %s2790_s23 }
   0xf   : > { %v176_v0 = vld [vmem:[%s3584_s26] sm:$0xff] (%p67_p3)  ;;  %v178_v1 = vld [vmem:[%s3584_s26 + $0x8] sm:$0xff] (%p67_p3) }
  0x10   : > { %v180_v2 = vld [vmem:[%s3584_s26 + $0x20] sm:$0xff] (%p67_p3)  ;;  %177 = vst [vmem:[%s3589_s27] sm:$0xff] (%p67_p3), %v176_v0  ;;  %179 = vst [vmem:[%s3589_s27 + $0x8] sm:$0xff] (%p67_p3), %v178_v1  ;;  %v182_v3 = vld [vmem:[%s3584_s26 + $0x28] sm:$0xff] (%p67_p3) }
  0x11   : > { %181 = vst [vmem:[%s3589_s27 + $0x10] sm:$0xff] %v180_v2  ;;  %v184_v4 = vld [vmem:[%s3584_s26 + $0x40] sm:$0xff]  ;;  %v186_v5 = vld [vmem:[%s3584_s26 + $0x48] sm:$0xff]  ;;  %183 = vst [vmem:[%s3589_s27 + $0x18] sm:$0xff] %v182_v3 }
  0x12   : > { %185 = vst [vmem:[%s3589_s27 + $0x20] sm:$0xff] %v184_v4  ;;  %187 = vst [vmem:[%s3589_s27 + $0x28] sm:$0xff] %v186_v5  ;;  %v188_v6 = vld [vmem:[%s3584_s26 + $0x60] sm:$0xff]  ;;  %v190_v7 = vld [vmem:[%s3584_s26 + $0x68] sm:$0xff] }
  0x13   : > { %v192_v8 = vld [vmem:[%s3584_s26 + $0x80] sm:$0xff]  ;;  %189 = vst [vmem:[%s3589_s27 + $0x30] sm:$0xff] %v188_v6  ;;  %191 = vst [vmem:[%s3589_s27 + $0x38] sm:$0xff] %v190_v7  ;;  %v194_v9 = vld [vmem:[%s3584_s26 + $0x88] sm:$0xff] }
  0x14   : > { %193 = vst [vmem:[%s3589_s27 + $0x40] sm:$0xff] %v192_v8  ;;  %v196_v10 = vld [vmem:[%s3584_s26 + $0xa0] sm:$0xff]  ;;  %v198_v11 = vld [vmem:[%s3584_s26 + $0xa8] sm:$0xff]  ;;  %195 = vst [vmem:[%s3589_s27 + $0x48] sm:$0xff] %v194_v9 }
  0x15   : > { %197 = vst [vmem:[%s3589_s27 + $0x50] sm:$0xff] %v196_v10  ;;  %199 = vst [vmem:[%s3589_s27 + $0x58] sm:$0xff] %v198_v11  ;;  %v200_v12 = vld [vmem:[%s3584_s26 + $0xc0] sm:$0xff]  ;;  %v202_v13 = vld [vmem:[%s3584_s26 + $0xc8] sm:$0xff] }
  0x16   : > { %v204_v14 = vld [vmem:[%s3584_s26 + $0xe0] sm:$0xff]  ;;  %201 = vst [vmem:[%s3589_s27 + $0x60] sm:$0xff] %v200_v12  ;;  %203 = vst [vmem:[%s3589_s27 + $0x68] sm:$0xff] %v202_v13  ;;  %v206_v15 = vld [vmem:[%s3584_s26 + $0xe8] sm:$0xff] }
  0x17   : > { %205 = vst [vmem:[%s3589_s27 + $0x70] sm:$0xff] %v204_v14  ;;  %v208_v16 = vld [vmem:[%s3584_s26 + $0x100] sm:$0xff]  ;;  %v210_v17 = vld [vmem:[%s3584_s26 + $0x108] sm:$0xff]  ;;  %207 = vst [vmem:[%s3589_s27 + $0x78] sm:$0xff] %v206_v15 }
  0x18   : > { %209 = vst [vmem:[%s3589_s27 + $0x80] sm:$0xff] %v208_v16  ;;  %211 = vst [vmem:[%s3589_s27 + $0x88] sm:$0xff] %v210_v17  ;;  %v212_v18 = vld [vmem:[%s3584_s26 + $0x120] sm:$0xff]  ;;  %v214_v19 = vld [vmem:[%s3584_s26 + $0x128] sm:$0xff] }
  0x19   : > { %v216_v20 = vld [vmem:[%s3584_s26 + $0x140] sm:$0xff]  ;;  %213 = vst [vmem:[%s3589_s27 + $0x90] sm:$0xff] %v212_v18  ;;  %215 = vst [vmem:[%s3589_s27 + $0x98] sm:$0xff] %v214_v19  ;;  %v218_v21 = vld [vmem:[%s3584_s26 + $0x148] sm:$0xff] }
  0x1a   : > { %217 = vst [vmem:[%s3589_s27 + $0xa0] sm:$0xff] %v216_v20  ;;  %v220_v22 = vld [vmem:[%s3584_s26 + $0x160] sm:$0xff]  ;;  %v222_v23 = vld [vmem:[%s3584_s26 + $0x168] sm:$0xff]  ;;  %219 = vst [vmem:[%s3589_s27 + $0xa8] sm:$0xff] %v218_v21 }
  0x1b   : > { %221 = vst [vmem:[%s3589_s27 + $0xb0] sm:$0xff] %v220_v22  ;;  %223 = vst [vmem:[%s3589_s27 + $0xb8] sm:$0xff] %v222_v23  ;;  %v224_v24 = vld [vmem:[%s3584_s26 + $0x180] sm:$0xff]  ;;  %v226_v25 = vld [vmem:[%s3584_s26 + $0x188] sm:$0xff] }
  0x1c   : > { %v228_v26 = vld [vmem:[%s3584_s26 + $0x1a0] sm:$0xff]  ;;  %225 = vst [vmem:[%s3589_s27 + $0xc0] sm:$0xff] %v224_v24  ;;  %227 = vst [vmem:[%s3589_s27 + $0xc8] sm:$0xff] %v226_v25  ;;  %v230_v27 = vld [vmem:[%s3584_s26 + $0x1a8] sm:$0xff] }
  0x1d   : > { %229 = vst [vmem:[%s3589_s27 + $0xd0] sm:$0xff] %v228_v26  ;;  %v232_v28 = vld [vmem:[%s3584_s26 + $0x1c0] sm:$0xff]  ;;  %v234_v29 = vld [vmem:[%s3584_s26 + $0x1c8] sm:$0xff]  ;;  %231 = vst [vmem:[%s3589_s27 + $0xd8] sm:$0xff] %v230_v27 }
  0x1e   : > { %233 = vst [vmem:[%s3589_s27 + $0xe0] sm:$0xff] %v232_v28  ;;  %235 = vst [vmem:[%s3589_s27 + $0xe8] sm:$0xff] %v234_v29  ;;  %v236_v30 = vld [vmem:[%s3584_s26 + $0x1e0] sm:$0xff]  ;;  %v238_v31 = vld [vmem:[%s3584_s26 + $0x1e8] sm:$0xff] }
  0x1f   : > { %v240_v32 = vld [vmem:[%s3584_s26 + $0x200] sm:$0xff]  ;;  %237 = vst [vmem:[%s3589_s27 + $0xf0] sm:$0xff] %v236_v30  ;;  %239 = vst [vmem:[%s3589_s27 + $0xf8] sm:$0xff] %v238_v31  ;;  %v242_v33 = vld [vmem:[%s3584_s26 + $0x208] sm:$0xff] }
  0x20   : > { %241 = vst [vmem:[%s3589_s27 + $0x100] sm:$0xff] %v240_v32  ;;  %v244_v34 = vld [vmem:[%s3584_s26 + $0x220] sm:$0xff]  ;;  %v246_v35 = vld [vmem:[%s3584_s26 + $0x228] sm:$0xff]  ;;  %243 = vst [vmem:[%s3589_s27 + $0x108] sm:$0xff] %v242_v33 }
  0x21   : > { %245 = vst [vmem:[%s3589_s27 + $0x110] sm:$0xff] %v244_v34  ;;  %247 = vst [vmem:[%s3589_s27 + $0x118] sm:$0xff] %v246_v35  ;;  %v248_v36 = vld [vmem:[%s3584_s26 + $0x240] sm:$0xff]  ;;  %v250_v37 = vld [vmem:[%s3584_s26 + $0x248] sm:$0xff] }
  0x22   : > { %v252_v38 = vld [vmem:[%s3584_s26 + $0x260] sm:$0xff]  ;;  %249 = vst [vmem:[%s3589_s27 + $0x120] sm:$0xff] %v248_v36  ;;  %251 = vst [vmem:[%s3589_s27 + $0x128] sm:$0xff] %v250_v37  ;;  %v254_v39 = vld [vmem:[%s3584_s26 + $0x268] sm:$0xff] }
  0x23   : > { %253 = vst [vmem:[%s3589_s27 + $0x130] sm:$0xff] %v252_v38  ;;  %v256_v40 = vld [vmem:[%s3584_s26 + $0x280] sm:$0xff]  ;;  %v258_v41 = vld [vmem:[%s3584_s26 + $0x288] sm:$0xff]  ;;  %255 = vst [vmem:[%s3589_s27 + $0x138] sm:$0xff] %v254_v39 }
  0x24   : > { %257 = vst [vmem:[%s3589_s27 + $0x140] sm:$0xff] %v256_v40  ;;  %259 = vst [vmem:[%s3589_s27 + $0x148] sm:$0xff] %v258_v41  ;;  %v260_v42 = vld [vmem:[%s3584_s26 + $0x2a0] sm:$0xff]  ;;  %v262_v43 = vld [vmem:[%s3584_s26 + $0x2a8] sm:$0xff] }
  0x25   : > { %v264_v44 = vld [vmem:[%s3584_s26 + $0x2c0] sm:$0xff]  ;;  %261 = vst [vmem:[%s3589_s27 + $0x150] sm:$0xff] %v260_v42  ;;  %263 = vst [vmem:[%s3589_s27 + $0x158] sm:$0xff] %v262_v43  ;;  %v266_v45 = vld [vmem:[%s3584_s26 + $0x2c8] sm:$0xff] }
  0x26   : > { %265 = vst [vmem:[%s3589_s27 + $0x160] sm:$0xff] %v264_v44  ;;  %v268_v46 = vld [vmem:[%s3584_s26 + $0x2e0] sm:$0xff]  ;;  %v270_v47 = vld [vmem:[%s3584_s26 + $0x2e8] sm:$0xff]  ;;  %267 = vst [vmem:[%s3589_s27 + $0x168] sm:$0xff] %v266_v45 }
  0x27   : > { %269 = vst [vmem:[%s3589_s27 + $0x170] sm:$0xff] %v268_v46  ;;  %271 = vst [vmem:[%s3589_s27 + $0x178] sm:$0xff] %v270_v47  ;;  %v272_v48 = vld [vmem:[%s3584_s26 + $0x300] sm:$0xff]  ;;  %v274_v49 = vld [vmem:[%s3584_s26 + $0x308] sm:$0xff] }
  0x28   : > { %v276_v50 = vld [vmem:[%s3584_s26 + $0x320] sm:$0xff]  ;;  %273 = vst [vmem:[%s3589_s27 + $0x180] sm:$0xff] %v272_v48  ;;  %275 = vst [vmem:[%s3589_s27 + $0x188] sm:$0xff] %v274_v49  ;;  %v278_v51 = vld [vmem:[%s3584_s26 + $0x328] sm:$0xff] }
  0x29   : > { %277 = vst [vmem:[%s3589_s27 + $0x190] sm:$0xff] %v276_v50  ;;  %v280_v52 = vld [vmem:[%s3584_s26 + $0x340] sm:$0xff]  ;;  %v282_v53 = vld [vmem:[%s3584_s26 + $0x348] sm:$0xff]  ;;  %279 = vst [vmem:[%s3589_s27 + $0x198] sm:$0xff] %v278_v51 }
  0x2a   : > { %281 = vst [vmem:[%s3589_s27 + $0x1a0] sm:$0xff] %v280_v52  ;;  %283 = vst [vmem:[%s3589_s27 + $0x1a8] sm:$0xff] %v282_v53  ;;  %v284_v54 = vld [vmem:[%s3584_s26 + $0x360] sm:$0xff]  ;;  %v286_v55 = vld [vmem:[%s3584_s26 + $0x368] sm:$0xff] }
  0x2b   : > { %v288_v56 = vld [vmem:[%s3584_s26 + $0x380] sm:$0xff]  ;;  %285 = vst [vmem:[%s3589_s27 + $0x1b0] sm:$0xff] %v284_v54  ;;  %287 = vst [vmem:[%s3589_s27 + $0x1b8] sm:$0xff] %v286_v55  ;;  %v290_v57 = vld [vmem:[%s3584_s26 + $0x388] sm:$0xff] }
  0x2c   : > { %289 = vst [vmem:[%s3589_s27 + $0x1c0] sm:$0xff] %v288_v56  ;;  %v292_v58 = vld [vmem:[%s3584_s26 + $0x3a0] sm:$0xff]  ;;  %v294_v59 = vld [vmem:[%s3584_s26 + $0x3a8] sm:$0xff]  ;;  %291 = vst [vmem:[%s3589_s27 + $0x1c8] sm:$0xff] %v290_v57 }
  0x2d   : > { %293 = vst [vmem:[%s3589_s27 + $0x1d0] sm:$0xff] %v292_v58  ;;  %295 = vst [vmem:[%s3589_s27 + $0x1d8] sm:$0xff] %v294_v59  ;;  %v296_v60 = vld [vmem:[%s3584_s26 + $0x3c0] sm:$0xff]  ;;  %v298_v61 = vld [vmem:[%s3584_s26 + $0x3c8] sm:$0xff] }
  0x2e   : > { %v300_v62 = vld [vmem:[%s3584_s26 + $0x3e0] sm:$0xff]  ;;  %297 = vst [vmem:[%s3589_s27 + $0x1e0] sm:$0xff] %v296_v60  ;;  %299 = vst [vmem:[%s3589_s27 + $0x1e8] sm:$0xff] %v298_v61  ;;  %v302_v63 = vld [vmem:[%s3584_s26 + $0x3e8] sm:$0xff] }
  0x2f   : > { %301 = vst [vmem:[%s3589_s27 + $0x1f0] sm:$0xff] %v300_v62  ;;  %v304_v0 = vld [vmem:[%s3584_s26 + $0x400] sm:$0xff]  ;;  %v306_v1 = vld [vmem:[%s3584_s26 + $0x408] sm:$0xff]  ;;  %303 = vst [vmem:[%s3589_s27 + $0x1f8] sm:$0xff] %v302_v63 }
  0x30   : > { %305 = vst [vmem:[%s3589_s27 + $0x200] sm:$0xff] %v304_v0  ;;  %307 = vst [vmem:[%s3589_s27 + $0x208] sm:$0xff] %v306_v1  ;;  %v308_v2 = vld [vmem:[%s3584_s26 + $0x420] sm:$0xff]  ;;  %v310_v3 = vld [vmem:[%s3584_s26 + $0x428] sm:$0xff] }
  0x31   : > { %v312_v4 = vld [vmem:[%s3584_s26 + $0x440] sm:$0xff]  ;;  %309 = vst [vmem:[%s3589_s27 + $0x210] sm:$0xff] %v308_v2  ;;  %311 = vst [vmem:[%s3589_s27 + $0x218] sm:$0xff] %v310_v3  ;;  %v314_v5 = vld [vmem:[%s3584_s26 + $0x448] sm:$0xff] }
  0x32   : > { %313 = vst [vmem:[%s3589_s27 + $0x220] sm:$0xff] %v312_v4  ;;  %v316_v6 = vld [vmem:[%s3584_s26 + $0x460] sm:$0xff]  ;;  %v318_v7 = vld [vmem:[%s3584_s26 + $0x468] sm:$0xff]  ;;  %315 = vst [vmem:[%s3589_s27 + $0x228] sm:$0xff] %v314_v5 }
  0x33   : > { %317 = vst [vmem:[%s3589_s27 + $0x230] sm:$0xff] %v316_v6  ;;  %319 = vst [vmem:[%s3589_s27 + $0x238] sm:$0xff] %v318_v7  ;;  %v320_v8 = vld [vmem:[%s3584_s26 + $0x480] sm:$0xff]  ;;  %v322_v9 = vld [vmem:[%s3584_s26 + $0x488] sm:$0xff] }
  0x34   : > { %v324_v10 = vld [vmem:[%s3584_s26 + $0x4a0] sm:$0xff]  ;;  %321 = vst [vmem:[%s3589_s27 + $0x240] sm:$0xff] %v320_v8  ;;  %323 = vst [vmem:[%s3589_s27 + $0x248] sm:$0xff] %v322_v9  ;;  %v326_v11 = vld [vmem:[%s3584_s26 + $0x4a8] sm:$0xff] }
  0x35   : > { %325 = vst [vmem:[%s3589_s27 + $0x250] sm:$0xff] %v324_v10  ;;  %v328_v12 = vld [vmem:[%s3584_s26 + $0x4c0] sm:$0xff]  ;;  %v330_v13 = vld [vmem:[%s3584_s26 + $0x4c8] sm:$0xff]  ;;  %327 = vst [vmem:[%s3589_s27 + $0x258] sm:$0xff] %v326_v11 }
  0x36   : > { %329 = vst [vmem:[%s3589_s27 + $0x260] sm:$0xff] %v328_v12  ;;  %331 = vst [vmem:[%s3589_s27 + $0x268] sm:$0xff] %v330_v13  ;;  %v332_v14 = vld [vmem:[%s3584_s26 + $0x4e0] sm:$0xff]  ;;  %v334_v15 = vld [vmem:[%s3584_s26 + $0x4e8] sm:$0xff] }
  0x37   : > { %v336_v16 = vld [vmem:[%s3584_s26 + $0x500] sm:$0xff]  ;;  %333 = vst [vmem:[%s3589_s27 + $0x270] sm:$0xff] %v332_v14  ;;  %335 = vst [vmem:[%s3589_s27 + $0x278] sm:$0xff] %v334_v15  ;;  %v338_v17 = vld [vmem:[%s3584_s26 + $0x508] sm:$0xff] }
  0x38   : > { %337 = vst [vmem:[%s3589_s27 + $0x280] sm:$0xff] %v336_v16  ;;  %v340_v18 = vld [vmem:[%s3584_s26 + $0x520] sm:$0xff]  ;;  %v342_v19 = vld [vmem:[%s3584_s26 + $0x528] sm:$0xff]  ;;  %339 = vst [vmem:[%s3589_s27 + $0x288] sm:$0xff] %v338_v17 }
  0x39   : > { %341 = vst [vmem:[%s3589_s27 + $0x290] sm:$0xff] %v340_v18  ;;  %343 = vst [vmem:[%s3589_s27 + $0x298] sm:$0xff] %v342_v19  ;;  %v344_v20 = vld [vmem:[%s3584_s26 + $0x540] sm:$0xff]  ;;  %v346_v21 = vld [vmem:[%s3584_s26 + $0x548] sm:$0xff] }
  0x3a   : > { %v348_v22 = vld [vmem:[%s3584_s26 + $0x560] sm:$0xff]  ;;  %345 = vst [vmem:[%s3589_s27 + $0x2a0] sm:$0xff] %v344_v20  ;;  %347 = vst [vmem:[%s3589_s27 + $0x2a8] sm:$0xff] %v346_v21  ;;  %v350_v23 = vld [vmem:[%s3584_s26 + $0x568] sm:$0xff] }
  0x3b   : > { %349 = vst [vmem:[%s3589_s27 + $0x2b0] sm:$0xff] %v348_v22  ;;  %v352_v24 = vld [vmem:[%s3584_s26 + $0x580] sm:$0xff]  ;;  %v354_v25 = vld [vmem:[%s3584_s26 + $0x588] sm:$0xff]  ;;  %351 = vst [vmem:[%s3589_s27 + $0x2b8] sm:$0xff] %v350_v23 }
  0x3c   : > { %353 = vst [vmem:[%s3589_s27 + $0x2c0] sm:$0xff] %v352_v24  ;;  %355 = vst [vmem:[%s3589_s27 + $0x2c8] sm:$0xff] %v354_v25  ;;  %v356_v26 = vld [vmem:[%s3584_s26 + $0x5a0] sm:$0xff]  ;;  %v358_v27 = vld [vmem:[%s3584_s26 + $0x5a8] sm:$0xff] }
  0x3d   : > { %v360_v28 = vld [vmem:[%s3584_s26 + $0x5c0] sm:$0xff]  ;;  %357 = vst [vmem:[%s3589_s27 + $0x2d0] sm:$0xff] %v356_v26  ;;  %359 = vst [vmem:[%s3589_s27 + $0x2d8] sm:$0xff] %v358_v27  ;;  %v362_v29 = vld [vmem:[%s3584_s26 + $0x5c8] sm:$0xff] }
  0x3e   : > { %361 = vst [vmem:[%s3589_s27 + $0x2e0] sm:$0xff] %v360_v28  ;;  %v364_v30 = vld [vmem:[%s3584_s26 + $0x5e0] sm:$0xff]  ;;  %v366_v31 = vld [vmem:[%s3584_s26 + $0x5e8] sm:$0xff]  ;;  %363 = vst [vmem:[%s3589_s27 + $0x2e8] sm:$0xff] %v362_v29 }
  0x3f   : > { %365 = vst [vmem:[%s3589_s27 + $0x2f0] sm:$0xff] %v364_v30  ;;  %367 = vst [vmem:[%s3589_s27 + $0x2f8] sm:$0xff] %v366_v31  ;;  %v368_v32 = vld [vmem:[%s3584_s26 + $0x600] sm:$0xff]  ;;  %v370_v33 = vld [vmem:[%s3584_s26 + $0x608] sm:$0xff] }
  0x40   : > { %v372_v34 = vld [vmem:[%s3584_s26 + $0x620] sm:$0xff]  ;;  %369 = vst [vmem:[%s3589_s27 + $0x300] sm:$0xff] %v368_v32  ;;  %371 = vst [vmem:[%s3589_s27 + $0x308] sm:$0xff] %v370_v33  ;;  %v374_v35 = vld [vmem:[%s3584_s26 + $0x628] sm:$0xff] }
  0x41   : > { %373 = vst [vmem:[%s3589_s27 + $0x310] sm:$0xff] %v372_v34  ;;  %v376_v36 = vld [vmem:[%s3584_s26 + $0x640] sm:$0xff]  ;;  %v378_v37 = vld [vmem:[%s3584_s26 + $0x648] sm:$0xff]  ;;  %375 = vst [vmem:[%s3589_s27 + $0x318] sm:$0xff] %v374_v35 }
  0x42   : > { %377 = vst [vmem:[%s3589_s27 + $0x320] sm:$0xff] %v376_v36  ;;  %379 = vst [vmem:[%s3589_s27 + $0x328] sm:$0xff] %v378_v37  ;;  %v380_v38 = vld [vmem:[%s3584_s26 + $0x660] sm:$0xff]  ;;  %v382_v39 = vld [vmem:[%s3584_s26 + $0x668] sm:$0xff] }
  0x43   : > { %v384_v40 = vld [vmem:[%s3584_s26 + $0x680] sm:$0xff]  ;;  %381 = vst [vmem:[%s3589_s27 + $0x330] sm:$0xff] %v380_v38  ;;  %383 = vst [vmem:[%s3589_s27 + $0x338] sm:$0xff] %v382_v39  ;;  %v386_v41 = vld [vmem:[%s3584_s26 + $0x688] sm:$0xff] }
  0x44   : > { %385 = vst [vmem:[%s3589_s27 + $0x340] sm:$0xff] %v384_v40  ;;  %v388_v42 = vld [vmem:[%s3584_s26 + $0x6a0] sm:$0xff]  ;;  %v390_v43 = vld [vmem:[%s3584_s26 + $0x6a8] sm:$0xff]  ;;  %387 = vst [vmem:[%s3589_s27 + $0x348] sm:$0xff] %v386_v41 }
  0x45   : > { %389 = vst [vmem:[%s3589_s27 + $0x350] sm:$0xff] %v388_v42  ;;  %391 = vst [vmem:[%s3589_s27 + $0x358] sm:$0xff] %v390_v43  ;;  %v392_v44 = vld [vmem:[%s3584_s26 + $0x6c0] sm:$0xff]  ;;  %v394_v45 = vld [vmem:[%s3584_s26 + $0x6c8] sm:$0xff] }
  0x46   : > { %v396_v46 = vld [vmem:[%s3584_s26 + $0x6e0] sm:$0xff]  ;;  %393 = vst [vmem:[%s3589_s27 + $0x360] sm:$0xff] %v392_v44  ;;  %395 = vst [vmem:[%s3589_s27 + $0x368] sm:$0xff] %v394_v45  ;;  %v398_v47 = vld [vmem:[%s3584_s26 + $0x6e8] sm:$0xff] }
  0x47   : > { %397 = vst [vmem:[%s3589_s27 + $0x370] sm:$0xff] %v396_v46  ;;  %v400_v48 = vld [vmem:[%s3584_s26 + $0x700] sm:$0xff]  ;;  %v402_v49 = vld [vmem:[%s3584_s26 + $0x708] sm:$0xff]  ;;  %399 = vst [vmem:[%s3589_s27 + $0x378] sm:$0xff] %v398_v47 }
  0x48   : > { %401 = vst [vmem:[%s3589_s27 + $0x380] sm:$0xff] %v400_v48  ;;  %403 = vst [vmem:[%s3589_s27 + $0x388] sm:$0xff] %v402_v49  ;;  %v404_v50 = vld [vmem:[%s3584_s26 + $0x720] sm:$0xff]  ;;  %v406_v51 = vld [vmem:[%s3584_s26 + $0x728] sm:$0xff] }
  0x49   : > { %v408_v52 = vld [vmem:[%s3584_s26 + $0x740] sm:$0xff]  ;;  %405 = vst [vmem:[%s3589_s27 + $0x390] sm:$0xff] %v404_v50  ;;  %407 = vst [vmem:[%s3589_s27 + $0x398] sm:$0xff] %v406_v51  ;;  %v410_v53 = vld [vmem:[%s3584_s26 + $0x748] sm:$0xff] }
  0x4a   : > { %409 = vst [vmem:[%s3589_s27 + $0x3a0] sm:$0xff] %v408_v52  ;;  %v412_v54 = vld [vmem:[%s3584_s26 + $0x760] sm:$0xff]  ;;  %v414_v55 = vld [vmem:[%s3584_s26 + $0x768] sm:$0xff]  ;;  %411 = vst [vmem:[%s3589_s27 + $0x3a8] sm:$0xff] %v410_v53 }
  0x4b   : > { %413 = vst [vmem:[%s3589_s27 + $0x3b0] sm:$0xff] %v412_v54  ;;  %415 = vst [vmem:[%s3589_s27 + $0x3b8] sm:$0xff] %v414_v55  ;;  %v416_v56 = vld [vmem:[%s3584_s26 + $0x780] sm:$0xff]  ;;  %v418_v57 = vld [vmem:[%s3584_s26 + $0x788] sm:$0xff] }
  0x4c   : > { %v420_v58 = vld [vmem:[%s3584_s26 + $0x7a0] sm:$0xff]  ;;  %417 = vst [vmem:[%s3589_s27 + $0x3c0] sm:$0xff] %v416_v56  ;;  %419 = vst [vmem:[%s3589_s27 + $0x3c8] sm:$0xff] %v418_v57  ;;  %v422_v59 = vld [vmem:[%s3584_s26 + $0x7a8] sm:$0xff] }
  0x4d   : > { %421 = vst [vmem:[%s3589_s27 + $0x3d0] sm:$0xff] %v420_v58  ;;  %v424_v60 = vld [vmem:[%s3584_s26 + $0x7c0] sm:$0xff]  ;;  %v426_v61 = vld [vmem:[%s3584_s26 + $0x7c8] sm:$0xff]  ;;  %423 = vst [vmem:[%s3589_s27 + $0x3d8] sm:$0xff] %v422_v59 }
  0x4e   : > { %425 = vst [vmem:[%s3589_s27 + $0x3e0] sm:$0xff] %v424_v60  ;;  %427 = vst [vmem:[%s3589_s27 + $0x3e8] sm:$0xff] %v426_v61  ;;  %v428_v62 = vld [vmem:[%s3584_s26 + $0x7e0] sm:$0xff]  ;;  %v430_v63 = vld [vmem:[%s3584_s26 + $0x7e8] sm:$0xff] }
  0x4f   : > { %v432_v0 = vld [vmem:[%s3584_s26 + $0x800] sm:$0xff]  ;;  %429 = vst [vmem:[%s3589_s27 + $0x3f0] sm:$0xff] %v428_v62  ;;  %431 = vst [vmem:[%s3589_s27 + $0x3f8] sm:$0xff] %v430_v63  ;;  %v434_v1 = vld [vmem:[%s3584_s26 + $0x808] sm:$0xff] }
  0x50   : > { %433 = vst [vmem:[%s3589_s27 + $0x400] sm:$0xff] %v432_v0  ;;  %v436_v2 = vld [vmem:[%s3584_s26 + $0x820] sm:$0xff]  ;;  %v438_v3 = vld [vmem:[%s3584_s26 + $0x828] sm:$0xff]  ;;  %435 = vst [vmem:[%s3589_s27 + $0x408] sm:$0xff] %v434_v1 }
  0x51   : > { %437 = vst [vmem:[%s3589_s27 + $0x410] sm:$0xff] %v436_v2  ;;  %439 = vst [vmem:[%s3589_s27 + $0x418] sm:$0xff] %v438_v3  ;;  %v440_v4 = vld [vmem:[%s3584_s26 + $0x840] sm:$0xff]  ;;  %v442_v5 = vld [vmem:[%s3584_s26 + $0x848] sm:$0xff] }
  0x52   : > { %v444_v6 = vld [vmem:[%s3584_s26 + $0x860] sm:$0xff]  ;;  %441 = vst [vmem:[%s3589_s27 + $0x420] sm:$0xff] %v440_v4  ;;  %443 = vst [vmem:[%s3589_s27 + $0x428] sm:$0xff] %v442_v5  ;;  %v446_v7 = vld [vmem:[%s3584_s26 + $0x868] sm:$0xff] }
  0x53   : > { %445 = vst [vmem:[%s3589_s27 + $0x430] sm:$0xff] %v444_v6  ;;  %v448_v8 = vld [vmem:[%s3584_s26 + $0x880] sm:$0xff]  ;;  %v450_v9 = vld [vmem:[%s3584_s26 + $0x888] sm:$0xff]  ;;  %447 = vst [vmem:[%s3589_s27 + $0x438] sm:$0xff] %v446_v7 }
  0x54   : > { %449 = vst [vmem:[%s3589_s27 + $0x440] sm:$0xff] %v448_v8  ;;  %451 = vst [vmem:[%s3589_s27 + $0x448] sm:$0xff] %v450_v9  ;;  %v452_v10 = vld [vmem:[%s3584_s26 + $0x8a0] sm:$0xff]  ;;  %v454_v11 = vld [vmem:[%s3584_s26 + $0x8a8] sm:$0xff] }
  0x55   : > { %v456_v12 = vld [vmem:[%s3584_s26 + $0x8c0] sm:$0xff]  ;;  %453 = vst [vmem:[%s3589_s27 + $0x450] sm:$0xff] %v452_v10  ;;  %455 = vst [vmem:[%s3589_s27 + $0x458] sm:$0xff] %v454_v11  ;;  %v458_v13 = vld [vmem:[%s3584_s26 + $0x8c8] sm:$0xff] }
  0x56   : > { %457 = vst [vmem:[%s3589_s27 + $0x460] sm:$0xff] %v456_v12  ;;  %v460_v14 = vld [vmem:[%s3584_s26 + $0x8e0] sm:$0xff]  ;;  %v462_v15 = vld [vmem:[%s3584_s26 + $0x8e8] sm:$0xff]  ;;  %459 = vst [vmem:[%s3589_s27 + $0x468] sm:$0xff] %v458_v13 }
  0x57   : > { %461 = vst [vmem:[%s3589_s27 + $0x470] sm:$0xff] %v460_v14  ;;  %463 = vst [vmem:[%s3589_s27 + $0x478] sm:$0xff] %v462_v15  ;;  %v464_v16 = vld [vmem:[%s3584_s26 + $0x900] sm:$0xff]  ;;  %v466_v17 = vld [vmem:[%s3584_s26 + $0x908] sm:$0xff] }
  0x58   : > { %v468_v18 = vld [vmem:[%s3584_s26 + $0x920] sm:$0xff]  ;;  %465 = vst [vmem:[%s3589_s27 + $0x480] sm:$0xff] %v464_v16  ;;  %467 = vst [vmem:[%s3589_s27 + $0x488] sm:$0xff] %v466_v17  ;;  %v470_v19 = vld [vmem:[%s3584_s26 + $0x928] sm:$0xff] }
  0x59   : > { %469 = vst [vmem:[%s3589_s27 + $0x490] sm:$0xff] %v468_v18  ;;  %v472_v20 = vld [vmem:[%s3584_s26 + $0x940] sm:$0xff]  ;;  %v474_v21 = vld [vmem:[%s3584_s26 + $0x948] sm:$0xff]  ;;  %471 = vst [vmem:[%s3589_s27 + $0x498] sm:$0xff] %v470_v19 }
  0x5a   : > { %473 = vst [vmem:[%s3589_s27 + $0x4a0] sm:$0xff] %v472_v20  ;;  %475 = vst [vmem:[%s3589_s27 + $0x4a8] sm:$0xff] %v474_v21  ;;  %v476_v22 = vld [vmem:[%s3584_s26 + $0x960] sm:$0xff]  ;;  %v478_v23 = vld [vmem:[%s3584_s26 + $0x968] sm:$0xff] }
  0x5b   : > { %v480_v24 = vld [vmem:[%s3584_s26 + $0x980] sm:$0xff]  ;;  %477 = vst [vmem:[%s3589_s27 + $0x4b0] sm:$0xff] %v476_v22  ;;  %479 = vst [vmem:[%s3589_s27 + $0x4b8] sm:$0xff] %v478_v23  ;;  %v482_v25 = vld [vmem:[%s3584_s26 + $0x988] sm:$0xff] }
  0x5c   : > { %481 = vst [vmem:[%s3589_s27 + $0x4c0] sm:$0xff] %v480_v24  ;;  %v484_v26 = vld [vmem:[%s3584_s26 + $0x9a0] sm:$0xff]  ;;  %v486_v27 = vld [vmem:[%s3584_s26 + $0x9a8] sm:$0xff]  ;;  %483 = vst [vmem:[%s3589_s27 + $0x4c8] sm:$0xff] %v482_v25 }
  0x5d   : > { %485 = vst [vmem:[%s3589_s27 + $0x4d0] sm:$0xff] %v484_v26  ;;  %487 = vst [vmem:[%s3589_s27 + $0x4d8] sm:$0xff] %v486_v27  ;;  %v488_v28 = vld [vmem:[%s3584_s26 + $0x9c0] sm:$0xff]  ;;  %v490_v29 = vld [vmem:[%s3584_s26 + $0x9c8] sm:$0xff] }
  0x5e   : > { %v492_v30 = vld [vmem:[%s3584_s26 + $0x9e0] sm:$0xff]  ;;  %489 = vst [vmem:[%s3589_s27 + $0x4e0] sm:$0xff] %v488_v28  ;;  %491 = vst [vmem:[%s3589_s27 + $0x4e8] sm:$0xff] %v490_v29  ;;  %v494_v31 = vld [vmem:[%s3584_s26 + $0x9e8] sm:$0xff] }
  0x5f   : > { %493 = vst [vmem:[%s3589_s27 + $0x4f0] sm:$0xff] %v492_v30  ;;  %v496_v32 = vld [vmem:[%s3584_s26 + $0xa00] sm:$0xff]  ;;  %v498_v33 = vld [vmem:[%s3584_s26 + $0xa08] sm:$0xff]  ;;  %495 = vst [vmem:[%s3589_s27 + $0x4f8] sm:$0xff] %v494_v31 }
  0x60   : > { %497 = vst [vmem:[%s3589_s27 + $0x500] sm:$0xff] %v496_v32  ;;  %499 = vst [vmem:[%s3589_s27 + $0x508] sm:$0xff] %v498_v33  ;;  %v500_v34 = vld [vmem:[%s3584_s26 + $0xa20] sm:$0xff]  ;;  %v502_v35 = vld [vmem:[%s3584_s26 + $0xa28] sm:$0xff] }
  0x61   : > { %v504_v36 = vld [vmem:[%s3584_s26 + $0xa40] sm:$0xff]  ;;  %501 = vst [vmem:[%s3589_s27 + $0x510] sm:$0xff] %v500_v34  ;;  %503 = vst [vmem:[%s3589_s27 + $0x518] sm:$0xff] %v502_v35  ;;  %v506_v37 = vld [vmem:[%s3584_s26 + $0xa48] sm:$0xff] }
  0x62   : > { %505 = vst [vmem:[%s3589_s27 + $0x520] sm:$0xff] %v504_v36  ;;  %v508_v38 = vld [vmem:[%s3584_s26 + $0xa60] sm:$0xff]  ;;  %v510_v39 = vld [vmem:[%s3584_s26 + $0xa68] sm:$0xff]  ;;  %507 = vst [vmem:[%s3589_s27 + $0x528] sm:$0xff] %v506_v37 }
  0x63   : > { %509 = vst [vmem:[%s3589_s27 + $0x530] sm:$0xff] %v508_v38  ;;  %511 = vst [vmem:[%s3589_s27 + $0x538] sm:$0xff] %v510_v39  ;;  %v512_v40 = vld [vmem:[%s3584_s26 + $0xa80] sm:$0xff]  ;;  %v514_v41 = vld [vmem:[%s3584_s26 + $0xa88] sm:$0xff] }
  0x64   : > { %v516_v42 = vld [vmem:[%s3584_s26 + $0xaa0] sm:$0xff]  ;;  %513 = vst [vmem:[%s3589_s27 + $0x540] sm:$0xff] %v512_v40  ;;  %515 = vst [vmem:[%s3589_s27 + $0x548] sm:$0xff] %v514_v41  ;;  %v518_v43 = vld [vmem:[%s3584_s26 + $0xaa8] sm:$0xff] }
  0x65   : > { %517 = vst [vmem:[%s3589_s27 + $0x550] sm:$0xff] %v516_v42  ;;  %v520_v44 = vld [vmem:[%s3584_s26 + $0xac0] sm:$0xff]  ;;  %v522_v45 = vld [vmem:[%s3584_s26 + $0xac8] sm:$0xff]  ;;  %519 = vst [vmem:[%s3589_s27 + $0x558] sm:$0xff] %v518_v43 }
  0x66   : > { %521 = vst [vmem:[%s3589_s27 + $0x560] sm:$0xff] %v520_v44  ;;  %523 = vst [vmem:[%s3589_s27 + $0x568] sm:$0xff] %v522_v45  ;;  %v524_v46 = vld [vmem:[%s3584_s26 + $0xae0] sm:$0xff]  ;;  %v526_v47 = vld [vmem:[%s3584_s26 + $0xae8] sm:$0xff] }
  0x67   : > { %v528_v48 = vld [vmem:[%s3584_s26 + $0xb00] sm:$0xff]  ;;  %525 = vst [vmem:[%s3589_s27 + $0x570] sm:$0xff] %v524_v46  ;;  %527 = vst [vmem:[%s3589_s27 + $0x578] sm:$0xff] %v526_v47  ;;  %v530_v49 = vld [vmem:[%s3584_s26 + $0xb08] sm:$0xff] }
  0x68   : > { %529 = vst [vmem:[%s3589_s27 + $0x580] sm:$0xff] %v528_v48  ;;  %v532_v50 = vld [vmem:[%s3584_s26 + $0xb20] sm:$0xff]  ;;  %v534_v51 = vld [vmem:[%s3584_s26 + $0xb28] sm:$0xff]  ;;  %531 = vst [vmem:[%s3589_s27 + $0x588] sm:$0xff] %v530_v49 }
  0x69   : > { %533 = vst [vmem:[%s3589_s27 + $0x590] sm:$0xff] %v532_v50  ;;  %535 = vst [vmem:[%s3589_s27 + $0x598] sm:$0xff] %v534_v51  ;;  %v536_v52 = vld [vmem:[%s3584_s26 + $0xb40] sm:$0xff]  ;;  %v538_v53 = vld [vmem:[%s3584_s26 + $0xb48] sm:$0xff] }
  0x6a   : > { %v540_v54 = vld [vmem:[%s3584_s26 + $0xb60] sm:$0xff]  ;;  %537 = vst [vmem:[%s3589_s27 + $0x5a0] sm:$0xff] %v536_v52  ;;  %539 = vst [vmem:[%s3589_s27 + $0x5a8] sm:$0xff] %v538_v53  ;;  %v542_v55 = vld [vmem:[%s3584_s26 + $0xb68] sm:$0xff] }
  0x6b   : > { %541 = vst [vmem:[%s3589_s27 + $0x5b0] sm:$0xff] %v540_v54  ;;  %v544_v56 = vld [vmem:[%s3584_s26 + $0xb80] sm:$0xff]  ;;  %v546_v57 = vld [vmem:[%s3584_s26 + $0xb88] sm:$0xff]  ;;  %543 = vst [vmem:[%s3589_s27 + $0x5b8] sm:$0xff] %v542_v55 }
  0x6c   : > { %545 = vst [vmem:[%s3589_s27 + $0x5c0] sm:$0xff] %v544_v56  ;;  %547 = vst [vmem:[%s3589_s27 + $0x5c8] sm:$0xff] %v546_v57  ;;  %v548_v58 = vld [vmem:[%s3584_s26 + $0xba0] sm:$0xff]  ;;  %v550_v59 = vld [vmem:[%s3584_s26 + $0xba8] sm:$0xff] }
  0x6d   : > { %v552_v60 = vld [vmem:[%s3584_s26 + $0xbc0] sm:$0xff]  ;;  %549 = vst [vmem:[%s3589_s27 + $0x5d0] sm:$0xff] %v548_v58  ;;  %551 = vst [vmem:[%s3589_s27 + $0x5d8] sm:$0xff] %v550_v59  ;;  %v554_v61 = vld [vmem:[%s3584_s26 + $0xbc8] sm:$0xff] }
  0x6e   : > { %553 = vst [vmem:[%s3589_s27 + $0x5e0] sm:$0xff] %v552_v60  ;;  %v556_v62 = vld [vmem:[%s3584_s26 + $0xbe0] sm:$0xff]  ;;  %v558_v63 = vld [vmem:[%s3584_s26 + $0xbe8] sm:$0xff]  ;;  %555 = vst [vmem:[%s3589_s27 + $0x5e8] sm:$0xff] %v554_v61 }
  0x6f   : > { %557 = vst [vmem:[%s3589_s27 + $0x5f0] sm:$0xff] %v556_v62  ;;  %559 = vst [vmem:[%s3589_s27 + $0x5f8] sm:$0xff] %v558_v63  ;;  %v560_v0 = vld [vmem:[%s3584_s26 + $0xc00] sm:$0xff]  ;;  %v562_v1 = vld [vmem:[%s3584_s26 + $0xc08] sm:$0xff] }
  0x70   : > { %v564_v2 = vld [vmem:[%s3584_s26 + $0xc20] sm:$0xff]  ;;  %561 = vst [vmem:[%s3589_s27 + $0x600] sm:$0xff] %v560_v0  ;;  %563 = vst [vmem:[%s3589_s27 + $0x608] sm:$0xff] %v562_v1  ;;  %v566_v3 = vld [vmem:[%s3584_s26 + $0xc28] sm:$0xff] }
  0x71   : > { %565 = vst [vmem:[%s3589_s27 + $0x610] sm:$0xff] %v564_v2  ;;  %v568_v4 = vld [vmem:[%s3584_s26 + $0xc40] sm:$0xff]  ;;  %v570_v5 = vld [vmem:[%s3584_s26 + $0xc48] sm:$0xff]  ;;  %567 = vst [vmem:[%s3589_s27 + $0x618] sm:$0xff] %v566_v3 }
  0x72   : > { %569 = vst [vmem:[%s3589_s27 + $0x620] sm:$0xff] %v568_v4  ;;  %571 = vst [vmem:[%s3589_s27 + $0x628] sm:$0xff] %v570_v5  ;;  %v572_v6 = vld [vmem:[%s3584_s26 + $0xc60] sm:$0xff]  ;;  %v574_v7 = vld [vmem:[%s3584_s26 + $0xc68] sm:$0xff] }
  0x73   : > { %v576_v8 = vld [vmem:[%s3584_s26 + $0xc80] sm:$0xff]  ;;  %573 = vst [vmem:[%s3589_s27 + $0x630] sm:$0xff] %v572_v6  ;;  %575 = vst [vmem:[%s3589_s27 + $0x638] sm:$0xff] %v574_v7  ;;  %v578_v9 = vld [vmem:[%s3584_s26 + $0xc88] sm:$0xff] }
  0x74   : > { %577 = vst [vmem:[%s3589_s27 + $0x640] sm:$0xff] %v576_v8  ;;  %v580_v10 = vld [vmem:[%s3584_s26 + $0xca0] sm:$0xff]  ;;  %v582_v11 = vld [vmem:[%s3584_s26 + $0xca8] sm:$0xff]  ;;  %579 = vst [vmem:[%s3589_s27 + $0x648] sm:$0xff] %v578_v9 }
  0x75   : > { %581 = vst [vmem:[%s3589_s27 + $0x650] sm:$0xff] %v580_v10  ;;  %583 = vst [vmem:[%s3589_s27 + $0x658] sm:$0xff] %v582_v11  ;;  %v584_v12 = vld [vmem:[%s3584_s26 + $0xcc0] sm:$0xff]  ;;  %v586_v13 = vld [vmem:[%s3584_s26 + $0xcc8] sm:$0xff] }
  0x76   : > { %v588_v14 = vld [vmem:[%s3584_s26 + $0xce0] sm:$0xff]  ;;  %585 = vst [vmem:[%s3589_s27 + $0x660] sm:$0xff] %v584_v12  ;;  %587 = vst [vmem:[%s3589_s27 + $0x668] sm:$0xff] %v586_v13  ;;  %v590_v15 = vld [vmem:[%s3584_s26 + $0xce8] sm:$0xff] }
  0x77   : > { %589 = vst [vmem:[%s3589_s27 + $0x670] sm:$0xff] %v588_v14  ;;  %v592_v16 = vld [vmem:[%s3584_s26 + $0xd00] sm:$0xff]  ;;  %v594_v17 = vld [vmem:[%s3584_s26 + $0xd08] sm:$0xff]  ;;  %591 = vst [vmem:[%s3589_s27 + $0x678] sm:$0xff] %v590_v15 }
  0x78   : > { %593 = vst [vmem:[%s3589_s27 + $0x680] sm:$0xff] %v592_v16  ;;  %595 = vst [vmem:[%s3589_s27 + $0x688] sm:$0xff] %v594_v17  ;;  %v596_v18 = vld [vmem:[%s3584_s26 + $0xd20] sm:$0xff]  ;;  %v598_v19 = vld [vmem:[%s3584_s26 + $0xd28] sm:$0xff] }
  0x79   : > { %v600_v20 = vld [vmem:[%s3584_s26 + $0xd40] sm:$0xff]  ;;  %597 = vst [vmem:[%s3589_s27 + $0x690] sm:$0xff] %v596_v18  ;;  %599 = vst [vmem:[%s3589_s27 + $0x698] sm:$0xff] %v598_v19  ;;  %v602_v21 = vld [vmem:[%s3584_s26 + $0xd48] sm:$0xff] }
  0x7a   : > { %601 = vst [vmem:[%s3589_s27 + $0x6a0] sm:$0xff] %v600_v20  ;;  %v604_v22 = vld [vmem:[%s3584_s26 + $0xd60] sm:$0xff]  ;;  %v606_v23 = vld [vmem:[%s3584_s26 + $0xd68] sm:$0xff]  ;;  %603 = vst [vmem:[%s3589_s27 + $0x6a8] sm:$0xff] %v602_v21 }
  0x7b   : > { %605 = vst [vmem:[%s3589_s27 + $0x6b0] sm:$0xff] %v604_v22  ;;  %607 = vst [vmem:[%s3589_s27 + $0x6b8] sm:$0xff] %v606_v23  ;;  %v608_v24 = vld [vmem:[%s3584_s26 + $0xd80] sm:$0xff]  ;;  %v610_v25 = vld [vmem:[%s3584_s26 + $0xd88] sm:$0xff] }
  0x7c   : > { %v612_v26 = vld [vmem:[%s3584_s26 + $0xda0] sm:$0xff]  ;;  %609 = vst [vmem:[%s3589_s27 + $0x6c0] sm:$0xff] %v608_v24  ;;  %611 = vst [vmem:[%s3589_s27 + $0x6c8] sm:$0xff] %v610_v25  ;;  %v614_v27 = vld [vmem:[%s3584_s26 + $0xda8] sm:$0xff] }
  0x7d   : > { %613 = vst [vmem:[%s3589_s27 + $0x6d0] sm:$0xff] %v612_v26  ;;  %v616_v28 = vld [vmem:[%s3584_s26 + $0xdc0] sm:$0xff]  ;;  %v618_v29 = vld [vmem:[%s3584_s26 + $0xdc8] sm:$0xff]  ;;  %615 = vst [vmem:[%s3589_s27 + $0x6d8] sm:$0xff] %v614_v27 }
  0x7e   : > { %617 = vst [vmem:[%s3589_s27 + $0x6e0] sm:$0xff] %v616_v28  ;;  %619 = vst [vmem:[%s3589_s27 + $0x6e8] sm:$0xff] %v618_v29  ;;  %v620_v30 = vld [vmem:[%s3584_s26 + $0xde0] sm:$0xff]  ;;  %v622_v31 = vld [vmem:[%s3584_s26 + $0xde8] sm:$0xff] }
  0x7f   : > { %v624_v32 = vld [vmem:[%s3584_s26 + $0xe00] sm:$0xff]  ;;  %621 = vst [vmem:[%s3589_s27 + $0x6f0] sm:$0xff] %v620_v30  ;;  %623 = vst [vmem:[%s3589_s27 + $0x6f8] sm:$0xff] %v622_v31  ;;  %v626_v33 = vld [vmem:[%s3584_s26 + $0xe08] sm:$0xff] }
  0x80   : > { %625 = vst [vmem:[%s3589_s27 + $0x700] sm:$0xff] %v624_v32  ;;  %v628_v34 = vld [vmem:[%s3584_s26 + $0xe20] sm:$0xff]  ;;  %v630_v35 = vld [vmem:[%s3584_s26 + $0xe28] sm:$0xff]  ;;  %627 = vst [vmem:[%s3589_s27 + $0x708] sm:$0xff] %v626_v33 }
  0x81   : > { %629 = vst [vmem:[%s3589_s27 + $0x710] sm:$0xff] %v628_v34  ;;  %631 = vst [vmem:[%s3589_s27 + $0x718] sm:$0xff] %v630_v35  ;;  %v632_v36 = vld [vmem:[%s3584_s26 + $0xe40] sm:$0xff]  ;;  %v634_v37 = vld [vmem:[%s3584_s26 + $0xe48] sm:$0xff] }
  0x82   : > { %v636_v38 = vld [vmem:[%s3584_s26 + $0xe60] sm:$0xff]  ;;  %633 = vst [vmem:[%s3589_s27 + $0x720] sm:$0xff] %v632_v36  ;;  %635 = vst [vmem:[%s3589_s27 + $0x728] sm:$0xff] %v634_v37  ;;  %v638_v39 = vld [vmem:[%s3584_s26 + $0xe68] sm:$0xff] }
  0x83   : > { %637 = vst [vmem:[%s3589_s27 + $0x730] sm:$0xff] %v636_v38  ;;  %v640_v40 = vld [vmem:[%s3584_s26 + $0xe80] sm:$0xff]  ;;  %v642_v41 = vld [vmem:[%s3584_s26 + $0xe88] sm:$0xff]  ;;  %639 = vst [vmem:[%s3589_s27 + $0x738] sm:$0xff] %v638_v39 }
  0x84   : > { %641 = vst [vmem:[%s3589_s27 + $0x740] sm:$0xff] %v640_v40  ;;  %643 = vst [vmem:[%s3589_s27 + $0x748] sm:$0xff] %v642_v41  ;;  %v644_v42 = vld [vmem:[%s3584_s26 + $0xea0] sm:$0xff]  ;;  %v646_v43 = vld [vmem:[%s3584_s26 + $0xea8] sm:$0xff] }
  0x85   : > { %v648_v44 = vld [vmem:[%s3584_s26 + $0xec0] sm:$0xff]  ;;  %645 = vst [vmem:[%s3589_s27 + $0x750] sm:$0xff] %v644_v42  ;;  %647 = vst [vmem:[%s3589_s27 + $0x758] sm:$0xff] %v646_v43  ;;  %v650_v45 = vld [vmem:[%s3584_s26 + $0xec8] sm:$0xff] }
  0x86   : > { %649 = vst [vmem:[%s3589_s27 + $0x760] sm:$0xff] %v648_v44  ;;  %v652_v46 = vld [vmem:[%s3584_s26 + $0xee0] sm:$0xff]  ;;  %v654_v47 = vld [vmem:[%s3584_s26 + $0xee8] sm:$0xff]  ;;  %651 = vst [vmem:[%s3589_s27 + $0x768] sm:$0xff] %v650_v45 }
  0x87   : > { %653 = vst [vmem:[%s3589_s27 + $0x770] sm:$0xff] %v652_v46  ;;  %655 = vst [vmem:[%s3589_s27 + $0x778] sm:$0xff] %v654_v47  ;;  %v656_v48 = vld [vmem:[%s3584_s26 + $0xf00] sm:$0xff]  ;;  %v658_v49 = vld [vmem:[%s3584_s26 + $0xf08] sm:$0xff] }
  0x88   : > { %v660_v50 = vld [vmem:[%s3584_s26 + $0xf20] sm:$0xff]  ;;  %657 = vst [vmem:[%s3589_s27 + $0x780] sm:$0xff] %v656_v48  ;;  %659 = vst [vmem:[%s3589_s27 + $0x788] sm:$0xff] %v658_v49  ;;  %v662_v51 = vld [vmem:[%s3584_s26 + $0xf28] sm:$0xff] }
  0x89   : > { %661 = vst [vmem:[%s3589_s27 + $0x790] sm:$0xff] %v660_v50  ;;  %v664_v52 = vld [vmem:[%s3584_s26 + $0xf40] sm:$0xff]  ;;  %v666_v53 = vld [vmem:[%s3584_s26 + $0xf48] sm:$0xff]  ;;  %663 = vst [vmem:[%s3589_s27 + $0x798] sm:$0xff] %v662_v51 }
  0x8a   : > { %665 = vst [vmem:[%s3589_s27 + $0x7a0] sm:$0xff] %v664_v52  ;;  %667 = vst [vmem:[%s3589_s27 + $0x7a8] sm:$0xff] %v666_v53  ;;  %v668_v54 = vld [vmem:[%s3584_s26 + $0xf60] sm:$0xff]  ;;  %v670_v55 = vld [vmem:[%s3584_s26 + $0xf68] sm:$0xff] }
  0x8b   : > { %v672_v56 = vld [vmem:[%s3584_s26 + $0xf80] sm:$0xff]  ;;  %669 = vst [vmem:[%s3589_s27 + $0x7b0] sm:$0xff] %v668_v54  ;;  %671 = vst [vmem:[%s3589_s27 + $0x7b8] sm:$0xff] %v670_v55  ;;  %v674_v57 = vld [vmem:[%s3584_s26 + $0xf88] sm:$0xff] }
  0x8c   : > { %673 = vst [vmem:[%s3589_s27 + $0x7c0] sm:$0xff] %v672_v56  ;;  %v676_v58 = vld [vmem:[%s3584_s26 + $0xfa0] sm:$0xff]  ;;  %v678_v59 = vld [vmem:[%s3584_s26 + $0xfa8] sm:$0xff]  ;;  %675 = vst [vmem:[%s3589_s27 + $0x7c8] sm:$0xff] %v674_v57 }
  0x8d   : > { %677 = vst [vmem:[%s3589_s27 + $0x7d0] sm:$0xff] %v676_v58  ;;  %679 = vst [vmem:[%s3589_s27 + $0x7d8] sm:$0xff] %v678_v59  ;;  %v680_v60 = vld [vmem:[%s3584_s26 + $0xfc0] sm:$0xff]  ;;  %v682_v61 = vld [vmem:[%s3584_s26 + $0xfc8] sm:$0xff] }
  0x8e   : > { %v684_v62 = vld [vmem:[%s3584_s26 + $0xfe0] sm:$0xff]  ;;  %681 = vst [vmem:[%s3589_s27 + $0x7e0] sm:$0xff] %v680_v60  ;;  %683 = vst [vmem:[%s3589_s27 + $0x7e8] sm:$0xff] %v682_v61  ;;  %v686_v63 = vld [vmem:[%s3584_s26 + $0xfe8] sm:$0xff] }
  0x8f   : > { %685 = vst [vmem:[%s3589_s27 + $0x7f0] sm:$0xff] %v684_v62  ;;  %687 = vst [vmem:[%s3589_s27 + $0x7f8] sm:$0xff] %v686_v63 }
  0x90 PF: > { %p2793_p6 = scmp.ge.s32.totalorder %s3519_s16, 1  ;;  %p700_p7 = scmp.lt.s32.totalorder %s3519_s16, 3 }
  0x92   : > { %p701_p8 = pnand %p2793_p6, %p700_p7 }
  0x93   : > { %s707_s28 = sand.u32 (!%p701_p8), 1, %s3503_s12   ;;  %s2795_s26 = sshll.u32 (!%p701_p8), %s3511_s14, 2 }
  0x94   : > { %704 = sbr.rel (%p701_p8) target bundleno = 612 (0x264), region = 51  ;;  %s2794_s6 = sshll.u32 (!%p701_p8), %s707_s28, 11 }
  0x95   : > { %s4113_s7 = scalar_lea.vmem (!%p701_p8), [#allocation2], %s2794_s6  ;;  %p750_p9 = scmp.lt.s32.totalorder (!%p701_p8), %s2795_s26, 7 }
  0x99   : > { %v765_v0 = vld [vmem:[%s4445_s0 + $0x8] sm:$0xff]  ;;  %v767_v1 = vld [vmem:[%s4445_s0 + $0x18] sm:$0xff]  ;;  %v3097_v4 = vld [vmem:[%s4113_s7 + $0xe4] ss:$16 sps:$4 sm:$0xff]   ;;  %s4456_s26 = smov (!%p750_p9, %s2795_s26), 7 }
  0x9a   : > { %v4109_v2 = vpack.c.bf16 %v765_v0, %v765_v0  ;;  %v4111_v3 = vpack.c.bf16 %v767_v1, %v767_v1  ;;  %v3099_v5 = vld [vmem:[%s4113_s7 + $0x2e4] ss:$16 sps:$4 sm:$0xff]   ;;  %2338 = vmatprep.subr.bf16.mxu0 %v3097_v4  ;;  %v3101_v6 = vld [vmem:[%s4113_s7 + $0xe0] ss:$16 sps:$4 sm:$0xff]   ;;  %s752_s29 = scalar_lea.vmem %s4447_s2, %s4456_s26  ;;  %s2797_s14 = sshll.u32 %s4456_s26, 3 }
  0x9b   : > { %v3102_v7 = vld [vmem:[%s4113_s7 + $0x2e0] ss:$16 sps:$4 sm:$0xff]   ;;  %2379 = vmatprep.subr.bf16.mxu1 %v3099_v5  ;;  %v3103_v8 = vld [vmem:[%s4113_s7 + $0xc4] ss:$16 sps:$4 sm:$0xff]   ;;  %2339 = vmatpush1.bf16.msra.mxu0 %v3101_v6  ;;  %s4424_s5 = scalar_lea.vmem %s4448_s3, %s2797_s14 }
  0x9c   : > { %2370 = vmatprep.mubr.bf16.mxu0 %v4109_v2  ;;  %2411 = vmatprep.mubr.bf16.mxu1 %v4111_v3  ;;  %v3105_v9 = vld [vmem:[%s4113_s7 + $0x2c4] ss:$16 sps:$4 sm:$0xff]   ;;  %v3107_v10 = vld [vmem:[%s4113_s7 + $0xc0] ss:$16 sps:$4 sm:$0xff]  }
  0x9d   : > { %2380 = vmatpush1.bf16.msra.mxu1 %v3102_v7  ;;  %2340 = vmatprep.subr.bf16.mxu0 %v3103_v8  ;;  %v3108_v11 = vld [vmem:[%s4113_s7 + $0x2c0] ss:$16 sps:$4 sm:$0xff]   ;;  %v3109_v12 = vld [vmem:[%s4113_s7 + $0xa4] ss:$16 sps:$4 sm:$0xff]  }
  0x9e   : > { %2381 = vmatprep.subr.bf16.mxu1 %v3105_v9  ;;  %v3111_v13 = vld [vmem:[%s4113_s7 + $0x2a4] ss:$16 sps:$4 sm:$0xff]   ;;  %v3113_v14 = vld [vmem:[%s4113_s7 + $0xa0] ss:$16 sps:$4 sm:$0xff]  }
  0x9f   : > { %v3114_v15 = vld [vmem:[%s4113_s7 + $0x2a0] ss:$16 sps:$4 sm:$0xff]   ;;  %2341 = vmatpush1.bf16.msra.mxu0 %v3107_v10  ;;  %v3115_v16 = vld [vmem:[%s4113_s7 + $0x84] ss:$16 sps:$4 sm:$0xff]   ;;  %v769_v10 = vld [vmem:[%s4445_s0 + $0x28] sm:$0xff] }
  0xa0   : > { %2342 = vmatprep.subr.bf16.mxu0 %v3109_v12  ;;  %v3117_v17 = vld [vmem:[%s4113_s7 + $0x284] ss:$16 sps:$4 sm:$0xff]   ;;  %v3119_v18 = vld [vmem:[%s4113_s7 + $0x80] ss:$16 sps:$4 sm:$0xff]  }
  0xa1   : > { %2382 = vmatpush1.bf16.msra.mxu1 %v3108_v11  ;;  %v3120_v19 = vld [vmem:[%s4113_s7 + $0x280] ss:$16 sps:$4 sm:$0xff]   ;;  %v3121_v20 = vld [vmem:[%s4113_s7 + $0x64] ss:$16 sps:$4 sm:$0xff]   ;;  %v771_v11 = vld [vmem:[%s4445_s0 + $0x38] sm:$0xff] }
  0xa2   : > { %2383 = vmatprep.subr.bf16.mxu1 %v3111_v13  ;;  %v3123_v21 = vld [vmem:[%s4113_s7 + $0x264] ss:$16 sps:$4 sm:$0xff]   ;;  %v3125_v22 = vld [vmem:[%s4113_s7 + $0x60] ss:$16 sps:$4 sm:$0xff]  }
  0xa3   : > { %2343 = vmatpush1.bf16.msra.mxu0 %v3113_v14  ;;  %v3126_v23 = vld [vmem:[%s4113_s7 + $0x260] ss:$16 sps:$4 sm:$0xff]   ;;  %v3127_v24 = vld [vmem:[%s4113_s7 + $0x44] ss:$16 sps:$4 sm:$0xff]  }
  0xa4   : > { %2344 = vmatprep.subr.bf16.mxu0 %v3115_v16  ;;  %v3129_v25 = vld [vmem:[%s4113_s7 + $0x244] ss:$16 sps:$4 sm:$0xff]   ;;  %v3131_v26 = vld [vmem:[%s4113_s7 + $0x40] ss:$16 sps:$4 sm:$0xff]  }
  0xa5   : > { %2384 = vmatpush1.bf16.msra.mxu1 %v3114_v15  ;;  %v3132_v27 = vld [vmem:[%s4113_s7 + $0x240] ss:$16 sps:$4 sm:$0xff]   ;;  %v3133_v28 = vld [vmem:[%s4113_s7 + $0x24] ss:$16 sps:$4 sm:$0xff]  }
  0xa6   : > { %2385 = vmatprep.subr.bf16.mxu1 %v3117_v17  ;;  %v3135_v29 = vld [vmem:[%s4113_s7 + $0x224] ss:$16 sps:$4 sm:$0xff]   ;;  %v3137_v30 = vld [vmem:[%s4113_s7 + $0x20] ss:$16 sps:$4 sm:$0xff]  }
  0xa7   : > { %2345 = vmatpush1.bf16.msra.mxu0 %v3119_v18  ;;  %v3138_v31 = vld [vmem:[%s4113_s7 + $0x220] ss:$16 sps:$4 sm:$0xff]   ;;  %v3139_v32 = vld [vmem:[%s4113_s7 + $0x4] ss:$16 sps:$4 sm:$0xff]   ;;  %v4203_v18 = vpack.c.bf16 %v769_v10, %v769_v10 }
  0xa8   : > { %2346 = vmatprep.subr.bf16.mxu0 %v3121_v20  ;;  %v3141_v33 = vld [vmem:[%s4113_s7 + $0x204] ss:$16 sps:$4 sm:$0xff]   ;;  %v3143_v34 = vld [vmem:[%s4113_s7] ss:$16 sps:$4 sm:$0xff]  }
  0xa9   : > { %2386 = vmatpush1.bf16.msra.mxu1 %v3120_v19  ;;  %v3144_v35 = vld [vmem:[%s4113_s7 + $0x200] ss:$16 sps:$4 sm:$0xff]   ;;  %v3145_v36 = vld [vmem:[%s4113_s7 + $0x1e4] ss:$16 sps:$4 sm:$0xff]   ;;  %v4205_v19 = vpack.c.bf16 %v771_v11, %v771_v11 }
  0xaa   : > { %2387 = vmatprep.subr.bf16.mxu1 %v3123_v21  ;;  %v3147_v37 = vld [vmem:[%s4113_s7 + $0x3e4] ss:$16 sps:$4 sm:$0xff]   ;;  %v3149_v38 = vld [vmem:[%s4113_s7 + $0x1e0] ss:$16 sps:$4 sm:$0xff]  }
  0xab   : > { %2347 = vmatpush1.bf16.msra.mxu0 %v3125_v22  ;;  %v3150_v39 = vld [vmem:[%s4113_s7 + $0x3e0] ss:$16 sps:$4 sm:$0xff]   ;;  %v3151_v40 = vld [vmem:[%s4113_s7 + $0x1c4] ss:$16 sps:$4 sm:$0xff]  }
  0xac   : > { %2348 = vmatprep.subr.bf16.mxu0 %v3127_v24  ;;  %v3153_v41 = vld [vmem:[%s4113_s7 + $0x3c4] ss:$16 sps:$4 sm:$0xff]   ;;  %v3155_v42 = vld [vmem:[%s4113_s7 + $0x1c0] ss:$16 sps:$4 sm:$0xff]  }
  0xad   : > { %2388 = vmatpush1.bf16.msra.mxu1 %v3126_v23  ;;  %v3156_v43 = vld [vmem:[%s4113_s7 + $0x3c0] ss:$16 sps:$4 sm:$0xff]   ;;  %v3157_v44 = vld [vmem:[%s4113_s7 + $0x1a4] ss:$16 sps:$4 sm:$0xff]  }
  0xae   : > { %2389 = vmatprep.subr.bf16.mxu1 %v3129_v25  ;;  %v3159_v45 = vld [vmem:[%s4113_s7 + $0x3a4] ss:$16 sps:$4 sm:$0xff]   ;;  %v3161_v46 = vld [vmem:[%s4113_s7 + $0x1a0] ss:$16 sps:$4 sm:$0xff]  }
  0xaf   : > { %2349 = vmatpush1.bf16.msra.mxu0 %v3131_v26  ;;  %v3162_v47 = vld [vmem:[%s4113_s7 + $0x3a0] ss:$16 sps:$4 sm:$0xff]   ;;  %v3163_v48 = vld [vmem:[%s4113_s7 + $0x184] ss:$16 sps:$4 sm:$0xff]  }
  0xb0   : > { %2350 = vmatprep.subr.bf16.mxu0 %v3133_v28  ;;  %v3165_v49 = vld [vmem:[%s4113_s7 + $0x384] ss:$16 sps:$4 sm:$0xff]   ;;  %v3167_v50 = vld [vmem:[%s4113_s7 + $0x180] ss:$16 sps:$4 sm:$0xff]  }
  0xb1   : > { %2390 = vmatpush1.bf16.msra.mxu1 %v3132_v27  ;;  %v3168_v51 = vld [vmem:[%s4113_s7 + $0x380] ss:$16 sps:$4 sm:$0xff]   ;;  %v3169_v52 = vld [vmem:[%s4113_s7 + $0x164] ss:$16 sps:$4 sm:$0xff]  }
  0xb2   : > { %2391 = vmatprep.subr.bf16.mxu1 %v3135_v29  ;;  %v3171_v53 = vld [vmem:[%s4113_s7 + $0x364] ss:$16 sps:$4 sm:$0xff]   ;;  %v3173_v54 = vld [vmem:[%s4113_s7 + $0x160] ss:$16 sps:$4 sm:$0xff]  }
  0xb3   : > { %2351 = vmatpush1.bf16.msra.mxu0 %v3137_v30  ;;  %v3174_v55 = vld [vmem:[%s4113_s7 + $0x360] ss:$16 sps:$4 sm:$0xff]   ;;  %v3175_v56 = vld [vmem:[%s4113_s7 + $0x144] ss:$16 sps:$4 sm:$0xff]  }
  0xb4   : > { %2352 = vmatprep.subr.bf16.mxu0 %v3139_v32  ;;  %v3177_v57 = vld [vmem:[%s4113_s7 + $0x344] ss:$16 sps:$4 sm:$0xff]   ;;  %v3179_v58 = vld [vmem:[%s4113_s7 + $0x140] ss:$16 sps:$4 sm:$0xff]  }
  0xb5   : > { %2392 = vmatpush1.bf16.msra.mxu1 %v3138_v31  ;;  %v3180_v59 = vld [vmem:[%s4113_s7 + $0x340] ss:$16 sps:$4 sm:$0xff]   ;;  %v3181_v60 = vld [vmem:[%s4113_s7 + $0x124] ss:$16 sps:$4 sm:$0xff]  }
  0xb6   : > { %2393 = vmatprep.subr.bf16.mxu1 %v3141_v33  ;;  %v3183_v61 = vld [vmem:[%s4113_s7 + $0x324] ss:$16 sps:$4 sm:$0xff]   ;;  %v3185_v62 = vld [vmem:[%s4113_s7 + $0x120] ss:$16 sps:$4 sm:$0xff]  }
  0xb7   : > { %2353 = vmatpush1.bf16.msra.mxu0 %v3143_v34  ;;  %v3186_v63 = vld [vmem:[%s4113_s7 + $0x320] ss:$16 sps:$4 sm:$0xff]   ;;  %v3187_v0 = vld [vmem:[%s4113_s7 + $0x104] ss:$16 sps:$4 sm:$0xff]  }
  0xb8   : > { %2354 = vmatprep.subr.bf16.mxu0 %v3145_v36  ;;  %v3189_v1 = vld [vmem:[%s4113_s7 + $0x304] ss:$16 sps:$4 sm:$0xff]   ;;  %v3191_v6 = vld [vmem:[%s4113_s7 + $0x100] ss:$16 sps:$4 sm:$0xff]  }
  0xb9   : > { %2394 = vmatpush1.bf16.msra.mxu1 %v3144_v35  ;;  %v764_v4 = vld [vmem:[%s4445_s0] sm:$0xff]  ;;  %v766_v5 = vld [vmem:[%s4445_s0 + $0x10] sm:$0xff] }
  0xba   : > { %2395 = vmatprep.subr.bf16.mxu1 %v3147_v37  ;;  %v3192_v7 = vld [vmem:[%s4113_s7 + $0x300] ss:$16 sps:$4 sm:$0xff]   ;;  %v3195_v8 = vld [vmem:[%s4113_s7 + $0x4e4] ss:$16 sps:$4 sm:$0xff]   ;;  %v4195_v12 = vpack.c.bf16 %v764_v4, %v764_v4  ;;  %v4197_v13 = vpack.c.bf16 %v766_v5, %v766_v5 }
  0xbb   : > { %2355 = vmatpush2.bf16.msra.mxu0 %v3149_v38  ;;  %v3198_v9 = vld [vmem:[%s4113_s7 + $0x6e4] ss:$16 sps:$4 sm:$0xff]   ;;  %v3193_v14 = vld [vmem:[%s4113_s7 + $0x4e0] ss:$16 sps:$4 sm:$0xff]  }
  0xbc   : > { %2356 = vmatprep.subr.bf16.mxu0 %v3151_v40  ;;  %v3196_v15 = vld [vmem:[%s4113_s7 + $0x6e0] ss:$16 sps:$4 sm:$0xff]   ;;  %v3201_v16 = vld [vmem:[%s4113_s7 + $0x4c4] ss:$16 sps:$4 sm:$0xff]  }
  0xbd   : > { %2396 = vmatpush2.bf16.msra.mxu1 %v3150_v39  ;;  %v3204_v17 = vld [vmem:[%s4113_s7 + $0x6c4] ss:$16 sps:$4 sm:$0xff]   ;;  %v3199_v20 = vld [vmem:[%s4113_s7 + $0x4c0] ss:$16 sps:$4 sm:$0xff]  }
  0xbe   : > { %2397 = vmatprep.subr.bf16.mxu1 %v3153_v41  ;;  %v3202_v21 = vld [vmem:[%s4113_s7 + $0x6c0] ss:$16 sps:$4 sm:$0xff]   ;;  %v3207_v22 = vld [vmem:[%s4113_s7 + $0x4a4] ss:$16 sps:$4 sm:$0xff]  }
  0xbf   : > { %2357 = vmatpush2.bf16.msra.mxu0 %v3155_v42  ;;  %v3210_v23 = vld [vmem:[%s4113_s7 + $0x6a4] ss:$16 sps:$4 sm:$0xff]   ;;  %v3205_v24 = vld [vmem:[%s4113_s7 + $0x4a0] ss:$16 sps:$4 sm:$0xff]  }
  0xc0   : > { %2358 = vmatprep.subr.bf16.mxu0 %v3157_v44  ;;  %v3208_v25 = vld [vmem:[%s4113_s7 + $0x6a0] ss:$16 sps:$4 sm:$0xff]   ;;  %v3213_v26 = vld [vmem:[%s4113_s7 + $0x484] ss:$16 sps:$4 sm:$0xff]  }
  0xc1   : > { %2398 = vmatpush2.bf16.msra.mxu1 %v3156_v43  ;;  %v3216_v27 = vld [vmem:[%s4113_s7 + $0x684] ss:$16 sps:$4 sm:$0xff]   ;;  %v3211_v28 = vld [vmem:[%s4113_s7 + $0x480] ss:$16 sps:$4 sm:$0xff]  }
  0xc2   : > { %2399 = vmatprep.subr.bf16.mxu1 %v3159_v45  ;;  %v3214_v29 = vld [vmem:[%s4113_s7 + $0x680] ss:$16 sps:$4 sm:$0xff]   ;;  %v3219_v30 = vld [vmem:[%s4113_s7 + $0x464] ss:$16 sps:$4 sm:$0xff]  }
  0xc3   : > { %2359 = vmatpush2.bf16.msra.mxu0 %v3161_v46  ;;  %v3222_v31 = vld [vmem:[%s4113_s7 + $0x664] ss:$16 sps:$4 sm:$0xff]   ;;  %v3217_v32 = vld [vmem:[%s4113_s7 + $0x460] ss:$16 sps:$4 sm:$0xff]  }
  0xc4   : > { %2360 = vmatprep.subr.bf16.mxu0 %v3163_v48  ;;  %v3220_v33 = vld [vmem:[%s4113_s7 + $0x660] ss:$16 sps:$4 sm:$0xff]   ;;  %v3225_v34 = vld [vmem:[%s4113_s7 + $0x444] ss:$16 sps:$4 sm:$0xff]  }
  0xc5   : > { %2400 = vmatpush2.bf16.msra.mxu1 %v3162_v47  ;;  %v3228_v35 = vld [vmem:[%s4113_s7 + $0x644] ss:$16 sps:$4 sm:$0xff]   ;;  %v3223_v36 = vld [vmem:[%s4113_s7 + $0x440] ss:$16 sps:$4 sm:$0xff]  }
  0xc6   : > { %2401 = vmatprep.subr.bf16.mxu1 %v3165_v49  ;;  %v3226_v37 = vld [vmem:[%s4113_s7 + $0x640] ss:$16 sps:$4 sm:$0xff]   ;;  %v3231_v38 = vld [vmem:[%s4113_s7 + $0x424] ss:$16 sps:$4 sm:$0xff]  }
  0xc7   : > { %2361 = vmatpush2.bf16.msra.mxu0 %v3167_v50  ;;  %v3234_v39 = vld [vmem:[%s4113_s7 + $0x624] ss:$16 sps:$4 sm:$0xff]   ;;  %v3229_v40 = vld [vmem:[%s4113_s7 + $0x420] ss:$16 sps:$4 sm:$0xff]  }
  0xc8   : > { %2362 = vmatprep.subr.bf16.mxu0 %v3169_v52  ;;  %v3232_v41 = vld [vmem:[%s4113_s7 + $0x620] ss:$16 sps:$4 sm:$0xff]   ;;  %v3237_v42 = vld [vmem:[%s4113_s7 + $0x404] ss:$16 sps:$4 sm:$0xff]  }
  0xc9   : > { %2402 = vmatpush2.bf16.msra.mxu1 %v3168_v51  ;;  %v3240_v43 = vld [vmem:[%s4113_s7 + $0x604] ss:$16 sps:$4 sm:$0xff]   ;;  %v3235_v44 = vld [vmem:[%s4113_s7 + $0x400] ss:$16 sps:$4 sm:$0xff]  }
  0xca   : > { %2403 = vmatprep.subr.bf16.mxu1 %v3171_v53  ;;  %v3238_v45 = vld [vmem:[%s4113_s7 + $0x600] ss:$16 sps:$4 sm:$0xff]   ;;  %v3243_v46 = vld [vmem:[%s4113_s7 + $0x5e4] ss:$16 sps:$4 sm:$0xff]  }
  0xcb   : > { %2363 = vmatpush2.bf16.msra.mxu0 %v3173_v54  ;;  %v3246_v47 = vld [vmem:[%s4113_s7 + $0x7e4] ss:$16 sps:$4 sm:$0xff]   ;;  %v3241_v48 = vld [vmem:[%s4113_s7 + $0x5e0] ss:$16 sps:$4 sm:$0xff]  }
  0xcc   : > { %2364 = vmatprep.subr.bf16.mxu0 %v3175_v56  ;;  %v3244_v49 = vld [vmem:[%s4113_s7 + $0x7e0] ss:$16 sps:$4 sm:$0xff]   ;;  %v3249_v50 = vld [vmem:[%s4113_s7 + $0x5c4] ss:$16 sps:$4 sm:$0xff]  }
  0xcd   : > { %2404 = vmatpush2.bf16.msra.mxu1 %v3174_v55  ;;  %v3252_v51 = vld [vmem:[%s4113_s7 + $0x7c4] ss:$16 sps:$4 sm:$0xff]   ;;  %v3247_v52 = vld [vmem:[%s4113_s7 + $0x5c0] ss:$16 sps:$4 sm:$0xff]  }
  0xce   : > { %2405 = vmatprep.subr.bf16.mxu1 %v3177_v57  ;;  %v3250_v53 = vld [vmem:[%s4113_s7 + $0x7c0] ss:$16 sps:$4 sm:$0xff]   ;;  %v3255_v54 = vld [vmem:[%s4113_s7 + $0x5a4] ss:$16 sps:$4 sm:$0xff]  }
  0xcf   : > { %2365 = vmatpush2.bf16.msra.mxu0 %v3179_v58  ;;  %v3258_v55 = vld [vmem:[%s4113_s7 + $0x7a4] ss:$16 sps:$4 sm:$0xff]   ;;  %v3253_v56 = vld [vmem:[%s4113_s7 + $0x5a0] ss:$16 sps:$4 sm:$0xff]  }
  0xd0   : > { %2366 = vmatprep.subr.bf16.mxu0 %v3181_v60  ;;  %v3256_v57 = vld [vmem:[%s4113_s7 + $0x7a0] ss:$16 sps:$4 sm:$0xff]   ;;  %v3261_v58 = vld [vmem:[%s4113_s7 + $0x584] ss:$16 sps:$4 sm:$0xff]  }
  0xd1   : > { %2406 = vmatpush2.bf16.msra.mxu1 %v3180_v59  ;;  %v3264_v59 = vld [vmem:[%s4113_s7 + $0x784] ss:$16 sps:$4 sm:$0xff]   ;;  %v3259_v60 = vld [vmem:[%s4113_s7 + $0x580] ss:$16 sps:$4 sm:$0xff]  }
  0xd2   : > { %2407 = vmatprep.subr.bf16.mxu1 %v3183_v61  ;;  %v3262_v61 = vld [vmem:[%s4113_s7 + $0x780] ss:$16 sps:$4 sm:$0xff]   ;;  %v3273_v4 = vld [vmem:[%s4113_s7 + $0x544] ss:$16 sps:$4 sm:$0xff]  }
  0xd3   : > { %2367 = vmatpush2.bf16.msra.mxu0 %v3185_v62  ;;  %v3267_v62 = vld [vmem:[%s4113_s7 + $0x564] ss:$16 sps:$4 sm:$0xff]   ;;  %v3277_v10 = vld [vmem:[%s4113_s7 + $0x520] ss:$16 sps:$4 sm:$0xff]  }
  0xd4   : > { %2368 = vmatprep.subr.bf16.mxu0 %v3187_v0  ;;  %v3265_v0 = vld [vmem:[%s4113_s7 + $0x560] ss:$16 sps:$4 sm:$0xff]   ;;  %v3276_v5 = vld [vmem:[%s4113_s7 + $0x744] ss:$16 sps:$4 sm:$0xff]  }
  0xd5   : > { %2408 = vmatpush2.bf16.msra.mxu1 %v3186_v63  ;;  %v3270_v63 = vld [vmem:[%s4113_s7 + $0x764] ss:$16 sps:$4 sm:$0xff]   ;;  %v3280_v11 = vld [vmem:[%s4113_s7 + $0x720] ss:$16 sps:$4 sm:$0xff]  }
  0xd6   : > { %2409 = vmatprep.subr.bf16.mxu1 %v3189_v1  ;;  %v3268_v1 = vld [vmem:[%s4113_s7 + $0x760] ss:$16 sps:$4 sm:$0xff]  }
  0xd7   : > { %2369 = vmatpush2.bf16.msra.mxu0 %v3191_v6  ;;  %v3271_v6 = vld [vmem:[%s4113_s7 + $0x540] ss:$16 sps:$4 sm:$0xff]  }
  0xd8   : > { %2420 = vmatprep.subr.bf16.mxu0 %v3195_v8  ;;  %v3279_v8 = vld [vmem:[%s4113_s7 + $0x524] ss:$16 sps:$4 sm:$0xff]  }
  0xd9   : > { %2410 = vmatpush2.bf16.msra.mxu1 %v3192_v7  ;;  %v3274_v7 = vld [vmem:[%s4113_s7 + $0x740] ss:$16 sps:$4 sm:$0xff]  }
  0xda   : > { %2461 = vmatprep.subr.bf16.mxu1 %v3198_v9  ;;  %2371 = vmatmul.mubr.bf16.vlgmr.msra.gmra.mxu0 %v4195_v12  ;;  %v3282_v9 = vld [vmem:[%s4113_s7 + $0x724] ss:$16 sps:$4 sm:$0xff]  }
  0xdb   : > { %2421 = vmatpush1.bf16.msra.mxu0 %v3193_v14  ;;  %2452 = vmatprep.mubr.bf16.mxu0 %v4203_v18  ;;  %v3285_v14 = vld [vmem:[%s4113_s7 + $0x504] ss:$16 sps:$4 sm:$0xff]  }
  0xdc   : > { %2412 = vmatmul.mubr.bf16.vlgmr.msra.gmra.mxu1 %v4197_v13  ;;  %2422 = vmatprep.subr.bf16.mxu0 %v3201_v16  ;;  %v3283_v16 = vld [vmem:[%s4113_s7 + $0x500] ss:$16 sps:$4 sm:$0xff]  }
  0xdd   : > { %2462 = vmatpush1.bf16.msra.mxu1 %v3196_v15  ;;  %2493 = vmatprep.mubr.bf16.mxu1 %v4205_v19  ;;  %v3288_v15 = vld [vmem:[%s4113_s7 + $0x704] ss:$16 sps:$4 sm:$0xff]  }
  0xde   : > { %2463 = vmatprep.subr.bf16.mxu1 %v3204_v17  ;;  %v3286_v17 = vld [vmem:[%s4113_s7 + $0x700] ss:$16 sps:$4 sm:$0xff]  }
  0xdf   : > { %2423 = vmatpush1.bf16.msra.mxu0 %v3199_v20  ;;  %v768_v20 = vld [vmem:[%s4445_s0 + $0x20] sm:$0xff] }
  0xe0   : > { %2424 = vmatprep.subr.bf16.mxu0 %v3207_v22  ;;  %v3291_v22 = vld [vmem:[%s4113_s7 + $0xec] ss:$16 sps:$4 sm:$0xff]  }
  0xe1   : > { %2464 = vmatpush1.bf16.msra.mxu1 %v3202_v21  ;;  %v770_v21 = vld [vmem:[%s4445_s0 + $0x30] sm:$0xff] }
  0xe2   : > { %2465 = vmatprep.subr.bf16.mxu1 %v3210_v23  ;;  %v3294_v23 = vld [vmem:[%s4113_s7 + $0x2ec] ss:$16 sps:$4 sm:$0xff]  }
  0xe3   : > { %2425 = vmatpush1.bf16.msra.mxu0 %v3205_v24  ;;  %v4277_v24 = vpack.c.bf16 %v768_v20, %v768_v20  ;;  %v3375_v20 = vld [vmem:[%s4113_s7 + $0x12c] ss:$16 sps:$4 sm:$0xff]  }
  0xe4   : > { %2426 = vmatprep.subr.bf16.mxu0 %v3213_v26  ;;  %v3289_v26 = vld [vmem:[%s4113_s7 + $0xe8] ss:$16 sps:$4 sm:$0xff]  }
  0xe5   : > { %2466 = vmatpush1.bf16.msra.mxu1 %v3208_v25  ;;  %v4279_v25 = vpack.c.bf16 %v770_v21, %v770_v21  ;;  %v3378_v21 = vld [vmem:[%s4113_s7 + $0x32c] ss:$16 sps:$4 sm:$0xff]  }
  0xe6   : > { %2467 = vmatprep.subr.bf16.mxu1 %v3216_v27  ;;  %v3292_v27 = vld [vmem:[%s4113_s7 + $0x2e8] ss:$16 sps:$4 sm:$0xff]  }
  0xe7   : > { %2427 = vmatpush1.bf16.msra.mxu0 %v3211_v28  ;;  %v3297_v28 = vld [vmem:[%s4113_s7 + $0xcc] ss:$16 sps:$4 sm:$0xff]  }
  0xe8   : > { %2428 = vmatprep.subr.bf16.mxu0 %v3219_v30  ;;  %v3295_v30 = vld [vmem:[%s4113_s7 + $0xc8] ss:$16 sps:$4 sm:$0xff]  }
  0xe9   : > { %2468 = vmatpush1.bf16.msra.mxu1 %v3214_v29  ;;  %v3300_v29 = vld [vmem:[%s4113_s7 + $0x2cc] ss:$16 sps:$4 sm:$0xff]  }
  0xea   : > { %2469 = vmatprep.subr.bf16.mxu1 %v3222_v31  ;;  %v3298_v31 = vld [vmem:[%s4113_s7 + $0x2c8] ss:$16 sps:$4 sm:$0xff]  }
  0xeb   : > { %2429 = vmatpush1.bf16.msra.mxu0 %v3217_v32  ;;  %v3303_v32 = vld [vmem:[%s4113_s7 + $0xac] ss:$16 sps:$4 sm:$0xff]  }
  0xec   : > { %2430 = vmatprep.subr.bf16.mxu0 %v3225_v34  ;;  %v3301_v34 = vld [vmem:[%s4113_s7 + $0xa8] ss:$16 sps:$4 sm:$0xff]  }
  0xed   : > { %2470 = vmatpush1.bf16.msra.mxu1 %v3220_v33  ;;  %v3306_v33 = vld [vmem:[%s4113_s7 + $0x2ac] ss:$16 sps:$4 sm:$0xff]  }
  0xee   : > { %2471 = vmatprep.subr.bf16.mxu1 %v3228_v35  ;;  %v3304_v35 = vld [vmem:[%s4113_s7 + $0x2a8] ss:$16 sps:$4 sm:$0xff]  }
  0xef   : > { %2431 = vmatpush1.bf16.msra.mxu0 %v3223_v36  ;;  %v3309_v36 = vld [vmem:[%s4113_s7 + $0x8c] ss:$16 sps:$4 sm:$0xff]  }
  0xf0   : > { %2432 = vmatprep.subr.bf16.mxu0 %v3231_v38  ;;  %v3307_v38 = vld [vmem:[%s4113_s7 + $0x88] ss:$16 sps:$4 sm:$0xff]  }
  0xf1   : > { %2472 = vmatpush1.bf16.msra.mxu1 %v3226_v37  ;;  %v3312_v37 = vld [vmem:[%s4113_s7 + $0x28c] ss:$16 sps:$4 sm:$0xff]  }
  0xf2   : > { %2473 = vmatprep.subr.bf16.mxu1 %v3234_v39  ;;  %v3318_v39 = vld [vmem:[%s4113_s7 + $0x26c] ss:$16 sps:$4 sm:$0xff]  }
  0xf3   : > { %2433 = vmatpush1.bf16.msra.mxu0 %v3229_v40  ;;  %v3313_v40 = vld [vmem:[%s4113_s7 + $0x68] ss:$16 sps:$4 sm:$0xff]  }
  0xf4   : > { %2434 = vmatprep.subr.bf16.mxu0 %v3237_v42  ;;  %v3321_v42 = vld [vmem:[%s4113_s7 + $0x4c] ss:$16 sps:$4 sm:$0xff]  }
  0xf5   : > { %2474 = vmatpush1.bf16.msra.mxu1 %v3232_v41  ;;  %v3316_v41 = vld [vmem:[%s4113_s7 + $0x268] ss:$16 sps:$4 sm:$0xff]  }
  0xf6   : > { %2475 = vmatprep.subr.bf16.mxu1 %v3240_v43  ;;  %v3324_v43 = vld [vmem:[%s4113_s7 + $0x24c] ss:$16 sps:$4 sm:$0xff]  }
  0xf7   : > { %2435 = vmatpush1.bf16.msra.mxu0 %v3235_v44  ;;  %v3319_v44 = vld [vmem:[%s4113_s7 + $0x48] ss:$16 sps:$4 sm:$0xff]  }
  0xf8   : > { %2436 = vmatprep.subr.bf16.mxu0 %v3243_v46  ;;  %v3327_v46 = vld [vmem:[%s4113_s7 + $0x2c] ss:$16 sps:$4 sm:$0xff]  }
  0xf9   : > { %2476 = vmatpush1.bf16.msra.mxu1 %v3238_v45  ;;  %v3322_v45 = vld [vmem:[%s4113_s7 + $0x248] ss:$16 sps:$4 sm:$0xff]  }
  0xfa   : > { %2477 = vmatprep.subr.bf16.mxu1 %v3246_v47  ;;  %v3330_v47 = vld [vmem:[%s4113_s7 + $0x22c] ss:$16 sps:$4 sm:$0xff]  }
  0xfb   : > { %2437 = vmatpush2.bf16.msra.mxu0 %v3241_v48  ;;  %v3325_v48 = vld [vmem:[%s4113_s7 + $0x28] ss:$16 sps:$4 sm:$0xff]  }
  0xfc   : > { %2438 = vmatprep.subr.bf16.mxu0 %v3249_v50  ;;  %v3333_v50 = vld [vmem:[%s4113_s7 + $0xc] ss:$16 sps:$4 sm:$0xff]  }
  0xfd   : > { %2478 = vmatpush2.bf16.msra.mxu1 %v3244_v49  ;;  %v3328_v49 = vld [vmem:[%s4113_s7 + $0x228] ss:$16 sps:$4 sm:$0xff]  }
  0xfe   : > { %2479 = vmatprep.subr.bf16.mxu1 %v3252_v51  ;;  %v3336_v51 = vld [vmem:[%s4113_s7 + $0x20c] ss:$16 sps:$4 sm:$0xff]  }
  0xff   : > { %2439 = vmatpush2.bf16.msra.mxu0 %v3247_v52  ;;  %v3331_v52 = vld [vmem:[%s4113_s7 + $0x8] ss:$16 sps:$4 sm:$0xff]  }
 0x100   : > { %2440 = vmatprep.subr.bf16.mxu0 %v3255_v54  ;;  %v3339_v54 = vld [vmem:[%s4113_s7 + $0x1ec] ss:$16 sps:$4 sm:$0xff]  }
 0x101   : > { %2480 = vmatpush2.bf16.msra.mxu1 %v3250_v53  ;;  %v3334_v53 = vld [vmem:[%s4113_s7 + $0x208] ss:$16 sps:$4 sm:$0xff]  }
 0x102   : > { %2481 = vmatprep.subr.bf16.mxu1 %v3258_v55  ;;  %v3342_v55 = vld [vmem:[%s4113_s7 + $0x3ec] ss:$16 sps:$4 sm:$0xff]  }
 0x103   : > { %2441 = vmatpush2.bf16.msra.mxu0 %v3253_v56  ;;  %v3337_v56 = vld [vmem:[%s4113_s7 + $0x1e8] ss:$16 sps:$4 sm:$0xff]  }
 0x104   : > { %2442 = vmatprep.subr.bf16.mxu0 %v3261_v58  ;;  %v3345_v58 = vld [vmem:[%s4113_s7 + $0x1cc] ss:$16 sps:$4 sm:$0xff]  }
 0x105   : > { %2482 = vmatpush2.bf16.msra.mxu1 %v3256_v57  ;;  %v3340_v57 = vld [vmem:[%s4113_s7 + $0x3e8] ss:$16 sps:$4 sm:$0xff]  }
 0x106   : > { %2483 = vmatprep.subr.bf16.mxu1 %v3264_v59  ;;  %v3348_v59 = vld [vmem:[%s4113_s7 + $0x3cc] ss:$16 sps:$4 sm:$0xff]  }
 0x107   : > { %2443 = vmatpush2.bf16.msra.mxu0 %v3259_v60  ;;  %v3343_v60 = vld [vmem:[%s4113_s7 + $0x1c8] ss:$16 sps:$4 sm:$0xff]  }
 0x108   : > { %2444 = vmatprep.subr.bf16.mxu0 %v3267_v62  ;;  %v3351_v62 = vld [vmem:[%s4113_s7 + $0x1ac] ss:$16 sps:$4 sm:$0xff]  }
 0x109   : > { %2484 = vmatpush2.bf16.msra.mxu1 %v3262_v61  ;;  %v3346_v61 = vld [vmem:[%s4113_s7 + $0x3c8] ss:$16 sps:$4 sm:$0xff]  }
 0x10a   : > { %2485 = vmatprep.subr.bf16.mxu1 %v3270_v63  ;;  %v3354_v63 = vld [vmem:[%s4113_s7 + $0x3ac] ss:$16 sps:$4 sm:$0xff]  }
 0x10b   : > { %2445 = vmatpush2.bf16.msra.mxu0 %v3265_v0  ;;  %v3349_v0 = vld [vmem:[%s4113_s7 + $0x1a8] ss:$16 sps:$4 sm:$0xff]  }
 0x10c   : > { %2446 = vmatprep.subr.bf16.mxu0 %v3273_v4  ;;  %v3357_v4 = vld [vmem:[%s4113_s7 + $0x18c] ss:$16 sps:$4 sm:$0xff]  }
 0x10d   : > { %2486 = vmatpush2.bf16.msra.mxu1 %v3268_v1  ;;  %v3352_v1 = vld [vmem:[%s4113_s7 + $0x3a8] ss:$16 sps:$4 sm:$0xff]  }
 0x10e   : > { %2487 = vmatprep.subr.bf16.mxu1 %v3276_v5  ;;  %v3360_v5 = vld [vmem:[%s4113_s7 + $0x38c] ss:$16 sps:$4 sm:$0xff]  }
 0x10f   : > { %2447 = vmatpush2.bf16.msra.mxu0 %v3271_v6  ;;  %v3355_v6 = vld [vmem:[%s4113_s7 + $0x188] ss:$16 sps:$4 sm:$0xff]  }
 0x110   : > { %2448 = vmatprep.subr.bf16.mxu0 %v3279_v8  ;;  %v3363_v8 = vld [vmem:[%s4113_s7 + $0x16c] ss:$16 sps:$4 sm:$0xff]  }
 0x111   : > { %2488 = vmatpush2.bf16.msra.mxu1 %v3274_v7  ;;  %v3358_v7 = vld [vmem:[%s4113_s7 + $0x388] ss:$16 sps:$4 sm:$0xff]  }
 0x112   : > { %2489 = vmatprep.subr.bf16.mxu1 %v3282_v9  ;;  %v3366_v9 = vld [vmem:[%s4113_s7 + $0x36c] ss:$16 sps:$4 sm:$0xff]  }
 0x113   : > { %2449 = vmatpush2.bf16.msra.mxu0 %v3277_v10  ;;  %v3361_v10 = vld [vmem:[%s4113_s7 + $0x168] ss:$16 sps:$4 sm:$0xff]  }
 0x114   : > { %2450 = vmatprep.subr.bf16.mxu0 %v3285_v14  ;;  %v3369_v14 = vld [vmem:[%s4113_s7 + $0x14c] ss:$16 sps:$4 sm:$0xff]  }
 0x115   : > { %2490 = vmatpush2.bf16.msra.mxu1 %v3280_v11  ;;  %v3364_v11 = vld [vmem:[%s4113_s7 + $0x368] ss:$16 sps:$4 sm:$0xff]  }
 0x116   : > { %2491 = vmatprep.subr.bf16.mxu1 %v3288_v15  ;;  %v3372_v15 = vld [vmem:[%s4113_s7 + $0x34c] ss:$16 sps:$4 sm:$0xff]  }
 0x117   : > { %2451 = vmatpush2.bf16.msra.mxu0 %v3283_v16  ;;  %v3367_v16 = vld [vmem:[%s4113_s7 + $0x148] ss:$16 sps:$4 sm:$0xff]  }
 0x118   : > { %2502 = vmatprep.subr.bf16.mxu0 %v3291_v22  ;;  %v3373_v22 = vld [vmem:[%s4113_s7 + $0x128] ss:$16 sps:$4 sm:$0xff]  }
 0x119   : > { %2492 = vmatpush2.bf16.msra.mxu1 %v3286_v17  ;;  %v3370_v17 = vld [vmem:[%s4113_s7 + $0x348] ss:$16 sps:$4 sm:$0xff]  }
 0x11a   : > { %2543 = vmatprep.subr.bf16.mxu1 %v3294_v23  ;;  %2453 = vmatmul.mubr.bf16.vlgmr.msra.gmra.mxu0 %v4277_v24  ;;  %v3376_v23 = vld [vmem:[%s4113_s7 + $0x328] ss:$16 sps:$4 sm:$0xff]  }
 0x11b   : > { %2503 = vmatpush1.bf16.msra.mxu0 %v3289_v26  ;;  %2534 = vmatprep.mubr.bf16.mxu0 %v4109_v2  ;;  %v3310_v2 = vld [vmem:[%s4113_s7 + $0x288] ss:$16 sps:$4 sm:$0xff]   ;;  %v3381_v26 = vld [vmem:[%s4113_s7 + $0x10c] ss:$16 sps:$4 sm:$0xff]  }
 0x11c   : > { %2494 = vmatmul.mubr.bf16.vlgmr.msra.gmra.mxu1 %v4279_v25  ;;  %2504 = vmatprep.subr.bf16.mxu0 %v3297_v28  ;;  %v3379_v28 = vld [vmem:[%s4113_s7 + $0x108] ss:$16 sps:$4 sm:$0xff]  }
 0x11d   : > { %2544 = vmatpush1.bf16.msra.mxu1 %v3292_v27  ;;  %2575 = vmatprep.mubr.bf16.mxu1 %v4111_v3  ;;  %v3315_v3 = vld [vmem:[%s4113_s7 + $0x6c] ss:$16 sps:$4 sm:$0xff]  }
 0x11e   : > { %2545 = vmatprep.subr.bf16.mxu1 %v3300_v29  ;;  %v3384_v27 = vld [vmem:[%s4113_s7 + $0x30c] ss:$16 sps:$4 sm:$0xff]   ;;  %v3382_v29 = vld [vmem:[%s4113_s7 + $0x308] ss:$16 sps:$4 sm:$0xff]  }
 0x11f   : > { %2505 = vmatpush1.bf16.msra.mxu0 %v3295_v30  ;;  %v3387_v30 = vld [vmem:[%s4113_s7 + $0x4ec] ss:$16 sps:$4 sm:$0xff]  }
 0x120   : > { %2506 = vmatprep.subr.bf16.mxu0 %v3303_v32  ;;  %v3385_v32 = vld [vmem:[%s4113_s7 + $0x4e8] ss:$16 sps:$4 sm:$0xff]  }
 0x121   : > { %2546 = vmatpush1.bf16.msra.mxu1 %v3298_v31  ;;  %v3390_v31 = vld [vmem:[%s4113_s7 + $0x6ec] ss:$16 sps:$4 sm:$0xff]  }
 0x122   : > { %2547 = vmatprep.subr.bf16.mxu1 %v3306_v33  ;;  %v3388_v33 = vld [vmem:[%s4113_s7 + $0x6e8] ss:$16 sps:$4 sm:$0xff]  }
 0x123   : > { %2507 = vmatpush1.bf16.msra.mxu0 %v3301_v34  ;;  %v3393_v34 = vld [vmem:[%s4113_s7 + $0x4cc] ss:$16 sps:$4 sm:$0xff]  }
 0x124   : > { %2508 = vmatprep.subr.bf16.mxu0 %v3309_v36  ;;  %v3391_v36 = vld [vmem:[%s4113_s7 + $0x4c8] ss:$16 sps:$4 sm:$0xff]  }
 0x125   : > { %2548 = vmatpush1.bf16.msra.mxu1 %v3304_v35  ;;  %v3396_v35 = vld [vmem:[%s4113_s7 + $0x6cc] ss:$16 sps:$4 sm:$0xff]  }
 0x126   : > { %2549 = vmatprep.subr.bf16.mxu1 %v3312_v37  ;;  %v3394_v37 = vld [vmem:[%s4113_s7 + $0x6c8] ss:$16 sps:$4 sm:$0xff]  }
 0x127   : > { %2509 = vmatpush1.bf16.msra.mxu0 %v3307_v38  ;;  %v3399_v38 = vld [vmem:[%s4113_s7 + $0x4ac] ss:$16 sps:$4 sm:$0xff]  }
 0x128   : > { %2510 = vmatprep.subr.bf16.mxu0 %v3315_v3  ;;  %v3405_v3 = vld [vmem:[%s4113_s7 + $0x48c] ss:$16 sps:$4 sm:$0xff]  }
 0x129   : > { %2550 = vmatpush1.bf16.msra.mxu1 %v3310_v2  ;;  %v3402_v2 = vld [vmem:[%s4113_s7 + $0x6ac] ss:$16 sps:$4 sm:$0xff]  }
 0x12a   : > { %2551 = vmatprep.subr.bf16.mxu1 %v3318_v39  ;;  %v3408_v39 = vld [vmem:[%s4113_s7 + $0x68c] ss:$16 sps:$4 sm:$0xff]  }
 0x12b   : > { %2511 = vmatpush1.bf16.msra.mxu0 %v3313_v40  ;;  %v3403_v40 = vld [vmem:[%s4113_s7 + $0x488] ss:$16 sps:$4 sm:$0xff]  }
 0x12c   : > { %2512 = vmatprep.subr.bf16.mxu0 %v3321_v42  ;;  %v3409_v42 = vld [vmem:[%s4113_s7 + $0x468] ss:$16 sps:$4 sm:$0xff]  }
 0x12d   : > { %2552 = vmatpush1.bf16.msra.mxu1 %v3316_v41  ;;  %v3414_v41 = vld [vmem:[%s4113_s7 + $0x66c] ss:$16 sps:$4 sm:$0xff]  }
 0x12e   : > { %2553 = vmatprep.subr.bf16.mxu1 %v3324_v43  ;;  %v3412_v43 = vld [vmem:[%s4113_s7 + $0x668] ss:$16 sps:$4 sm:$0xff]  }
 0x12f   : > { %2513 = vmatpush1.bf16.msra.mxu0 %v3319_v44  ;;  %v3417_v44 = vld [vmem:[%s4113_s7 + $0x44c] ss:$16 sps:$4 sm:$0xff]  }
 0x130   : > { %2514 = vmatprep.subr.bf16.mxu0 %v3327_v46  ;;  %v3415_v46 = vld [vmem:[%s4113_s7 + $0x448] ss:$16 sps:$4 sm:$0xff]  }
 0x131   : > { %2554 = vmatpush1.bf16.msra.mxu1 %v3322_v45  ;;  %v3420_v45 = vld [vmem:[%s4113_s7 + $0x64c] ss:$16 sps:$4 sm:$0xff]  }
 0x132   : > { %2555 = vmatprep.subr.bf16.mxu1 %v3330_v47  ;;  %v3418_v47 = vld [vmem:[%s4113_s7 + $0x648] ss:$16 sps:$4 sm:$0xff]  }
 0x133   : > { %2515 = vmatpush1.bf16.msra.mxu0 %v3325_v48  ;;  %v3423_v48 = vld [vmem:[%s4113_s7 + $0x42c] ss:$16 sps:$4 sm:$0xff]  }
 0x134   : > { %2516 = vmatprep.subr.bf16.mxu0 %v3333_v50  ;;  %v3421_v50 = vld [vmem:[%s4113_s7 + $0x428] ss:$16 sps:$4 sm:$0xff]  }
 0x135   : > { %2556 = vmatpush1.bf16.msra.mxu1 %v3328_v49  ;;  %v3426_v49 = vld [vmem:[%s4113_s7 + $0x62c] ss:$16 sps:$4 sm:$0xff]  }
 0x136   : > { %2557 = vmatprep.subr.bf16.mxu1 %v3336_v51  ;;  %v3424_v51 = vld [vmem:[%s4113_s7 + $0x628] ss:$16 sps:$4 sm:$0xff]  }
 0x137   : > { %2517 = vmatpush1.bf16.msra.mxu0 %v3331_v52  ;;  %v3429_v52 = vld [vmem:[%s4113_s7 + $0x40c] ss:$16 sps:$4 sm:$0xff]  }
 0x138   : > { %2518 = vmatprep.subr.bf16.mxu0 %v3339_v54  ;;  %v3427_v54 = vld [vmem:[%s4113_s7 + $0x408] ss:$16 sps:$4 sm:$0xff]  }
 0x139   : > { %2558 = vmatpush1.bf16.msra.mxu1 %v3334_v53  ;;  %v3432_v53 = vld [vmem:[%s4113_s7 + $0x60c] ss:$16 sps:$4 sm:$0xff]  }
 0x13a   : > { %2559 = vmatprep.subr.bf16.mxu1 %v3342_v55  ;;  %v3430_v55 = vld [vmem:[%s4113_s7 + $0x608] ss:$16 sps:$4 sm:$0xff]  }
 0x13b   : > { %2519 = vmatpush2.bf16.msra.mxu0 %v3337_v56  ;;  %v3435_v56 = vld [vmem:[%s4113_s7 + $0x5ec] ss:$16 sps:$4 sm:$0xff]  }
 0x13c   : > { %2520 = vmatprep.subr.bf16.mxu0 %v3345_v58  ;;  %v3433_v58 = vld [vmem:[%s4113_s7 + $0x5e8] ss:$16 sps:$4 sm:$0xff]  }
 0x13d   : > { %2560 = vmatpush2.bf16.msra.mxu1 %v3340_v57  ;;  %v3438_v57 = vld [vmem:[%s4113_s7 + $0x7ec] ss:$16 sps:$4 sm:$0xff]  }
 0x13e   : > { %2561 = vmatprep.subr.bf16.mxu1 %v3348_v59  ;;  %v3436_v59 = vld [vmem:[%s4113_s7 + $0x7e8] ss:$16 sps:$4 sm:$0xff]  }
 0x13f   : > { %2521 = vmatpush2.bf16.msra.mxu0 %v3343_v60  ;;  %v3441_v60 = vld [vmem:[%s4113_s7 + $0x5cc] ss:$16 sps:$4 sm:$0xff]  }
 0x140   : > { %2522 = vmatprep.subr.bf16.mxu0 %v3351_v62  ;;  %v3439_v62 = vld [vmem:[%s4113_s7 + $0x5c8] ss:$16 sps:$4 sm:$0xff]  }
 0x141   : > { %2562 = vmatpush2.bf16.msra.mxu1 %v3346_v61  ;;  %v3444_v61 = vld [vmem:[%s4113_s7 + $0x7cc] ss:$16 sps:$4 sm:$0xff]  }
 0x142   : > { %2563 = vmatprep.subr.bf16.mxu1 %v3354_v63  ;;  %v3442_v63 = vld [vmem:[%s4113_s7 + $0x7c8] ss:$16 sps:$4 sm:$0xff]  }
 0x143   : > { %2523 = vmatpush2.bf16.msra.mxu0 %v3349_v0  ;;  %v3447_v0 = vld [vmem:[%s4113_s7 + $0x5ac] ss:$16 sps:$4 sm:$0xff]  }
 0x144   : > { %2524 = vmatprep.subr.bf16.mxu0 %v3357_v4  ;;  %v3445_v4 = vld [vmem:[%s4113_s7 + $0x5a8] ss:$16 sps:$4 sm:$0xff]  }
 0x145   : > { %2564 = vmatpush2.bf16.msra.mxu1 %v3352_v1  ;;  %v3450_v1 = vld [vmem:[%s4113_s7 + $0x7ac] ss:$16 sps:$4 sm:$0xff]  }
 0x146   : > { %2565 = vmatprep.subr.bf16.mxu1 %v3360_v5  ;;  %v3448_v5 = vld [vmem:[%s4113_s7 + $0x7a8] ss:$16 sps:$4 sm:$0xff]  }
 0x147   : > { %2525 = vmatpush2.bf16.msra.mxu0 %v3355_v6  ;;  %v3453_v6 = vld [vmem:[%s4113_s7 + $0x58c] ss:$16 sps:$4 sm:$0xff]  }
 0x148   : > { %2526 = vmatprep.subr.bf16.mxu0 %v3363_v8  ;;  %v3451_v8 = vld [vmem:[%s4113_s7 + $0x588] ss:$16 sps:$4 sm:$0xff]  }
 0x149   : > { %2566 = vmatpush2.bf16.msra.mxu1 %v3358_v7  ;;  %v3456_v7 = vld [vmem:[%s4113_s7 + $0x78c] ss:$16 sps:$4 sm:$0xff]  }
 0x14a   : > { %2567 = vmatprep.subr.bf16.mxu1 %v3366_v9  ;;  %v3454_v9 = vld [vmem:[%s4113_s7 + $0x788] ss:$16 sps:$4 sm:$0xff]  }
 0x14b   : > { %2527 = vmatpush2.bf16.msra.mxu0 %v3361_v10  ;;  %v3459_v10 = vld [vmem:[%s4113_s7 + $0x56c] ss:$16 sps:$4 sm:$0xff]  }
 0x14c   : > { %2528 = vmatprep.subr.bf16.mxu0 %v3369_v14  ;;  %v3457_v14 = vld [vmem:[%s4113_s7 + $0x568] ss:$16 sps:$4 sm:$0xff]  }
 0x14d   : > { %2568 = vmatpush2.bf16.msra.mxu1 %v3364_v11  ;;  %v3462_v11 = vld [vmem:[%s4113_s7 + $0x76c] ss:$16 sps:$4 sm:$0xff]  }
 0x14e   : > { %2569 = vmatprep.subr.bf16.mxu1 %v3372_v15  ;;  %v3460_v15 = vld [vmem:[%s4113_s7 + $0x768] ss:$16 sps:$4 sm:$0xff]  }
 0x14f   : > { %2529 = vmatpush2.bf16.msra.mxu0 %v3367_v16  ;;  %v3465_v16 = vld [vmem:[%s4113_s7 + $0x54c] ss:$16 sps:$4 sm:$0xff]  }
 0x150   : > { %2530 = vmatprep.subr.bf16.mxu0 %v3375_v20  ;;  %v3463_v20 = vld [vmem:[%s4113_s7 + $0x548] ss:$16 sps:$4 sm:$0xff]  }
 0x151   : > { %2570 = vmatpush2.bf16.msra.mxu1 %v3370_v17  ;;  %v3468_v17 = vld [vmem:[%s4113_s7 + $0x74c] ss:$16 sps:$4 sm:$0xff]  }
 0x152   : > { %2571 = vmatprep.subr.bf16.mxu1 %v3378_v21  ;;  %v3466_v21 = vld [vmem:[%s4113_s7 + $0x748] ss:$16 sps:$4 sm:$0xff]  }
 0x153   : > { %2531 = vmatpush2.bf16.msra.mxu0 %v3373_v22  ;;  %v3471_v22 = vld [vmem:[%s4113_s7 + $0x52c] ss:$16 sps:$4 sm:$0xff]  }
 0x154   : > { %2532 = vmatprep.subr.bf16.mxu0 %v3381_v26  ;;  %v3469_v26 = vld [vmem:[%s4113_s7 + $0x528] ss:$16 sps:$4 sm:$0xff]  }
 0x155   : > { %2572 = vmatpush2.bf16.msra.mxu1 %v3376_v23  ;;  %v3474_v23 = vld [vmem:[%s4113_s7 + $0x72c] ss:$16 sps:$4 sm:$0xff]  }
 0x156   : > { %2573 = vmatprep.subr.bf16.mxu1 %v3384_v27  ;;  %v3472_v27 = vld [vmem:[%s4113_s7 + $0x728] ss:$16 sps:$4 sm:$0xff]  }
 0x157   : > { %2533 = vmatpush2.bf16.msra.mxu0 %v3379_v28  ;;  %v3477_v28 = vld [vmem:[%s4113_s7 + $0x50c] ss:$16 sps:$4 sm:$0xff]  }
 0x158   : > { %2584 = vmatprep.subr.bf16.mxu0 %v3387_v30  ;;  %v3475_v30 = vld [vmem:[%s4113_s7 + $0x508] ss:$16 sps:$4 sm:$0xff]  }
 0x159   : > { %2574 = vmatpush2.bf16.msra.mxu1 %v3382_v29  ;;  %v3480_v29 = vld [vmem:[%s4113_s7 + $0x70c] ss:$16 sps:$4 sm:$0xff]  }
 0x15a   : > { %2625 = vmatprep.subr.bf16.mxu1 %v3390_v31  ;;  %2535 = vmatmul.mubr.bf16.vlgmr.msra.gmra.mxu0 %v4195_v12  ;;  %v3397_v12 = vld [vmem:[%s4113_s7 + $0x4a8] ss:$16 sps:$4 sm:$0xff]  }
 0x15b   : > { %2585 = vmatpush1.bf16.msra.mxu0 %v3385_v32  ;;  %2616 = vmatprep.mubr.bf16.mxu0 %v4203_v18  ;;  %v3406_v18 = vld [vmem:[%s4113_s7 + $0x688] ss:$16 sps:$4 sm:$0xff]  }
 0x15c   : > { %2576 = vmatmul.mubr.bf16.vlgmr.msra.gmra.mxu1 %v4197_v13  ;;  %2586 = vmatprep.subr.bf16.mxu0 %v3393_v34  ;;  %v3400_v13 = vld [vmem:[%s4113_s7 + $0x6a8] ss:$16 sps:$4 sm:$0xff]  }
 0x15d   : > { %2626 = vmatpush1.bf16.msra.mxu1 %v3388_v33  ;;  %2657 = vmatprep.mubr.bf16.mxu1 %v4205_v19  ;;  %v3411_v19 = vld [vmem:[%s4113_s7 + $0x46c] ss:$16 sps:$4 sm:$0xff]   ;;  %v3478_v31 = vld [vmem:[%s4113_s7 + $0x708] ss:$16 sps:$4 sm:$0xff]  }
 0x15e   : > { %2627 = vmatprep.subr.bf16.mxu1 %v3396_v35 }
 0x15f   : > { %2587 = vmatpush1.bf16.msra.mxu0 %v3391_v36 }
 0x160   : > { %2588 = vmatprep.subr.bf16.mxu0 %v3399_v38 }
 0x161   : > { %2628 = vmatpush1.bf16.msra.mxu1 %v3394_v37 }
 0x162   : > { %2629 = vmatprep.subr.bf16.mxu1 %v3402_v2 }
 0x163   : > { %2589 = vmatpush1.bf16.msra.mxu0 %v3397_v12  ;;  %v1038_v12 = vlaneseq }
 0x164   : > { %2590 = vmatprep.subr.bf16.mxu0 %v3405_v3 }
 0x165   : > { %2630 = vmatpush1.bf16.msra.mxu1 %v3400_v13  ;;  %v1039_v13 = vshrl.u32 %v1038_v12, 7 }
 0x166   : > { %2631 = vmatprep.subr.bf16.mxu1 %v3408_v39  ;;  %v1036_v39 = vld [vmem:[%s752_s29] sm:$0xf] }
 0x167   : > { %2591 = vmatpush1.bf16.msra.mxu0 %v3403_v40  ;;  %v1040_v3 = vsub.s32 0, %v1039_v13 }
 0x168   : > { %2592 = vmatprep.subr.bf16.mxu0 %v3411_v19 }
 0x169   : > { %2632 = vmatpush1.bf16.msra.mxu1 %v3406_v18  ;;  %v1041_v40 = vrot.slane %v1036_v39, %v1040_v3 }
 0x16a   : > { %2633 = vmatprep.subr.bf16.mxu1 %v3414_v41 }
 0x16b   : > { %2593 = vmatpush1.bf16.msra.mxu0 %v3409_v42 }
 0x16c   : > { %2594 = vmatprep.subr.bf16.mxu0 %v3417_v44 }
 0x16d   : > { %2634 = vmatpush1.bf16.msra.mxu1 %v3412_v43 }
 0x16e   : > { %2635 = vmatprep.subr.bf16.mxu1 %v3420_v45 }
 0x16f   : > { %2595 = vmatpush1.bf16.msra.mxu0 %v3415_v46 }
 0x170   : > { %2596 = vmatprep.subr.bf16.mxu0 %v3423_v48 }
 0x171   : > { %2636 = vmatpush1.bf16.msra.mxu1 %v3418_v47 }
 0x172   : > { %2637 = vmatprep.subr.bf16.mxu1 %v3426_v49 }
 0x173   : > { %2597 = vmatpush1.bf16.msra.mxu0 %v3421_v50 }
 0x174   : > { %2598 = vmatprep.subr.bf16.mxu0 %v3429_v52 }
 0x175   : > { %2638 = vmatpush1.bf16.msra.mxu1 %v3424_v51 }
 0x176   : > { %2639 = vmatprep.subr.bf16.mxu1 %v3432_v53 }
 0x177   : > { %2599 = vmatpush1.bf16.msra.mxu0 %v3427_v54 }
 0x178   : > { %2600 = vmatprep.subr.bf16.mxu0 %v3435_v56 }
 0x179   : > { %2640 = vmatpush1.bf16.msra.mxu1 %v3430_v55 }
 0x17a   : > { %2641 = vmatprep.subr.bf16.mxu1 %v3438_v57 }
 0x17b   : > { %2601 = vmatpush2.bf16.msra.mxu0 %v3433_v58 }
 0x17c   : > { %2602 = vmatprep.subr.bf16.mxu0 %v3441_v60 }
 0x17d   : > { %2642 = vmatpush2.bf16.msra.mxu1 %v3436_v59 }
 0x17e   : > { %2643 = vmatprep.subr.bf16.mxu1 %v3444_v61 }
 0x17f   : > { %2603 = vmatpush2.bf16.msra.mxu0 %v3439_v62 }
 0x180   : > { %2604 = vmatprep.subr.bf16.mxu0 %v3447_v0 }
 0x181   : > { %2644 = vmatpush2.bf16.msra.mxu1 %v3442_v63 }
 0x182   : > { %2645 = vmatprep.subr.bf16.mxu1 %v3450_v1  ;;  %v1048_v1 = vsub.s32 2, %v1039_v13 }
 0x183   : > { %2605 = vmatpush2.bf16.msra.mxu0 %v3445_v4  ;;  %v1052_v4 = vsub.s32 3, %v1039_v13 }
 0x184   : > { %2606 = vmatprep.subr.bf16.mxu0 %v3453_v6 }
 0x185   : > { %2646 = vmatpush2.bf16.msra.mxu1 %v3448_v5  ;;  %v1049_v5 = vrot.slane %v1036_v39, %v1048_v1  ;;  %v1053_v6 = vrot.slane %v1036_v39, %v1052_v4 }
 0x186   : > { %2647 = vmatprep.subr.bf16.mxu1 %v3456_v7 }
 0x187   : > { %2607 = vmatpush2.bf16.msra.mxu0 %v3451_v8 }
 0x188   : > { %2608 = vmatprep.subr.bf16.mxu0 %v3459_v10 }
 0x189   : > { %2648 = vmatpush2.bf16.msra.mxu1 %v3454_v9 }
 0x18a   : > { %2649 = vmatprep.subr.bf16.mxu1 %v3462_v11 }
 0x18b   : > { %2609 = vmatpush2.bf16.msra.mxu0 %v3457_v14 }
 0x18c   : > { %2610 = vmatprep.subr.bf16.mxu0 %v3465_v16 }
 0x18d   : > { %2650 = vmatpush2.bf16.msra.mxu1 %v3460_v15 }
 0x18e   : > { %2651 = vmatprep.subr.bf16.mxu1 %v3468_v17 }
 0x18f   : > { %2611 = vmatpush2.bf16.msra.mxu0 %v3463_v20 }
 0x190   : > { %2612 = vmatprep.subr.bf16.mxu0 %v3471_v22 }
 0x191   : > { %2652 = vmatpush2.bf16.msra.mxu1 %v3466_v21 }
 0x192   : > { %2653 = vmatprep.subr.bf16.mxu1 %v3474_v23 }
 0x193   : > { %2613 = vmatpush2.bf16.msra.mxu0 %v3469_v26 }
 0x194   : > { %2614 = vmatprep.subr.bf16.mxu0 %v3477_v28 }
 0x195   : > { %2654 = vmatpush2.bf16.msra.mxu1 %v3472_v27 }
 0x196   : > { %2655 = vmatprep.subr.bf16.mxu1 %v3480_v29 }
 0x197   : > { %2615 = vmatpush2.bf16.msra.mxu0 %v3475_v30 }
 0x199   : > { %2656 = vmatpush2.bf16.msra.mxu1 %v3478_v31 }
 0x19a   : > { %v2372_v32 = vpop.f32.mrf.mxu0  ;;  %2617 = vmatmul.mubr.bf16.vlgmr.msra.gmra.mxu0 %v4277_v24  ;;  %v1044_v24 = vsub.s32 1, %v1039_v13 }
 0x19b   : > { %v2373_v18 = vadd.f32 %v2372_v32, %v1041_v40 }
 0x19c   : > { %v2413_v33 = vpop.f32.mrf.mxu1  ;;  %2658 = vmatmul.mubr.bf16.vlgmr.msra.gmra.mxu1 %v4279_v25  ;;  %v2374_v34 = vpop.f32.mrf.mxu0  ;;  %v1045_v25 = vrot.slane %v1036_v39, %v1044_v24 }
 0x19d   : > { %v2414_v41 = vadd.f32 %v2413_v33, %v2373_v18 }
 0x19e   : > { %v2415_v35 = vpop.f32.mrf.mxu1  ;;  %v2376_v36 = vpop.f32.mrf.mxu0  ;;  %v2375_v19 = vadd.f32 %v2374_v34, %v1045_v25 }
 0x1a0   : > { %v2417_v37 = vpop.f32.mrf.mxu1  ;;  %v2377_v38 = vpop.f32.mrf.mxu0  ;;  %v2416_v44 = vadd.f32 %v2415_v35, %v2375_v19 }
 0x1a2   : > { %v2418_v2 = vpop.f32.mrf.mxu1 }
 0x1da   : > { %v2454_v42 = vpop.f32.mrf.mxu0 }
 0x1db   : > { %v2455_v45 = vadd.f32 %v2454_v42, %v2414_v41 }
 0x1dc   : > { %v2495_v43 = vpop.f32.mrf.mxu1  ;;  %v2456_v46 = vpop.f32.mrf.mxu0 }
 0x1dd   : > { %v2496_v48 = vadd.f32 %v2495_v43, %v2455_v45  ;;  %v2457_v49 = vadd.f32 %v2456_v46, %v2416_v44 }
 0x1de   : > { %v2497_v47 = vpop.f32.mrf.mxu1  ;;  %v2458_v50 = vpop.f32.mrf.mxu0 }
 0x1df   : > { %v2666_v52 = vmax.f32 %v2496_v48, 0.0  ;;  %v2498_v53 = vadd.f32 %v2497_v47, %v2457_v49 }
 0x1e0   : > { %v2499_v51 = vpop.f32.mrf.mxu1  ;;  %v2459_v54 = vpop.f32.mrf.mxu0 }
 0x1e1   : > { %2670 = vst [vmem:[%s4424_s5] sm:$0xff] %v2666_v52  ;;  %v2667_v56 = vmax.f32 %v2498_v53, 0.0 }
 0x1e2   : > { %v2500_v55 = vpop.f32.mrf.mxu1 }
 0x1e3   : > { %2671 = vst [vmem:[%s4424_s5 + $0x8] sm:$0xff] %v2667_v56 }
 0x21a   : > { %v2536_v57 = vpop.f32.mrf.mxu0 }
 0x21b   : > { %v2537_v7 = vadd.f32 %v2536_v57, %v1049_v5 }
 0x21c   : > { %v2577_v58 = vpop.f32.mrf.mxu1  ;;  %v2538_v59 = vpop.f32.mrf.mxu0 }
 0x21d   : > { %v2539_v8 = vadd.f32 %v2538_v59, %v1053_v6  ;;  %v2578_v9 = vadd.f32 %v2577_v58, %v2537_v7 }
 0x21e   : > { %v2579_v60 = vpop.f32.mrf.mxu1  ;;  %v2540_v61 = vpop.f32.mrf.mxu0 }
 0x21f   : > { %v2580_v14 = vadd.f32 %v2579_v60, %v2539_v8 }
 0x220   : > { %v2581_v62 = vpop.f32.mrf.mxu1  ;;  %v2541_v63 = vpop.f32.mrf.mxu0 }
 0x222   : > { %v2582_v0 = vpop.f32.mrf.mxu1 }
 0x25a   : > { %v2618_v10 = vpop.f32.mrf.mxu0 }
 0x25b   : > { %v2619_v15 = vadd.f32 %v2618_v10, %v2578_v9 }
 0x25c   : > { %v2659_v11 = vpop.f32.mrf.mxu1  ;;  %v2620_v16 = vpop.f32.mrf.mxu0 }
 0x25d   : > { %v2660_v20 = vadd.f32 %v2659_v11, %v2619_v15  ;;  %v2621_v21 = vadd.f32 %v2620_v16, %v2580_v14 }
 0x25e   : > { %v2661_v17 = vpop.f32.mrf.mxu1  ;;  %v2622_v22 = vpop.f32.mrf.mxu0 }
 0x25f   : > { %v2668_v26 = vmax.f32 %v2660_v20, 0.0  ;;  %v2662_v27 = vadd.f32 %v2661_v17, %v2621_v21 }
 0x260   : > { %v2663_v23 = vpop.f32.mrf.mxu1  ;;  %v2623_v28 = vpop.f32.mrf.mxu0 }
 0x261   : > { %2672 = vst [vmem:[%s4424_s5 + $0x10] sm:$0xff] %v2668_v26  ;;  %v2669_v30 = vmax.f32 %v2662_v27, 0.0 }
 0x262   : > { %v2664_v29 = vpop.f32.mrf.mxu1 }
 0x263   : > { %2673 = vst [vmem:[%s4424_s5 + $0x18] sm:$0xff] %v2669_v30 }
 0x264 PF: > { %s13_s16 = sadd.s32 1, %s3519_s16   ;;  %s4449_s12 = smov %s3507_s13 }
 0x265   : > { %p10_p10 = scmp.ge.s32.totalorder %s13_s16, 4   ;;  %s4450_s13 = smov %s3576_s20 }
 0x266   : > { %s4451_s14 = smov %s3515_s15  ;;  %s4452_s15 = smov %s4454_s17 }
 0x267   :  { %12 = sbr.rel (!%p10_p10) target bundleno = 3 (0x3), region = 96 }

// kernel: encoder2_forward.9
= control target key start
LH: loop header
LB: loop body
LE: loop exit
PB: predicated region body
PF: predicated region fallthrough
CT: control target
= control target key end

     0   :  { %s3427_s1 = inlined_call_operand.vmem [shape: bf16[1024,512], index: 1, kind: input, shape index: {}]   ;;  %s3428_s0 = inlined_call_operand.vmem [shape: f32[8,1024], index: 0, kind: input, shape index: {}]   ;;  %s3429_s2 = inlined_call_operand.vmem [shape: f32[1,512], index: 2, kind: input, shape index: {}]   ;;  %s3430_s3 = inlined_call_operand.vmem [shape: f32[8,512], index: 3, kind: output, shape index: {}]  }
   0x1   :  { %v2184_v0 = vld [vmem:[%s3427_s1 + $0xe4] ss:$16 sps:$4 sm:$0xff]   ;;  %v2188_v2 = vld [vmem:[%s3427_s1 + $0xe0] ss:$16 sps:$4 sm:$0xff]   ;;  %v15_v46 = vld [vmem:[%s3428_s0 + $0x8] sm:$0xff] }
   0x2   :  { %v2186_v1 = vld [vmem:[%s3427_s1 + $0x2e4] ss:$16 sps:$4 sm:$0xff]   ;;  %1588 = vmatprep.subr.bf16.mxu0 %v2184_v0  ;;  %v2189_v3 = vld [vmem:[%s3427_s1 + $0x2e0] ss:$16 sps:$4 sm:$0xff]   ;;  %v2735_v49 = vpack.c.bf16 %v15_v46, %v15_v46  ;;  %v17_v50 = vld [vmem:[%s3428_s0 + $0x18] sm:$0xff] }
   0x3   :  { %1629 = vmatprep.subr.bf16.mxu1 %v2186_v1  ;;  %v2190_v4 = vld [vmem:[%s3427_s1 + $0xc4] ss:$16 sps:$4 sm:$0xff]   ;;  %1589 = vmatpush1.bf16.msra.mxu0 %v2188_v2  ;;  %v2194_v6 = vld [vmem:[%s3427_s1 + $0xc0] ss:$16 sps:$4 sm:$0xff]   ;;  %v2743_v52 = vpack.c.bf16 %v17_v50, %v17_v50 }
   0x4   :  { %1630 = vmatpush1.bf16.msra.mxu1 %v2189_v3  ;;  %v2192_v5 = vld [vmem:[%s3427_s1 + $0x2c4] ss:$16 sps:$4 sm:$0xff]   ;;  %1590 = vmatprep.subr.bf16.mxu0 %v2190_v4  ;;  %v2195_v7 = vld [vmem:[%s3427_s1 + $0x2c0] ss:$16 sps:$4 sm:$0xff]  }
   0x5   :  { %1631 = vmatprep.subr.bf16.mxu1 %v2192_v5  ;;  %v2196_v8 = vld [vmem:[%s3427_s1 + $0xa4] ss:$16 sps:$4 sm:$0xff]   ;;  %v2200_v10 = vld [vmem:[%s3427_s1 + $0xa0] ss:$16 sps:$4 sm:$0xff]   ;;  %1620 = vmatprep.mubr.bf16.mxu0 %v2735_v49 }
   0x6   :  { %v2198_v9 = vld [vmem:[%s3427_s1 + $0x2a4] ss:$16 sps:$4 sm:$0xff]   ;;  %v2201_v11 = vld [vmem:[%s3427_s1 + $0x2a0] ss:$16 sps:$4 sm:$0xff]   ;;  %1661 = vmatprep.mubr.bf16.mxu1 %v2743_v52 }
   0x7   :  { %1591 = vmatpush1.bf16.msra.mxu0 %v2194_v6  ;;  %v2202_v12 = vld [vmem:[%s3427_s1 + $0x84] ss:$16 sps:$4 sm:$0xff]   ;;  %v2206_v14 = vld [vmem:[%s3427_s1 + $0x80] ss:$16 sps:$4 sm:$0xff]  }
   0x8   :  { %1632 = vmatpush1.bf16.msra.mxu1 %v2195_v7  ;;  %1592 = vmatprep.subr.bf16.mxu0 %v2196_v8  ;;  %v2204_v13 = vld [vmem:[%s3427_s1 + $0x284] ss:$16 sps:$4 sm:$0xff]   ;;  %v2207_v15 = vld [vmem:[%s3427_s1 + $0x280] ss:$16 sps:$4 sm:$0xff]  }
   0x9   :  { %1633 = vmatprep.subr.bf16.mxu1 %v2198_v9  ;;  %v2208_v16 = vld [vmem:[%s3427_s1 + $0x64] ss:$16 sps:$4 sm:$0xff]   ;;  %v2212_v18 = vld [vmem:[%s3427_s1 + $0x60] ss:$16 sps:$4 sm:$0xff]  }
   0xa   :  { %v2210_v17 = vld [vmem:[%s3427_s1 + $0x264] ss:$16 sps:$4 sm:$0xff]   ;;  %v2213_v19 = vld [vmem:[%s3427_s1 + $0x260] ss:$16 sps:$4 sm:$0xff]  }
   0xb   :  { %1593 = vmatpush1.bf16.msra.mxu0 %v2200_v10  ;;  %v2214_v20 = vld [vmem:[%s3427_s1 + $0x44] ss:$16 sps:$4 sm:$0xff]   ;;  %v2218_v22 = vld [vmem:[%s3427_s1 + $0x40] ss:$16 sps:$4 sm:$0xff]  }
   0xc   :  { %1634 = vmatpush1.bf16.msra.mxu1 %v2201_v11  ;;  %1594 = vmatprep.subr.bf16.mxu0 %v2202_v12  ;;  %v2216_v21 = vld [vmem:[%s3427_s1 + $0x244] ss:$16 sps:$4 sm:$0xff]   ;;  %v2219_v23 = vld [vmem:[%s3427_s1 + $0x240] ss:$16 sps:$4 sm:$0xff]  }
   0xd   :  { %1635 = vmatprep.subr.bf16.mxu1 %v2204_v13  ;;  %v2220_v24 = vld [vmem:[%s3427_s1 + $0x24] ss:$16 sps:$4 sm:$0xff]   ;;  %v2224_v26 = vld [vmem:[%s3427_s1 + $0x20] ss:$16 sps:$4 sm:$0xff]  }
   0xe   :  { %v2222_v25 = vld [vmem:[%s3427_s1 + $0x224] ss:$16 sps:$4 sm:$0xff]   ;;  %v2225_v27 = vld [vmem:[%s3427_s1 + $0x220] ss:$16 sps:$4 sm:$0xff]  }
   0xf   :  { %1595 = vmatpush1.bf16.msra.mxu0 %v2206_v14  ;;  %v2226_v28 = vld [vmem:[%s3427_s1 + $0x4] ss:$16 sps:$4 sm:$0xff]   ;;  %v2230_v30 = vld [vmem:[%s3427_s1] ss:$16 sps:$4 sm:$0xff]  }
  0x10   :  { %1636 = vmatpush1.bf16.msra.mxu1 %v2207_v15  ;;  %1596 = vmatprep.subr.bf16.mxu0 %v2208_v16  ;;  %v2228_v29 = vld [vmem:[%s3427_s1 + $0x204] ss:$16 sps:$4 sm:$0xff]   ;;  %v2231_v31 = vld [vmem:[%s3427_s1 + $0x200] ss:$16 sps:$4 sm:$0xff]  }
  0x11   :  { %1637 = vmatprep.subr.bf16.mxu1 %v2210_v17  ;;  %v2232_v32 = vld [vmem:[%s3427_s1 + $0x1e4] ss:$16 sps:$4 sm:$0xff]   ;;  %v2236_v34 = vld [vmem:[%s3427_s1 + $0x1e0] ss:$16 sps:$4 sm:$0xff]  }
  0x12   :  { %v2234_v33 = vld [vmem:[%s3427_s1 + $0x3e4] ss:$16 sps:$4 sm:$0xff]   ;;  %v2237_v35 = vld [vmem:[%s3427_s1 + $0x3e0] ss:$16 sps:$4 sm:$0xff]  }
  0x13   :  { %1597 = vmatpush1.bf16.msra.mxu0 %v2212_v18  ;;  %v2238_v36 = vld [vmem:[%s3427_s1 + $0x1c4] ss:$16 sps:$4 sm:$0xff]   ;;  %v2242_v38 = vld [vmem:[%s3427_s1 + $0x1c0] ss:$16 sps:$4 sm:$0xff]  }
  0x14   :  { %1638 = vmatpush1.bf16.msra.mxu1 %v2213_v19  ;;  %1598 = vmatprep.subr.bf16.mxu0 %v2214_v20  ;;  %v2240_v37 = vld [vmem:[%s3427_s1 + $0x3c4] ss:$16 sps:$4 sm:$0xff]   ;;  %v2243_v39 = vld [vmem:[%s3427_s1 + $0x3c0] ss:$16 sps:$4 sm:$0xff]  }
  0x15   :  { %1639 = vmatprep.subr.bf16.mxu1 %v2216_v21  ;;  %v2244_v40 = vld [vmem:[%s3427_s1 + $0x1a4] ss:$16 sps:$4 sm:$0xff]   ;;  %v2248_v42 = vld [vmem:[%s3427_s1 + $0x1a0] ss:$16 sps:$4 sm:$0xff]  }
  0x16   :  { %v2246_v41 = vld [vmem:[%s3427_s1 + $0x3a4] ss:$16 sps:$4 sm:$0xff]   ;;  %v2249_v43 = vld [vmem:[%s3427_s1 + $0x3a0] ss:$16 sps:$4 sm:$0xff]  }
  0x17   :  { %1599 = vmatpush1.bf16.msra.mxu0 %v2218_v22  ;;  %v2250_v44 = vld [vmem:[%s3427_s1 + $0x184] ss:$16 sps:$4 sm:$0xff]   ;;  %v2254_v47 = vld [vmem:[%s3427_s1 + $0x180] ss:$16 sps:$4 sm:$0xff]  }
  0x18   :  { %1640 = vmatpush1.bf16.msra.mxu1 %v2219_v23  ;;  %1600 = vmatprep.subr.bf16.mxu0 %v2220_v24  ;;  %v2252_v45 = vld [vmem:[%s3427_s1 + $0x384] ss:$16 sps:$4 sm:$0xff]   ;;  %v2255_v48 = vld [vmem:[%s3427_s1 + $0x380] ss:$16 sps:$4 sm:$0xff]  }
  0x19   :  { %1641 = vmatprep.subr.bf16.mxu1 %v2222_v25  ;;  %v2256_v51 = vld [vmem:[%s3427_s1 + $0x164] ss:$16 sps:$4 sm:$0xff]   ;;  %v2260_v54 = vld [vmem:[%s3427_s1 + $0x160] ss:$16 sps:$4 sm:$0xff]  }
  0x1a   :  { %v2258_v53 = vld [vmem:[%s3427_s1 + $0x364] ss:$16 sps:$4 sm:$0xff]   ;;  %v2261_v55 = vld [vmem:[%s3427_s1 + $0x360] ss:$16 sps:$4 sm:$0xff]  }
  0x1b   :  { %1601 = vmatpush1.bf16.msra.mxu0 %v2224_v26  ;;  %v2262_v56 = vld [vmem:[%s3427_s1 + $0x144] ss:$16 sps:$4 sm:$0xff]   ;;  %v2266_v58 = vld [vmem:[%s3427_s1 + $0x140] ss:$16 sps:$4 sm:$0xff]  }
  0x1c   :  { %1642 = vmatpush1.bf16.msra.mxu1 %v2225_v27  ;;  %1602 = vmatprep.subr.bf16.mxu0 %v2226_v28  ;;  %v2264_v57 = vld [vmem:[%s3427_s1 + $0x344] ss:$16 sps:$4 sm:$0xff]   ;;  %v2267_v59 = vld [vmem:[%s3427_s1 + $0x340] ss:$16 sps:$4 sm:$0xff]  }
  0x1d   :  { %1643 = vmatprep.subr.bf16.mxu1 %v2228_v29  ;;  %v2268_v60 = vld [vmem:[%s3427_s1 + $0x124] ss:$16 sps:$4 sm:$0xff]   ;;  %v2272_v62 = vld [vmem:[%s3427_s1 + $0x120] ss:$16 sps:$4 sm:$0xff]  }
  0x1e   :  { %v2270_v61 = vld [vmem:[%s3427_s1 + $0x324] ss:$16 sps:$4 sm:$0xff]   ;;  %v2273_v63 = vld [vmem:[%s3427_s1 + $0x320] ss:$16 sps:$4 sm:$0xff]  }
  0x1f   :  { %1603 = vmatpush1.bf16.msra.mxu0 %v2230_v30  ;;  %v2274_v0 = vld [vmem:[%s3427_s1 + $0x104] ss:$16 sps:$4 sm:$0xff]   ;;  %v2278_v2 = vld [vmem:[%s3427_s1 + $0x100] ss:$16 sps:$4 sm:$0xff]  }
  0x20   :  { %1644 = vmatpush1.bf16.msra.mxu1 %v2231_v31  ;;  %1604 = vmatprep.subr.bf16.mxu0 %v2232_v32  ;;  %v2276_v1 = vld [vmem:[%s3427_s1 + $0x304] ss:$16 sps:$4 sm:$0xff]   ;;  %v2279_v3 = vld [vmem:[%s3427_s1 + $0x300] ss:$16 sps:$4 sm:$0xff]  }
  0x21   :  { %1645 = vmatprep.subr.bf16.mxu1 %v2234_v33  ;;  %v14_v4 = vld [vmem:[%s3428_s0] sm:$0xff]  ;;  %v16_v5 = vld [vmem:[%s3428_s0 + $0x10] sm:$0xff] }
  0x22   :  { %v2282_v6 = vld [vmem:[%s3427_s1 + $0x4e4] ss:$16 sps:$4 sm:$0xff]   ;;  %v2804_v8 = vpack.c.bf16 %v14_v4, %v14_v4  ;;  %v2806_v9 = vpack.c.bf16 %v16_v5, %v16_v5  ;;  %v2280_v10 = vld [vmem:[%s3427_s1 + $0x4e0] ss:$16 sps:$4 sm:$0xff]  }
  0x23   :  { %1605 = vmatpush2.bf16.msra.mxu0 %v2236_v34  ;;  %v2285_v7 = vld [vmem:[%s3427_s1 + $0x6e4] ss:$16 sps:$4 sm:$0xff]   ;;  %v2283_v11 = vld [vmem:[%s3427_s1 + $0x6e0] ss:$16 sps:$4 sm:$0xff]   ;;  %v19_v34 = vld [vmem:[%s3428_s0 + $0x28] sm:$0xff] }
  0x24   :  { %1646 = vmatpush2.bf16.msra.mxu1 %v2237_v35  ;;  %1606 = vmatprep.subr.bf16.mxu0 %v2238_v36  ;;  %v2288_v12 = vld [vmem:[%s3427_s1 + $0x4c4] ss:$16 sps:$4 sm:$0xff]   ;;  %v2286_v14 = vld [vmem:[%s3427_s1 + $0x4c0] ss:$16 sps:$4 sm:$0xff]  }
  0x25   :  { %1647 = vmatprep.subr.bf16.mxu1 %v2240_v37  ;;  %v2291_v13 = vld [vmem:[%s3427_s1 + $0x6c4] ss:$16 sps:$4 sm:$0xff]   ;;  %v2289_v15 = vld [vmem:[%s3427_s1 + $0x6c0] ss:$16 sps:$4 sm:$0xff]   ;;  %v2891_v37 = vpack.c.bf16 %v19_v34, %v19_v34  ;;  %v2402_v34 = vld [vmem:[%s3427_s1 + $0x6c] ss:$16 sps:$4 sm:$0xff]  }
  0x26   :  { %v2294_v16 = vld [vmem:[%s3427_s1 + $0x4a4] ss:$16 sps:$4 sm:$0xff]   ;;  %v2292_v18 = vld [vmem:[%s3427_s1 + $0x4a0] ss:$16 sps:$4 sm:$0xff]  }
  0x27   :  { %1607 = vmatpush2.bf16.msra.mxu0 %v2242_v38  ;;  %v2297_v17 = vld [vmem:[%s3427_s1 + $0x6a4] ss:$16 sps:$4 sm:$0xff]   ;;  %v2295_v19 = vld [vmem:[%s3427_s1 + $0x6a0] ss:$16 sps:$4 sm:$0xff]   ;;  %v21_v38 = vld [vmem:[%s3428_s0 + $0x38] sm:$0xff] }
  0x28   :  { %1648 = vmatpush2.bf16.msra.mxu1 %v2243_v39  ;;  %1608 = vmatprep.subr.bf16.mxu0 %v2244_v40  ;;  %v2300_v20 = vld [vmem:[%s3427_s1 + $0x484] ss:$16 sps:$4 sm:$0xff]   ;;  %v2298_v22 = vld [vmem:[%s3427_s1 + $0x480] ss:$16 sps:$4 sm:$0xff]   ;;  %v2899_v40 = vpack.c.bf16 %v21_v38, %v21_v38  ;;  %v2403_v38 = vld [vmem:[%s3427_s1 + $0x268] ss:$16 sps:$4 sm:$0xff]  }
  0x29   :  { %1649 = vmatprep.subr.bf16.mxu1 %v2246_v41  ;;  %v2303_v21 = vld [vmem:[%s3427_s1 + $0x684] ss:$16 sps:$4 sm:$0xff]   ;;  %v2301_v23 = vld [vmem:[%s3427_s1 + $0x680] ss:$16 sps:$4 sm:$0xff]  }
  0x2a   :  { %v2306_v24 = vld [vmem:[%s3427_s1 + $0x464] ss:$16 sps:$4 sm:$0xff]   ;;  %v2304_v26 = vld [vmem:[%s3427_s1 + $0x460] ss:$16 sps:$4 sm:$0xff]  }
  0x2b   :  { %1609 = vmatpush2.bf16.msra.mxu0 %v2248_v42  ;;  %v2309_v25 = vld [vmem:[%s3427_s1 + $0x664] ss:$16 sps:$4 sm:$0xff]   ;;  %v2307_v27 = vld [vmem:[%s3427_s1 + $0x660] ss:$16 sps:$4 sm:$0xff]  }
  0x2c   :  { %1650 = vmatpush2.bf16.msra.mxu1 %v2249_v43  ;;  %1610 = vmatprep.subr.bf16.mxu0 %v2250_v44  ;;  %v2312_v28 = vld [vmem:[%s3427_s1 + $0x444] ss:$16 sps:$4 sm:$0xff]   ;;  %v2310_v30 = vld [vmem:[%s3427_s1 + $0x440] ss:$16 sps:$4 sm:$0xff]  }
  0x2d   :  { %1651 = vmatprep.subr.bf16.mxu1 %v2252_v45  ;;  %v2315_v29 = vld [vmem:[%s3427_s1 + $0x644] ss:$16 sps:$4 sm:$0xff]   ;;  %v2313_v31 = vld [vmem:[%s3427_s1 + $0x640] ss:$16 sps:$4 sm:$0xff]  }
  0x2e   :  { %v2318_v32 = vld [vmem:[%s3427_s1 + $0x424] ss:$16 sps:$4 sm:$0xff]   ;;  %v2316_v35 = vld [vmem:[%s3427_s1 + $0x420] ss:$16 sps:$4 sm:$0xff]  }
  0x2f   :  { %1611 = vmatpush2.bf16.msra.mxu0 %v2254_v47  ;;  %v2321_v33 = vld [vmem:[%s3427_s1 + $0x624] ss:$16 sps:$4 sm:$0xff]   ;;  %v2319_v36 = vld [vmem:[%s3427_s1 + $0x620] ss:$16 sps:$4 sm:$0xff]  }
  0x30   :  { %1652 = vmatpush2.bf16.msra.mxu1 %v2255_v48  ;;  %1612 = vmatprep.subr.bf16.mxu0 %v2256_v51  ;;  %v2324_v39 = vld [vmem:[%s3427_s1 + $0x404] ss:$16 sps:$4 sm:$0xff]   ;;  %v2322_v42 = vld [vmem:[%s3427_s1 + $0x400] ss:$16 sps:$4 sm:$0xff]  }
  0x31   :  { %1653 = vmatprep.subr.bf16.mxu1 %v2258_v53  ;;  %v2327_v41 = vld [vmem:[%s3427_s1 + $0x604] ss:$16 sps:$4 sm:$0xff]   ;;  %v2325_v43 = vld [vmem:[%s3427_s1 + $0x600] ss:$16 sps:$4 sm:$0xff]  }
  0x32   :  { %v2330_v44 = vld [vmem:[%s3427_s1 + $0x5e4] ss:$16 sps:$4 sm:$0xff]   ;;  %v2328_v46 = vld [vmem:[%s3427_s1 + $0x5e0] ss:$16 sps:$4 sm:$0xff]  }
  0x33   :  { %1613 = vmatpush2.bf16.msra.mxu0 %v2260_v54  ;;  %v2333_v45 = vld [vmem:[%s3427_s1 + $0x7e4] ss:$16 sps:$4 sm:$0xff]   ;;  %v2331_v47 = vld [vmem:[%s3427_s1 + $0x7e0] ss:$16 sps:$4 sm:$0xff]  }
  0x34   :  { %1654 = vmatpush2.bf16.msra.mxu1 %v2261_v55  ;;  %1614 = vmatprep.subr.bf16.mxu0 %v2262_v56  ;;  %v2336_v48 = vld [vmem:[%s3427_s1 + $0x5c4] ss:$16 sps:$4 sm:$0xff]   ;;  %v2334_v51 = vld [vmem:[%s3427_s1 + $0x5c0] ss:$16 sps:$4 sm:$0xff]  }
  0x35   :  { %1655 = vmatprep.subr.bf16.mxu1 %v2264_v57  ;;  %v2339_v50 = vld [vmem:[%s3427_s1 + $0x7c4] ss:$16 sps:$4 sm:$0xff]   ;;  %v2337_v53 = vld [vmem:[%s3427_s1 + $0x7c0] ss:$16 sps:$4 sm:$0xff]  }
  0x36   :  { %v2342_v54 = vld [vmem:[%s3427_s1 + $0x5a4] ss:$16 sps:$4 sm:$0xff]   ;;  %v2340_v56 = vld [vmem:[%s3427_s1 + $0x5a0] ss:$16 sps:$4 sm:$0xff]  }
  0x37   :  { %1615 = vmatpush2.bf16.msra.mxu0 %v2266_v58  ;;  %v2345_v55 = vld [vmem:[%s3427_s1 + $0x7a4] ss:$16 sps:$4 sm:$0xff]   ;;  %v2343_v57 = vld [vmem:[%s3427_s1 + $0x7a0] ss:$16 sps:$4 sm:$0xff]  }
  0x38   :  { %1656 = vmatpush2.bf16.msra.mxu1 %v2267_v59  ;;  %1616 = vmatprep.subr.bf16.mxu0 %v2268_v60  ;;  %v2348_v58 = vld [vmem:[%s3427_s1 + $0x584] ss:$16 sps:$4 sm:$0xff]   ;;  %v2346_v60 = vld [vmem:[%s3427_s1 + $0x580] ss:$16 sps:$4 sm:$0xff]  }
  0x39   :  { %1657 = vmatprep.subr.bf16.mxu1 %v2270_v61  ;;  %v2351_v59 = vld [vmem:[%s3427_s1 + $0x784] ss:$16 sps:$4 sm:$0xff]   ;;  %v2349_v61 = vld [vmem:[%s3427_s1 + $0x780] ss:$16 sps:$4 sm:$0xff]  }
  0x3a   :  { %v2358_v4 = vld [vmem:[%s3427_s1 + $0x540] ss:$16 sps:$4 sm:$0xff]  }
  0x3b   :  { %1617 = vmatpush2.bf16.msra.mxu0 %v2272_v62  ;;  %v2354_v62 = vld [vmem:[%s3427_s1 + $0x564] ss:$16 sps:$4 sm:$0xff]   ;;  %v2361_v5 = vld [vmem:[%s3427_s1 + $0x740] ss:$16 sps:$4 sm:$0xff]  }
  0x3c   :  { %1658 = vmatpush2.bf16.msra.mxu1 %v2273_v63  ;;  %1618 = vmatprep.subr.bf16.mxu0 %v2274_v0  ;;  %v2357_v63 = vld [vmem:[%s3427_s1 + $0x764] ss:$16 sps:$4 sm:$0xff]   ;;  %v2352_v0 = vld [vmem:[%s3427_s1 + $0x560] ss:$16 sps:$4 sm:$0xff]  }
  0x3d   :  { %1659 = vmatprep.subr.bf16.mxu1 %v2276_v1  ;;  %v2355_v1 = vld [vmem:[%s3427_s1 + $0x760] ss:$16 sps:$4 sm:$0xff]  }
  0x3f   :  { %1619 = vmatpush2.bf16.msra.mxu0 %v2278_v2  ;;  %v2360_v2 = vld [vmem:[%s3427_s1 + $0x544] ss:$16 sps:$4 sm:$0xff]  }
  0x40   :  { %1660 = vmatpush2.bf16.msra.mxu1 %v2279_v3  ;;  %1670 = vmatprep.subr.bf16.mxu0 %v2282_v6  ;;  %v2363_v3 = vld [vmem:[%s3427_s1 + $0x744] ss:$16 sps:$4 sm:$0xff]  }
  0x41   :  { %1711 = vmatprep.subr.bf16.mxu1 %v2285_v7  ;;  %v2366_v6 = vld [vmem:[%s3427_s1 + $0x524] ss:$16 sps:$4 sm:$0xff]  }
  0x42   :  { %1621 = vmatmul.mubr.bf16.vlgmr.msra.gmra.mxu0 %v2804_v8  ;;  %v2369_v7 = vld [vmem:[%s3427_s1 + $0x724] ss:$16 sps:$4 sm:$0xff]  }
  0x43   :  { %1662 = vmatmul.mubr.bf16.vlgmr.msra.gmra.mxu1 %v2806_v9  ;;  %1671 = vmatpush1.bf16.msra.mxu0 %v2280_v10  ;;  %v2364_v10 = vld [vmem:[%s3427_s1 + $0x520] ss:$16 sps:$4 sm:$0xff]  }
  0x44   :  { %1712 = vmatpush1.bf16.msra.mxu1 %v2283_v11  ;;  %1672 = vmatprep.subr.bf16.mxu0 %v2288_v12  ;;  %v2367_v11 = vld [vmem:[%s3427_s1 + $0x720] ss:$16 sps:$4 sm:$0xff]   ;;  %v2372_v12 = vld [vmem:[%s3427_s1 + $0x504] ss:$16 sps:$4 sm:$0xff]  }
  0x45   :  { %1713 = vmatprep.subr.bf16.mxu1 %v2291_v13  ;;  %1702 = vmatprep.mubr.bf16.mxu0 %v2891_v37  ;;  %v2375_v13 = vld [vmem:[%s3427_s1 + $0x704] ss:$16 sps:$4 sm:$0xff]  }
  0x46   :  { %1743 = vmatprep.mubr.bf16.mxu1 %v2899_v40 }
  0x47   :  { %1673 = vmatpush1.bf16.msra.mxu0 %v2286_v14  ;;  %v2370_v14 = vld [vmem:[%s3427_s1 + $0x500] ss:$16 sps:$4 sm:$0xff]  }
  0x48   :  { %1714 = vmatpush1.bf16.msra.mxu1 %v2289_v15  ;;  %1674 = vmatprep.subr.bf16.mxu0 %v2294_v16  ;;  %v2373_v15 = vld [vmem:[%s3427_s1 + $0x700] ss:$16 sps:$4 sm:$0xff]  }
  0x49   :  { %1715 = vmatprep.subr.bf16.mxu1 %v2297_v17  ;;  %v18_v16 = vld [vmem:[%s3428_s0 + $0x20] sm:$0xff]  ;;  %v20_v17 = vld [vmem:[%s3428_s0 + $0x30] sm:$0xff] }
  0x4b   :  { %1675 = vmatpush1.bf16.msra.mxu0 %v2292_v18  ;;  %v2378_v18 = vld [vmem:[%s3427_s1 + $0xec] ss:$16 sps:$4 sm:$0xff]  }
  0x4c   :  { %1716 = vmatpush1.bf16.msra.mxu1 %v2295_v19  ;;  %1676 = vmatprep.subr.bf16.mxu0 %v2300_v20  ;;  %v2381_v19 = vld [vmem:[%s3427_s1 + $0x2ec] ss:$16 sps:$4 sm:$0xff]   ;;  %v3020_v20 = vpack.c.bf16 %v18_v16, %v18_v16 }
  0x4d   :  { %1717 = vmatprep.subr.bf16.mxu1 %v2303_v21  ;;  %v3022_v21 = vpack.c.bf16 %v20_v17, %v20_v17  ;;  %v2462_v16 = vld [vmem:[%s3427_s1 + $0x12c] ss:$16 sps:$4 sm:$0xff]  }
  0x4e   :  { %v2465_v17 = vld [vmem:[%s3427_s1 + $0x32c] ss:$16 sps:$4 sm:$0xff]  }
  0x4f   :  { %1677 = vmatpush1.bf16.msra.mxu0 %v2298_v22  ;;  %v2376_v22 = vld [vmem:[%s3427_s1 + $0xe8] ss:$16 sps:$4 sm:$0xff]  }
  0x50   :  { %1718 = vmatpush1.bf16.msra.mxu1 %v2301_v23  ;;  %1678 = vmatprep.subr.bf16.mxu0 %v2306_v24  ;;  %v2379_v23 = vld [vmem:[%s3427_s1 + $0x2e8] ss:$16 sps:$4 sm:$0xff]   ;;  %v2384_v24 = vld [vmem:[%s3427_s1 + $0xcc] ss:$16 sps:$4 sm:$0xff]  }
  0x51   :  { %1719 = vmatprep.subr.bf16.mxu1 %v2309_v25  ;;  %v2387_v25 = vld [vmem:[%s3427_s1 + $0x2cc] ss:$16 sps:$4 sm:$0xff]  }
  0x53   :  { %1679 = vmatpush1.bf16.msra.mxu0 %v2304_v26  ;;  %v2382_v26 = vld [vmem:[%s3427_s1 + $0xc8] ss:$16 sps:$4 sm:$0xff]  }
  0x54   :  { %1720 = vmatpush1.bf16.msra.mxu1 %v2307_v27  ;;  %1680 = vmatprep.subr.bf16.mxu0 %v2312_v28  ;;  %v2385_v27 = vld [vmem:[%s3427_s1 + $0x2c8] ss:$16 sps:$4 sm:$0xff]   ;;  %v2390_v28 = vld [vmem:[%s3427_s1 + $0xac] ss:$16 sps:$4 sm:$0xff]  }
  0x55   :  { %1721 = vmatprep.subr.bf16.mxu1 %v2315_v29  ;;  %v2393_v29 = vld [vmem:[%s3427_s1 + $0x2ac] ss:$16 sps:$4 sm:$0xff]  }
  0x57   :  { %1681 = vmatpush1.bf16.msra.mxu0 %v2310_v30  ;;  %v2388_v30 = vld [vmem:[%s3427_s1 + $0xa8] ss:$16 sps:$4 sm:$0xff]  }
  0x58   :  { %1722 = vmatpush1.bf16.msra.mxu1 %v2313_v31  ;;  %1682 = vmatprep.subr.bf16.mxu0 %v2318_v32  ;;  %v2391_v31 = vld [vmem:[%s3427_s1 + $0x2a8] ss:$16 sps:$4 sm:$0xff]   ;;  %v2396_v32 = vld [vmem:[%s3427_s1 + $0x8c] ss:$16 sps:$4 sm:$0xff]  }
  0x59   :  { %1723 = vmatprep.subr.bf16.mxu1 %v2321_v33  ;;  %v2397_v33 = vld [vmem:[%s3427_s1 + $0x288] ss:$16 sps:$4 sm:$0xff]  }
  0x5b   :  { %1683 = vmatpush1.bf16.msra.mxu0 %v2316_v35  ;;  %v2405_v35 = vld [vmem:[%s3427_s1 + $0x26c] ss:$16 sps:$4 sm:$0xff]  }
  0x5c   :  { %1724 = vmatpush1.bf16.msra.mxu1 %v2319_v36  ;;  %1684 = vmatprep.subr.bf16.mxu0 %v2324_v39  ;;  %v2400_v36 = vld [vmem:[%s3427_s1 + $0x68] ss:$16 sps:$4 sm:$0xff]   ;;  %v2408_v39 = vld [vmem:[%s3427_s1 + $0x4c] ss:$16 sps:$4 sm:$0xff]  }
  0x5d   :  { %1725 = vmatprep.subr.bf16.mxu1 %v2327_v41  ;;  %v2411_v41 = vld [vmem:[%s3427_s1 + $0x24c] ss:$16 sps:$4 sm:$0xff]  }
  0x5f   :  { %1685 = vmatpush1.bf16.msra.mxu0 %v2322_v42  ;;  %v2406_v42 = vld [vmem:[%s3427_s1 + $0x48] ss:$16 sps:$4 sm:$0xff]  }
  0x60   :  { %1726 = vmatpush1.bf16.msra.mxu1 %v2325_v43  ;;  %1686 = vmatprep.subr.bf16.mxu0 %v2330_v44  ;;  %v2409_v43 = vld [vmem:[%s3427_s1 + $0x248] ss:$16 sps:$4 sm:$0xff]   ;;  %v2414_v44 = vld [vmem:[%s3427_s1 + $0x2c] ss:$16 sps:$4 sm:$0xff]  }
  0x61   :  { %1727 = vmatprep.subr.bf16.mxu1 %v2333_v45  ;;  %v2417_v45 = vld [vmem:[%s3427_s1 + $0x22c] ss:$16 sps:$4 sm:$0xff]  }
  0x63   :  { %1687 = vmatpush2.bf16.msra.mxu0 %v2328_v46  ;;  %v2412_v46 = vld [vmem:[%s3427_s1 + $0x28] ss:$16 sps:$4 sm:$0xff]  }
  0x64   :  { %1728 = vmatpush2.bf16.msra.mxu1 %v2331_v47  ;;  %1688 = vmatprep.subr.bf16.mxu0 %v2336_v48  ;;  %v2415_v47 = vld [vmem:[%s3427_s1 + $0x228] ss:$16 sps:$4 sm:$0xff]   ;;  %v2420_v48 = vld [vmem:[%s3427_s1 + $0xc] ss:$16 sps:$4 sm:$0xff]  }
  0x65   :  { %1729 = vmatprep.subr.bf16.mxu1 %v2339_v50  ;;  %v2423_v50 = vld [vmem:[%s3427_s1 + $0x20c] ss:$16 sps:$4 sm:$0xff]  }
  0x67   :  { %1689 = vmatpush2.bf16.msra.mxu0 %v2334_v51  ;;  %v2418_v51 = vld [vmem:[%s3427_s1 + $0x8] ss:$16 sps:$4 sm:$0xff]  }
  0x68   :  { %1730 = vmatpush2.bf16.msra.mxu1 %v2337_v53  ;;  %1690 = vmatprep.subr.bf16.mxu0 %v2342_v54  ;;  %v2421_v53 = vld [vmem:[%s3427_s1 + $0x208] ss:$16 sps:$4 sm:$0xff]   ;;  %v2426_v54 = vld [vmem:[%s3427_s1 + $0x1ec] ss:$16 sps:$4 sm:$0xff]  }
  0x69   :  { %1731 = vmatprep.subr.bf16.mxu1 %v2345_v55  ;;  %v2429_v55 = vld [vmem:[%s3427_s1 + $0x3ec] ss:$16 sps:$4 sm:$0xff]  }
  0x6b   :  { %1691 = vmatpush2.bf16.msra.mxu0 %v2340_v56  ;;  %v2424_v56 = vld [vmem:[%s3427_s1 + $0x1e8] ss:$16 sps:$4 sm:$0xff]  }
  0x6c   :  { %1732 = vmatpush2.bf16.msra.mxu1 %v2343_v57  ;;  %1692 = vmatprep.subr.bf16.mxu0 %v2348_v58  ;;  %v2427_v57 = vld [vmem:[%s3427_s1 + $0x3e8] ss:$16 sps:$4 sm:$0xff]   ;;  %v2432_v58 = vld [vmem:[%s3427_s1 + $0x1cc] ss:$16 sps:$4 sm:$0xff]  }
  0x6d   :  { %1733 = vmatprep.subr.bf16.mxu1 %v2351_v59  ;;  %v2435_v59 = vld [vmem:[%s3427_s1 + $0x3cc] ss:$16 sps:$4 sm:$0xff]  }
  0x6f   :  { %1693 = vmatpush2.bf16.msra.mxu0 %v2346_v60  ;;  %v2430_v60 = vld [vmem:[%s3427_s1 + $0x1c8] ss:$16 sps:$4 sm:$0xff]  }
  0x70   :  { %1734 = vmatpush2.bf16.msra.mxu1 %v2349_v61  ;;  %1694 = vmatprep.subr.bf16.mxu0 %v2354_v62  ;;  %v2433_v61 = vld [vmem:[%s3427_s1 + $0x3c8] ss:$16 sps:$4 sm:$0xff]   ;;  %v2438_v62 = vld [vmem:[%s3427_s1 + $0x1ac] ss:$16 sps:$4 sm:$0xff]  }
  0x71   :  { %1735 = vmatprep.subr.bf16.mxu1 %v2357_v63  ;;  %v2441_v63 = vld [vmem:[%s3427_s1 + $0x3ac] ss:$16 sps:$4 sm:$0xff]  }
  0x73   :  { %1695 = vmatpush2.bf16.msra.mxu0 %v2352_v0  ;;  %v2436_v0 = vld [vmem:[%s3427_s1 + $0x1a8] ss:$16 sps:$4 sm:$0xff]  }
  0x74   :  { %1736 = vmatpush2.bf16.msra.mxu1 %v2355_v1  ;;  %1696 = vmatprep.subr.bf16.mxu0 %v2360_v2  ;;  %v2439_v1 = vld [vmem:[%s3427_s1 + $0x3a8] ss:$16 sps:$4 sm:$0xff]   ;;  %v2444_v2 = vld [vmem:[%s3427_s1 + $0x18c] ss:$16 sps:$4 sm:$0xff]  }
  0x75   :  { %1737 = vmatprep.subr.bf16.mxu1 %v2363_v3  ;;  %v2447_v3 = vld [vmem:[%s3427_s1 + $0x38c] ss:$16 sps:$4 sm:$0xff]  }
  0x77   :  { %1697 = vmatpush2.bf16.msra.mxu0 %v2358_v4  ;;  %v2442_v4 = vld [vmem:[%s3427_s1 + $0x188] ss:$16 sps:$4 sm:$0xff]  }
  0x78   :  { %1738 = vmatpush2.bf16.msra.mxu1 %v2361_v5  ;;  %1698 = vmatprep.subr.bf16.mxu0 %v2366_v6  ;;  %v2445_v5 = vld [vmem:[%s3427_s1 + $0x388] ss:$16 sps:$4 sm:$0xff]   ;;  %v2450_v6 = vld [vmem:[%s3427_s1 + $0x16c] ss:$16 sps:$4 sm:$0xff]  }
  0x79   :  { %1739 = vmatprep.subr.bf16.mxu1 %v2369_v7  ;;  %v2453_v7 = vld [vmem:[%s3427_s1 + $0x36c] ss:$16 sps:$4 sm:$0xff]  }
  0x7b   :  { %1699 = vmatpush2.bf16.msra.mxu0 %v2364_v10  ;;  %v2448_v10 = vld [vmem:[%s3427_s1 + $0x168] ss:$16 sps:$4 sm:$0xff]  }
  0x7c   :  { %1740 = vmatpush2.bf16.msra.mxu1 %v2367_v11  ;;  %1700 = vmatprep.subr.bf16.mxu0 %v2372_v12  ;;  %v2451_v11 = vld [vmem:[%s3427_s1 + $0x368] ss:$16 sps:$4 sm:$0xff]   ;;  %v2456_v12 = vld [vmem:[%s3427_s1 + $0x14c] ss:$16 sps:$4 sm:$0xff]  }
  0x7d   :  { %1741 = vmatprep.subr.bf16.mxu1 %v2375_v13  ;;  %v2459_v13 = vld [vmem:[%s3427_s1 + $0x34c] ss:$16 sps:$4 sm:$0xff]  }
  0x7f   :  { %1701 = vmatpush2.bf16.msra.mxu0 %v2370_v14  ;;  %v2454_v14 = vld [vmem:[%s3427_s1 + $0x148] ss:$16 sps:$4 sm:$0xff]  }
  0x80   :  { %1742 = vmatpush2.bf16.msra.mxu1 %v2373_v15  ;;  %1752 = vmatprep.subr.bf16.mxu0 %v2378_v18  ;;  %v2457_v15 = vld [vmem:[%s3427_s1 + $0x348] ss:$16 sps:$4 sm:$0xff]  }
  0x81   :  { %1793 = vmatprep.subr.bf16.mxu1 %v2381_v19  ;;  %v2460_v18 = vld [vmem:[%s3427_s1 + $0x128] ss:$16 sps:$4 sm:$0xff]  }
  0x82   :  { %1703 = vmatmul.mubr.bf16.vlgmr.msra.gmra.mxu0 %v3020_v20  ;;  %v2463_v19 = vld [vmem:[%s3427_s1 + $0x328] ss:$16 sps:$4 sm:$0xff]  }
  0x83   :  { %1744 = vmatmul.mubr.bf16.vlgmr.msra.gmra.mxu1 %v3022_v21  ;;  %1753 = vmatpush1.bf16.msra.mxu0 %v2376_v22  ;;  %v2468_v22 = vld [vmem:[%s3427_s1 + $0x10c] ss:$16 sps:$4 sm:$0xff]  }
  0x84   :  { %1794 = vmatpush1.bf16.msra.mxu1 %v2379_v23  ;;  %1754 = vmatprep.subr.bf16.mxu0 %v2384_v24  ;;  %v2471_v23 = vld [vmem:[%s3427_s1 + $0x30c] ss:$16 sps:$4 sm:$0xff]   ;;  %v2466_v24 = vld [vmem:[%s3427_s1 + $0x108] ss:$16 sps:$4 sm:$0xff]  }
  0x85   :  { %1795 = vmatprep.subr.bf16.mxu1 %v2387_v25  ;;  %1784 = vmatprep.mubr.bf16.mxu0 %v2735_v49  ;;  %v2399_v49 = vld [vmem:[%s3427_s1 + $0x28c] ss:$16 sps:$4 sm:$0xff]   ;;  %v2469_v25 = vld [vmem:[%s3427_s1 + $0x308] ss:$16 sps:$4 sm:$0xff]  }
  0x86   :  { %1825 = vmatprep.mubr.bf16.mxu1 %v2743_v52  ;;  %v2394_v52 = vld [vmem:[%s3427_s1 + $0x88] ss:$16 sps:$4 sm:$0xff]  }
  0x87   :  { %1755 = vmatpush1.bf16.msra.mxu0 %v2382_v26  ;;  %v2474_v26 = vld [vmem:[%s3427_s1 + $0x4ec] ss:$16 sps:$4 sm:$0xff]  }
  0x88   :  { %1796 = vmatpush1.bf16.msra.mxu1 %v2385_v27  ;;  %1756 = vmatprep.subr.bf16.mxu0 %v2390_v28  ;;  %v2477_v27 = vld [vmem:[%s3427_s1 + $0x6ec] ss:$16 sps:$4 sm:$0xff]   ;;  %v2472_v28 = vld [vmem:[%s3427_s1 + $0x4e8] ss:$16 sps:$4 sm:$0xff]  }
  0x89   :  { %1797 = vmatprep.subr.bf16.mxu1 %v2393_v29  ;;  %v2475_v29 = vld [vmem:[%s3427_s1 + $0x6e8] ss:$16 sps:$4 sm:$0xff]  }
  0x8b   :  { %1757 = vmatpush1.bf16.msra.mxu0 %v2388_v30  ;;  %v2480_v30 = vld [vmem:[%s3427_s1 + $0x4cc] ss:$16 sps:$4 sm:$0xff]  }
  0x8c   :  { %1798 = vmatpush1.bf16.msra.mxu1 %v2391_v31  ;;  %1758 = vmatprep.subr.bf16.mxu0 %v2396_v32  ;;  %v2483_v31 = vld [vmem:[%s3427_s1 + $0x6cc] ss:$16 sps:$4 sm:$0xff]   ;;  %v2478_v32 = vld [vmem:[%s3427_s1 + $0x4c8] ss:$16 sps:$4 sm:$0xff]  }
  0x8d   :  { %1799 = vmatprep.subr.bf16.mxu1 %v2399_v49  ;;  %v2481_v49 = vld [vmem:[%s3427_s1 + $0x6c8] ss:$16 sps:$4 sm:$0xff]  }
  0x8f   :  { %1759 = vmatpush1.bf16.msra.mxu0 %v2394_v52  ;;  %v2486_v52 = vld [vmem:[%s3427_s1 + $0x4ac] ss:$16 sps:$4 sm:$0xff]  }
  0x90   :  { %1800 = vmatpush1.bf16.msra.mxu1 %v2397_v33  ;;  %1760 = vmatprep.subr.bf16.mxu0 %v2402_v34  ;;  %v2487_v33 = vld [vmem:[%s3427_s1 + $0x6a8] ss:$16 sps:$4 sm:$0xff]   ;;  %v2492_v34 = vld [vmem:[%s3427_s1 + $0x48c] ss:$16 sps:$4 sm:$0xff]  }
  0x91   :  { %1801 = vmatprep.subr.bf16.mxu1 %v2405_v35  ;;  %v2493_v35 = vld [vmem:[%s3427_s1 + $0x688] ss:$16 sps:$4 sm:$0xff]  }
  0x93   :  { %1761 = vmatpush1.bf16.msra.mxu0 %v2400_v36  ;;  %v2498_v36 = vld [vmem:[%s3427_s1 + $0x46c] ss:$16 sps:$4 sm:$0xff]  }
  0x94   :  { %1802 = vmatpush1.bf16.msra.mxu1 %v2403_v38  ;;  %1762 = vmatprep.subr.bf16.mxu0 %v2408_v39  ;;  %v2501_v38 = vld [vmem:[%s3427_s1 + $0x66c] ss:$16 sps:$4 sm:$0xff]   ;;  %v2496_v39 = vld [vmem:[%s3427_s1 + $0x468] ss:$16 sps:$4 sm:$0xff]  }
  0x95   :  { %1803 = vmatprep.subr.bf16.mxu1 %v2411_v41  ;;  %v2499_v41 = vld [vmem:[%s3427_s1 + $0x668] ss:$16 sps:$4 sm:$0xff]  }
  0x97   :  { %1763 = vmatpush1.bf16.msra.mxu0 %v2406_v42  ;;  %v2504_v42 = vld [vmem:[%s3427_s1 + $0x44c] ss:$16 sps:$4 sm:$0xff]  }
  0x98   :  { %1804 = vmatpush1.bf16.msra.mxu1 %v2409_v43  ;;  %1764 = vmatprep.subr.bf16.mxu0 %v2414_v44  ;;  %v2507_v43 = vld [vmem:[%s3427_s1 + $0x64c] ss:$16 sps:$4 sm:$0xff]   ;;  %v2502_v44 = vld [vmem:[%s3427_s1 + $0x448] ss:$16 sps:$4 sm:$0xff]  }
  0x99   :  { %1805 = vmatprep.subr.bf16.mxu1 %v2417_v45  ;;  %v2505_v45 = vld [vmem:[%s3427_s1 + $0x648] ss:$16 sps:$4 sm:$0xff]  }
  0x9b   :  { %1765 = vmatpush1.bf16.msra.mxu0 %v2412_v46  ;;  %v2510_v46 = vld [vmem:[%s3427_s1 + $0x42c] ss:$16 sps:$4 sm:$0xff]  }
  0x9c   :  { %1806 = vmatpush1.bf16.msra.mxu1 %v2415_v47  ;;  %1766 = vmatprep.subr.bf16.mxu0 %v2420_v48  ;;  %v2513_v47 = vld [vmem:[%s3427_s1 + $0x62c] ss:$16 sps:$4 sm:$0xff]   ;;  %v2508_v48 = vld [vmem:[%s3427_s1 + $0x428] ss:$16 sps:$4 sm:$0xff]  }
  0x9d   :  { %1807 = vmatprep.subr.bf16.mxu1 %v2423_v50  ;;  %v2511_v50 = vld [vmem:[%s3427_s1 + $0x628] ss:$16 sps:$4 sm:$0xff]  }
  0x9f   :  { %1767 = vmatpush1.bf16.msra.mxu0 %v2418_v51  ;;  %v2516_v51 = vld [vmem:[%s3427_s1 + $0x40c] ss:$16 sps:$4 sm:$0xff]  }
  0xa0   :  { %1808 = vmatpush1.bf16.msra.mxu1 %v2421_v53  ;;  %1768 = vmatprep.subr.bf16.mxu0 %v2426_v54  ;;  %v2519_v53 = vld [vmem:[%s3427_s1 + $0x60c] ss:$16 sps:$4 sm:$0xff]   ;;  %v2514_v54 = vld [vmem:[%s3427_s1 + $0x408] ss:$16 sps:$4 sm:$0xff]  }
  0xa1   :  { %1809 = vmatprep.subr.bf16.mxu1 %v2429_v55  ;;  %v2517_v55 = vld [vmem:[%s3427_s1 + $0x608] ss:$16 sps:$4 sm:$0xff]  }
  0xa3   :  { %1769 = vmatpush2.bf16.msra.mxu0 %v2424_v56  ;;  %v2522_v56 = vld [vmem:[%s3427_s1 + $0x5ec] ss:$16 sps:$4 sm:$0xff]  }
  0xa4   :  { %1810 = vmatpush2.bf16.msra.mxu1 %v2427_v57  ;;  %1770 = vmatprep.subr.bf16.mxu0 %v2432_v58  ;;  %v2525_v57 = vld [vmem:[%s3427_s1 + $0x7ec] ss:$16 sps:$4 sm:$0xff]   ;;  %v2520_v58 = vld [vmem:[%s3427_s1 + $0x5e8] ss:$16 sps:$4 sm:$0xff]  }
  0xa5   :  { %1811 = vmatprep.subr.bf16.mxu1 %v2435_v59  ;;  %v2523_v59 = vld [vmem:[%s3427_s1 + $0x7e8] ss:$16 sps:$4 sm:$0xff]  }
  0xa7   :  { %1771 = vmatpush2.bf16.msra.mxu0 %v2430_v60  ;;  %v2528_v60 = vld [vmem:[%s3427_s1 + $0x5cc] ss:$16 sps:$4 sm:$0xff]  }
  0xa8   :  { %1812 = vmatpush2.bf16.msra.mxu1 %v2433_v61  ;;  %1772 = vmatprep.subr.bf16.mxu0 %v2438_v62  ;;  %v2531_v61 = vld [vmem:[%s3427_s1 + $0x7cc] ss:$16 sps:$4 sm:$0xff]   ;;  %v2526_v62 = vld [vmem:[%s3427_s1 + $0x5c8] ss:$16 sps:$4 sm:$0xff]  }
  0xa9   :  { %1813 = vmatprep.subr.bf16.mxu1 %v2441_v63  ;;  %v2529_v63 = vld [vmem:[%s3427_s1 + $0x7c8] ss:$16 sps:$4 sm:$0xff]  }
  0xab   :  { %1773 = vmatpush2.bf16.msra.mxu0 %v2436_v0  ;;  %v2534_v0 = vld [vmem:[%s3427_s1 + $0x5ac] ss:$16 sps:$4 sm:$0xff]  }
  0xac   :  { %1814 = vmatpush2.bf16.msra.mxu1 %v2439_v1  ;;  %1774 = vmatprep.subr.bf16.mxu0 %v2444_v2  ;;  %v2537_v1 = vld [vmem:[%s3427_s1 + $0x7ac] ss:$16 sps:$4 sm:$0xff]   ;;  %v2532_v2 = vld [vmem:[%s3427_s1 + $0x5a8] ss:$16 sps:$4 sm:$0xff]  }
  0xad   :  { %1815 = vmatprep.subr.bf16.mxu1 %v2447_v3  ;;  %v2535_v3 = vld [vmem:[%s3427_s1 + $0x7a8] ss:$16 sps:$4 sm:$0xff]  }
  0xaf   :  { %1775 = vmatpush2.bf16.msra.mxu0 %v2442_v4  ;;  %v2540_v4 = vld [vmem:[%s3427_s1 + $0x58c] ss:$16 sps:$4 sm:$0xff]  }
  0xb0   :  { %1816 = vmatpush2.bf16.msra.mxu1 %v2445_v5  ;;  %1776 = vmatprep.subr.bf16.mxu0 %v2450_v6  ;;  %v2543_v5 = vld [vmem:[%s3427_s1 + $0x78c] ss:$16 sps:$4 sm:$0xff]   ;;  %v2538_v6 = vld [vmem:[%s3427_s1 + $0x588] ss:$16 sps:$4 sm:$0xff]  }
  0xb1   :  { %1817 = vmatprep.subr.bf16.mxu1 %v2453_v7  ;;  %v2541_v7 = vld [vmem:[%s3427_s1 + $0x788] ss:$16 sps:$4 sm:$0xff]  }
  0xb3   :  { %1777 = vmatpush2.bf16.msra.mxu0 %v2448_v10  ;;  %v2546_v10 = vld [vmem:[%s3427_s1 + $0x56c] ss:$16 sps:$4 sm:$0xff]  }
  0xb4   :  { %1818 = vmatpush2.bf16.msra.mxu1 %v2451_v11  ;;  %1778 = vmatprep.subr.bf16.mxu0 %v2456_v12  ;;  %v2549_v11 = vld [vmem:[%s3427_s1 + $0x76c] ss:$16 sps:$4 sm:$0xff]   ;;  %v2544_v12 = vld [vmem:[%s3427_s1 + $0x568] ss:$16 sps:$4 sm:$0xff]  }
  0xb5   :  { %1819 = vmatprep.subr.bf16.mxu1 %v2459_v13  ;;  %v2547_v13 = vld [vmem:[%s3427_s1 + $0x768] ss:$16 sps:$4 sm:$0xff]  }
  0xb7   :  { %1779 = vmatpush2.bf16.msra.mxu0 %v2454_v14  ;;  %v2552_v14 = vld [vmem:[%s3427_s1 + $0x54c] ss:$16 sps:$4 sm:$0xff]  }
  0xb8   :  { %1820 = vmatpush2.bf16.msra.mxu1 %v2457_v15  ;;  %1780 = vmatprep.subr.bf16.mxu0 %v2462_v16  ;;  %v2555_v15 = vld [vmem:[%s3427_s1 + $0x74c] ss:$16 sps:$4 sm:$0xff]   ;;  %v2550_v16 = vld [vmem:[%s3427_s1 + $0x548] ss:$16 sps:$4 sm:$0xff]  }
  0xb9   :  { %1821 = vmatprep.subr.bf16.mxu1 %v2465_v17  ;;  %v2553_v17 = vld [vmem:[%s3427_s1 + $0x748] ss:$16 sps:$4 sm:$0xff]  }
  0xbb   :  { %1781 = vmatpush2.bf16.msra.mxu0 %v2460_v18  ;;  %v2558_v18 = vld [vmem:[%s3427_s1 + $0x52c] ss:$16 sps:$4 sm:$0xff]  }
  0xbc   :  { %1822 = vmatpush2.bf16.msra.mxu1 %v2463_v19  ;;  %1782 = vmatprep.subr.bf16.mxu0 %v2468_v22  ;;  %v2561_v19 = vld [vmem:[%s3427_s1 + $0x72c] ss:$16 sps:$4 sm:$0xff]   ;;  %v2556_v22 = vld [vmem:[%s3427_s1 + $0x528] ss:$16 sps:$4 sm:$0xff]  }
  0xbd   :  { %1823 = vmatprep.subr.bf16.mxu1 %v2471_v23  ;;  %v2559_v23 = vld [vmem:[%s3427_s1 + $0x728] ss:$16 sps:$4 sm:$0xff]  }
  0xbf   :  { %1783 = vmatpush2.bf16.msra.mxu0 %v2466_v24  ;;  %v2564_v24 = vld [vmem:[%s3427_s1 + $0x50c] ss:$16 sps:$4 sm:$0xff]  }
  0xc0   :  { %1824 = vmatpush2.bf16.msra.mxu1 %v2469_v25  ;;  %1834 = vmatprep.subr.bf16.mxu0 %v2474_v26  ;;  %v2567_v25 = vld [vmem:[%s3427_s1 + $0x70c] ss:$16 sps:$4 sm:$0xff]   ;;  %v2562_v26 = vld [vmem:[%s3427_s1 + $0x508] ss:$16 sps:$4 sm:$0xff]  }
  0xc1   :  { %1875 = vmatprep.subr.bf16.mxu1 %v2477_v27  ;;  %v2565_v27 = vld [vmem:[%s3427_s1 + $0x708] ss:$16 sps:$4 sm:$0xff]  }
  0xc2   :  { %1785 = vmatmul.mubr.bf16.vlgmr.msra.gmra.mxu0 %v2804_v8  ;;  %v2489_v8 = vld [vmem:[%s3427_s1 + $0x6ac] ss:$16 sps:$4 sm:$0xff]  }
  0xc3   :  { %1826 = vmatmul.mubr.bf16.vlgmr.msra.gmra.mxu1 %v2806_v9  ;;  %1835 = vmatpush1.bf16.msra.mxu0 %v2472_v28  ;;  %v2484_v9 = vld [vmem:[%s3427_s1 + $0x4a8] ss:$16 sps:$4 sm:$0xff]  }
  0xc4   :  { %1876 = vmatpush1.bf16.msra.mxu1 %v2475_v29  ;;  %1836 = vmatprep.subr.bf16.mxu0 %v2480_v30 }
  0xc5   :  { %1877 = vmatprep.subr.bf16.mxu1 %v2483_v31  ;;  %1866 = vmatprep.mubr.bf16.mxu0 %v2891_v37  ;;  %v2495_v37 = vld [vmem:[%s3427_s1 + $0x68c] ss:$16 sps:$4 sm:$0xff]  }
  0xc6   :  { %1907 = vmatprep.mubr.bf16.mxu1 %v2899_v40  ;;  %v2490_v40 = vld [vmem:[%s3427_s1 + $0x488] ss:$16 sps:$4 sm:$0xff]  }
  0xc7   :  { %1837 = vmatpush1.bf16.msra.mxu0 %v2478_v32 }
  0xc8   :  { %1878 = vmatpush1.bf16.msra.mxu1 %v2481_v49  ;;  %1838 = vmatprep.subr.bf16.mxu0 %v2486_v52 }
  0xc9   :  { %1879 = vmatprep.subr.bf16.mxu1 %v2489_v8 }
  0xcb   :  { %1839 = vmatpush1.bf16.msra.mxu0 %v2484_v9  ;;  %v288_v9 = vlaneseq }
  0xcc   :  { %1880 = vmatpush1.bf16.msra.mxu1 %v2487_v33  ;;  %1840 = vmatprep.subr.bf16.mxu0 %v2492_v34 }
  0xcd   :  { %1881 = vmatprep.subr.bf16.mxu1 %v2495_v37  ;;  %v289_v33 = vshrl.u32 %v288_v9, 7  ;;  %v286_v37 = vld [vmem:[%s3429_s2] sm:$0xf] }
  0xcf   :  { %1841 = vmatpush1.bf16.msra.mxu0 %v2490_v40  ;;  %v290_v34 = vsub.s32 0, %v289_v33  ;;  %v294_v40 = vsub.s32 1, %v289_v33 }
  0xd0   :  { %1882 = vmatpush1.bf16.msra.mxu1 %v2493_v35  ;;  %1842 = vmatprep.subr.bf16.mxu0 %v2498_v36 }
  0xd1   :  { %1883 = vmatprep.subr.bf16.mxu1 %v2501_v38  ;;  %v291_v35 = vrot.slane %v286_v37, %v290_v34  ;;  %v295_v36 = vrot.slane %v286_v37, %v294_v40 }
  0xd3   :  { %1843 = vmatpush1.bf16.msra.mxu0 %v2496_v39 }
  0xd4   :  { %1884 = vmatpush1.bf16.msra.mxu1 %v2499_v41  ;;  %1844 = vmatprep.subr.bf16.mxu0 %v2504_v42 }
  0xd5   :  { %1885 = vmatprep.subr.bf16.mxu1 %v2507_v43 }
  0xd7   :  { %1845 = vmatpush1.bf16.msra.mxu0 %v2502_v44 }
  0xd8   :  { %1886 = vmatpush1.bf16.msra.mxu1 %v2505_v45  ;;  %1846 = vmatprep.subr.bf16.mxu0 %v2510_v46 }
  0xd9   :  { %1887 = vmatprep.subr.bf16.mxu1 %v2513_v47 }
  0xdb   :  { %1847 = vmatpush1.bf16.msra.mxu0 %v2508_v48 }
  0xdc   :  { %1888 = vmatpush1.bf16.msra.mxu1 %v2511_v50  ;;  %1848 = vmatprep.subr.bf16.mxu0 %v2516_v51 }
  0xdd   :  { %1889 = vmatprep.subr.bf16.mxu1 %v2519_v53 }
  0xdf   :  { %1849 = vmatpush1.bf16.msra.mxu0 %v2514_v54 }
  0xe0   :  { %1890 = vmatpush1.bf16.msra.mxu1 %v2517_v55  ;;  %1850 = vmatprep.subr.bf16.mxu0 %v2522_v56 }
  0xe1   :  { %1891 = vmatprep.subr.bf16.mxu1 %v2525_v57 }
  0xe3   :  { %1851 = vmatpush2.bf16.msra.mxu0 %v2520_v58 }
  0xe4   :  { %1892 = vmatpush2.bf16.msra.mxu1 %v2523_v59  ;;  %1852 = vmatprep.subr.bf16.mxu0 %v2528_v60 }
  0xe5   :  { %1893 = vmatprep.subr.bf16.mxu1 %v2531_v61 }
  0xe7   :  { %1853 = vmatpush2.bf16.msra.mxu0 %v2526_v62 }
  0xe8   :  { %1894 = vmatpush2.bf16.msra.mxu1 %v2529_v63  ;;  %1854 = vmatprep.subr.bf16.mxu0 %v2534_v0 }
  0xe9   :  { %1895 = vmatprep.subr.bf16.mxu1 %v2537_v1  ;;  %v298_v1 = vsub.s32 2, %v289_v33 }
  0xeb   :  { %1855 = vmatpush2.bf16.msra.mxu0 %v2532_v2  ;;  %v302_v2 = vsub.s32 3, %v289_v33 }
  0xec   :  { %1896 = vmatpush2.bf16.msra.mxu1 %v2535_v3  ;;  %1856 = vmatprep.subr.bf16.mxu0 %v2540_v4  ;;  %v299_v3 = vrot.slane %v286_v37, %v298_v1 }
  0xed   :  { %1897 = vmatprep.subr.bf16.mxu1 %v2543_v5  ;;  %v303_v4 = vrot.slane %v286_v37, %v302_v2 }
  0xef   :  { %1857 = vmatpush2.bf16.msra.mxu0 %v2538_v6 }
  0xf0   :  { %1898 = vmatpush2.bf16.msra.mxu1 %v2541_v7  ;;  %1858 = vmatprep.subr.bf16.mxu0 %v2546_v10 }
  0xf1   :  { %1899 = vmatprep.subr.bf16.mxu1 %v2549_v11 }
  0xf3   :  { %1859 = vmatpush2.bf16.msra.mxu0 %v2544_v12 }
  0xf4   :  { %1900 = vmatpush2.bf16.msra.mxu1 %v2547_v13  ;;  %1860 = vmatprep.subr.bf16.mxu0 %v2552_v14 }
  0xf5   :  { %1901 = vmatprep.subr.bf16.mxu1 %v2555_v15 }
  0xf7   :  { %1861 = vmatpush2.bf16.msra.mxu0 %v2550_v16 }
  0xf8   :  { %1902 = vmatpush2.bf16.msra.mxu1 %v2553_v17  ;;  %1862 = vmatprep.subr.bf16.mxu0 %v2558_v18 }
  0xf9   :  { %1903 = vmatprep.subr.bf16.mxu1 %v2561_v19 }
  0xfb   :  { %1863 = vmatpush2.bf16.msra.mxu0 %v2556_v22 }
  0xfc   :  { %1904 = vmatpush2.bf16.msra.mxu1 %v2559_v23  ;;  %1864 = vmatprep.subr.bf16.mxu0 %v2564_v24 }
  0xfd   :  { %1905 = vmatprep.subr.bf16.mxu1 %v2567_v25 }
  0xff   :  { %1865 = vmatpush2.bf16.msra.mxu0 %v2562_v26 }
 0x100   :  { %1906 = vmatpush2.bf16.msra.mxu1 %v2565_v27 }
 0x102   :  { %v1622_v28 = vpop.f32.mrf.mxu0  ;;  %1867 = vmatmul.mubr.bf16.vlgmr.msra.gmra.mxu0 %v3020_v20 }
 0x103   :  { %v1663_v29 = vpop.f32.mrf.mxu1  ;;  %1908 = vmatmul.mubr.bf16.vlgmr.msra.gmra.mxu1 %v3022_v21  ;;  %v1623_v38 = vadd.f32 %v1622_v28, %v291_v35 }
 0x104   :  { %v1624_v30 = vpop.f32.mrf.mxu0 }
 0x105   :  { %v1665_v31 = vpop.f32.mrf.mxu1  ;;  %v1625_v20 = vadd.f32 %v1624_v30, %v295_v36  ;;  %v1664_v39 = vadd.f32 %v1663_v29, %v1623_v38 }
 0x106   :  { %v1626_v32 = vpop.f32.mrf.mxu0 }
 0x107   :  { %v1667_v49 = vpop.f32.mrf.mxu1  ;;  %v1666_v42 = vadd.f32 %v1665_v31, %v1625_v20 }
 0x108   :  { %v1627_v52 = vpop.f32.mrf.mxu0 }
 0x109   :  { %v1668_v8 = vpop.f32.mrf.mxu1 }
 0x142   :  { %v1704_v21 = vpop.f32.mrf.mxu0 }
 0x143   :  { %v1745_v41 = vpop.f32.mrf.mxu1  ;;  %v1705_v43 = vadd.f32 %v1704_v21, %v1664_v39 }
 0x144   :  { %v1706_v44 = vpop.f32.mrf.mxu0 }
 0x145   :  { %v1747_v45 = vpop.f32.mrf.mxu1  ;;  %v1746_v46 = vadd.f32 %v1745_v41, %v1705_v43  ;;  %v1707_v47 = vadd.f32 %v1706_v44, %v1666_v42 }
 0x146   :  { %v1708_v48 = vpop.f32.mrf.mxu0 }
 0x147   :  { %v1749_v50 = vpop.f32.mrf.mxu1  ;;  %v1916_v51 = vmax.f32 %v1746_v46, 0.0  ;;  %v1748_v53 = vadd.f32 %v1747_v45, %v1707_v47 }
 0x148   :  { %v1709_v54 = vpop.f32.mrf.mxu0 }
 0x149   :  { %v1750_v55 = vpop.f32.mrf.mxu1  ;;  %1920 = vst [vmem:[%s3430_s3] sm:$0xff] %v1916_v51  ;;  %v1917_v56 = vmax.f32 %v1748_v53, 0.0 }
 0x14b   :  { %1921 = vst [vmem:[%s3430_s3 + $0x8] sm:$0xff] %v1917_v56 }
 0x182   :  { %v1786_v57 = vpop.f32.mrf.mxu0 }
 0x183   :  { %v1827_v58 = vpop.f32.mrf.mxu1  ;;  %v1787_v5 = vadd.f32 %v1786_v57, %v299_v3 }
 0x184   :  { %v1788_v59 = vpop.f32.mrf.mxu0 }
 0x185   :  { %v1829_v60 = vpop.f32.mrf.mxu1  ;;  %v1789_v6 = vadd.f32 %v1788_v59, %v303_v4  ;;  %v1828_v7 = vadd.f32 %v1827_v58, %v1787_v5 }
 0x186   :  { %v1790_v61 = vpop.f32.mrf.mxu0 }
 0x187   :  { %v1831_v62 = vpop.f32.mrf.mxu1  ;;  %v1830_v12 = vadd.f32 %v1829_v60, %v1789_v6 }
 0x188   :  { %v1791_v63 = vpop.f32.mrf.mxu0 }
 0x189   :  { %v1832_v0 = vpop.f32.mrf.mxu1 }
 0x1c2   :  { %v1868_v10 = vpop.f32.mrf.mxu0 }
 0x1c3   :  { %v1909_v11 = vpop.f32.mrf.mxu1  ;;  %v1869_v13 = vadd.f32 %v1868_v10, %v1828_v7 }
 0x1c4   :  { %v1870_v14 = vpop.f32.mrf.mxu0 }
 0x1c5   :  { %v1911_v15 = vpop.f32.mrf.mxu1  ;;  %v1910_v16 = vadd.f32 %v1909_v11, %v1869_v13  ;;  %v1871_v17 = vadd.f32 %v1870_v14, %v1830_v12 }
 0x1c6   :  { %v1872_v18 = vpop.f32.mrf.mxu0 }
 0x1c7   :  { %v1913_v19 = vpop.f32.mrf.mxu1  ;;  %v1918_v22 = vmax.f32 %v1910_v16, 0.0  ;;  %v1912_v23 = vadd.f32 %v1911_v15, %v1871_v17 }
 0x1c8   :  { %v1873_v24 = vpop.f32.mrf.mxu0 }
 0x1c9   :  { %v1914_v25 = vpop.f32.mrf.mxu1  ;;  %1922 = vst [vmem:[%s3430_s3 + $0x10] sm:$0xff] %v1918_v22  ;;  %v1919_v26 = vmax.f32 %v1912_v23, 0.0 }
 0x1cb   :  { %1923 = vst [vmem:[%s3430_s3 + $0x18] sm:$0xff] %v1919_v26 }

// kernel: encoder2_forward.7
= control target key start
LH: loop header
LB: loop body
LE: loop exit
PB: predicated region body
PF: predicated region fallthrough
CT: control target
= control target key end

     0   :  { %s6574_s12 = smov 0   ;;  %s6576_s13 = smov 0   ;;  %s8340_s0 = inlined_call_operand.vmem [shape: f32[8,2048], index: 0, kind: input, shape index: {}]   ;;  %s8341_s1 = inlined_call_operand.vmem [shape: bf16[2048,1024], index: 1, kind: input, shape index: {}]   ;;  %s8342_s2 = inlined_call_operand.vmem [shape: f32[1,1024], index: 2, kind: input, shape index: {}]   ;;  %s8343_s3 = inlined_call_operand.vmem [shape: f32[8,1024], index: 3, kind: output, shape index: {}]  }
   0x1   :  { %s6578_s14 = smov 0   ;;  %s6580_s15 = smov 0  }
   0x2   :  { %s6582_s16 = smov 0  }
   0x3 LB: > { %s22_s17 = sadd.s32 1, %s6548_s15  ;;  %p65_p1 = scmp.ne.s32.totalorder %s6540_s13, %s6536_s12  ;;  %s6552_s16 = sphi %s6582_s16, %s13_s16   ;;  %s6548_s15 = sphi %s6580_s15, %s8347_s15   ;;  %s6544_s14 = sphi %s6578_s14, %s8346_s14   ;;  %s6540_s13 = sphi %s6576_s13, %s8345_s13   ;;  %s6536_s12 = sphi %s6574_s12, %s8344_s12  }
   0x4   : > { %p23_p0 = scmp.ge.s32.totalorder %s22_s17, 2  ;;  %p66_p2 = scmp.eq.s32.totalorder %s6552_s16, 0 }
   0x5   : > { %s58_s19 = sadd.s32 1, %s6540_s13  ;;  %p5181_p5 = scmp.ge.s32.totalorder %s6552_s16, 2 }
   0x6   : > { %s8349_s17 = smov (%p23_p0, %s22_s17), 0  ;;  %p67_p3 = por %p66_p2, %p65_p1 }
   0x7   : > { %s55_s18 = ssub.s32 %s6548_s15, %s8349_s17  ;;  %153 = sbr.rel (%p5181_p5) target bundleno = 272 (0x110), region = 20 }
   0x8   : > { %p56_p4 = scmp.eq.s32.totalorder %s55_s18, 0 }
   0xa   : > { %s6609_s20 = scalar_select %p56_p4, %s6540_s13, %s58_s19  }
   0xc   : > { %156 = sbr.rel (!%p67_p3) target bundleno = 272 (0x110), region = 24  ;;  %s158_s21 = sand.u32 (%p67_p3), 1, %s6540_s13  }
   0xd   : > { %s5704_s22 = sshll.u32 (%p67_p3), %s6548_s15, 4  ;;  %s5182_s23 = sshll.u32 (%p67_p3), %s158_s21, 12 }
   0xe   : > { %s6617_s26 = scalar_lea.vmem (%p67_p3), %s8341_s1, %s5704_s22  ;;  %s6622_s27 = scalar_lea.vmem (%p67_p3), [#allocation2], %s5182_s23 }
   0xf   : > { %v176_v0 = vld [vmem:[%s6617_s26] sm:$0xff] (%p67_p3)  ;;  %v178_v1 = vld [vmem:[%s6617_s26 + $0x8] sm:$0xff] (%p67_p3) }
  0x10   : > { %v180_v2 = vld [vmem:[%s6617_s26 + $0x20] sm:$0xff] (%p67_p3)  ;;  %177 = vst [vmem:[%s6622_s27] sm:$0xff] (%p67_p3), %v176_v0  ;;  %179 = vst [vmem:[%s6622_s27 + $0x8] sm:$0xff] (%p67_p3), %v178_v1  ;;  %v182_v3 = vld [vmem:[%s6617_s26 + $0x28] sm:$0xff] (%p67_p3) }
  0x11   : > { %181 = vst [vmem:[%s6622_s27 + $0x10] sm:$0xff] %v180_v2  ;;  %v184_v4 = vld [vmem:[%s6617_s26 + $0x40] sm:$0xff]  ;;  %v186_v5 = vld [vmem:[%s6617_s26 + $0x48] sm:$0xff]  ;;  %183 = vst [vmem:[%s6622_s27 + $0x18] sm:$0xff] %v182_v3 }
  0x12   : > { %185 = vst [vmem:[%s6622_s27 + $0x20] sm:$0xff] %v184_v4  ;;  %187 = vst [vmem:[%s6622_s27 + $0x28] sm:$0xff] %v186_v5  ;;  %v188_v6 = vld [vmem:[%s6617_s26 + $0x60] sm:$0xff]  ;;  %v190_v7 = vld [vmem:[%s6617_s26 + $0x68] sm:$0xff] }
  0x13   : > { %v192_v8 = vld [vmem:[%s6617_s26 + $0x80] sm:$0xff]  ;;  %189 = vst [vmem:[%s6622_s27 + $0x30] sm:$0xff] %v188_v6  ;;  %191 = vst [vmem:[%s6622_s27 + $0x38] sm:$0xff] %v190_v7  ;;  %v194_v9 = vld [vmem:[%s6617_s26 + $0x88] sm:$0xff] }
  0x14   : > { %193 = vst [vmem:[%s6622_s27 + $0x40] sm:$0xff] %v192_v8  ;;  %v196_v10 = vld [vmem:[%s6617_s26 + $0xa0] sm:$0xff]  ;;  %v198_v11 = vld [vmem:[%s6617_s26 + $0xa8] sm:$0xff]  ;;  %195 = vst [vmem:[%s6622_s27 + $0x48] sm:$0xff] %v194_v9 }
  0x15   : > { %197 = vst [vmem:[%s6622_s27 + $0x50] sm:$0xff] %v196_v10  ;;  %199 = vst [vmem:[%s6622_s27 + $0x58] sm:$0xff] %v198_v11  ;;  %v200_v12 = vld [vmem:[%s6617_s26 + $0xc0] sm:$0xff]  ;;  %v202_v13 = vld [vmem:[%s6617_s26 + $0xc8] sm:$0xff] }
  0x16   : > { %v204_v14 = vld [vmem:[%s6617_s26 + $0xe0] sm:$0xff]  ;;  %201 = vst [vmem:[%s6622_s27 + $0x60] sm:$0xff] %v200_v12  ;;  %203 = vst [vmem:[%s6622_s27 + $0x68] sm:$0xff] %v202_v13  ;;  %v206_v15 = vld [vmem:[%s6617_s26 + $0xe8] sm:$0xff] }
  0x17   : > { %205 = vst [vmem:[%s6622_s27 + $0x70] sm:$0xff] %v204_v14  ;;  %v208_v16 = vld [vmem:[%s6617_s26 + $0x100] sm:$0xff]  ;;  %v210_v17 = vld [vmem:[%s6617_s26 + $0x108] sm:$0xff]  ;;  %207 = vst [vmem:[%s6622_s27 + $0x78] sm:$0xff] %v206_v15 }
  0x18   : > { %209 = vst [vmem:[%s6622_s27 + $0x80] sm:$0xff] %v208_v16  ;;  %211 = vst [vmem:[%s6622_s27 + $0x88] sm:$0xff] %v210_v17  ;;  %v212_v18 = vld [vmem:[%s6617_s26 + $0x120] sm:$0xff]  ;;  %v214_v19 = vld [vmem:[%s6617_s26 + $0x128] sm:$0xff] }
  0x19   : > { %v216_v20 = vld [vmem:[%s6617_s26 + $0x140] sm:$0xff]  ;;  %213 = vst [vmem:[%s6622_s27 + $0x90] sm:$0xff] %v212_v18  ;;  %215 = vst [vmem:[%s6622_s27 + $0x98] sm:$0xff] %v214_v19  ;;  %v218_v21 = vld [vmem:[%s6617_s26 + $0x148] sm:$0xff] }
  0x1a   : > { %217 = vst [vmem:[%s6622_s27 + $0xa0] sm:$0xff] %v216_v20  ;;  %v220_v22 = vld [vmem:[%s6617_s26 + $0x160] sm:$0xff]  ;;  %v222_v23 = vld [vmem:[%s6617_s26 + $0x168] sm:$0xff]  ;;  %219 = vst [vmem:[%s6622_s27 + $0xa8] sm:$0xff] %v218_v21 }
  0x1b   : > { %221 = vst [vmem:[%s6622_s27 + $0xb0] sm:$0xff] %v220_v22  ;;  %223 = vst [vmem:[%s6622_s27 + $0xb8] sm:$0xff] %v222_v23  ;;  %v224_v24 = vld [vmem:[%s6617_s26 + $0x180] sm:$0xff]  ;;  %v226_v25 = vld [vmem:[%s6617_s26 + $0x188] sm:$0xff] }
  0x1c   : > { %v228_v26 = vld [vmem:[%s6617_s26 + $0x1a0] sm:$0xff]  ;;  %225 = vst [vmem:[%s6622_s27 + $0xc0] sm:$0xff] %v224_v24  ;;  %227 = vst [vmem:[%s6622_s27 + $0xc8] sm:$0xff] %v226_v25  ;;  %v230_v27 = vld [vmem:[%s6617_s26 + $0x1a8] sm:$0xff] }
  0x1d   : > { %229 = vst [vmem:[%s6622_s27 + $0xd0] sm:$0xff] %v228_v26  ;;  %v232_v28 = vld [vmem:[%s6617_s26 + $0x1c0] sm:$0xff]  ;;  %v234_v29 = vld [vmem:[%s6617_s26 + $0x1c8] sm:$0xff]  ;;  %231 = vst [vmem:[%s6622_s27 + $0xd8] sm:$0xff] %v230_v27 }
  0x1e   : > { %233 = vst [vmem:[%s6622_s27 + $0xe0] sm:$0xff] %v232_v28  ;;  %235 = vst [vmem:[%s6622_s27 + $0xe8] sm:$0xff] %v234_v29  ;;  %v236_v30 = vld [vmem:[%s6617_s26 + $0x1e0] sm:$0xff]  ;;  %v238_v31 = vld [vmem:[%s6617_s26 + $0x1e8] sm:$0xff] }
  0x1f   : > { %v240_v32 = vld [vmem:[%s6617_s26 + $0x200] sm:$0xff]  ;;  %237 = vst [vmem:[%s6622_s27 + $0xf0] sm:$0xff] %v236_v30  ;;  %239 = vst [vmem:[%s6622_s27 + $0xf8] sm:$0xff] %v238_v31  ;;  %v242_v33 = vld [vmem:[%s6617_s26 + $0x208] sm:$0xff] }
  0x20   : > { %241 = vst [vmem:[%s6622_s27 + $0x100] sm:$0xff] %v240_v32  ;;  %v244_v34 = vld [vmem:[%s6617_s26 + $0x220] sm:$0xff]  ;;  %v246_v35 = vld [vmem:[%s6617_s26 + $0x228] sm:$0xff]  ;;  %243 = vst [vmem:[%s6622_s27 + $0x108] sm:$0xff] %v242_v33 }
  0x21   : > { %245 = vst [vmem:[%s6622_s27 + $0x110] sm:$0xff] %v244_v34  ;;  %247 = vst [vmem:[%s6622_s27 + $0x118] sm:$0xff] %v246_v35  ;;  %v248_v36 = vld [vmem:[%s6617_s26 + $0x240] sm:$0xff]  ;;  %v250_v37 = vld [vmem:[%s6617_s26 + $0x248] sm:$0xff] }
  0x22   : > { %v252_v38 = vld [vmem:[%s6617_s26 + $0x260] sm:$0xff]  ;;  %249 = vst [vmem:[%s6622_s27 + $0x120] sm:$0xff] %v248_v36  ;;  %251 = vst [vmem:[%s6622_s27 + $0x128] sm:$0xff] %v250_v37  ;;  %v254_v39 = vld [vmem:[%s6617_s26 + $0x268] sm:$0xff] }
  0x23   : > { %253 = vst [vmem:[%s6622_s27 + $0x130] sm:$0xff] %v252_v38  ;;  %v256_v40 = vld [vmem:[%s6617_s26 + $0x280] sm:$0xff]  ;;  %v258_v41 = vld [vmem:[%s6617_s26 + $0x288] sm:$0xff]  ;;  %255 = vst [vmem:[%s6622_s27 + $0x138] sm:$0xff] %v254_v39 }
  0x24   : > { %257 = vst [vmem:[%s6622_s27 + $0x140] sm:$0xff] %v256_v40  ;;  %259 = vst [vmem:[%s6622_s27 + $0x148] sm:$0xff] %v258_v41  ;;  %v260_v42 = vld [vmem:[%s6617_s26 + $0x2a0] sm:$0xff]  ;;  %v262_v43 = vld [vmem:[%s6617_s26 + $0x2a8] sm:$0xff] }
  0x25   : > { %v264_v44 = vld [vmem:[%s6617_s26 + $0x2c0] sm:$0xff]  ;;  %261 = vst [vmem:[%s6622_s27 + $0x150] sm:$0xff] %v260_v42  ;;  %263 = vst [vmem:[%s6622_s27 + $0x158] sm:$0xff] %v262_v43  ;;  %v266_v45 = vld [vmem:[%s6617_s26 + $0x2c8] sm:$0xff] }
  0x26   : > { %265 = vst [vmem:[%s6622_s27 + $0x160] sm:$0xff] %v264_v44  ;;  %v268_v46 = vld [vmem:[%s6617_s26 + $0x2e0] sm:$0xff]  ;;  %v270_v47 = vld [vmem:[%s6617_s26 + $0x2e8] sm:$0xff]  ;;  %267 = vst [vmem:[%s6622_s27 + $0x168] sm:$0xff] %v266_v45 }
  0x27   : > { %269 = vst [vmem:[%s6622_s27 + $0x170] sm:$0xff] %v268_v46  ;;  %271 = vst [vmem:[%s6622_s27 + $0x178] sm:$0xff] %v270_v47  ;;  %v272_v48 = vld [vmem:[%s6617_s26 + $0x300] sm:$0xff]  ;;  %v274_v49 = vld [vmem:[%s6617_s26 + $0x308] sm:$0xff] }
  0x28   : > { %v276_v50 = vld [vmem:[%s6617_s26 + $0x320] sm:$0xff]  ;;  %273 = vst [vmem:[%s6622_s27 + $0x180] sm:$0xff] %v272_v48  ;;  %275 = vst [vmem:[%s6622_s27 + $0x188] sm:$0xff] %v274_v49  ;;  %v278_v51 = vld [vmem:[%s6617_s26 + $0x328] sm:$0xff] }
  0x29   : > { %277 = vst [vmem:[%s6622_s27 + $0x190] sm:$0xff] %v276_v50  ;;  %v280_v52 = vld [vmem:[%s6617_s26 + $0x340] sm:$0xff]  ;;  %v282_v53 = vld [vmem:[%s6617_s26 + $0x348] sm:$0xff]  ;;  %279 = vst [vmem:[%s6622_s27 + $0x198] sm:$0xff] %v278_v51 }
  0x2a   : > { %281 = vst [vmem:[%s6622_s27 + $0x1a0] sm:$0xff] %v280_v52  ;;  %283 = vst [vmem:[%s6622_s27 + $0x1a8] sm:$0xff] %v282_v53  ;;  %v284_v54 = vld [vmem:[%s6617_s26 + $0x360] sm:$0xff]  ;;  %v286_v55 = vld [vmem:[%s6617_s26 + $0x368] sm:$0xff] }
  0x2b   : > { %v288_v56 = vld [vmem:[%s6617_s26 + $0x380] sm:$0xff]  ;;  %285 = vst [vmem:[%s6622_s27 + $0x1b0] sm:$0xff] %v284_v54  ;;  %287 = vst [vmem:[%s6622_s27 + $0x1b8] sm:$0xff] %v286_v55  ;;  %v290_v57 = vld [vmem:[%s6617_s26 + $0x388] sm:$0xff] }
  0x2c   : > { %289 = vst [vmem:[%s6622_s27 + $0x1c0] sm:$0xff] %v288_v56  ;;  %v292_v58 = vld [vmem:[%s6617_s26 + $0x3a0] sm:$0xff]  ;;  %v294_v59 = vld [vmem:[%s6617_s26 + $0x3a8] sm:$0xff]  ;;  %291 = vst [vmem:[%s6622_s27 + $0x1c8] sm:$0xff] %v290_v57 }
  0x2d   : > { %293 = vst [vmem:[%s6622_s27 + $0x1d0] sm:$0xff] %v292_v58  ;;  %295 = vst [vmem:[%s6622_s27 + $0x1d8] sm:$0xff] %v294_v59  ;;  %v296_v60 = vld [vmem:[%s6617_s26 + $0x3c0] sm:$0xff]  ;;  %v298_v61 = vld [vmem:[%s6617_s26 + $0x3c8] sm:$0xff] }
  0x2e   : > { %v300_v62 = vld [vmem:[%s6617_s26 + $0x3e0] sm:$0xff]  ;;  %297 = vst [vmem:[%s6622_s27 + $0x1e0] sm:$0xff] %v296_v60  ;;  %299 = vst [vmem:[%s6622_s27 + $0x1e8] sm:$0xff] %v298_v61  ;;  %v302_v63 = vld [vmem:[%s6617_s26 + $0x3e8] sm:$0xff] }
  0x2f   : > { %301 = vst [vmem:[%s6622_s27 + $0x1f0] sm:$0xff] %v300_v62  ;;  %v304_v0 = vld [vmem:[%s6617_s26 + $0x400] sm:$0xff]  ;;  %v306_v1 = vld [vmem:[%s6617_s26 + $0x408] sm:$0xff]  ;;  %303 = vst [vmem:[%s6622_s27 + $0x1f8] sm:$0xff] %v302_v63 }
  0x30   : > { %305 = vst [vmem:[%s6622_s27 + $0x200] sm:$0xff] %v304_v0  ;;  %307 = vst [vmem:[%s6622_s27 + $0x208] sm:$0xff] %v306_v1  ;;  %v308_v2 = vld [vmem:[%s6617_s26 + $0x420] sm:$0xff]  ;;  %v310_v3 = vld [vmem:[%s6617_s26 + $0x428] sm:$0xff] }
  0x31   : > { %v312_v4 = vld [vmem:[%s6617_s26 + $0x440] sm:$0xff]  ;;  %309 = vst [vmem:[%s6622_s27 + $0x210] sm:$0xff] %v308_v2  ;;  %311 = vst [vmem:[%s6622_s27 + $0x218] sm:$0xff] %v310_v3  ;;  %v314_v5 = vld [vmem:[%s6617_s26 + $0x448] sm:$0xff] }
  0x32   : > { %313 = vst [vmem:[%s6622_s27 + $0x220] sm:$0xff] %v312_v4  ;;  %v316_v6 = vld [vmem:[%s6617_s26 + $0x460] sm:$0xff]  ;;  %v318_v7 = vld [vmem:[%s6617_s26 + $0x468] sm:$0xff]  ;;  %315 = vst [vmem:[%s6622_s27 + $0x228] sm:$0xff] %v314_v5 }
  0x33   : > { %317 = vst [vmem:[%s6622_s27 + $0x230] sm:$0xff] %v316_v6  ;;  %319 = vst [vmem:[%s6622_s27 + $0x238] sm:$0xff] %v318_v7  ;;  %v320_v8 = vld [vmem:[%s6617_s26 + $0x480] sm:$0xff]  ;;  %v322_v9 = vld [vmem:[%s6617_s26 + $0x488] sm:$0xff] }
  0x34   : > { %v324_v10 = vld [vmem:[%s6617_s26 + $0x4a0] sm:$0xff]  ;;  %321 = vst [vmem:[%s6622_s27 + $0x240] sm:$0xff] %v320_v8  ;;  %323 = vst [vmem:[%s6622_s27 + $0x248] sm:$0xff] %v322_v9  ;;  %v326_v11 = vld [vmem:[%s6617_s26 + $0x4a8] sm:$0xff] }
  0x35   : > { %325 = vst [vmem:[%s6622_s27 + $0x250] sm:$0xff] %v324_v10  ;;  %v328_v12 = vld [vmem:[%s6617_s26 + $0x4c0] sm:$0xff]  ;;  %v330_v13 = vld [vmem:[%s6617_s26 + $0x4c8] sm:$0xff]  ;;  %327 = vst [vmem:[%s6622_s27 + $0x258] sm:$0xff] %v326_v11 }
  0x36   : > { %329 = vst [vmem:[%s6622_s27 + $0x260] sm:$0xff] %v328_v12  ;;  %331 = vst [vmem:[%s6622_s27 + $0x268] sm:$0xff] %v330_v13  ;;  %v332_v14 = vld [vmem:[%s6617_s26 + $0x4e0] sm:$0xff]  ;;  %v334_v15 = vld [vmem:[%s6617_s26 + $0x4e8] sm:$0xff] }
  0x37   : > { %v336_v16 = vld [vmem:[%s6617_s26 + $0x500] sm:$0xff]  ;;  %333 = vst [vmem:[%s6622_s27 + $0x270] sm:$0xff] %v332_v14  ;;  %335 = vst [vmem:[%s6622_s27 + $0x278] sm:$0xff] %v334_v15  ;;  %v338_v17 = vld [vmem:[%s6617_s26 + $0x508] sm:$0xff] }
  0x38   : > { %337 = vst [vmem:[%s6622_s27 + $0x280] sm:$0xff] %v336_v16  ;;  %v340_v18 = vld [vmem:[%s6617_s26 + $0x520] sm:$0xff]  ;;  %v342_v19 = vld [vmem:[%s6617_s26 + $0x528] sm:$0xff]  ;;  %339 = vst [vmem:[%s6622_s27 + $0x288] sm:$0xff] %v338_v17 }
  0x39   : > { %341 = vst [vmem:[%s6622_s27 + $0x290] sm:$0xff] %v340_v18  ;;  %343 = vst [vmem:[%s6622_s27 + $0x298] sm:$0xff] %v342_v19  ;;  %v344_v20 = vld [vmem:[%s6617_s26 + $0x540] sm:$0xff]  ;;  %v346_v21 = vld [vmem:[%s6617_s26 + $0x548] sm:$0xff] }
  0x3a   : > { %v348_v22 = vld [vmem:[%s6617_s26 + $0x560] sm:$0xff]  ;;  %345 = vst [vmem:[%s6622_s27 + $0x2a0] sm:$0xff] %v344_v20  ;;  %347 = vst [vmem:[%s6622_s27 + $0x2a8] sm:$0xff] %v346_v21  ;;  %v350_v23 = vld [vmem:[%s6617_s26 + $0x568] sm:$0xff] }
  0x3b   : > { %349 = vst [vmem:[%s6622_s27 + $0x2b0] sm:$0xff] %v348_v22  ;;  %v352_v24 = vld [vmem:[%s6617_s26 + $0x580] sm:$0xff]  ;;  %v354_v25 = vld [vmem:[%s6617_s26 + $0x588] sm:$0xff]  ;;  %351 = vst [vmem:[%s6622_s27 + $0x2b8] sm:$0xff] %v350_v23 }
  0x3c   : > { %353 = vst [vmem:[%s6622_s27 + $0x2c0] sm:$0xff] %v352_v24  ;;  %355 = vst [vmem:[%s6622_s27 + $0x2c8] sm:$0xff] %v354_v25  ;;  %v356_v26 = vld [vmem:[%s6617_s26 + $0x5a0] sm:$0xff]  ;;  %v358_v27 = vld [vmem:[%s6617_s26 + $0x5a8] sm:$0xff] }
  0x3d   : > { %v360_v28 = vld [vmem:[%s6617_s26 + $0x5c0] sm:$0xff]  ;;  %357 = vst [vmem:[%s6622_s27 + $0x2d0] sm:$0xff] %v356_v26  ;;  %359 = vst [vmem:[%s6622_s27 + $0x2d8] sm:$0xff] %v358_v27  ;;  %v362_v29 = vld [vmem:[%s6617_s26 + $0x5c8] sm:$0xff] }
  0x3e   : > { %361 = vst [vmem:[%s6622_s27 + $0x2e0] sm:$0xff] %v360_v28  ;;  %v364_v30 = vld [vmem:[%s6617_s26 + $0x5e0] sm:$0xff]  ;;  %v366_v31 = vld [vmem:[%s6617_s26 + $0x5e8] sm:$0xff]  ;;  %363 = vst [vmem:[%s6622_s27 + $0x2e8] sm:$0xff] %v362_v29 }
  0x3f   : > { %365 = vst [vmem:[%s6622_s27 + $0x2f0] sm:$0xff] %v364_v30  ;;  %367 = vst [vmem:[%s6622_s27 + $0x2f8] sm:$0xff] %v366_v31  ;;  %v368_v32 = vld [vmem:[%s6617_s26 + $0x600] sm:$0xff]  ;;  %v370_v33 = vld [vmem:[%s6617_s26 + $0x608] sm:$0xff] }
  0x40   : > { %v372_v34 = vld [vmem:[%s6617_s26 + $0x620] sm:$0xff]  ;;  %369 = vst [vmem:[%s6622_s27 + $0x300] sm:$0xff] %v368_v32  ;;  %371 = vst [vmem:[%s6622_s27 + $0x308] sm:$0xff] %v370_v33  ;;  %v374_v35 = vld [vmem:[%s6617_s26 + $0x628] sm:$0xff] }
  0x41   : > { %373 = vst [vmem:[%s6622_s27 + $0x310] sm:$0xff] %v372_v34  ;;  %v376_v36 = vld [vmem:[%s6617_s26 + $0x640] sm:$0xff]  ;;  %v378_v37 = vld [vmem:[%s6617_s26 + $0x648] sm:$0xff]  ;;  %375 = vst [vmem:[%s6622_s27 + $0x318] sm:$0xff] %v374_v35 }
  0x42   : > { %377 = vst [vmem:[%s6622_s27 + $0x320] sm:$0xff] %v376_v36  ;;  %379 = vst [vmem:[%s6622_s27 + $0x328] sm:$0xff] %v378_v37  ;;  %v380_v38 = vld [vmem:[%s6617_s26 + $0x660] sm:$0xff]  ;;  %v382_v39 = vld [vmem:[%s6617_s26 + $0x668] sm:$0xff] }
  0x43   : > { %v384_v40 = vld [vmem:[%s6617_s26 + $0x680] sm:$0xff]  ;;  %381 = vst [vmem:[%s6622_s27 + $0x330] sm:$0xff] %v380_v38  ;;  %383 = vst [vmem:[%s6622_s27 + $0x338] sm:$0xff] %v382_v39  ;;  %v386_v41 = vld [vmem:[%s6617_s26 + $0x688] sm:$0xff] }
  0x44   : > { %385 = vst [vmem:[%s6622_s27 + $0x340] sm:$0xff] %v384_v40  ;;  %v388_v42 = vld [vmem:[%s6617_s26 + $0x6a0] sm:$0xff]  ;;  %v390_v43 = vld [vmem:[%s6617_s26 + $0x6a8] sm:$0xff]  ;;  %387 = vst [vmem:[%s6622_s27 + $0x348] sm:$0xff] %v386_v41 }
  0x45   : > { %389 = vst [vmem:[%s6622_s27 + $0x350] sm:$0xff] %v388_v42  ;;  %391 = vst [vmem:[%s6622_s27 + $0x358] sm:$0xff] %v390_v43  ;;  %v392_v44 = vld [vmem:[%s6617_s26 + $0x6c0] sm:$0xff]  ;;  %v394_v45 = vld [vmem:[%s6617_s26 + $0x6c8] sm:$0xff] }
  0x46   : > { %v396_v46 = vld [vmem:[%s6617_s26 + $0x6e0] sm:$0xff]  ;;  %393 = vst [vmem:[%s6622_s27 + $0x360] sm:$0xff] %v392_v44  ;;  %395 = vst [vmem:[%s6622_s27 + $0x368] sm:$0xff] %v394_v45  ;;  %v398_v47 = vld [vmem:[%s6617_s26 + $0x6e8] sm:$0xff] }
  0x47   : > { %397 = vst [vmem:[%s6622_s27 + $0x370] sm:$0xff] %v396_v46  ;;  %v400_v48 = vld [vmem:[%s6617_s26 + $0x700] sm:$0xff]  ;;  %v402_v49 = vld [vmem:[%s6617_s26 + $0x708] sm:$0xff]  ;;  %399 = vst [vmem:[%s6622_s27 + $0x378] sm:$0xff] %v398_v47 }
  0x48   : > { %401 = vst [vmem:[%s6622_s27 + $0x380] sm:$0xff] %v400_v48  ;;  %403 = vst [vmem:[%s6622_s27 + $0x388] sm:$0xff] %v402_v49  ;;  %v404_v50 = vld [vmem:[%s6617_s26 + $0x720] sm:$0xff]  ;;  %v406_v51 = vld [vmem:[%s6617_s26 + $0x728] sm:$0xff] }
  0x49   : > { %v408_v52 = vld [vmem:[%s6617_s26 + $0x740] sm:$0xff]  ;;  %405 = vst [vmem:[%s6622_s27 + $0x390] sm:$0xff] %v404_v50  ;;  %407 = vst [vmem:[%s6622_s27 + $0x398] sm:$0xff] %v406_v51  ;;  %v410_v53 = vld [vmem:[%s6617_s26 + $0x748] sm:$0xff] }
  0x4a   : > { %409 = vst [vmem:[%s6622_s27 + $0x3a0] sm:$0xff] %v408_v52  ;;  %v412_v54 = vld [vmem:[%s6617_s26 + $0x760] sm:$0xff]  ;;  %v414_v55 = vld [vmem:[%s6617_s26 + $0x768] sm:$0xff]  ;;  %411 = vst [vmem:[%s6622_s27 + $0x3a8] sm:$0xff] %v410_v53 }
  0x4b   : > { %413 = vst [vmem:[%s6622_s27 + $0x3b0] sm:$0xff] %v412_v54  ;;  %415 = vst [vmem:[%s6622_s27 + $0x3b8] sm:$0xff] %v414_v55  ;;  %v416_v56 = vld [vmem:[%s6617_s26 + $0x780] sm:$0xff]  ;;  %v418_v57 = vld [vmem:[%s6617_s26 + $0x788] sm:$0xff] }
  0x4c   : > { %v420_v58 = vld [vmem:[%s6617_s26 + $0x7a0] sm:$0xff]  ;;  %417 = vst [vmem:[%s6622_s27 + $0x3c0] sm:$0xff] %v416_v56  ;;  %419 = vst [vmem:[%s6622_s27 + $0x3c8] sm:$0xff] %v418_v57  ;;  %v422_v59 = vld [vmem:[%s6617_s26 + $0x7a8] sm:$0xff] }
  0x4d   : > { %421 = vst [vmem:[%s6622_s27 + $0x3d0] sm:$0xff] %v420_v58  ;;  %v424_v60 = vld [vmem:[%s6617_s26 + $0x7c0] sm:$0xff]  ;;  %v426_v61 = vld [vmem:[%s6617_s26 + $0x7c8] sm:$0xff]  ;;  %423 = vst [vmem:[%s6622_s27 + $0x3d8] sm:$0xff] %v422_v59 }
  0x4e   : > { %425 = vst [vmem:[%s6622_s27 + $0x3e0] sm:$0xff] %v424_v60  ;;  %427 = vst [vmem:[%s6622_s27 + $0x3e8] sm:$0xff] %v426_v61  ;;  %v428_v62 = vld [vmem:[%s6617_s26 + $0x7e0] sm:$0xff]  ;;  %v430_v63 = vld [vmem:[%s6617_s26 + $0x7e8] sm:$0xff] }
  0x4f   : > { %v432_v0 = vld [vmem:[%s6617_s26 + $0x800] sm:$0xff]  ;;  %429 = vst [vmem:[%s6622_s27 + $0x3f0] sm:$0xff] %v428_v62  ;;  %431 = vst [vmem:[%s6622_s27 + $0x3f8] sm:$0xff] %v430_v63  ;;  %v434_v1 = vld [vmem:[%s6617_s26 + $0x808] sm:$0xff] }
  0x50   : > { %433 = vst [vmem:[%s6622_s27 + $0x400] sm:$0xff] %v432_v0  ;;  %v436_v2 = vld [vmem:[%s6617_s26 + $0x820] sm:$0xff]  ;;  %v438_v3 = vld [vmem:[%s6617_s26 + $0x828] sm:$0xff]  ;;  %435 = vst [vmem:[%s6622_s27 + $0x408] sm:$0xff] %v434_v1 }
  0x51   : > { %437 = vst [vmem:[%s6622_s27 + $0x410] sm:$0xff] %v436_v2  ;;  %439 = vst [vmem:[%s6622_s27 + $0x418] sm:$0xff] %v438_v3  ;;  %v440_v4 = vld [vmem:[%s6617_s26 + $0x840] sm:$0xff]  ;;  %v442_v5 = vld [vmem:[%s6617_s26 + $0x848] sm:$0xff] }
  0x52   : > { %v444_v6 = vld [vmem:[%s6617_s26 + $0x860] sm:$0xff]  ;;  %441 = vst [vmem:[%s6622_s27 + $0x420] sm:$0xff] %v440_v4  ;;  %443 = vst [vmem:[%s6622_s27 + $0x428] sm:$0xff] %v442_v5  ;;  %v446_v7 = vld [vmem:[%s6617_s26 + $0x868] sm:$0xff] }
  0x53   : > { %445 = vst [vmem:[%s6622_s27 + $0x430] sm:$0xff] %v444_v6  ;;  %v448_v8 = vld [vmem:[%s6617_s26 + $0x880] sm:$0xff]  ;;  %v450_v9 = vld [vmem:[%s6617_s26 + $0x888] sm:$0xff]  ;;  %447 = vst [vmem:[%s6622_s27 + $0x438] sm:$0xff] %v446_v7 }
  0x54   : > { %449 = vst [vmem:[%s6622_s27 + $0x440] sm:$0xff] %v448_v8  ;;  %451 = vst [vmem:[%s6622_s27 + $0x448] sm:$0xff] %v450_v9  ;;  %v452_v10 = vld [vmem:[%s6617_s26 + $0x8a0] sm:$0xff]  ;;  %v454_v11 = vld [vmem:[%s6617_s26 + $0x8a8] sm:$0xff] }
  0x55   : > { %v456_v12 = vld [vmem:[%s6617_s26 + $0x8c0] sm:$0xff]  ;;  %453 = vst [vmem:[%s6622_s27 + $0x450] sm:$0xff] %v452_v10  ;;  %455 = vst [vmem:[%s6622_s27 + $0x458] sm:$0xff] %v454_v11  ;;  %v458_v13 = vld [vmem:[%s6617_s26 + $0x8c8] sm:$0xff] }
  0x56   : > { %457 = vst [vmem:[%s6622_s27 + $0x460] sm:$0xff] %v456_v12  ;;  %v460_v14 = vld [vmem:[%s6617_s26 + $0x8e0] sm:$0xff]  ;;  %v462_v15 = vld [vmem:[%s6617_s26 + $0x8e8] sm:$0xff]  ;;  %459 = vst [vmem:[%s6622_s27 + $0x468] sm:$0xff] %v458_v13 }
  0x57   : > { %461 = vst [vmem:[%s6622_s27 + $0x470] sm:$0xff] %v460_v14  ;;  %463 = vst [vmem:[%s6622_s27 + $0x478] sm:$0xff] %v462_v15  ;;  %v464_v16 = vld [vmem:[%s6617_s26 + $0x900] sm:$0xff]  ;;  %v466_v17 = vld [vmem:[%s6617_s26 + $0x908] sm:$0xff] }
  0x58   : > { %v468_v18 = vld [vmem:[%s6617_s26 + $0x920] sm:$0xff]  ;;  %465 = vst [vmem:[%s6622_s27 + $0x480] sm:$0xff] %v464_v16  ;;  %467 = vst [vmem:[%s6622_s27 + $0x488] sm:$0xff] %v466_v17  ;;  %v470_v19 = vld [vmem:[%s6617_s26 + $0x928] sm:$0xff] }
  0x59   : > { %469 = vst [vmem:[%s6622_s27 + $0x490] sm:$0xff] %v468_v18  ;;  %v472_v20 = vld [vmem:[%s6617_s26 + $0x940] sm:$0xff]  ;;  %v474_v21 = vld [vmem:[%s6617_s26 + $0x948] sm:$0xff]  ;;  %471 = vst [vmem:[%s6622_s27 + $0x498] sm:$0xff] %v470_v19 }
  0x5a   : > { %473 = vst [vmem:[%s6622_s27 + $0x4a0] sm:$0xff] %v472_v20  ;;  %475 = vst [vmem:[%s6622_s27 + $0x4a8] sm:$0xff] %v474_v21  ;;  %v476_v22 = vld [vmem:[%s6617_s26 + $0x960] sm:$0xff]  ;;  %v478_v23 = vld [vmem:[%s6617_s26 + $0x968] sm:$0xff] }
  0x5b   : > { %v480_v24 = vld [vmem:[%s6617_s26 + $0x980] sm:$0xff]  ;;  %477 = vst [vmem:[%s6622_s27 + $0x4b0] sm:$0xff] %v476_v22  ;;  %479 = vst [vmem:[%s6622_s27 + $0x4b8] sm:$0xff] %v478_v23  ;;  %v482_v25 = vld [vmem:[%s6617_s26 + $0x988] sm:$0xff] }
  0x5c   : > { %481 = vst [vmem:[%s6622_s27 + $0x4c0] sm:$0xff] %v480_v24  ;;  %v484_v26 = vld [vmem:[%s6617_s26 + $0x9a0] sm:$0xff]  ;;  %v486_v27 = vld [vmem:[%s6617_s26 + $0x9a8] sm:$0xff]  ;;  %483 = vst [vmem:[%s6622_s27 + $0x4c8] sm:$0xff] %v482_v25 }
  0x5d   : > { %485 = vst [vmem:[%s6622_s27 + $0x4d0] sm:$0xff] %v484_v26  ;;  %487 = vst [vmem:[%s6622_s27 + $0x4d8] sm:$0xff] %v486_v27  ;;  %v488_v28 = vld [vmem:[%s6617_s26 + $0x9c0] sm:$0xff]  ;;  %v490_v29 = vld [vmem:[%s6617_s26 + $0x9c8] sm:$0xff] }
  0x5e   : > { %v492_v30 = vld [vmem:[%s6617_s26 + $0x9e0] sm:$0xff]  ;;  %489 = vst [vmem:[%s6622_s27 + $0x4e0] sm:$0xff] %v488_v28  ;;  %491 = vst [vmem:[%s6622_s27 + $0x4e8] sm:$0xff] %v490_v29  ;;  %v494_v31 = vld [vmem:[%s6617_s26 + $0x9e8] sm:$0xff] }
  0x5f   : > { %493 = vst [vmem:[%s6622_s27 + $0x4f0] sm:$0xff] %v492_v30  ;;  %v496_v32 = vld [vmem:[%s6617_s26 + $0xa00] sm:$0xff]  ;;  %v498_v33 = vld [vmem:[%s6617_s26 + $0xa08] sm:$0xff]  ;;  %495 = vst [vmem:[%s6622_s27 + $0x4f8] sm:$0xff] %v494_v31 }
  0x60   : > { %497 = vst [vmem:[%s6622_s27 + $0x500] sm:$0xff] %v496_v32  ;;  %499 = vst [vmem:[%s6622_s27 + $0x508] sm:$0xff] %v498_v33  ;;  %v500_v34 = vld [vmem:[%s6617_s26 + $0xa20] sm:$0xff]  ;;  %v502_v35 = vld [vmem:[%s6617_s26 + $0xa28] sm:$0xff] }
  0x61   : > { %v504_v36 = vld [vmem:[%s6617_s26 + $0xa40] sm:$0xff]  ;;  %501 = vst [vmem:[%s6622_s27 + $0x510] sm:$0xff] %v500_v34  ;;  %503 = vst [vmem:[%s6622_s27 + $0x518] sm:$0xff] %v502_v35  ;;  %v506_v37 = vld [vmem:[%s6617_s26 + $0xa48] sm:$0xff] }
  0x62   : > { %505 = vst [vmem:[%s6622_s27 + $0x520] sm:$0xff] %v504_v36  ;;  %v508_v38 = vld [vmem:[%s6617_s26 + $0xa60] sm:$0xff]  ;;  %v510_v39 = vld [vmem:[%s6617_s26 + $0xa68] sm:$0xff]  ;;  %507 = vst [vmem:[%s6622_s27 + $0x528] sm:$0xff] %v506_v37 }
  0x63   : > { %509 = vst [vmem:[%s6622_s27 + $0x530] sm:$0xff] %v508_v38  ;;  %511 = vst [vmem:[%s6622_s27 + $0x538] sm:$0xff] %v510_v39  ;;  %v512_v40 = vld [vmem:[%s6617_s26 + $0xa80] sm:$0xff]  ;;  %v514_v41 = vld [vmem:[%s6617_s26 + $0xa88] sm:$0xff] }
  0x64   : > { %v516_v42 = vld [vmem:[%s6617_s26 + $0xaa0] sm:$0xff]  ;;  %513 = vst [vmem:[%s6622_s27 + $0x540] sm:$0xff] %v512_v40  ;;  %515 = vst [vmem:[%s6622_s27 + $0x548] sm:$0xff] %v514_v41  ;;  %v518_v43 = vld [vmem:[%s6617_s26 + $0xaa8] sm:$0xff] }
  0x65   : > { %517 = vst [vmem:[%s6622_s27 + $0x550] sm:$0xff] %v516_v42  ;;  %v520_v44 = vld [vmem:[%s6617_s26 + $0xac0] sm:$0xff]  ;;  %v522_v45 = vld [vmem:[%s6617_s26 + $0xac8] sm:$0xff]  ;;  %519 = vst [vmem:[%s6622_s27 + $0x558] sm:$0xff] %v518_v43 }
  0x66   : > { %521 = vst [vmem:[%s6622_s27 + $0x560] sm:$0xff] %v520_v44  ;;  %523 = vst [vmem:[%s6622_s27 + $0x568] sm:$0xff] %v522_v45  ;;  %v524_v46 = vld [vmem:[%s6617_s26 + $0xae0] sm:$0xff]  ;;  %v526_v47 = vld [vmem:[%s6617_s26 + $0xae8] sm:$0xff] }
  0x67   : > { %v528_v48 = vld [vmem:[%s6617_s26 + $0xb00] sm:$0xff]  ;;  %525 = vst [vmem:[%s6622_s27 + $0x570] sm:$0xff] %v524_v46  ;;  %527 = vst [vmem:[%s6622_s27 + $0x578] sm:$0xff] %v526_v47  ;;  %v530_v49 = vld [vmem:[%s6617_s26 + $0xb08] sm:$0xff] }
  0x68   : > { %529 = vst [vmem:[%s6622_s27 + $0x580] sm:$0xff] %v528_v48  ;;  %v532_v50 = vld [vmem:[%s6617_s26 + $0xb20] sm:$0xff]  ;;  %v534_v51 = vld [vmem:[%s6617_s26 + $0xb28] sm:$0xff]  ;;  %531 = vst [vmem:[%s6622_s27 + $0x588] sm:$0xff] %v530_v49 }
  0x69   : > { %533 = vst [vmem:[%s6622_s27 + $0x590] sm:$0xff] %v532_v50  ;;  %535 = vst [vmem:[%s6622_s27 + $0x598] sm:$0xff] %v534_v51  ;;  %v536_v52 = vld [vmem:[%s6617_s26 + $0xb40] sm:$0xff]  ;;  %v538_v53 = vld [vmem:[%s6617_s26 + $0xb48] sm:$0xff] }
  0x6a   : > { %v540_v54 = vld [vmem:[%s6617_s26 + $0xb60] sm:$0xff]  ;;  %537 = vst [vmem:[%s6622_s27 + $0x5a0] sm:$0xff] %v536_v52  ;;  %539 = vst [vmem:[%s6622_s27 + $0x5a8] sm:$0xff] %v538_v53  ;;  %v542_v55 = vld [vmem:[%s6617_s26 + $0xb68] sm:$0xff] }
  0x6b   : > { %541 = vst [vmem:[%s6622_s27 + $0x5b0] sm:$0xff] %v540_v54  ;;  %v544_v56 = vld [vmem:[%s6617_s26 + $0xb80] sm:$0xff]  ;;  %v546_v57 = vld [vmem:[%s6617_s26 + $0xb88] sm:$0xff]  ;;  %543 = vst [vmem:[%s6622_s27 + $0x5b8] sm:$0xff] %v542_v55 }
  0x6c   : > { %545 = vst [vmem:[%s6622_s27 + $0x5c0] sm:$0xff] %v544_v56  ;;  %547 = vst [vmem:[%s6622_s27 + $0x5c8] sm:$0xff] %v546_v57  ;;  %v548_v58 = vld [vmem:[%s6617_s26 + $0xba0] sm:$0xff]  ;;  %v550_v59 = vld [vmem:[%s6617_s26 + $0xba8] sm:$0xff] }
  0x6d   : > { %v552_v60 = vld [vmem:[%s6617_s26 + $0xbc0] sm:$0xff]  ;;  %549 = vst [vmem:[%s6622_s27 + $0x5d0] sm:$0xff] %v548_v58  ;;  %551 = vst [vmem:[%s6622_s27 + $0x5d8] sm:$0xff] %v550_v59  ;;  %v554_v61 = vld [vmem:[%s6617_s26 + $0xbc8] sm:$0xff] }
  0x6e   : > { %553 = vst [vmem:[%s6622_s27 + $0x5e0] sm:$0xff] %v552_v60  ;;  %v556_v62 = vld [vmem:[%s6617_s26 + $0xbe0] sm:$0xff]  ;;  %v558_v63 = vld [vmem:[%s6617_s26 + $0xbe8] sm:$0xff]  ;;  %555 = vst [vmem:[%s6622_s27 + $0x5e8] sm:$0xff] %v554_v61 }
  0x6f   : > { %557 = vst [vmem:[%s6622_s27 + $0x5f0] sm:$0xff] %v556_v62  ;;  %559 = vst [vmem:[%s6622_s27 + $0x5f8] sm:$0xff] %v558_v63  ;;  %v560_v0 = vld [vmem:[%s6617_s26 + $0xc00] sm:$0xff]  ;;  %v562_v1 = vld [vmem:[%s6617_s26 + $0xc08] sm:$0xff] }
  0x70   : > { %v564_v2 = vld [vmem:[%s6617_s26 + $0xc20] sm:$0xff]  ;;  %561 = vst [vmem:[%s6622_s27 + $0x600] sm:$0xff] %v560_v0  ;;  %563 = vst [vmem:[%s6622_s27 + $0x608] sm:$0xff] %v562_v1  ;;  %v566_v3 = vld [vmem:[%s6617_s26 + $0xc28] sm:$0xff] }
  0x71   : > { %565 = vst [vmem:[%s6622_s27 + $0x610] sm:$0xff] %v564_v2  ;;  %v568_v4 = vld [vmem:[%s6617_s26 + $0xc40] sm:$0xff]  ;;  %v570_v5 = vld [vmem:[%s6617_s26 + $0xc48] sm:$0xff]  ;;  %567 = vst [vmem:[%s6622_s27 + $0x618] sm:$0xff] %v566_v3 }
  0x72   : > { %569 = vst [vmem:[%s6622_s27 + $0x620] sm:$0xff] %v568_v4  ;;  %571 = vst [vmem:[%s6622_s27 + $0x628] sm:$0xff] %v570_v5  ;;  %v572_v6 = vld [vmem:[%s6617_s26 + $0xc60] sm:$0xff]  ;;  %v574_v7 = vld [vmem:[%s6617_s26 + $0xc68] sm:$0xff] }
  0x73   : > { %v576_v8 = vld [vmem:[%s6617_s26 + $0xc80] sm:$0xff]  ;;  %573 = vst [vmem:[%s6622_s27 + $0x630] sm:$0xff] %v572_v6  ;;  %575 = vst [vmem:[%s6622_s27 + $0x638] sm:$0xff] %v574_v7  ;;  %v578_v9 = vld [vmem:[%s6617_s26 + $0xc88] sm:$0xff] }
  0x74   : > { %577 = vst [vmem:[%s6622_s27 + $0x640] sm:$0xff] %v576_v8  ;;  %v580_v10 = vld [vmem:[%s6617_s26 + $0xca0] sm:$0xff]  ;;  %v582_v11 = vld [vmem:[%s6617_s26 + $0xca8] sm:$0xff]  ;;  %579 = vst [vmem:[%s6622_s27 + $0x648] sm:$0xff] %v578_v9 }
  0x75   : > { %581 = vst [vmem:[%s6622_s27 + $0x650] sm:$0xff] %v580_v10  ;;  %583 = vst [vmem:[%s6622_s27 + $0x658] sm:$0xff] %v582_v11  ;;  %v584_v12 = vld [vmem:[%s6617_s26 + $0xcc0] sm:$0xff]  ;;  %v586_v13 = vld [vmem:[%s6617_s26 + $0xcc8] sm:$0xff] }
  0x76   : > { %v588_v14 = vld [vmem:[%s6617_s26 + $0xce0] sm:$0xff]  ;;  %585 = vst [vmem:[%s6622_s27 + $0x660] sm:$0xff] %v584_v12  ;;  %587 = vst [vmem:[%s6622_s27 + $0x668] sm:$0xff] %v586_v13  ;;  %v590_v15 = vld [vmem:[%s6617_s26 + $0xce8] sm:$0xff] }
  0x77   : > { %589 = vst [vmem:[%s6622_s27 + $0x670] sm:$0xff] %v588_v14  ;;  %v592_v16 = vld [vmem:[%s6617_s26 + $0xd00] sm:$0xff]  ;;  %v594_v17 = vld [vmem:[%s6617_s26 + $0xd08] sm:$0xff]  ;;  %591 = vst [vmem:[%s6622_s27 + $0x678] sm:$0xff] %v590_v15 }
  0x78   : > { %593 = vst [vmem:[%s6622_s27 + $0x680] sm:$0xff] %v592_v16  ;;  %595 = vst [vmem:[%s6622_s27 + $0x688] sm:$0xff] %v594_v17  ;;  %v596_v18 = vld [vmem:[%s6617_s26 + $0xd20] sm:$0xff]  ;;  %v598_v19 = vld [vmem:[%s6617_s26 + $0xd28] sm:$0xff] }
  0x79   : > { %v600_v20 = vld [vmem:[%s6617_s26 + $0xd40] sm:$0xff]  ;;  %597 = vst [vmem:[%s6622_s27 + $0x690] sm:$0xff] %v596_v18  ;;  %599 = vst [vmem:[%s6622_s27 + $0x698] sm:$0xff] %v598_v19  ;;  %v602_v21 = vld [vmem:[%s6617_s26 + $0xd48] sm:$0xff] }
  0x7a   : > { %601 = vst [vmem:[%s6622_s27 + $0x6a0] sm:$0xff] %v600_v20  ;;  %v604_v22 = vld [vmem:[%s6617_s26 + $0xd60] sm:$0xff]  ;;  %v606_v23 = vld [vmem:[%s6617_s26 + $0xd68] sm:$0xff]  ;;  %603 = vst [vmem:[%s6622_s27 + $0x6a8] sm:$0xff] %v602_v21 }
  0x7b   : > { %605 = vst [vmem:[%s6622_s27 + $0x6b0] sm:$0xff] %v604_v22  ;;  %607 = vst [vmem:[%s6622_s27 + $0x6b8] sm:$0xff] %v606_v23  ;;  %v608_v24 = vld [vmem:[%s6617_s26 + $0xd80] sm:$0xff]  ;;  %v610_v25 = vld [vmem:[%s6617_s26 + $0xd88] sm:$0xff] }
  0x7c   : > { %v612_v26 = vld [vmem:[%s6617_s26 + $0xda0] sm:$0xff]  ;;  %609 = vst [vmem:[%s6622_s27 + $0x6c0] sm:$0xff] %v608_v24  ;;  %611 = vst [vmem:[%s6622_s27 + $0x6c8] sm:$0xff] %v610_v25  ;;  %v614_v27 = vld [vmem:[%s6617_s26 + $0xda8] sm:$0xff] }
  0x7d   : > { %613 = vst [vmem:[%s6622_s27 + $0x6d0] sm:$0xff] %v612_v26  ;;  %v616_v28 = vld [vmem:[%s6617_s26 + $0xdc0] sm:$0xff]  ;;  %v618_v29 = vld [vmem:[%s6617_s26 + $0xdc8] sm:$0xff]  ;;  %615 = vst [vmem:[%s6622_s27 + $0x6d8] sm:$0xff] %v614_v27 }
  0x7e   : > { %617 = vst [vmem:[%s6622_s27 + $0x6e0] sm:$0xff] %v616_v28  ;;  %619 = vst [vmem:[%s6622_s27 + $0x6e8] sm:$0xff] %v618_v29  ;;  %v620_v30 = vld [vmem:[%s6617_s26 + $0xde0] sm:$0xff]  ;;  %v622_v31 = vld [vmem:[%s6617_s26 + $0xde8] sm:$0xff] }
  0x7f   : > { %v624_v32 = vld [vmem:[%s6617_s26 + $0xe00] sm:$0xff]  ;;  %621 = vst [vmem:[%s6622_s27 + $0x6f0] sm:$0xff] %v620_v30  ;;  %623 = vst [vmem:[%s6622_s27 + $0x6f8] sm:$0xff] %v622_v31  ;;  %v626_v33 = vld [vmem:[%s6617_s26 + $0xe08] sm:$0xff] }
  0x80   : > { %625 = vst [vmem:[%s6622_s27 + $0x700] sm:$0xff] %v624_v32  ;;  %v628_v34 = vld [vmem:[%s6617_s26 + $0xe20] sm:$0xff]  ;;  %v630_v35 = vld [vmem:[%s6617_s26 + $0xe28] sm:$0xff]  ;;  %627 = vst [vmem:[%s6622_s27 + $0x708] sm:$0xff] %v626_v33 }
  0x81   : > { %629 = vst [vmem:[%s6622_s27 + $0x710] sm:$0xff] %v628_v34  ;;  %631 = vst [vmem:[%s6622_s27 + $0x718] sm:$0xff] %v630_v35  ;;  %v632_v36 = vld [vmem:[%s6617_s26 + $0xe40] sm:$0xff]  ;;  %v634_v37 = vld [vmem:[%s6617_s26 + $0xe48] sm:$0xff] }
  0x82   : > { %v636_v38 = vld [vmem:[%s6617_s26 + $0xe60] sm:$0xff]  ;;  %633 = vst [vmem:[%s6622_s27 + $0x720] sm:$0xff] %v632_v36  ;;  %635 = vst [vmem:[%s6622_s27 + $0x728] sm:$0xff] %v634_v37  ;;  %v638_v39 = vld [vmem:[%s6617_s26 + $0xe68] sm:$0xff] }
  0x83   : > { %637 = vst [vmem:[%s6622_s27 + $0x730] sm:$0xff] %v636_v38  ;;  %v640_v40 = vld [vmem:[%s6617_s26 + $0xe80] sm:$0xff]  ;;  %v642_v41 = vld [vmem:[%s6617_s26 + $0xe88] sm:$0xff]  ;;  %639 = vst [vmem:[%s6622_s27 + $0x738] sm:$0xff] %v638_v39 }
  0x84   : > { %641 = vst [vmem:[%s6622_s27 + $0x740] sm:$0xff] %v640_v40  ;;  %643 = vst [vmem:[%s6622_s27 + $0x748] sm:$0xff] %v642_v41  ;;  %v644_v42 = vld [vmem:[%s6617_s26 + $0xea0] sm:$0xff]  ;;  %v646_v43 = vld [vmem:[%s6617_s26 + $0xea8] sm:$0xff] }
  0x85   : > { %v648_v44 = vld [vmem:[%s6617_s26 + $0xec0] sm:$0xff]  ;;  %645 = vst [vmem:[%s6622_s27 + $0x750] sm:$0xff] %v644_v42  ;;  %647 = vst [vmem:[%s6622_s27 + $0x758] sm:$0xff] %v646_v43  ;;  %v650_v45 = vld [vmem:[%s6617_s26 + $0xec8] sm:$0xff] }
  0x86   : > { %649 = vst [vmem:[%s6622_s27 + $0x760] sm:$0xff] %v648_v44  ;;  %v652_v46 = vld [vmem:[%s6617_s26 + $0xee0] sm:$0xff]  ;;  %v654_v47 = vld [vmem:[%s6617_s26 + $0xee8] sm:$0xff]  ;;  %651 = vst [vmem:[%s6622_s27 + $0x768] sm:$0xff] %v650_v45 }
  0x87   : > { %653 = vst [vmem:[%s6622_s27 + $0x770] sm:$0xff] %v652_v46  ;;  %655 = vst [vmem:[%s6622_s27 + $0x778] sm:$0xff] %v654_v47  ;;  %v656_v48 = vld [vmem:[%s6617_s26 + $0xf00] sm:$0xff]  ;;  %v658_v49 = vld [vmem:[%s6617_s26 + $0xf08] sm:$0xff] }
  0x88   : > { %v660_v50 = vld [vmem:[%s6617_s26 + $0xf20] sm:$0xff]  ;;  %657 = vst [vmem:[%s6622_s27 + $0x780] sm:$0xff] %v656_v48  ;;  %659 = vst [vmem:[%s6622_s27 + $0x788] sm:$0xff] %v658_v49  ;;  %v662_v51 = vld [vmem:[%s6617_s26 + $0xf28] sm:$0xff] }
  0x89   : > { %661 = vst [vmem:[%s6622_s27 + $0x790] sm:$0xff] %v660_v50  ;;  %v664_v52 = vld [vmem:[%s6617_s26 + $0xf40] sm:$0xff]  ;;  %v666_v53 = vld [vmem:[%s6617_s26 + $0xf48] sm:$0xff]  ;;  %663 = vst [vmem:[%s6622_s27 + $0x798] sm:$0xff] %v662_v51 }
  0x8a   : > { %665 = vst [vmem:[%s6622_s27 + $0x7a0] sm:$0xff] %v664_v52  ;;  %667 = vst [vmem:[%s6622_s27 + $0x7a8] sm:$0xff] %v666_v53  ;;  %v668_v54 = vld [vmem:[%s6617_s26 + $0xf60] sm:$0xff]  ;;  %v670_v55 = vld [vmem:[%s6617_s26 + $0xf68] sm:$0xff] }
  0x8b   : > { %v672_v56 = vld [vmem:[%s6617_s26 + $0xf80] sm:$0xff]  ;;  %669 = vst [vmem:[%s6622_s27 + $0x7b0] sm:$0xff] %v668_v54  ;;  %671 = vst [vmem:[%s6622_s27 + $0x7b8] sm:$0xff] %v670_v55  ;;  %v674_v57 = vld [vmem:[%s6617_s26 + $0xf88] sm:$0xff] }
  0x8c   : > { %673 = vst [vmem:[%s6622_s27 + $0x7c0] sm:$0xff] %v672_v56  ;;  %v676_v58 = vld [vmem:[%s6617_s26 + $0xfa0] sm:$0xff]  ;;  %v678_v59 = vld [vmem:[%s6617_s26 + $0xfa8] sm:$0xff]  ;;  %675 = vst [vmem:[%s6622_s27 + $0x7c8] sm:$0xff] %v674_v57 }
  0x8d   : > { %677 = vst [vmem:[%s6622_s27 + $0x7d0] sm:$0xff] %v676_v58  ;;  %679 = vst [vmem:[%s6622_s27 + $0x7d8] sm:$0xff] %v678_v59  ;;  %v680_v60 = vld [vmem:[%s6617_s26 + $0xfc0] sm:$0xff]  ;;  %v682_v61 = vld [vmem:[%s6617_s26 + $0xfc8] sm:$0xff] }
  0x8e   : > { %v684_v62 = vld [vmem:[%s6617_s26 + $0xfe0] sm:$0xff]  ;;  %681 = vst [vmem:[%s6622_s27 + $0x7e0] sm:$0xff] %v680_v60  ;;  %683 = vst [vmem:[%s6622_s27 + $0x7e8] sm:$0xff] %v682_v61  ;;  %v686_v63 = vld [vmem:[%s6617_s26 + $0xfe8] sm:$0xff] }
  0x8f   : > { %685 = vst [vmem:[%s6622_s27 + $0x7f0] sm:$0xff] %v684_v62  ;;  %v688_v0 = vld [vmem:[%s6617_s26 + $0x1000] sm:$0xff]  ;;  %v690_v1 = vld [vmem:[%s6617_s26 + $0x1008] sm:$0xff]  ;;  %687 = vst [vmem:[%s6622_s27 + $0x7f8] sm:$0xff] %v686_v63 }
  0x90   : > { %689 = vst [vmem:[%s6622_s27 + $0x800] sm:$0xff] %v688_v0  ;;  %691 = vst [vmem:[%s6622_s27 + $0x808] sm:$0xff] %v690_v1  ;;  %v692_v2 = vld [vmem:[%s6617_s26 + $0x1020] sm:$0xff]  ;;  %v694_v3 = vld [vmem:[%s6617_s26 + $0x1028] sm:$0xff] }
  0x91   : > { %v696_v4 = vld [vmem:[%s6617_s26 + $0x1040] sm:$0xff]  ;;  %693 = vst [vmem:[%s6622_s27 + $0x810] sm:$0xff] %v692_v2  ;;  %695 = vst [vmem:[%s6622_s27 + $0x818] sm:$0xff] %v694_v3  ;;  %v698_v5 = vld [vmem:[%s6617_s26 + $0x1048] sm:$0xff] }
  0x92   : > { %697 = vst [vmem:[%s6622_s27 + $0x820] sm:$0xff] %v696_v4  ;;  %v700_v6 = vld [vmem:[%s6617_s26 + $0x1060] sm:$0xff]  ;;  %v702_v7 = vld [vmem:[%s6617_s26 + $0x1068] sm:$0xff]  ;;  %699 = vst [vmem:[%s6622_s27 + $0x828] sm:$0xff] %v698_v5 }
  0x93   : > { %701 = vst [vmem:[%s6622_s27 + $0x830] sm:$0xff] %v700_v6  ;;  %703 = vst [vmem:[%s6622_s27 + $0x838] sm:$0xff] %v702_v7  ;;  %v704_v8 = vld [vmem:[%s6617_s26 + $0x1080] sm:$0xff]  ;;  %v706_v9 = vld [vmem:[%s6617_s26 + $0x1088] sm:$0xff] }
  0x94   : > { %v708_v10 = vld [vmem:[%s6617_s26 + $0x10a0] sm:$0xff]  ;;  %705 = vst [vmem:[%s6622_s27 + $0x840] sm:$0xff] %v704_v8  ;;  %707 = vst [vmem:[%s6622_s27 + $0x848] sm:$0xff] %v706_v9  ;;  %v710_v11 = vld [vmem:[%s6617_s26 + $0x10a8] sm:$0xff] }
  0x95   : > { %709 = vst [vmem:[%s6622_s27 + $0x850] sm:$0xff] %v708_v10  ;;  %v712_v12 = vld [vmem:[%s6617_s26 + $0x10c0] sm:$0xff]  ;;  %v714_v13 = vld [vmem:[%s6617_s26 + $0x10c8] sm:$0xff]  ;;  %711 = vst [vmem:[%s6622_s27 + $0x858] sm:$0xff] %v710_v11 }
  0x96   : > { %713 = vst [vmem:[%s6622_s27 + $0x860] sm:$0xff] %v712_v12  ;;  %715 = vst [vmem:[%s6622_s27 + $0x868] sm:$0xff] %v714_v13  ;;  %v716_v14 = vld [vmem:[%s6617_s26 + $0x10e0] sm:$0xff]  ;;  %v718_v15 = vld [vmem:[%s6617_s26 + $0x10e8] sm:$0xff] }
  0x97   : > { %v720_v16 = vld [vmem:[%s6617_s26 + $0x1100] sm:$0xff]  ;;  %717 = vst [vmem:[%s6622_s27 + $0x870] sm:$0xff] %v716_v14  ;;  %719 = vst [vmem:[%s6622_s27 + $0x878] sm:$0xff] %v718_v15  ;;  %v722_v17 = vld [vmem:[%s6617_s26 + $0x1108] sm:$0xff] }
  0x98   : > { %721 = vst [vmem:[%s6622_s27 + $0x880] sm:$0xff] %v720_v16  ;;  %v724_v18 = vld [vmem:[%s6617_s26 + $0x1120] sm:$0xff]  ;;  %v726_v19 = vld [vmem:[%s6617_s26 + $0x1128] sm:$0xff]  ;;  %723 = vst [vmem:[%s6622_s27 + $0x888] sm:$0xff] %v722_v17 }
  0x99   : > { %725 = vst [vmem:[%s6622_s27 + $0x890] sm:$0xff] %v724_v18  ;;  %727 = vst [vmem:[%s6622_s27 + $0x898] sm:$0xff] %v726_v19  ;;  %v728_v20 = vld [vmem:[%s6617_s26 + $0x1140] sm:$0xff]  ;;  %v730_v21 = vld [vmem:[%s6617_s26 + $0x1148] sm:$0xff] }
  0x9a   : > { %v732_v22 = vld [vmem:[%s6617_s26 + $0x1160] sm:$0xff]  ;;  %729 = vst [vmem:[%s6622_s27 + $0x8a0] sm:$0xff] %v728_v20  ;;  %731 = vst [vmem:[%s6622_s27 + $0x8a8] sm:$0xff] %v730_v21  ;;  %v734_v23 = vld [vmem:[%s6617_s26 + $0x1168] sm:$0xff] }
  0x9b   : > { %733 = vst [vmem:[%s6622_s27 + $0x8b0] sm:$0xff] %v732_v22  ;;  %v736_v24 = vld [vmem:[%s6617_s26 + $0x1180] sm:$0xff]  ;;  %v738_v25 = vld [vmem:[%s6617_s26 + $0x1188] sm:$0xff]  ;;  %735 = vst [vmem:[%s6622_s27 + $0x8b8] sm:$0xff] %v734_v23 }
  0x9c   : > { %737 = vst [vmem:[%s6622_s27 + $0x8c0] sm:$0xff] %v736_v24  ;;  %739 = vst [vmem:[%s6622_s27 + $0x8c8] sm:$0xff] %v738_v25  ;;  %v740_v26 = vld [vmem:[%s6617_s26 + $0x11a0] sm:$0xff]  ;;  %v742_v27 = vld [vmem:[%s6617_s26 + $0x11a8] sm:$0xff] }
  0x9d   : > { %v744_v28 = vld [vmem:[%s6617_s26 + $0x11c0] sm:$0xff]  ;;  %741 = vst [vmem:[%s6622_s27 + $0x8d0] sm:$0xff] %v740_v26  ;;  %743 = vst [vmem:[%s6622_s27 + $0x8d8] sm:$0xff] %v742_v27  ;;  %v746_v29 = vld [vmem:[%s6617_s26 + $0x11c8] sm:$0xff] }
  0x9e   : > { %745 = vst [vmem:[%s6622_s27 + $0x8e0] sm:$0xff] %v744_v28  ;;  %v748_v30 = vld [vmem:[%s6617_s26 + $0x11e0] sm:$0xff]  ;;  %v750_v31 = vld [vmem:[%s6617_s26 + $0x11e8] sm:$0xff]  ;;  %747 = vst [vmem:[%s6622_s27 + $0x8e8] sm:$0xff] %v746_v29 }
  0x9f   : > { %749 = vst [vmem:[%s6622_s27 + $0x8f0] sm:$0xff] %v748_v30  ;;  %751 = vst [vmem:[%s6622_s27 + $0x8f8] sm:$0xff] %v750_v31  ;;  %v752_v32 = vld [vmem:[%s6617_s26 + $0x1200] sm:$0xff]  ;;  %v754_v33 = vld [vmem:[%s6617_s26 + $0x1208] sm:$0xff] }
  0xa0   : > { %v756_v34 = vld [vmem:[%s6617_s26 + $0x1220] sm:$0xff]  ;;  %753 = vst [vmem:[%s6622_s27 + $0x900] sm:$0xff] %v752_v32  ;;  %755 = vst [vmem:[%s6622_s27 + $0x908] sm:$0xff] %v754_v33  ;;  %v758_v35 = vld [vmem:[%s6617_s26 + $0x1228] sm:$0xff] }
  0xa1   : > { %757 = vst [vmem:[%s6622_s27 + $0x910] sm:$0xff] %v756_v34  ;;  %v760_v36 = vld [vmem:[%s6617_s26 + $0x1240] sm:$0xff]  ;;  %v762_v37 = vld [vmem:[%s6617_s26 + $0x1248] sm:$0xff]  ;;  %759 = vst [vmem:[%s6622_s27 + $0x918] sm:$0xff] %v758_v35 }
  0xa2   : > { %761 = vst [vmem:[%s6622_s27 + $0x920] sm:$0xff] %v760_v36  ;;  %763 = vst [vmem:[%s6622_s27 + $0x928] sm:$0xff] %v762_v37  ;;  %v764_v38 = vld [vmem:[%s6617_s26 + $0x1260] sm:$0xff]  ;;  %v766_v39 = vld [vmem:[%s6617_s26 + $0x1268] sm:$0xff] }
  0xa3   : > { %v768_v40 = vld [vmem:[%s6617_s26 + $0x1280] sm:$0xff]  ;;  %765 = vst [vmem:[%s6622_s27 + $0x930] sm:$0xff] %v764_v38  ;;  %767 = vst [vmem:[%s6622_s27 + $0x938] sm:$0xff] %v766_v39  ;;  %v770_v41 = vld [vmem:[%s6617_s26 + $0x1288] sm:$0xff] }
  0xa4   : > { %769 = vst [vmem:[%s6622_s27 + $0x940] sm:$0xff] %v768_v40  ;;  %v772_v42 = vld [vmem:[%s6617_s26 + $0x12a0] sm:$0xff]  ;;  %v774_v43 = vld [vmem:[%s6617_s26 + $0x12a8] sm:$0xff]  ;;  %771 = vst [vmem:[%s6622_s27 + $0x948] sm:$0xff] %v770_v41 }
  0xa5   : > { %773 = vst [vmem:[%s6622_s27 + $0x950] sm:$0xff] %v772_v42  ;;  %775 = vst [vmem:[%s6622_s27 + $0x958] sm:$0xff] %v774_v43  ;;  %v776_v44 = vld [vmem:[%s6617_s26 + $0x12c0] sm:$0xff]  ;;  %v778_v45 = vld [vmem:[%s6617_s26 + $0x12c8] sm:$0xff] }
  0xa6   : > { %v780_v46 = vld [vmem:[%s6617_s26 + $0x12e0] sm:$0xff]  ;;  %777 = vst [vmem:[%s6622_s27 + $0x960] sm:$0xff] %v776_v44  ;;  %779 = vst [vmem:[%s6622_s27 + $0x968] sm:$0xff] %v778_v45  ;;  %v782_v47 = vld [vmem:[%s6617_s26 + $0x12e8] sm:$0xff] }
  0xa7   : > { %781 = vst [vmem:[%s6622_s27 + $0x970] sm:$0xff] %v780_v46  ;;  %v784_v48 = vld [vmem:[%s6617_s26 + $0x1300] sm:$0xff]  ;;  %v786_v49 = vld [vmem:[%s6617_s26 + $0x1308] sm:$0xff]  ;;  %783 = vst [vmem:[%s6622_s27 + $0x978] sm:$0xff] %v782_v47 }
  0xa8   : > { %785 = vst [vmem:[%s6622_s27 + $0x980] sm:$0xff] %v784_v48  ;;  %787 = vst [vmem:[%s6622_s27 + $0x988] sm:$0xff] %v786_v49  ;;  %v788_v50 = vld [vmem:[%s6617_s26 + $0x1320] sm:$0xff]  ;;  %v790_v51 = vld [vmem:[%s6617_s26 + $0x1328] sm:$0xff] }
  0xa9   : > { %v792_v52 = vld [vmem:[%s6617_s26 + $0x1340] sm:$0xff]  ;;  %789 = vst [vmem:[%s6622_s27 + $0x990] sm:$0xff] %v788_v50  ;;  %791 = vst [vmem:[%s6622_s27 + $0x998] sm:$0xff] %v790_v51  ;;  %v794_v53 = vld [vmem:[%s6617_s26 + $0x1348] sm:$0xff] }
  0xaa   : > { %793 = vst [vmem:[%s6622_s27 + $0x9a0] sm:$0xff] %v792_v52  ;;  %v796_v54 = vld [vmem:[%s6617_s26 + $0x1360] sm:$0xff]  ;;  %v798_v55 = vld [vmem:[%s6617_s26 + $0x1368] sm:$0xff]  ;;  %795 = vst [vmem:[%s6622_s27 + $0x9a8] sm:$0xff] %v794_v53 }
  0xab   : > { %797 = vst [vmem:[%s6622_s27 + $0x9b0] sm:$0xff] %v796_v54  ;;  %799 = vst [vmem:[%s6622_s27 + $0x9b8] sm:$0xff] %v798_v55  ;;  %v800_v56 = vld [vmem:[%s6617_s26 + $0x1380] sm:$0xff]  ;;  %v802_v57 = vld [vmem:[%s6617_s26 + $0x1388] sm:$0xff] }
  0xac   : > { %v804_v58 = vld [vmem:[%s6617_s26 + $0x13a0] sm:$0xff]  ;;  %801 = vst [vmem:[%s6622_s27 + $0x9c0] sm:$0xff] %v800_v56  ;;  %803 = vst [vmem:[%s6622_s27 + $0x9c8] sm:$0xff] %v802_v57  ;;  %v806_v59 = vld [vmem:[%s6617_s26 + $0x13a8] sm:$0xff] }
  0xad   : > { %805 = vst [vmem:[%s6622_s27 + $0x9d0] sm:$0xff] %v804_v58  ;;  %v808_v60 = vld [vmem:[%s6617_s26 + $0x13c0] sm:$0xff]  ;;  %v810_v61 = vld [vmem:[%s6617_s26 + $0x13c8] sm:$0xff]  ;;  %807 = vst [vmem:[%s6622_s27 + $0x9d8] sm:$0xff] %v806_v59 }
  0xae   : > { %809 = vst [vmem:[%s6622_s27 + $0x9e0] sm:$0xff] %v808_v60  ;;  %811 = vst [vmem:[%s6622_s27 + $0x9e8] sm:$0xff] %v810_v61  ;;  %v812_v62 = vld [vmem:[%s6617_s26 + $0x13e0] sm:$0xff]  ;;  %v814_v63 = vld [vmem:[%s6617_s26 + $0x13e8] sm:$0xff] }
  0xaf   : > { %v816_v0 = vld [vmem:[%s6617_s26 + $0x1400] sm:$0xff]  ;;  %813 = vst [vmem:[%s6622_s27 + $0x9f0] sm:$0xff] %v812_v62  ;;  %815 = vst [vmem:[%s6622_s27 + $0x9f8] sm:$0xff] %v814_v63  ;;  %v818_v1 = vld [vmem:[%s6617_s26 + $0x1408] sm:$0xff] }
  0xb0   : > { %817 = vst [vmem:[%s6622_s27 + $0xa00] sm:$0xff] %v816_v0  ;;  %v820_v2 = vld [vmem:[%s6617_s26 + $0x1420] sm:$0xff]  ;;  %v822_v3 = vld [vmem:[%s6617_s26 + $0x1428] sm:$0xff]  ;;  %819 = vst [vmem:[%s6622_s27 + $0xa08] sm:$0xff] %v818_v1 }
  0xb1   : > { %821 = vst [vmem:[%s6622_s27 + $0xa10] sm:$0xff] %v820_v2  ;;  %823 = vst [vmem:[%s6622_s27 + $0xa18] sm:$0xff] %v822_v3  ;;  %v824_v4 = vld [vmem:[%s6617_s26 + $0x1440] sm:$0xff]  ;;  %v826_v5 = vld [vmem:[%s6617_s26 + $0x1448] sm:$0xff] }
  0xb2   : > { %v828_v6 = vld [vmem:[%s6617_s26 + $0x1460] sm:$0xff]  ;;  %825 = vst [vmem:[%s6622_s27 + $0xa20] sm:$0xff] %v824_v4  ;;  %827 = vst [vmem:[%s6622_s27 + $0xa28] sm:$0xff] %v826_v5  ;;  %v830_v7 = vld [vmem:[%s6617_s26 + $0x1468] sm:$0xff] }
  0xb3   : > { %829 = vst [vmem:[%s6622_s27 + $0xa30] sm:$0xff] %v828_v6  ;;  %v832_v8 = vld [vmem:[%s6617_s26 + $0x1480] sm:$0xff]  ;;  %v834_v9 = vld [vmem:[%s6617_s26 + $0x1488] sm:$0xff]  ;;  %831 = vst [vmem:[%s6622_s27 + $0xa38] sm:$0xff] %v830_v7 }
  0xb4   : > { %833 = vst [vmem:[%s6622_s27 + $0xa40] sm:$0xff] %v832_v8  ;;  %835 = vst [vmem:[%s6622_s27 + $0xa48] sm:$0xff] %v834_v9  ;;  %v836_v10 = vld [vmem:[%s6617_s26 + $0x14a0] sm:$0xff]  ;;  %v838_v11 = vld [vmem:[%s6617_s26 + $0x14a8] sm:$0xff] }
  0xb5   : > { %v840_v12 = vld [vmem:[%s6617_s26 + $0x14c0] sm:$0xff]  ;;  %837 = vst [vmem:[%s6622_s27 + $0xa50] sm:$0xff] %v836_v10  ;;  %839 = vst [vmem:[%s6622_s27 + $0xa58] sm:$0xff] %v838_v11  ;;  %v842_v13 = vld [vmem:[%s6617_s26 + $0x14c8] sm:$0xff] }
  0xb6   : > { %841 = vst [vmem:[%s6622_s27 + $0xa60] sm:$0xff] %v840_v12  ;;  %v844_v14 = vld [vmem:[%s6617_s26 + $0x14e0] sm:$0xff]  ;;  %v846_v15 = vld [vmem:[%s6617_s26 + $0x14e8] sm:$0xff]  ;;  %843 = vst [vmem:[%s6622_s27 + $0xa68] sm:$0xff] %v842_v13 }
  0xb7   : > { %845 = vst [vmem:[%s6622_s27 + $0xa70] sm:$0xff] %v844_v14  ;;  %847 = vst [vmem:[%s6622_s27 + $0xa78] sm:$0xff] %v846_v15  ;;  %v848_v16 = vld [vmem:[%s6617_s26 + $0x1500] sm:$0xff]  ;;  %v850_v17 = vld [vmem:[%s6617_s26 + $0x1508] sm:$0xff] }
  0xb8   : > { %v852_v18 = vld [vmem:[%s6617_s26 + $0x1520] sm:$0xff]  ;;  %849 = vst [vmem:[%s6622_s27 + $0xa80] sm:$0xff] %v848_v16  ;;  %851 = vst [vmem:[%s6622_s27 + $0xa88] sm:$0xff] %v850_v17  ;;  %v854_v19 = vld [vmem:[%s6617_s26 + $0x1528] sm:$0xff] }
  0xb9   : > { %853 = vst [vmem:[%s6622_s27 + $0xa90] sm:$0xff] %v852_v18  ;;  %v856_v20 = vld [vmem:[%s6617_s26 + $0x1540] sm:$0xff]  ;;  %v858_v21 = vld [vmem:[%s6617_s26 + $0x1548] sm:$0xff]  ;;  %855 = vst [vmem:[%s6622_s27 + $0xa98] sm:$0xff] %v854_v19 }
  0xba   : > { %857 = vst [vmem:[%s6622_s27 + $0xaa0] sm:$0xff] %v856_v20  ;;  %859 = vst [vmem:[%s6622_s27 + $0xaa8] sm:$0xff] %v858_v21  ;;  %v860_v22 = vld [vmem:[%s6617_s26 + $0x1560] sm:$0xff]  ;;  %v862_v23 = vld [vmem:[%s6617_s26 + $0x1568] sm:$0xff] }
  0xbb   : > { %v864_v24 = vld [vmem:[%s6617_s26 + $0x1580] sm:$0xff]  ;;  %861 = vst [vmem:[%s6622_s27 + $0xab0] sm:$0xff] %v860_v22  ;;  %863 = vst [vmem:[%s6622_s27 + $0xab8] sm:$0xff] %v862_v23  ;;  %v866_v25 = vld [vmem:[%s6617_s26 + $0x1588] sm:$0xff] }
  0xbc   : > { %865 = vst [vmem:[%s6622_s27 + $0xac0] sm:$0xff] %v864_v24  ;;  %v868_v26 = vld [vmem:[%s6617_s26 + $0x15a0] sm:$0xff]  ;;  %v870_v27 = vld [vmem:[%s6617_s26 + $0x15a8] sm:$0xff]  ;;  %867 = vst [vmem:[%s6622_s27 + $0xac8] sm:$0xff] %v866_v25 }
  0xbd   : > { %869 = vst [vmem:[%s6622_s27 + $0xad0] sm:$0xff] %v868_v26  ;;  %871 = vst [vmem:[%s6622_s27 + $0xad8] sm:$0xff] %v870_v27  ;;  %v872_v28 = vld [vmem:[%s6617_s26 + $0x15c0] sm:$0xff]  ;;  %v874_v29 = vld [vmem:[%s6617_s26 + $0x15c8] sm:$0xff] }
  0xbe   : > { %v876_v30 = vld [vmem:[%s6617_s26 + $0x15e0] sm:$0xff]  ;;  %873 = vst [vmem:[%s6622_s27 + $0xae0] sm:$0xff] %v872_v28  ;;  %875 = vst [vmem:[%s6622_s27 + $0xae8] sm:$0xff] %v874_v29  ;;  %v878_v31 = vld [vmem:[%s6617_s26 + $0x15e8] sm:$0xff] }
  0xbf   : > { %877 = vst [vmem:[%s6622_s27 + $0xaf0] sm:$0xff] %v876_v30  ;;  %v880_v32 = vld [vmem:[%s6617_s26 + $0x1600] sm:$0xff]  ;;  %v882_v33 = vld [vmem:[%s6617_s26 + $0x1608] sm:$0xff]  ;;  %879 = vst [vmem:[%s6622_s27 + $0xaf8] sm:$0xff] %v878_v31 }
  0xc0   : > { %881 = vst [vmem:[%s6622_s27 + $0xb00] sm:$0xff] %v880_v32  ;;  %883 = vst [vmem:[%s6622_s27 + $0xb08] sm:$0xff] %v882_v33  ;;  %v884_v34 = vld [vmem:[%s6617_s26 + $0x1620] sm:$0xff]  ;;  %v886_v35 = vld [vmem:[%s6617_s26 + $0x1628] sm:$0xff] }
  0xc1   : > { %v888_v36 = vld [vmem:[%s6617_s26 + $0x1640] sm:$0xff]  ;;  %885 = vst [vmem:[%s6622_s27 + $0xb10] sm:$0xff] %v884_v34  ;;  %887 = vst [vmem:[%s6622_s27 + $0xb18] sm:$0xff] %v886_v35  ;;  %v890_v37 = vld [vmem:[%s6617_s26 + $0x1648] sm:$0xff] }
  0xc2   : > { %889 = vst [vmem:[%s6622_s27 + $0xb20] sm:$0xff] %v888_v36  ;;  %v892_v38 = vld [vmem:[%s6617_s26 + $0x1660] sm:$0xff]  ;;  %v894_v39 = vld [vmem:[%s6617_s26 + $0x1668] sm:$0xff]  ;;  %891 = vst [vmem:[%s6622_s27 + $0xb28] sm:$0xff] %v890_v37 }
  0xc3   : > { %893 = vst [vmem:[%s6622_s27 + $0xb30] sm:$0xff] %v892_v38  ;;  %895 = vst [vmem:[%s6622_s27 + $0xb38] sm:$0xff] %v894_v39  ;;  %v896_v40 = vld [vmem:[%s6617_s26 + $0x1680] sm:$0xff]  ;;  %v898_v41 = vld [vmem:[%s6617_s26 + $0x1688] sm:$0xff] }
  0xc4   : > { %v900_v42 = vld [vmem:[%s6617_s26 + $0x16a0] sm:$0xff]  ;;  %897 = vst [vmem:[%s6622_s27 + $0xb40] sm:$0xff] %v896_v40  ;;  %899 = vst [vmem:[%s6622_s27 + $0xb48] sm:$0xff] %v898_v41  ;;  %v902_v43 = vld [vmem:[%s6617_s26 + $0x16a8] sm:$0xff] }
  0xc5   : > { %901 = vst [vmem:[%s6622_s27 + $0xb50] sm:$0xff] %v900_v42  ;;  %v904_v44 = vld [vmem:[%s6617_s26 + $0x16c0] sm:$0xff]  ;;  %v906_v45 = vld [vmem:[%s6617_s26 + $0x16c8] sm:$0xff]  ;;  %903 = vst [vmem:[%s6622_s27 + $0xb58] sm:$0xff] %v902_v43 }
  0xc6   : > { %905 = vst [vmem:[%s6622_s27 + $0xb60] sm:$0xff] %v904_v44  ;;  %907 = vst [vmem:[%s6622_s27 + $0xb68] sm:$0xff] %v906_v45  ;;  %v908_v46 = vld [vmem:[%s6617_s26 + $0x16e0] sm:$0xff]  ;;  %v910_v47 = vld [vmem:[%s6617_s26 + $0x16e8] sm:$0xff] }
  0xc7   : > { %v912_v48 = vld [vmem:[%s6617_s26 + $0x1700] sm:$0xff]  ;;  %909 = vst [vmem:[%s6622_s27 + $0xb70] sm:$0xff] %v908_v46  ;;  %911 = vst [vmem:[%s6622_s27 + $0xb78] sm:$0xff] %v910_v47  ;;  %v914_v49 = vld [vmem:[%s6617_s26 + $0x1708] sm:$0xff] }
  0xc8   : > { %913 = vst [vmem:[%s6622_s27 + $0xb80] sm:$0xff] %v912_v48  ;;  %v916_v50 = vld [vmem:[%s6617_s26 + $0x1720] sm:$0xff]  ;;  %v918_v51 = vld [vmem:[%s6617_s26 + $0x1728] sm:$0xff]  ;;  %915 = vst [vmem:[%s6622_s27 + $0xb88] sm:$0xff] %v914_v49 }
  0xc9   : > { %917 = vst [vmem:[%s6622_s27 + $0xb90] sm:$0xff] %v916_v50  ;;  %919 = vst [vmem:[%s6622_s27 + $0xb98] sm:$0xff] %v918_v51  ;;  %v920_v52 = vld [vmem:[%s6617_s26 + $0x1740] sm:$0xff]  ;;  %v922_v53 = vld [vmem:[%s6617_s26 + $0x1748] sm:$0xff] }
  0xca   : > { %v924_v54 = vld [vmem:[%s6617_s26 + $0x1760] sm:$0xff]  ;;  %921 = vst [vmem:[%s6622_s27 + $0xba0] sm:$0xff] %v920_v52  ;;  %923 = vst [vmem:[%s6622_s27 + $0xba8] sm:$0xff] %v922_v53  ;;  %v926_v55 = vld [vmem:[%s6617_s26 + $0x1768] sm:$0xff] }
  0xcb   : > { %925 = vst [vmem:[%s6622_s27 + $0xbb0] sm:$0xff] %v924_v54  ;;  %v928_v56 = vld [vmem:[%s6617_s26 + $0x1780] sm:$0xff]  ;;  %v930_v57 = vld [vmem:[%s6617_s26 + $0x1788] sm:$0xff]  ;;  %927 = vst [vmem:[%s6622_s27 + $0xbb8] sm:$0xff] %v926_v55 }
  0xcc   : > { %929 = vst [vmem:[%s6622_s27 + $0xbc0] sm:$0xff] %v928_v56  ;;  %931 = vst [vmem:[%s6622_s27 + $0xbc8] sm:$0xff] %v930_v57  ;;  %v932_v58 = vld [vmem:[%s6617_s26 + $0x17a0] sm:$0xff]  ;;  %v934_v59 = vld [vmem:[%s6617_s26 + $0x17a8] sm:$0xff] }
  0xcd   : > { %v936_v60 = vld [vmem:[%s6617_s26 + $0x17c0] sm:$0xff]  ;;  %933 = vst [vmem:[%s6622_s27 + $0xbd0] sm:$0xff] %v932_v58  ;;  %935 = vst [vmem:[%s6622_s27 + $0xbd8] sm:$0xff] %v934_v59  ;;  %v938_v61 = vld [vmem:[%s6617_s26 + $0x17c8] sm:$0xff] }
  0xce   : > { %937 = vst [vmem:[%s6622_s27 + $0xbe0] sm:$0xff] %v936_v60  ;;  %v940_v62 = vld [vmem:[%s6617_s26 + $0x17e0] sm:$0xff]  ;;  %v942_v63 = vld [vmem:[%s6617_s26 + $0x17e8] sm:$0xff]  ;;  %939 = vst [vmem:[%s6622_s27 + $0xbe8] sm:$0xff] %v938_v61 }
  0xcf   : > { %941 = vst [vmem:[%s6622_s27 + $0xbf0] sm:$0xff] %v940_v62  ;;  %943 = vst [vmem:[%s6622_s27 + $0xbf8] sm:$0xff] %v942_v63  ;;  %v944_v0 = vld [vmem:[%s6617_s26 + $0x1800] sm:$0xff]  ;;  %v946_v1 = vld [vmem:[%s6617_s26 + $0x1808] sm:$0xff] }
  0xd0   : > { %v948_v2 = vld [vmem:[%s6617_s26 + $0x1820] sm:$0xff]  ;;  %945 = vst [vmem:[%s6622_s27 + $0xc00] sm:$0xff] %v944_v0  ;;  %947 = vst [vmem:[%s6622_s27 + $0xc08] sm:$0xff] %v946_v1  ;;  %v950_v3 = vld [vmem:[%s6617_s26 + $0x1828] sm:$0xff] }
  0xd1   : > { %949 = vst [vmem:[%s6622_s27 + $0xc10] sm:$0xff] %v948_v2  ;;  %v952_v4 = vld [vmem:[%s6617_s26 + $0x1840] sm:$0xff]  ;;  %v954_v5 = vld [vmem:[%s6617_s26 + $0x1848] sm:$0xff]  ;;  %951 = vst [vmem:[%s6622_s27 + $0xc18] sm:$0xff] %v950_v3 }
  0xd2   : > { %953 = vst [vmem:[%s6622_s27 + $0xc20] sm:$0xff] %v952_v4  ;;  %955 = vst [vmem:[%s6622_s27 + $0xc28] sm:$0xff] %v954_v5  ;;  %v956_v6 = vld [vmem:[%s6617_s26 + $0x1860] sm:$0xff]  ;;  %v958_v7 = vld [vmem:[%s6617_s26 + $0x1868] sm:$0xff] }
  0xd3   : > { %v960_v8 = vld [vmem:[%s6617_s26 + $0x1880] sm:$0xff]  ;;  %957 = vst [vmem:[%s6622_s27 + $0xc30] sm:$0xff] %v956_v6  ;;  %959 = vst [vmem:[%s6622_s27 + $0xc38] sm:$0xff] %v958_v7  ;;  %v962_v9 = vld [vmem:[%s6617_s26 + $0x1888] sm:$0xff] }
  0xd4   : > { %961 = vst [vmem:[%s6622_s27 + $0xc40] sm:$0xff] %v960_v8  ;;  %v964_v10 = vld [vmem:[%s6617_s26 + $0x18a0] sm:$0xff]  ;;  %v966_v11 = vld [vmem:[%s6617_s26 + $0x18a8] sm:$0xff]  ;;  %963 = vst [vmem:[%s6622_s27 + $0xc48] sm:$0xff] %v962_v9 }
  0xd5   : > { %965 = vst [vmem:[%s6622_s27 + $0xc50] sm:$0xff] %v964_v10  ;;  %967 = vst [vmem:[%s6622_s27 + $0xc58] sm:$0xff] %v966_v11  ;;  %v968_v12 = vld [vmem:[%s6617_s26 + $0x18c0] sm:$0xff]  ;;  %v970_v13 = vld [vmem:[%s6617_s26 + $0x18c8] sm:$0xff] }
  0xd6   : > { %v972_v14 = vld [vmem:[%s6617_s26 + $0x18e0] sm:$0xff]  ;;  %969 = vst [vmem:[%s6622_s27 + $0xc60] sm:$0xff] %v968_v12  ;;  %971 = vst [vmem:[%s6622_s27 + $0xc68] sm:$0xff] %v970_v13  ;;  %v974_v15 = vld [vmem:[%s6617_s26 + $0x18e8] sm:$0xff] }
  0xd7   : > { %973 = vst [vmem:[%s6622_s27 + $0xc70] sm:$0xff] %v972_v14  ;;  %v976_v16 = vld [vmem:[%s6617_s26 + $0x1900] sm:$0xff]  ;;  %v978_v17 = vld [vmem:[%s6617_s26 + $0x1908] sm:$0xff]  ;;  %975 = vst [vmem:[%s6622_s27 + $0xc78] sm:$0xff] %v974_v15 }
  0xd8   : > { %977 = vst [vmem:[%s6622_s27 + $0xc80] sm:$0xff] %v976_v16  ;;  %979 = vst [vmem:[%s6622_s27 + $0xc88] sm:$0xff] %v978_v17  ;;  %v980_v18 = vld [vmem:[%s6617_s26 + $0x1920] sm:$0xff]  ;;  %v982_v19 = vld [vmem:[%s6617_s26 + $0x1928] sm:$0xff] }
  0xd9   : > { %v984_v20 = vld [vmem:[%s6617_s26 + $0x1940] sm:$0xff]  ;;  %981 = vst [vmem:[%s6622_s27 + $0xc90] sm:$0xff] %v980_v18  ;;  %983 = vst [vmem:[%s6622_s27 + $0xc98] sm:$0xff] %v982_v19  ;;  %v986_v21 = vld [vmem:[%s6617_s26 + $0x1948] sm:$0xff] }
  0xda   : > { %985 = vst [vmem:[%s6622_s27 + $0xca0] sm:$0xff] %v984_v20  ;;  %v988_v22 = vld [vmem:[%s6617_s26 + $0x1960] sm:$0xff]  ;;  %v990_v23 = vld [vmem:[%s6617_s26 + $0x1968] sm:$0xff]  ;;  %987 = vst [vmem:[%s6622_s27 + $0xca8] sm:$0xff] %v986_v21 }
  0xdb   : > { %989 = vst [vmem:[%s6622_s27 + $0xcb0] sm:$0xff] %v988_v22  ;;  %991 = vst [vmem:[%s6622_s27 + $0xcb8] sm:$0xff] %v990_v23  ;;  %v992_v24 = vld [vmem:[%s6617_s26 + $0x1980] sm:$0xff]  ;;  %v994_v25 = vld [vmem:[%s6617_s26 + $0x1988] sm:$0xff] }
  0xdc   : > { %v996_v26 = vld [vmem:[%s6617_s26 + $0x19a0] sm:$0xff]  ;;  %993 = vst [vmem:[%s6622_s27 + $0xcc0] sm:$0xff] %v992_v24  ;;  %995 = vst [vmem:[%s6622_s27 + $0xcc8] sm:$0xff] %v994_v25  ;;  %v998_v27 = vld [vmem:[%s6617_s26 + $0x19a8] sm:$0xff] }
  0xdd   : > { %997 = vst [vmem:[%s6622_s27 + $0xcd0] sm:$0xff] %v996_v26  ;;  %v1000_v28 = vld [vmem:[%s6617_s26 + $0x19c0] sm:$0xff]  ;;  %v1002_v29 = vld [vmem:[%s6617_s26 + $0x19c8] sm:$0xff]  ;;  %999 = vst [vmem:[%s6622_s27 + $0xcd8] sm:$0xff] %v998_v27 }
  0xde   : > { %1001 = vst [vmem:[%s6622_s27 + $0xce0] sm:$0xff] %v1000_v28  ;;  %1003 = vst [vmem:[%s6622_s27 + $0xce8] sm:$0xff] %v1002_v29  ;;  %v1004_v30 = vld [vmem:[%s6617_s26 + $0x19e0] sm:$0xff]  ;;  %v1006_v31 = vld [vmem:[%s6617_s26 + $0x19e8] sm:$0xff] }
  0xdf   : > { %v1008_v32 = vld [vmem:[%s6617_s26 + $0x1a00] sm:$0xff]  ;;  %1005 = vst [vmem:[%s6622_s27 + $0xcf0] sm:$0xff] %v1004_v30  ;;  %1007 = vst [vmem:[%s6622_s27 + $0xcf8] sm:$0xff] %v1006_v31  ;;  %v1010_v33 = vld [vmem:[%s6617_s26 + $0x1a08] sm:$0xff] }
  0xe0   : > { %1009 = vst [vmem:[%s6622_s27 + $0xd00] sm:$0xff] %v1008_v32  ;;  %v1012_v34 = vld [vmem:[%s6617_s26 + $0x1a20] sm:$0xff]  ;;  %v1014_v35 = vld [vmem:[%s6617_s26 + $0x1a28] sm:$0xff]  ;;  %1011 = vst [vmem:[%s6622_s27 + $0xd08] sm:$0xff] %v1010_v33 }
  0xe1   : > { %1013 = vst [vmem:[%s6622_s27 + $0xd10] sm:$0xff] %v1012_v34  ;;  %1015 = vst [vmem:[%s6622_s27 + $0xd18] sm:$0xff] %v1014_v35  ;;  %v1016_v36 = vld [vmem:[%s6617_s26 + $0x1a40] sm:$0xff]  ;;  %v1018_v37 = vld [vmem:[%s6617_s26 + $0x1a48] sm:$0xff] }
  0xe2   : > { %v1020_v38 = vld [vmem:[%s6617_s26 + $0x1a60] sm:$0xff]  ;;  %1017 = vst [vmem:[%s6622_s27 + $0xd20] sm:$0xff] %v1016_v36  ;;  %1019 = vst [vmem:[%s6622_s27 + $0xd28] sm:$0xff] %v1018_v37  ;;  %v1022_v39 = vld [vmem:[%s6617_s26 + $0x1a68] sm:$0xff] }
  0xe3   : > { %1021 = vst [vmem:[%s6622_s27 + $0xd30] sm:$0xff] %v1020_v38  ;;  %v1024_v40 = vld [vmem:[%s6617_s26 + $0x1a80] sm:$0xff]  ;;  %v1026_v41 = vld [vmem:[%s6617_s26 + $0x1a88] sm:$0xff]  ;;  %1023 = vst [vmem:[%s6622_s27 + $0xd38] sm:$0xff] %v1022_v39 }
  0xe4   : > { %1025 = vst [vmem:[%s6622_s27 + $0xd40] sm:$0xff] %v1024_v40  ;;  %1027 = vst [vmem:[%s6622_s27 + $0xd48] sm:$0xff] %v1026_v41  ;;  %v1028_v42 = vld [vmem:[%s6617_s26 + $0x1aa0] sm:$0xff]  ;;  %v1030_v43 = vld [vmem:[%s6617_s26 + $0x1aa8] sm:$0xff] }
  0xe5   : > { %v1032_v44 = vld [vmem:[%s6617_s26 + $0x1ac0] sm:$0xff]  ;;  %1029 = vst [vmem:[%s6622_s27 + $0xd50] sm:$0xff] %v1028_v42  ;;  %1031 = vst [vmem:[%s6622_s27 + $0xd58] sm:$0xff] %v1030_v43  ;;  %v1034_v45 = vld [vmem:[%s6617_s26 + $0x1ac8] sm:$0xff] }
  0xe6   : > { %1033 = vst [vmem:[%s6622_s27 + $0xd60] sm:$0xff] %v1032_v44  ;;  %v1036_v46 = vld [vmem:[%s6617_s26 + $0x1ae0] sm:$0xff]  ;;  %v1038_v47 = vld [vmem:[%s6617_s26 + $0x1ae8] sm:$0xff]  ;;  %1035 = vst [vmem:[%s6622_s27 + $0xd68] sm:$0xff] %v1034_v45 }
  0xe7   : > { %1037 = vst [vmem:[%s6622_s27 + $0xd70] sm:$0xff] %v1036_v46  ;;  %1039 = vst [vmem:[%s6622_s27 + $0xd78] sm:$0xff] %v1038_v47  ;;  %v1040_v48 = vld [vmem:[%s6617_s26 + $0x1b00] sm:$0xff]  ;;  %v1042_v49 = vld [vmem:[%s6617_s26 + $0x1b08] sm:$0xff] }
  0xe8   : > { %v1044_v50 = vld [vmem:[%s6617_s26 + $0x1b20] sm:$0xff]  ;;  %1041 = vst [vmem:[%s6622_s27 + $0xd80] sm:$0xff] %v1040_v48  ;;  %1043 = vst [vmem:[%s6622_s27 + $0xd88] sm:$0xff] %v1042_v49  ;;  %v1046_v51 = vld [vmem:[%s6617_s26 + $0x1b28] sm:$0xff] }
  0xe9   : > { %1045 = vst [vmem:[%s6622_s27 + $0xd90] sm:$0xff] %v1044_v50  ;;  %v1048_v52 = vld [vmem:[%s6617_s26 + $0x1b40] sm:$0xff]  ;;  %v1050_v53 = vld [vmem:[%s6617_s26 + $0x1b48] sm:$0xff]  ;;  %1047 = vst [vmem:[%s6622_s27 + $0xd98] sm:$0xff] %v1046_v51 }
  0xea   : > { %1049 = vst [vmem:[%s6622_s27 + $0xda0] sm:$0xff] %v1048_v52  ;;  %1051 = vst [vmem:[%s6622_s27 + $0xda8] sm:$0xff] %v1050_v53  ;;  %v1052_v54 = vld [vmem:[%s6617_s26 + $0x1b60] sm:$0xff]  ;;  %v1054_v55 = vld [vmem:[%s6617_s26 + $0x1b68] sm:$0xff] }
  0xeb   : > { %v1056_v56 = vld [vmem:[%s6617_s26 + $0x1b80] sm:$0xff]  ;;  %1053 = vst [vmem:[%s6622_s27 + $0xdb0] sm:$0xff] %v1052_v54  ;;  %1055 = vst [vmem:[%s6622_s27 + $0xdb8] sm:$0xff] %v1054_v55  ;;  %v1058_v57 = vld [vmem:[%s6617_s26 + $0x1b88] sm:$0xff] }
  0xec   : > { %1057 = vst [vmem:[%s6622_s27 + $0xdc0] sm:$0xff] %v1056_v56  ;;  %v1060_v58 = vld [vmem:[%s6617_s26 + $0x1ba0] sm:$0xff]  ;;  %v1062_v59 = vld [vmem:[%s6617_s26 + $0x1ba8] sm:$0xff]  ;;  %1059 = vst [vmem:[%s6622_s27 + $0xdc8] sm:$0xff] %v1058_v57 }
  0xed   : > { %1061 = vst [vmem:[%s6622_s27 + $0xdd0] sm:$0xff] %v1060_v58  ;;  %1063 = vst [vmem:[%s6622_s27 + $0xdd8] sm:$0xff] %v1062_v59  ;;  %v1064_v60 = vld [vmem:[%s6617_s26 + $0x1bc0] sm:$0xff]  ;;  %v1066_v61 = vld [vmem:[%s6617_s26 + $0x1bc8] sm:$0xff] }
  0xee   : > { %v1068_v62 = vld [vmem:[%s6617_s26 + $0x1be0] sm:$0xff]  ;;  %1065 = vst [vmem:[%s6622_s27 + $0xde0] sm:$0xff] %v1064_v60  ;;  %1067 = vst [vmem:[%s6622_s27 + $0xde8] sm:$0xff] %v1066_v61  ;;  %v1070_v63 = vld [vmem:[%s6617_s26 + $0x1be8] sm:$0xff] }
  0xef   : > { %1069 = vst [vmem:[%s6622_s27 + $0xdf0] sm:$0xff] %v1068_v62  ;;  %v1072_v0 = vld [vmem:[%s6617_s26 + $0x1c00] sm:$0xff]  ;;  %v1074_v1 = vld [vmem:[%s6617_s26 + $0x1c08] sm:$0xff]  ;;  %1071 = vst [vmem:[%s6622_s27 + $0xdf8] sm:$0xff] %v1070_v63 }
  0xf0   : > { %1073 = vst [vmem:[%s6622_s27 + $0xe00] sm:$0xff] %v1072_v0  ;;  %1075 = vst [vmem:[%s6622_s27 + $0xe08] sm:$0xff] %v1074_v1  ;;  %v1076_v2 = vld [vmem:[%s6617_s26 + $0x1c20] sm:$0xff]  ;;  %v1078_v3 = vld [vmem:[%s6617_s26 + $0x1c28] sm:$0xff] }
  0xf1   : > { %v1080_v4 = vld [vmem:[%s6617_s26 + $0x1c40] sm:$0xff]  ;;  %1077 = vst [vmem:[%s6622_s27 + $0xe10] sm:$0xff] %v1076_v2  ;;  %1079 = vst [vmem:[%s6622_s27 + $0xe18] sm:$0xff] %v1078_v3  ;;  %v1082_v5 = vld [vmem:[%s6617_s26 + $0x1c48] sm:$0xff] }
  0xf2   : > { %1081 = vst [vmem:[%s6622_s27 + $0xe20] sm:$0xff] %v1080_v4  ;;  %v1084_v6 = vld [vmem:[%s6617_s26 + $0x1c60] sm:$0xff]  ;;  %v1086_v7 = vld [vmem:[%s6617_s26 + $0x1c68] sm:$0xff]  ;;  %1083 = vst [vmem:[%s6622_s27 + $0xe28] sm:$0xff] %v1082_v5 }
  0xf3   : > { %1085 = vst [vmem:[%s6622_s27 + $0xe30] sm:$0xff] %v1084_v6  ;;  %1087 = vst [vmem:[%s6622_s27 + $0xe38] sm:$0xff] %v1086_v7  ;;  %v1088_v8 = vld [vmem:[%s6617_s26 + $0x1c80] sm:$0xff]  ;;  %v1090_v9 = vld [vmem:[%s6617_s26 + $0x1c88] sm:$0xff] }
  0xf4   : > { %v1092_v10 = vld [vmem:[%s6617_s26 + $0x1ca0] sm:$0xff]  ;;  %1089 = vst [vmem:[%s6622_s27 + $0xe40] sm:$0xff] %v1088_v8  ;;  %1091 = vst [vmem:[%s6622_s27 + $0xe48] sm:$0xff] %v1090_v9  ;;  %v1094_v11 = vld [vmem:[%s6617_s26 + $0x1ca8] sm:$0xff] }
  0xf5   : > { %1093 = vst [vmem:[%s6622_s27 + $0xe50] sm:$0xff] %v1092_v10  ;;  %v1096_v12 = vld [vmem:[%s6617_s26 + $0x1cc0] sm:$0xff]  ;;  %v1098_v13 = vld [vmem:[%s6617_s26 + $0x1cc8] sm:$0xff]  ;;  %1095 = vst [vmem:[%s6622_s27 + $0xe58] sm:$0xff] %v1094_v11 }
  0xf6   : > { %1097 = vst [vmem:[%s6622_s27 + $0xe60] sm:$0xff] %v1096_v12  ;;  %1099 = vst [vmem:[%s6622_s27 + $0xe68] sm:$0xff] %v1098_v13  ;;  %v1100_v14 = vld [vmem:[%s6617_s26 + $0x1ce0] sm:$0xff]  ;;  %v1102_v15 = vld [vmem:[%s6617_s26 + $0x1ce8] sm:$0xff] }
  0xf7   : > { %v1104_v16 = vld [vmem:[%s6617_s26 + $0x1d00] sm:$0xff]  ;;  %1101 = vst [vmem:[%s6622_s27 + $0xe70] sm:$0xff] %v1100_v14  ;;  %1103 = vst [vmem:[%s6622_s27 + $0xe78] sm:$0xff] %v1102_v15  ;;  %v1106_v17 = vld [vmem:[%s6617_s26 + $0x1d08] sm:$0xff] }
  0xf8   : > { %1105 = vst [vmem:[%s6622_s27 + $0xe80] sm:$0xff] %v1104_v16  ;;  %v1108_v18 = vld [vmem:[%s6617_s26 + $0x1d20] sm:$0xff]  ;;  %v1110_v19 = vld [vmem:[%s6617_s26 + $0x1d28] sm:$0xff]  ;;  %1107 = vst [vmem:[%s6622_s27 + $0xe88] sm:$0xff] %v1106_v17 }
  0xf9   : > { %1109 = vst [vmem:[%s6622_s27 + $0xe90] sm:$0xff] %v1108_v18  ;;  %1111 = vst [vmem:[%s6622_s27 + $0xe98] sm:$0xff] %v1110_v19  ;;  %v1112_v20 = vld [vmem:[%s6617_s26 + $0x1d40] sm:$0xff]  ;;  %v1114_v21 = vld [vmem:[%s6617_s26 + $0x1d48] sm:$0xff] }
  0xfa   : > { %v1116_v22 = vld [vmem:[%s6617_s26 + $0x1d60] sm:$0xff]  ;;  %1113 = vst [vmem:[%s6622_s27 + $0xea0] sm:$0xff] %v1112_v20  ;;  %1115 = vst [vmem:[%s6622_s27 + $0xea8] sm:$0xff] %v1114_v21  ;;  %v1118_v23 = vld [vmem:[%s6617_s26 + $0x1d68] sm:$0xff] }
  0xfb   : > { %1117 = vst [vmem:[%s6622_s27 + $0xeb0] sm:$0xff] %v1116_v22  ;;  %v1120_v24 = vld [vmem:[%s6617_s26 + $0x1d80] sm:$0xff]  ;;  %v1122_v25 = vld [vmem:[%s6617_s26 + $0x1d88] sm:$0xff]  ;;  %1119 = vst [vmem:[%s6622_s27 + $0xeb8] sm:$0xff] %v1118_v23 }
  0xfc   : > { %1121 = vst [vmem:[%s6622_s27 + $0xec0] sm:$0xff] %v1120_v24  ;;  %1123 = vst [vmem:[%s6622_s27 + $0xec8] sm:$0xff] %v1122_v25  ;;  %v1124_v26 = vld [vmem:[%s6617_s26 + $0x1da0] sm:$0xff]  ;;  %v1126_v27 = vld [vmem:[%s6617_s26 + $0x1da8] sm:$0xff] }
  0xfd   : > { %v1128_v28 = vld [vmem:[%s6617_s26 + $0x1dc0] sm:$0xff]  ;;  %1125 = vst [vmem:[%s6622_s27 + $0xed0] sm:$0xff] %v1124_v26  ;;  %1127 = vst [vmem:[%s6622_s27 + $0xed8] sm:$0xff] %v1126_v27  ;;  %v1130_v29 = vld [vmem:[%s6617_s26 + $0x1dc8] sm:$0xff] }
  0xfe   : > { %1129 = vst [vmem:[%s6622_s27 + $0xee0] sm:$0xff] %v1128_v28  ;;  %v1132_v30 = vld [vmem:[%s6617_s26 + $0x1de0] sm:$0xff]  ;;  %v1134_v31 = vld [vmem:[%s6617_s26 + $0x1de8] sm:$0xff]  ;;  %1131 = vst [vmem:[%s6622_s27 + $0xee8] sm:$0xff] %v1130_v29 }
  0xff   : > { %1133 = vst [vmem:[%s6622_s27 + $0xef0] sm:$0xff] %v1132_v30  ;;  %1135 = vst [vmem:[%s6622_s27 + $0xef8] sm:$0xff] %v1134_v31  ;;  %v1136_v32 = vld [vmem:[%s6617_s26 + $0x1e00] sm:$0xff]  ;;  %v1138_v33 = vld [vmem:[%s6617_s26 + $0x1e08] sm:$0xff] }
 0x100   : > { %v1140_v34 = vld [vmem:[%s6617_s26 + $0x1e20] sm:$0xff]  ;;  %1137 = vst [vmem:[%s6622_s27 + $0xf00] sm:$0xff] %v1136_v32  ;;  %1139 = vst [vmem:[%s6622_s27 + $0xf08] sm:$0xff] %v1138_v33  ;;  %v1142_v35 = vld [vmem:[%s6617_s26 + $0x1e28] sm:$0xff] }
 0x101   : > { %1141 = vst [vmem:[%s6622_s27 + $0xf10] sm:$0xff] %v1140_v34  ;;  %v1144_v36 = vld [vmem:[%s6617_s26 + $0x1e40] sm:$0xff]  ;;  %v1146_v37 = vld [vmem:[%s6617_s26 + $0x1e48] sm:$0xff]  ;;  %1143 = vst [vmem:[%s6622_s27 + $0xf18] sm:$0xff] %v1142_v35 }
 0x102   : > { %1145 = vst [vmem:[%s6622_s27 + $0xf20] sm:$0xff] %v1144_v36  ;;  %1147 = vst [vmem:[%s6622_s27 + $0xf28] sm:$0xff] %v1146_v37  ;;  %v1148_v38 = vld [vmem:[%s6617_s26 + $0x1e60] sm:$0xff]  ;;  %v1150_v39 = vld [vmem:[%s6617_s26 + $0x1e68] sm:$0xff] }
 0x103   : > { %v1152_v40 = vld [vmem:[%s6617_s26 + $0x1e80] sm:$0xff]  ;;  %1149 = vst [vmem:[%s6622_s27 + $0xf30] sm:$0xff] %v1148_v38  ;;  %1151 = vst [vmem:[%s6622_s27 + $0xf38] sm:$0xff] %v1150_v39  ;;  %v1154_v41 = vld [vmem:[%s6617_s26 + $0x1e88] sm:$0xff] }
 0x104   : > { %1153 = vst [vmem:[%s6622_s27 + $0xf40] sm:$0xff] %v1152_v40  ;;  %v1156_v42 = vld [vmem:[%s6617_s26 + $0x1ea0] sm:$0xff]  ;;  %v1158_v43 = vld [vmem:[%s6617_s26 + $0x1ea8] sm:$0xff]  ;;  %1155 = vst [vmem:[%s6622_s27 + $0xf48] sm:$0xff] %v1154_v41 }
 0x105   : > { %1157 = vst [vmem:[%s6622_s27 + $0xf50] sm:$0xff] %v1156_v42  ;;  %1159 = vst [vmem:[%s6622_s27 + $0xf58] sm:$0xff] %v1158_v43  ;;  %v1160_v44 = vld [vmem:[%s6617_s26 + $0x1ec0] sm:$0xff]  ;;  %v1162_v45 = vld [vmem:[%s6617_s26 + $0x1ec8] sm:$0xff] }
 0x106   : > { %v1164_v46 = vld [vmem:[%s6617_s26 + $0x1ee0] sm:$0xff]  ;;  %1161 = vst [vmem:[%s6622_s27 + $0xf60] sm:$0xff] %v1160_v44  ;;  %1163 = vst [vmem:[%s6622_s27 + $0xf68] sm:$0xff] %v1162_v45  ;;  %v1166_v47 = vld [vmem:[%s6617_s26 + $0x1ee8] sm:$0xff] }
 0x107   : > { %1165 = vst [vmem:[%s6622_s27 + $0xf70] sm:$0xff] %v1164_v46  ;;  %v1168_v48 = vld [vmem:[%s6617_s26 + $0x1f00] sm:$0xff]  ;;  %v1170_v49 = vld [vmem:[%s6617_s26 + $0x1f08] sm:$0xff]  ;;  %1167 = vst [vmem:[%s6622_s27 + $0xf78] sm:$0xff] %v1166_v47 }
 0x108   : > { %1169 = vst [vmem:[%s6622_s27 + $0xf80] sm:$0xff] %v1168_v48  ;;  %1171 = vst [vmem:[%s6622_s27 + $0xf88] sm:$0xff] %v1170_v49  ;;  %v1172_v50 = vld [vmem:[%s6617_s26 + $0x1f20] sm:$0xff]  ;;  %v1174_v51 = vld [vmem:[%s6617_s26 + $0x1f28] sm:$0xff] }
 0x109   : > { %v1176_v52 = vld [vmem:[%s6617_s26 + $0x1f40] sm:$0xff]  ;;  %1173 = vst [vmem:[%s6622_s27 + $0xf90] sm:$0xff] %v1172_v50  ;;  %1175 = vst [vmem:[%s6622_s27 + $0xf98] sm:$0xff] %v1174_v51  ;;  %v1178_v53 = vld [vmem:[%s6617_s26 + $0x1f48] sm:$0xff] }
 0x10a   : > { %1177 = vst [vmem:[%s6622_s27 + $0xfa0] sm:$0xff] %v1176_v52  ;;  %v1180_v54 = vld [vmem:[%s6617_s26 + $0x1f60] sm:$0xff]  ;;  %v1182_v55 = vld [vmem:[%s6617_s26 + $0x1f68] sm:$0xff]  ;;  %1179 = vst [vmem:[%s6622_s27 + $0xfa8] sm:$0xff] %v1178_v53 }
 0x10b   : > { %1181 = vst [vmem:[%s6622_s27 + $0xfb0] sm:$0xff] %v1180_v54  ;;  %1183 = vst [vmem:[%s6622_s27 + $0xfb8] sm:$0xff] %v1182_v55  ;;  %v1184_v56 = vld [vmem:[%s6617_s26 + $0x1f80] sm:$0xff]  ;;  %v1186_v57 = vld [vmem:[%s6617_s26 + $0x1f88] sm:$0xff] }
 0x10c   : > { %v1188_v58 = vld [vmem:[%s6617_s26 + $0x1fa0] sm:$0xff]  ;;  %1185 = vst [vmem:[%s6622_s27 + $0xfc0] sm:$0xff] %v1184_v56  ;;  %1187 = vst [vmem:[%s6622_s27 + $0xfc8] sm:$0xff] %v1186_v57  ;;  %v1190_v59 = vld [vmem:[%s6617_s26 + $0x1fa8] sm:$0xff] }
 0x10d   : > { %1189 = vst [vmem:[%s6622_s27 + $0xfd0] sm:$0xff] %v1188_v58  ;;  %v1192_v60 = vld [vmem:[%s6617_s26 + $0x1fc0] sm:$0xff]  ;;  %v1194_v61 = vld [vmem:[%s6617_s26 + $0x1fc8] sm:$0xff]  ;;  %1191 = vst [vmem:[%s6622_s27 + $0xfd8] sm:$0xff] %v1190_v59 }
 0x10e   : > { %1193 = vst [vmem:[%s6622_s27 + $0xfe0] sm:$0xff] %v1192_v60  ;;  %1195 = vst [vmem:[%s6622_s27 + $0xfe8] sm:$0xff] %v1194_v61  ;;  %v1196_v62 = vld [vmem:[%s6617_s26 + $0x1fe0] sm:$0xff]  ;;  %v1198_v63 = vld [vmem:[%s6617_s26 + $0x1fe8] sm:$0xff] }
 0x10f   : > { %1197 = vst [vmem:[%s6622_s27 + $0xff0] sm:$0xff] %v1196_v62  ;;  %1199 = vst [vmem:[%s6622_s27 + $0xff8] sm:$0xff] %v1198_v63 }
 0x110 PF: > { %p5185_p6 = scmp.ge.s32.totalorder %s6552_s16, 1  ;;  %p1212_p7 = scmp.lt.s32.totalorder %s6552_s16, 3 }
 0x112   : > { %p1213_p8 = pnand %p5185_p6, %p1212_p7 }
 0x113   : > { %s1219_s28 = sand.u32 (!%p1213_p8), 1, %s6536_s12   ;;  %s5187_s12 = sshll.u32 (!%p1213_p8), %s6544_s14, 2 }
 0x114   : > { %1216 = sbr.rel (%p1213_p8) target bundleno = 996 (0x3e4), region = 51  ;;  %s5186_s6 = sshll.u32 (!%p1213_p8), %s1219_s28, 12 }
 0x115   : > { %s7658_s7 = scalar_lea.vmem (!%p1213_p8), [#allocation2], %s5186_s6  ;;  %p1262_p9 = scmp.lt.s32.totalorder (!%p1213_p8), %s5187_s12, 7 }
 0x119   : > { %v1277_v0 = vld [vmem:[%s8340_s0 + $0x8] sm:$0xff]  ;;  %v1279_v1 = vld [vmem:[%s8340_s0 + $0x18] sm:$0xff]  ;;  %v5745_v4 = vld [vmem:[%s7658_s7 + $0xe4] ss:$16 sps:$4 sm:$0xff]   ;;  %s8351_s12 = smov (!%p1262_p9, %s5187_s12), 7 }
 0x11a   : > { %v7654_v2 = vpack.c.bf16 %v1277_v0, %v1277_v0  ;;  %v7656_v3 = vpack.c.bf16 %v1279_v1, %v1279_v1  ;;  %v5747_v5 = vld [vmem:[%s7658_s7 + $0x2e4] ss:$16 sps:$4 sm:$0xff]   ;;  %4402 = vmatprep.subr.bf16.mxu0 %v5745_v4  ;;  %v5749_v6 = vld [vmem:[%s7658_s7 + $0xe0] ss:$16 sps:$4 sm:$0xff]   ;;  %s7994_s19 = scalar_lea.vmem %s8342_s2, %s8351_s12  ;;  %s5189_s25 = sshll.u32 %s8351_s12, 3 }
 0x11b   : > { %v5750_v7 = vld [vmem:[%s7658_s7 + $0x2e0] ss:$16 sps:$4 sm:$0xff]   ;;  %4443 = vmatprep.subr.bf16.mxu1 %v5747_v5  ;;  %v5751_v8 = vld [vmem:[%s7658_s7 + $0xc4] ss:$16 sps:$4 sm:$0xff]   ;;  %4403 = vmatpush1.bf16.msra.mxu0 %v5749_v6  ;;  %s8260_s28 = scalar_lea.vmem %s8343_s3, %s5189_s25 }
 0x11c   : > { %4434 = vmatprep.mubr.bf16.mxu0 %v7654_v2  ;;  %4475 = vmatprep.mubr.bf16.mxu1 %v7656_v3  ;;  %v5753_v9 = vld [vmem:[%s7658_s7 + $0x2c4] ss:$16 sps:$4 sm:$0xff]   ;;  %v5755_v10 = vld [vmem:[%s7658_s7 + $0xc0] ss:$16 sps:$4 sm:$0xff]  }
 0x11d   : > { %4444 = vmatpush1.bf16.msra.mxu1 %v5750_v7  ;;  %4404 = vmatprep.subr.bf16.mxu0 %v5751_v8  ;;  %v5756_v11 = vld [vmem:[%s7658_s7 + $0x2c0] ss:$16 sps:$4 sm:$0xff]   ;;  %v5757_v12 = vld [vmem:[%s7658_s7 + $0xa4] ss:$16 sps:$4 sm:$0xff]  }
 0x11e   : > { %4445 = vmatprep.subr.bf16.mxu1 %v5753_v9  ;;  %v5759_v13 = vld [vmem:[%s7658_s7 + $0x2a4] ss:$16 sps:$4 sm:$0xff]   ;;  %v5761_v14 = vld [vmem:[%s7658_s7 + $0xa0] ss:$16 sps:$4 sm:$0xff]  }
 0x11f   : > { %v5762_v15 = vld [vmem:[%s7658_s7 + $0x2a0] ss:$16 sps:$4 sm:$0xff]   ;;  %4405 = vmatpush1.bf16.msra.mxu0 %v5755_v10  ;;  %v5763_v16 = vld [vmem:[%s7658_s7 + $0x84] ss:$16 sps:$4 sm:$0xff]   ;;  %v1281_v10 = vld [vmem:[%s8340_s0 + $0x28] sm:$0xff] }
 0x120   : > { %4406 = vmatprep.subr.bf16.mxu0 %v5757_v12  ;;  %v5765_v17 = vld [vmem:[%s7658_s7 + $0x284] ss:$16 sps:$4 sm:$0xff]   ;;  %v5767_v18 = vld [vmem:[%s7658_s7 + $0x80] ss:$16 sps:$4 sm:$0xff]  }
 0x121   : > { %4446 = vmatpush1.bf16.msra.mxu1 %v5756_v11  ;;  %v5768_v19 = vld [vmem:[%s7658_s7 + $0x280] ss:$16 sps:$4 sm:$0xff]   ;;  %v5769_v20 = vld [vmem:[%s7658_s7 + $0x64] ss:$16 sps:$4 sm:$0xff]   ;;  %v1283_v11 = vld [vmem:[%s8340_s0 + $0x38] sm:$0xff] }
 0x122   : > { %4447 = vmatprep.subr.bf16.mxu1 %v5759_v13  ;;  %v5771_v21 = vld [vmem:[%s7658_s7 + $0x264] ss:$16 sps:$4 sm:$0xff]   ;;  %v5773_v22 = vld [vmem:[%s7658_s7 + $0x60] ss:$16 sps:$4 sm:$0xff]  }
 0x123   : > { %4407 = vmatpush1.bf16.msra.mxu0 %v5761_v14  ;;  %v5774_v23 = vld [vmem:[%s7658_s7 + $0x260] ss:$16 sps:$4 sm:$0xff]   ;;  %v5775_v24 = vld [vmem:[%s7658_s7 + $0x44] ss:$16 sps:$4 sm:$0xff]  }
 0x124   : > { %4408 = vmatprep.subr.bf16.mxu0 %v5763_v16  ;;  %v5777_v25 = vld [vmem:[%s7658_s7 + $0x244] ss:$16 sps:$4 sm:$0xff]   ;;  %v5779_v26 = vld [vmem:[%s7658_s7 + $0x40] ss:$16 sps:$4 sm:$0xff]  }
 0x125   : > { %4448 = vmatpush1.bf16.msra.mxu1 %v5762_v15  ;;  %v5780_v27 = vld [vmem:[%s7658_s7 + $0x240] ss:$16 sps:$4 sm:$0xff]   ;;  %v5781_v28 = vld [vmem:[%s7658_s7 + $0x24] ss:$16 sps:$4 sm:$0xff]  }
 0x126   : > { %4449 = vmatprep.subr.bf16.mxu1 %v5765_v17  ;;  %v5783_v29 = vld [vmem:[%s7658_s7 + $0x224] ss:$16 sps:$4 sm:$0xff]   ;;  %v5785_v30 = vld [vmem:[%s7658_s7 + $0x20] ss:$16 sps:$4 sm:$0xff]  }
 0x127   : > { %4409 = vmatpush1.bf16.msra.mxu0 %v5767_v18  ;;  %v5786_v31 = vld [vmem:[%s7658_s7 + $0x220] ss:$16 sps:$4 sm:$0xff]   ;;  %v5787_v32 = vld [vmem:[%s7658_s7 + $0x4] ss:$16 sps:$4 sm:$0xff]   ;;  %v7748_v18 = vpack.c.bf16 %v1281_v10, %v1281_v10 }
 0x128   : > { %4410 = vmatprep.subr.bf16.mxu0 %v5769_v20  ;;  %v5789_v33 = vld [vmem:[%s7658_s7 + $0x204] ss:$16 sps:$4 sm:$0xff]   ;;  %v5791_v34 = vld [vmem:[%s7658_s7] ss:$16 sps:$4 sm:$0xff]  }
 0x129   : > { %4450 = vmatpush1.bf16.msra.mxu1 %v5768_v19  ;;  %v5792_v35 = vld [vmem:[%s7658_s7 + $0x200] ss:$16 sps:$4 sm:$0xff]   ;;  %v5793_v36 = vld [vmem:[%s7658_s7 + $0x1e4] ss:$16 sps:$4 sm:$0xff]   ;;  %v7750_v19 = vpack.c.bf16 %v1283_v11, %v1283_v11 }
 0x12a   : > { %4451 = vmatprep.subr.bf16.mxu1 %v5771_v21  ;;  %v5795_v37 = vld [vmem:[%s7658_s7 + $0x3e4] ss:$16 sps:$4 sm:$0xff]   ;;  %v5797_v38 = vld [vmem:[%s7658_s7 + $0x1e0] ss:$16 sps:$4 sm:$0xff]  }
 0x12b   : > { %4411 = vmatpush1.bf16.msra.mxu0 %v5773_v22  ;;  %v5798_v39 = vld [vmem:[%s7658_s7 + $0x3e0] ss:$16 sps:$4 sm:$0xff]   ;;  %v5799_v40 = vld [vmem:[%s7658_s7 + $0x1c4] ss:$16 sps:$4 sm:$0xff]  }
 0x12c   : > { %4412 = vmatprep.subr.bf16.mxu0 %v5775_v24  ;;  %v5801_v41 = vld [vmem:[%s7658_s7 + $0x3c4] ss:$16 sps:$4 sm:$0xff]   ;;  %v5803_v42 = vld [vmem:[%s7658_s7 + $0x1c0] ss:$16 sps:$4 sm:$0xff]  }
 0x12d   : > { %4452 = vmatpush1.bf16.msra.mxu1 %v5774_v23  ;;  %v5804_v43 = vld [vmem:[%s7658_s7 + $0x3c0] ss:$16 sps:$4 sm:$0xff]   ;;  %v5805_v44 = vld [vmem:[%s7658_s7 + $0x1a4] ss:$16 sps:$4 sm:$0xff]  }
 0x12e   : > { %4453 = vmatprep.subr.bf16.mxu1 %v5777_v25  ;;  %v5807_v45 = vld [vmem:[%s7658_s7 + $0x3a4] ss:$16 sps:$4 sm:$0xff]   ;;  %v5809_v46 = vld [vmem:[%s7658_s7 + $0x1a0] ss:$16 sps:$4 sm:$0xff]  }
 0x12f   : > { %4413 = vmatpush1.bf16.msra.mxu0 %v5779_v26  ;;  %v5810_v47 = vld [vmem:[%s7658_s7 + $0x3a0] ss:$16 sps:$4 sm:$0xff]   ;;  %v5811_v48 = vld [vmem:[%s7658_s7 + $0x184] ss:$16 sps:$4 sm:$0xff]  }
 0x130   : > { %4414 = vmatprep.subr.bf16.mxu0 %v5781_v28  ;;  %v5813_v49 = vld [vmem:[%s7658_s7 + $0x384] ss:$16 sps:$4 sm:$0xff]   ;;  %v5815_v50 = vld [vmem:[%s7658_s7 + $0x180] ss:$16 sps:$4 sm:$0xff]  }
 0x131   : > { %4454 = vmatpush1.bf16.msra.mxu1 %v5780_v27  ;;  %v5816_v51 = vld [vmem:[%s7658_s7 + $0x380] ss:$16 sps:$4 sm:$0xff]   ;;  %v5817_v52 = vld [vmem:[%s7658_s7 + $0x164] ss:$16 sps:$4 sm:$0xff]  }
 0x132   : > { %4455 = vmatprep.subr.bf16.mxu1 %v5783_v29  ;;  %v5819_v53 = vld [vmem:[%s7658_s7 + $0x364] ss:$16 sps:$4 sm:$0xff]   ;;  %v5821_v54 = vld [vmem:[%s7658_s7 + $0x160] ss:$16 sps:$4 sm:$0xff]  }
 0x133   : > { %4415 = vmatpush1.bf16.msra.mxu0 %v5785_v30  ;;  %v5822_v55 = vld [vmem:[%s7658_s7 + $0x360] ss:$16 sps:$4 sm:$0xff]   ;;  %v5823_v56 = vld [vmem:[%s7658_s7 + $0x144] ss:$16 sps:$4 sm:$0xff]  }
 0x134   : > { %4416 = vmatprep.subr.bf16.mxu0 %v5787_v32  ;;  %v5825_v57 = vld [vmem:[%s7658_s7 + $0x344] ss:$16 sps:$4 sm:$0xff]   ;;  %v5827_v58 = vld [vmem:[%s7658_s7 + $0x140] ss:$16 sps:$4 sm:$0xff]  }
 0x135   : > { %4456 = vmatpush1.bf16.msra.mxu1 %v5786_v31  ;;  %v5828_v59 = vld [vmem:[%s7658_s7 + $0x340] ss:$16 sps:$4 sm:$0xff]   ;;  %v5829_v60 = vld [vmem:[%s7658_s7 + $0x124] ss:$16 sps:$4 sm:$0xff]  }
 0x136   : > { %4457 = vmatprep.subr.bf16.mxu1 %v5789_v33  ;;  %v5831_v61 = vld [vmem:[%s7658_s7 + $0x324] ss:$16 sps:$4 sm:$0xff]   ;;  %v5833_v62 = vld [vmem:[%s7658_s7 + $0x120] ss:$16 sps:$4 sm:$0xff]  }
 0x137   : > { %4417 = vmatpush1.bf16.msra.mxu0 %v5791_v34  ;;  %v5834_v63 = vld [vmem:[%s7658_s7 + $0x320] ss:$16 sps:$4 sm:$0xff]   ;;  %v5835_v0 = vld [vmem:[%s7658_s7 + $0x104] ss:$16 sps:$4 sm:$0xff]  }
 0x138   : > { %4418 = vmatprep.subr.bf16.mxu0 %v5793_v36  ;;  %v5837_v1 = vld [vmem:[%s7658_s7 + $0x304] ss:$16 sps:$4 sm:$0xff]   ;;  %v5839_v6 = vld [vmem:[%s7658_s7 + $0x100] ss:$16 sps:$4 sm:$0xff]  }
 0x139   : > { %4458 = vmatpush1.bf16.msra.mxu1 %v5792_v35  ;;  %v1276_v4 = vld [vmem:[%s8340_s0] sm:$0xff]  ;;  %v1278_v5 = vld [vmem:[%s8340_s0 + $0x10] sm:$0xff] }
 0x13a   : > { %4459 = vmatprep.subr.bf16.mxu1 %v5795_v37  ;;  %v5840_v7 = vld [vmem:[%s7658_s7 + $0x300] ss:$16 sps:$4 sm:$0xff]   ;;  %v5843_v8 = vld [vmem:[%s7658_s7 + $0x4e4] ss:$16 sps:$4 sm:$0xff]   ;;  %v7740_v12 = vpack.c.bf16 %v1276_v4, %v1276_v4  ;;  %v7742_v13 = vpack.c.bf16 %v1278_v5, %v1278_v5 }
 0x13b   : > { %4419 = vmatpush2.bf16.msra.mxu0 %v5797_v38  ;;  %v5846_v9 = vld [vmem:[%s7658_s7 + $0x6e4] ss:$16 sps:$4 sm:$0xff]   ;;  %v5841_v14 = vld [vmem:[%s7658_s7 + $0x4e0] ss:$16 sps:$4 sm:$0xff]  }
 0x13c   : > { %4420 = vmatprep.subr.bf16.mxu0 %v5799_v40  ;;  %v5844_v15 = vld [vmem:[%s7658_s7 + $0x6e0] ss:$16 sps:$4 sm:$0xff]   ;;  %v5849_v16 = vld [vmem:[%s7658_s7 + $0x4c4] ss:$16 sps:$4 sm:$0xff]  }
 0x13d   : > { %4460 = vmatpush2.bf16.msra.mxu1 %v5798_v39  ;;  %v5852_v17 = vld [vmem:[%s7658_s7 + $0x6c4] ss:$16 sps:$4 sm:$0xff]   ;;  %v5847_v20 = vld [vmem:[%s7658_s7 + $0x4c0] ss:$16 sps:$4 sm:$0xff]  }
 0x13e   : > { %4461 = vmatprep.subr.bf16.mxu1 %v5801_v41  ;;  %v5850_v21 = vld [vmem:[%s7658_s7 + $0x6c0] ss:$16 sps:$4 sm:$0xff]   ;;  %v5855_v22 = vld [vmem:[%s7658_s7 + $0x4a4] ss:$16 sps:$4 sm:$0xff]  }
 0x13f   : > { %4421 = vmatpush2.bf16.msra.mxu0 %v5803_v42  ;;  %v5858_v23 = vld [vmem:[%s7658_s7 + $0x6a4] ss:$16 sps:$4 sm:$0xff]   ;;  %v5853_v24 = vld [vmem:[%s7658_s7 + $0x4a0] ss:$16 sps:$4 sm:$0xff]  }
 0x140   : > { %4422 = vmatprep.subr.bf16.mxu0 %v5805_v44  ;;  %v5856_v25 = vld [vmem:[%s7658_s7 + $0x6a0] ss:$16 sps:$4 sm:$0xff]   ;;  %v5861_v26 = vld [vmem:[%s7658_s7 + $0x484] ss:$16 sps:$4 sm:$0xff]  }
 0x141   : > { %4462 = vmatpush2.bf16.msra.mxu1 %v5804_v43  ;;  %v5864_v27 = vld [vmem:[%s7658_s7 + $0x684] ss:$16 sps:$4 sm:$0xff]   ;;  %v5859_v28 = vld [vmem:[%s7658_s7 + $0x480] ss:$16 sps:$4 sm:$0xff]  }
 0x142   : > { %4463 = vmatprep.subr.bf16.mxu1 %v5807_v45  ;;  %v5862_v29 = vld [vmem:[%s7658_s7 + $0x680] ss:$16 sps:$4 sm:$0xff]   ;;  %v5867_v30 = vld [vmem:[%s7658_s7 + $0x464] ss:$16 sps:$4 sm:$0xff]  }
 0x143   : > { %4423 = vmatpush2.bf16.msra.mxu0 %v5809_v46  ;;  %v5870_v31 = vld [vmem:[%s7658_s7 + $0x664] ss:$16 sps:$4 sm:$0xff]   ;;  %v5865_v32 = vld [vmem:[%s7658_s7 + $0x460] ss:$16 sps:$4 sm:$0xff]  }
 0x144   : > { %4424 = vmatprep.subr.bf16.mxu0 %v5811_v48  ;;  %v5868_v33 = vld [vmem:[%s7658_s7 + $0x660] ss:$16 sps:$4 sm:$0xff]   ;;  %v5873_v34 = vld [vmem:[%s7658_s7 + $0x444] ss:$16 sps:$4 sm:$0xff]  }
 0x145   : > { %4464 = vmatpush2.bf16.msra.mxu1 %v5810_v47  ;;  %v5876_v35 = vld [vmem:[%s7658_s7 + $0x644] ss:$16 sps:$4 sm:$0xff]   ;;  %v5871_v36 = vld [vmem:[%s7658_s7 + $0x440] ss:$16 sps:$4 sm:$0xff]  }
 0x146   : > { %4465 = vmatprep.subr.bf16.mxu1 %v5813_v49  ;;  %v5874_v37 = vld [vmem:[%s7658_s7 + $0x640] ss:$16 sps:$4 sm:$0xff]   ;;  %v5879_v38 = vld [vmem:[%s7658_s7 + $0x424] ss:$16 sps:$4 sm:$0xff]  }
 0x147   : > { %4425 = vmatpush2.bf16.msra.mxu0 %v5815_v50  ;;  %v5882_v39 = vld [vmem:[%s7658_s7 + $0x624] ss:$16 sps:$4 sm:$0xff]   ;;  %v5877_v40 = vld [vmem:[%s7658_s7 + $0x420] ss:$16 sps:$4 sm:$0xff]  }
 0x148   : > { %4426 = vmatprep.subr.bf16.mxu0 %v5817_v52  ;;  %v5880_v41 = vld [vmem:[%s7658_s7 + $0x620] ss:$16 sps:$4 sm:$0xff]   ;;  %v5885_v42 = vld [vmem:[%s7658_s7 + $0x404] ss:$16 sps:$4 sm:$0xff]  }
 0x149   : > { %4466 = vmatpush2.bf16.msra.mxu1 %v5816_v51  ;;  %v5888_v43 = vld [vmem:[%s7658_s7 + $0x604] ss:$16 sps:$4 sm:$0xff]   ;;  %v5883_v44 = vld [vmem:[%s7658_s7 + $0x400] ss:$16 sps:$4 sm:$0xff]  }
 0x14a   : > { %4467 = vmatprep.subr.bf16.mxu1 %v5819_v53  ;;  %v5886_v45 = vld [vmem:[%s7658_s7 + $0x600] ss:$16 sps:$4 sm:$0xff]   ;;  %v5891_v46 = vld [vmem:[%s7658_s7 + $0x5e4] ss:$16 sps:$4 sm:$0xff]  }
 0x14b   : > { %4427 = vmatpush2.bf16.msra.mxu0 %v5821_v54  ;;  %v5894_v47 = vld [vmem:[%s7658_s7 + $0x7e4] ss:$16 sps:$4 sm:$0xff]   ;;  %v5889_v48 = vld [vmem:[%s7658_s7 + $0x5e0] ss:$16 sps:$4 sm:$0xff]  }
 0x14c   : > { %4428 = vmatprep.subr.bf16.mxu0 %v5823_v56  ;;  %v5892_v49 = vld [vmem:[%s7658_s7 + $0x7e0] ss:$16 sps:$4 sm:$0xff]   ;;  %v5897_v50 = vld [vmem:[%s7658_s7 + $0x5c4] ss:$16 sps:$4 sm:$0xff]  }
 0x14d   : > { %4468 = vmatpush2.bf16.msra.mxu1 %v5822_v55  ;;  %v5900_v51 = vld [vmem:[%s7658_s7 + $0x7c4] ss:$16 sps:$4 sm:$0xff]   ;;  %v5895_v52 = vld [vmem:[%s7658_s7 + $0x5c0] ss:$16 sps:$4 sm:$0xff]  }
 0x14e   : > { %4469 = vmatprep.subr.bf16.mxu1 %v5825_v57  ;;  %v5898_v53 = vld [vmem:[%s7658_s7 + $0x7c0] ss:$16 sps:$4 sm:$0xff]   ;;  %v5903_v54 = vld [vmem:[%s7658_s7 + $0x5a4] ss:$16 sps:$4 sm:$0xff]  }
 0x14f   : > { %4429 = vmatpush2.bf16.msra.mxu0 %v5827_v58  ;;  %v5906_v55 = vld [vmem:[%s7658_s7 + $0x7a4] ss:$16 sps:$4 sm:$0xff]   ;;  %v5901_v56 = vld [vmem:[%s7658_s7 + $0x5a0] ss:$16 sps:$4 sm:$0xff]  }
 0x150   : > { %4430 = vmatprep.subr.bf16.mxu0 %v5829_v60  ;;  %v5904_v57 = vld [vmem:[%s7658_s7 + $0x7a0] ss:$16 sps:$4 sm:$0xff]   ;;  %v5909_v58 = vld [vmem:[%s7658_s7 + $0x584] ss:$16 sps:$4 sm:$0xff]  }
 0x151   : > { %4470 = vmatpush2.bf16.msra.mxu1 %v5828_v59  ;;  %v5912_v59 = vld [vmem:[%s7658_s7 + $0x784] ss:$16 sps:$4 sm:$0xff]   ;;  %v5907_v60 = vld [vmem:[%s7658_s7 + $0x580] ss:$16 sps:$4 sm:$0xff]  }
 0x152   : > { %4471 = vmatprep.subr.bf16.mxu1 %v5831_v61  ;;  %v5910_v61 = vld [vmem:[%s7658_s7 + $0x780] ss:$16 sps:$4 sm:$0xff]   ;;  %v5921_v4 = vld [vmem:[%s7658_s7 + $0x544] ss:$16 sps:$4 sm:$0xff]  }
 0x153   : > { %4431 = vmatpush2.bf16.msra.mxu0 %v5833_v62  ;;  %v5915_v62 = vld [vmem:[%s7658_s7 + $0x564] ss:$16 sps:$4 sm:$0xff]   ;;  %v5925_v10 = vld [vmem:[%s7658_s7 + $0x520] ss:$16 sps:$4 sm:$0xff]  }
 0x154   : > { %4432 = vmatprep.subr.bf16.mxu0 %v5835_v0  ;;  %v5913_v0 = vld [vmem:[%s7658_s7 + $0x560] ss:$16 sps:$4 sm:$0xff]   ;;  %v5924_v5 = vld [vmem:[%s7658_s7 + $0x744] ss:$16 sps:$4 sm:$0xff]  }
 0x155   : > { %4472 = vmatpush2.bf16.msra.mxu1 %v5834_v63  ;;  %v5918_v63 = vld [vmem:[%s7658_s7 + $0x764] ss:$16 sps:$4 sm:$0xff]   ;;  %v5928_v11 = vld [vmem:[%s7658_s7 + $0x720] ss:$16 sps:$4 sm:$0xff]  }
 0x156   : > { %4473 = vmatprep.subr.bf16.mxu1 %v5837_v1  ;;  %v5916_v1 = vld [vmem:[%s7658_s7 + $0x760] ss:$16 sps:$4 sm:$0xff]  }
 0x157   : > { %4433 = vmatpush2.bf16.msra.mxu0 %v5839_v6  ;;  %v5919_v6 = vld [vmem:[%s7658_s7 + $0x540] ss:$16 sps:$4 sm:$0xff]  }
 0x158   : > { %4484 = vmatprep.subr.bf16.mxu0 %v5843_v8  ;;  %v5927_v8 = vld [vmem:[%s7658_s7 + $0x524] ss:$16 sps:$4 sm:$0xff]  }
 0x159   : > { %4474 = vmatpush2.bf16.msra.mxu1 %v5840_v7  ;;  %v5922_v7 = vld [vmem:[%s7658_s7 + $0x740] ss:$16 sps:$4 sm:$0xff]  }
 0x15a   : > { %4525 = vmatprep.subr.bf16.mxu1 %v5846_v9  ;;  %4435 = vmatmul.mubr.bf16.vlgmr.msra.gmra.mxu0 %v7740_v12  ;;  %v5930_v9 = vld [vmem:[%s7658_s7 + $0x724] ss:$16 sps:$4 sm:$0xff]  }
 0x15b   : > { %4485 = vmatpush1.bf16.msra.mxu0 %v5841_v14  ;;  %4516 = vmatprep.mubr.bf16.mxu0 %v7748_v18  ;;  %v5933_v14 = vld [vmem:[%s7658_s7 + $0x504] ss:$16 sps:$4 sm:$0xff]  }
 0x15c   : > { %4476 = vmatmul.mubr.bf16.vlgmr.msra.gmra.mxu1 %v7742_v13  ;;  %4486 = vmatprep.subr.bf16.mxu0 %v5849_v16  ;;  %v5931_v16 = vld [vmem:[%s7658_s7 + $0x500] ss:$16 sps:$4 sm:$0xff]  }
 0x15d   : > { %4526 = vmatpush1.bf16.msra.mxu1 %v5844_v15  ;;  %4557 = vmatprep.mubr.bf16.mxu1 %v7750_v19  ;;  %v5936_v15 = vld [vmem:[%s7658_s7 + $0x704] ss:$16 sps:$4 sm:$0xff]  }
 0x15e   : > { %4527 = vmatprep.subr.bf16.mxu1 %v5852_v17  ;;  %v5934_v17 = vld [vmem:[%s7658_s7 + $0x700] ss:$16 sps:$4 sm:$0xff]  }
 0x15f   : > { %4487 = vmatpush1.bf16.msra.mxu0 %v5847_v20  ;;  %v1280_v20 = vld [vmem:[%s8340_s0 + $0x20] sm:$0xff] }
 0x160   : > { %4488 = vmatprep.subr.bf16.mxu0 %v5855_v22  ;;  %v5939_v22 = vld [vmem:[%s7658_s7 + $0x8e4] ss:$16 sps:$4 sm:$0xff]  }
 0x161   : > { %4528 = vmatpush1.bf16.msra.mxu1 %v5850_v21  ;;  %v1282_v21 = vld [vmem:[%s8340_s0 + $0x30] sm:$0xff] }
 0x162   : > { %4529 = vmatprep.subr.bf16.mxu1 %v5858_v23  ;;  %v5942_v23 = vld [vmem:[%s7658_s7 + $0xae4] ss:$16 sps:$4 sm:$0xff]  }
 0x163   : > { %4489 = vmatpush1.bf16.msra.mxu0 %v5853_v24  ;;  %v7822_v24 = vpack.c.bf16 %v1280_v20, %v1280_v20  ;;  %v6009_v20 = vld [vmem:[%s7658_s7 + $0x960] ss:$16 sps:$4 sm:$0xff]  }
 0x164   : > { %4490 = vmatprep.subr.bf16.mxu0 %v5861_v26  ;;  %v5937_v26 = vld [vmem:[%s7658_s7 + $0x8e0] ss:$16 sps:$4 sm:$0xff]  }
 0x165   : > { %4530 = vmatpush1.bf16.msra.mxu1 %v5856_v25  ;;  %v7824_v25 = vpack.c.bf16 %v1282_v21, %v1282_v21  ;;  %v6012_v21 = vld [vmem:[%s7658_s7 + $0xb60] ss:$16 sps:$4 sm:$0xff]  }
 0x166   : > { %4531 = vmatprep.subr.bf16.mxu1 %v5864_v27  ;;  %v5940_v27 = vld [vmem:[%s7658_s7 + $0xae0] ss:$16 sps:$4 sm:$0xff]  }
 0x167   : > { %4491 = vmatpush1.bf16.msra.mxu0 %v5859_v28  ;;  %v1285_v28 = vld [vmem:[%s8340_s0 + $0x48] sm:$0xff] }
 0x168   : > { %4492 = vmatprep.subr.bf16.mxu0 %v5867_v30  ;;  %v5948_v30 = vld [vmem:[%s7658_s7 + $0xac4] ss:$16 sps:$4 sm:$0xff]  }
 0x169   : > { %4532 = vmatpush1.bf16.msra.mxu1 %v5862_v29  ;;  %v5945_v29 = vld [vmem:[%s7658_s7 + $0x8c4] ss:$16 sps:$4 sm:$0xff]  }
 0x16a   : > { %4533 = vmatprep.subr.bf16.mxu1 %v5870_v31  ;;  %v1287_v31 = vld [vmem:[%s8340_s0 + $0x58] sm:$0xff] }
 0x16b   : > { %4493 = vmatpush1.bf16.msra.mxu0 %v5865_v32  ;;  %v7836_v32 = vpack.c.bf16 %v1285_v28, %v1285_v28  ;;  %v6023_v28 = vld [vmem:[%s7658_s7 + $0x924] ss:$16 sps:$4 sm:$0xff]  }
 0x16c   : > { %4494 = vmatprep.subr.bf16.mxu0 %v5873_v34  ;;  %v5943_v34 = vld [vmem:[%s7658_s7 + $0x8c0] ss:$16 sps:$4 sm:$0xff]  }
 0x16d   : > { %4534 = vmatpush1.bf16.msra.mxu1 %v5868_v33  ;;  %v7838_v33 = vpack.c.bf16 %v1287_v31, %v1287_v31  ;;  %v6024_v31 = vld [vmem:[%s7658_s7 + $0xb20] ss:$16 sps:$4 sm:$0xff]  }
 0x16e   : > { %4535 = vmatprep.subr.bf16.mxu1 %v5876_v35  ;;  %v5946_v35 = vld [vmem:[%s7658_s7 + $0xac0] ss:$16 sps:$4 sm:$0xff]  }
 0x16f   : > { %4495 = vmatpush1.bf16.msra.mxu0 %v5871_v36  ;;  %v5951_v36 = vld [vmem:[%s7658_s7 + $0x8a4] ss:$16 sps:$4 sm:$0xff]  }
 0x170   : > { %4496 = vmatprep.subr.bf16.mxu0 %v5879_v38  ;;  %v5949_v38 = vld [vmem:[%s7658_s7 + $0x8a0] ss:$16 sps:$4 sm:$0xff]  }
 0x171   : > { %4536 = vmatpush1.bf16.msra.mxu1 %v5874_v37  ;;  %v5954_v37 = vld [vmem:[%s7658_s7 + $0xaa4] ss:$16 sps:$4 sm:$0xff]  }
 0x172   : > { %4537 = vmatprep.subr.bf16.mxu1 %v5882_v39  ;;  %v5952_v39 = vld [vmem:[%s7658_s7 + $0xaa0] ss:$16 sps:$4 sm:$0xff]  }
 0x173   : > { %4497 = vmatpush1.bf16.msra.mxu0 %v5877_v40  ;;  %v5957_v40 = vld [vmem:[%s7658_s7 + $0x884] ss:$16 sps:$4 sm:$0xff]  }
 0x174   : > { %4498 = vmatprep.subr.bf16.mxu0 %v5885_v42  ;;  %v5955_v42 = vld [vmem:[%s7658_s7 + $0x880] ss:$16 sps:$4 sm:$0xff]  }
 0x175   : > { %4538 = vmatpush1.bf16.msra.mxu1 %v5880_v41  ;;  %v5960_v41 = vld [vmem:[%s7658_s7 + $0xa84] ss:$16 sps:$4 sm:$0xff]  }
 0x176   : > { %4539 = vmatprep.subr.bf16.mxu1 %v5888_v43  ;;  %v5958_v43 = vld [vmem:[%s7658_s7 + $0xa80] ss:$16 sps:$4 sm:$0xff]  }
 0x177   : > { %4499 = vmatpush1.bf16.msra.mxu0 %v5883_v44  ;;  %v5963_v44 = vld [vmem:[%s7658_s7 + $0x864] ss:$16 sps:$4 sm:$0xff]  }
 0x178   : > { %4500 = vmatprep.subr.bf16.mxu0 %v5891_v46  ;;  %v5961_v46 = vld [vmem:[%s7658_s7 + $0x860] ss:$16 sps:$4 sm:$0xff]  }
 0x179   : > { %4540 = vmatpush1.bf16.msra.mxu1 %v5886_v45  ;;  %v5966_v45 = vld [vmem:[%s7658_s7 + $0xa64] ss:$16 sps:$4 sm:$0xff]  }
 0x17a   : > { %4541 = vmatprep.subr.bf16.mxu1 %v5894_v47  ;;  %v5964_v47 = vld [vmem:[%s7658_s7 + $0xa60] ss:$16 sps:$4 sm:$0xff]  }
 0x17b   : > { %4501 = vmatpush2.bf16.msra.mxu0 %v5889_v48  ;;  %v5969_v48 = vld [vmem:[%s7658_s7 + $0x844] ss:$16 sps:$4 sm:$0xff]  }
 0x17c   : > { %4502 = vmatprep.subr.bf16.mxu0 %v5897_v50  ;;  %v5967_v50 = vld [vmem:[%s7658_s7 + $0x840] ss:$16 sps:$4 sm:$0xff]  }
 0x17d   : > { %4542 = vmatpush2.bf16.msra.mxu1 %v5892_v49  ;;  %v5972_v49 = vld [vmem:[%s7658_s7 + $0xa44] ss:$16 sps:$4 sm:$0xff]  }
 0x17e   : > { %4543 = vmatprep.subr.bf16.mxu1 %v5900_v51  ;;  %v5970_v51 = vld [vmem:[%s7658_s7 + $0xa40] ss:$16 sps:$4 sm:$0xff]  }
 0x17f   : > { %4503 = vmatpush2.bf16.msra.mxu0 %v5895_v52  ;;  %v5975_v52 = vld [vmem:[%s7658_s7 + $0x824] ss:$16 sps:$4 sm:$0xff]  }
 0x180   : > { %4504 = vmatprep.subr.bf16.mxu0 %v5903_v54  ;;  %v5973_v54 = vld [vmem:[%s7658_s7 + $0x820] ss:$16 sps:$4 sm:$0xff]  }
 0x181   : > { %4544 = vmatpush2.bf16.msra.mxu1 %v5898_v53  ;;  %v5978_v53 = vld [vmem:[%s7658_s7 + $0xa24] ss:$16 sps:$4 sm:$0xff]  }
 0x182   : > { %4545 = vmatprep.subr.bf16.mxu1 %v5906_v55  ;;  %v5976_v55 = vld [vmem:[%s7658_s7 + $0xa20] ss:$16 sps:$4 sm:$0xff]  }
 0x183   : > { %4505 = vmatpush2.bf16.msra.mxu0 %v5901_v56  ;;  %v5981_v56 = vld [vmem:[%s7658_s7 + $0x804] ss:$16 sps:$4 sm:$0xff]  }
 0x184   : > { %4506 = vmatprep.subr.bf16.mxu0 %v5909_v58  ;;  %v5979_v58 = vld [vmem:[%s7658_s7 + $0x800] ss:$16 sps:$4 sm:$0xff]  }
 0x185   : > { %4546 = vmatpush2.bf16.msra.mxu1 %v5904_v57  ;;  %v5984_v57 = vld [vmem:[%s7658_s7 + $0xa04] ss:$16 sps:$4 sm:$0xff]  }
 0x186   : > { %4547 = vmatprep.subr.bf16.mxu1 %v5912_v59  ;;  %v5982_v59 = vld [vmem:[%s7658_s7 + $0xa00] ss:$16 sps:$4 sm:$0xff]  }
 0x187   : > { %4507 = vmatpush2.bf16.msra.mxu0 %v5907_v60  ;;  %v5987_v60 = vld [vmem:[%s7658_s7 + $0x9e4] ss:$16 sps:$4 sm:$0xff]  }
 0x188   : > { %4508 = vmatprep.subr.bf16.mxu0 %v5915_v62  ;;  %v5985_v62 = vld [vmem:[%s7658_s7 + $0x9e0] ss:$16 sps:$4 sm:$0xff]  }
 0x189   : > { %4548 = vmatpush2.bf16.msra.mxu1 %v5910_v61  ;;  %v5990_v61 = vld [vmem:[%s7658_s7 + $0xbe4] ss:$16 sps:$4 sm:$0xff]  }
 0x18a   : > { %4549 = vmatprep.subr.bf16.mxu1 %v5918_v63  ;;  %v5988_v63 = vld [vmem:[%s7658_s7 + $0xbe0] ss:$16 sps:$4 sm:$0xff]  }
 0x18b   : > { %4509 = vmatpush2.bf16.msra.mxu0 %v5913_v0  ;;  %v5993_v0 = vld [vmem:[%s7658_s7 + $0x9c4] ss:$16 sps:$4 sm:$0xff]  }
 0x18c   : > { %4510 = vmatprep.subr.bf16.mxu0 %v5921_v4  ;;  %v5991_v4 = vld [vmem:[%s7658_s7 + $0x9c0] ss:$16 sps:$4 sm:$0xff]  }
 0x18d   : > { %4550 = vmatpush2.bf16.msra.mxu1 %v5916_v1  ;;  %v5996_v1 = vld [vmem:[%s7658_s7 + $0xbc4] ss:$16 sps:$4 sm:$0xff]  }
 0x18e   : > { %4551 = vmatprep.subr.bf16.mxu1 %v5924_v5  ;;  %v5994_v5 = vld [vmem:[%s7658_s7 + $0xbc0] ss:$16 sps:$4 sm:$0xff]  }
 0x18f   : > { %4511 = vmatpush2.bf16.msra.mxu0 %v5919_v6  ;;  %v5999_v6 = vld [vmem:[%s7658_s7 + $0x9a4] ss:$16 sps:$4 sm:$0xff]  }
 0x190   : > { %4512 = vmatprep.subr.bf16.mxu0 %v5927_v8  ;;  %v5997_v8 = vld [vmem:[%s7658_s7 + $0x9a0] ss:$16 sps:$4 sm:$0xff]  }
 0x191   : > { %4552 = vmatpush2.bf16.msra.mxu1 %v5922_v7  ;;  %v6002_v7 = vld [vmem:[%s7658_s7 + $0xba4] ss:$16 sps:$4 sm:$0xff]  }
 0x192   : > { %4553 = vmatprep.subr.bf16.mxu1 %v5930_v9  ;;  %v6000_v9 = vld [vmem:[%s7658_s7 + $0xba0] ss:$16 sps:$4 sm:$0xff]  }
 0x193   : > { %4513 = vmatpush2.bf16.msra.mxu0 %v5925_v10  ;;  %v6005_v10 = vld [vmem:[%s7658_s7 + $0x984] ss:$16 sps:$4 sm:$0xff]  }
 0x194   : > { %4514 = vmatprep.subr.bf16.mxu0 %v5933_v14  ;;  %v6003_v14 = vld [vmem:[%s7658_s7 + $0x980] ss:$16 sps:$4 sm:$0xff]  }
 0x195   : > { %4554 = vmatpush2.bf16.msra.mxu1 %v5928_v11  ;;  %v6008_v11 = vld [vmem:[%s7658_s7 + $0xb84] ss:$16 sps:$4 sm:$0xff]  }
 0x196   : > { %4555 = vmatprep.subr.bf16.mxu1 %v5936_v15  ;;  %v6006_v15 = vld [vmem:[%s7658_s7 + $0xb80] ss:$16 sps:$4 sm:$0xff]  }
 0x197   : > { %4515 = vmatpush2.bf16.msra.mxu0 %v5931_v16  ;;  %v6011_v16 = vld [vmem:[%s7658_s7 + $0x964] ss:$16 sps:$4 sm:$0xff]  }
 0x198   : > { %4566 = vmatprep.subr.bf16.mxu0 %v5939_v22  ;;  %v6017_v22 = vld [vmem:[%s7658_s7 + $0x944] ss:$16 sps:$4 sm:$0xff]  }
 0x199   : > { %4556 = vmatpush2.bf16.msra.mxu1 %v5934_v17  ;;  %v6014_v17 = vld [vmem:[%s7658_s7 + $0xb64] ss:$16 sps:$4 sm:$0xff]  }
 0x19a   : > { %4607 = vmatprep.subr.bf16.mxu1 %v5942_v23  ;;  %4517 = vmatmul.mubr.bf16.vlgmr.msra.gmra.mxu0 %v7822_v24  ;;  %v6020_v23 = vld [vmem:[%s7658_s7 + $0xb44] ss:$16 sps:$4 sm:$0xff]  }
 0x19b   : > { %4567 = vmatpush1.bf16.msra.mxu0 %v5937_v26  ;;  %4598 = vmatprep.mubr.bf16.mxu0 %v7836_v32  ;;  %v6015_v26 = vld [vmem:[%s7658_s7 + $0x940] ss:$16 sps:$4 sm:$0xff]  }
 0x19c   : > { %4558 = vmatmul.mubr.bf16.vlgmr.msra.gmra.mxu1 %v7824_v25  ;;  %4568 = vmatprep.subr.bf16.mxu0 %v5945_v29  ;;  %v6026_v29 = vld [vmem:[%s7658_s7 + $0xb24] ss:$16 sps:$4 sm:$0xff]  }
 0x19d   : > { %4608 = vmatpush1.bf16.msra.mxu1 %v5940_v27  ;;  %4639 = vmatprep.mubr.bf16.mxu1 %v7838_v33  ;;  %v6018_v27 = vld [vmem:[%s7658_s7 + $0xb40] ss:$16 sps:$4 sm:$0xff]  }
 0x19e   : > { %4609 = vmatprep.subr.bf16.mxu1 %v5948_v30  ;;  %v6021_v30 = vld [vmem:[%s7658_s7 + $0x920] ss:$16 sps:$4 sm:$0xff]  }
 0x19f   : > { %4569 = vmatpush1.bf16.msra.mxu0 %v5943_v34  ;;  %v6029_v34 = vld [vmem:[%s7658_s7 + $0x904] ss:$16 sps:$4 sm:$0xff]  }
 0x1a0   : > { %4570 = vmatprep.subr.bf16.mxu0 %v5951_v36  ;;  %v6027_v36 = vld [vmem:[%s7658_s7 + $0x900] ss:$16 sps:$4 sm:$0xff]  }
 0x1a1   : > { %4610 = vmatpush1.bf16.msra.mxu1 %v5946_v35  ;;  %v6032_v35 = vld [vmem:[%s7658_s7 + $0xb04] ss:$16 sps:$4 sm:$0xff]  }
 0x1a2   : > { %4611 = vmatprep.subr.bf16.mxu1 %v5954_v37  ;;  %v6030_v37 = vld [vmem:[%s7658_s7 + $0xb00] ss:$16 sps:$4 sm:$0xff]  }
 0x1a3   : > { %4571 = vmatpush1.bf16.msra.mxu0 %v5949_v38  ;;  %v1284_v38 = vld [vmem:[%s8340_s0 + $0x40] sm:$0xff] }
 0x1a4   : > { %4572 = vmatprep.subr.bf16.mxu0 %v5957_v40  ;;  %v6035_v40 = vld [vmem:[%s7658_s7 + $0xce4] ss:$16 sps:$4 sm:$0xff]  }
 0x1a5   : > { %4612 = vmatpush1.bf16.msra.mxu1 %v5952_v39  ;;  %v1286_v39 = vld [vmem:[%s8340_s0 + $0x50] sm:$0xff] }
 0x1a6   : > { %4613 = vmatprep.subr.bf16.mxu1 %v5960_v41  ;;  %v6038_v41 = vld [vmem:[%s7658_s7 + $0xee4] ss:$16 sps:$4 sm:$0xff]  }
 0x1a7   : > { %4573 = vmatpush1.bf16.msra.mxu0 %v5955_v42  ;;  %v6033_v42 = vld [vmem:[%s7658_s7 + $0xce0] ss:$16 sps:$4 sm:$0xff]  }
 0x1a8   : > { %4574 = vmatprep.subr.bf16.mxu0 %v5963_v44  ;;  %v7913_v44 = vpack.c.bf16 %v1286_v39, %v1286_v39  ;;  %v6102_v39 = vld [vmem:[%s7658_s7 + $0xf80] ss:$16 sps:$4 sm:$0xff]  }
 0x1a9   : > { %4614 = vmatpush1.bf16.msra.mxu1 %v5958_v43  ;;  %v7911_v43 = vpack.c.bf16 %v1284_v38, %v1284_v38  ;;  %v6099_v38 = vld [vmem:[%s7658_s7 + $0xd80] ss:$16 sps:$4 sm:$0xff]  }
 0x1aa   : > { %4615 = vmatprep.subr.bf16.mxu1 %v5966_v45  ;;  %v1289_v45 = vld [vmem:[%s8340_s0 + $0x68] sm:$0xff] }
 0x1ab   : > { %4575 = vmatpush1.bf16.msra.mxu0 %v5961_v46  ;;  %v1291_v46 = vld [vmem:[%s8340_s0 + $0x78] sm:$0xff] }
 0x1ac   : > { %4576 = vmatprep.subr.bf16.mxu0 %v5969_v48  ;;  %v6041_v48 = vld [vmem:[%s7658_s7 + $0xcc4] ss:$16 sps:$4 sm:$0xff]  }
 0x1ad   : > { %4616 = vmatpush1.bf16.msra.mxu1 %v5964_v47  ;;  %v6036_v47 = vld [vmem:[%s7658_s7 + $0xee0] ss:$16 sps:$4 sm:$0xff]  }
 0x1ae   : > { %4617 = vmatprep.subr.bf16.mxu1 %v5972_v49  ;;  %v6044_v49 = vld [vmem:[%s7658_s7 + $0xec4] ss:$16 sps:$4 sm:$0xff]  }
 0x1af   : > { %4577 = vmatpush1.bf16.msra.mxu0 %v5967_v50  ;;  %v7924_v50 = vpack.c.bf16 %v1289_v45, %v1289_v45  ;;  %v6108_v45 = vld [vmem:[%s7658_s7 + $0xf60] ss:$16 sps:$4 sm:$0xff]  }
 0x1b0   : > { %4578 = vmatprep.subr.bf16.mxu0 %v5975_v52  ;;  %v6039_v52 = vld [vmem:[%s7658_s7 + $0xcc0] ss:$16 sps:$4 sm:$0xff]  }
 0x1b1   : > { %4618 = vmatpush1.bf16.msra.mxu1 %v5970_v51  ;;  %v7926_v51 = vpack.c.bf16 %v1291_v46, %v1291_v46  ;;  %v6113_v46 = vld [vmem:[%s7658_s7 + $0xd44] ss:$16 sps:$4 sm:$0xff]  }
 0x1b2   : > { %4619 = vmatprep.subr.bf16.mxu1 %v5978_v53  ;;  %v6042_v53 = vld [vmem:[%s7658_s7 + $0xec0] ss:$16 sps:$4 sm:$0xff]  }
 0x1b3   : > { %4579 = vmatpush1.bf16.msra.mxu0 %v5973_v54  ;;  %v6047_v54 = vld [vmem:[%s7658_s7 + $0xca4] ss:$16 sps:$4 sm:$0xff]  }
 0x1b4   : > { %4580 = vmatprep.subr.bf16.mxu0 %v5981_v56  ;;  %v6045_v56 = vld [vmem:[%s7658_s7 + $0xca0] ss:$16 sps:$4 sm:$0xff]  }
 0x1b5   : > { %4620 = vmatpush1.bf16.msra.mxu1 %v5976_v55  ;;  %v6050_v55 = vld [vmem:[%s7658_s7 + $0xea4] ss:$16 sps:$4 sm:$0xff]  }
 0x1b6   : > { %4621 = vmatprep.subr.bf16.mxu1 %v5984_v57  ;;  %v6048_v57 = vld [vmem:[%s7658_s7 + $0xea0] ss:$16 sps:$4 sm:$0xff]  }
 0x1b7   : > { %4581 = vmatpush1.bf16.msra.mxu0 %v5979_v58  ;;  %v6053_v58 = vld [vmem:[%s7658_s7 + $0xc84] ss:$16 sps:$4 sm:$0xff]  }
 0x1b8   : > { %4582 = vmatprep.subr.bf16.mxu0 %v5987_v60  ;;  %v6051_v60 = vld [vmem:[%s7658_s7 + $0xc80] ss:$16 sps:$4 sm:$0xff]  }
 0x1b9   : > { %4622 = vmatpush1.bf16.msra.mxu1 %v5982_v59  ;;  %v6056_v59 = vld [vmem:[%s7658_s7 + $0xe84] ss:$16 sps:$4 sm:$0xff]  }
 0x1ba   : > { %4623 = vmatprep.subr.bf16.mxu1 %v5990_v61  ;;  %v6054_v61 = vld [vmem:[%s7658_s7 + $0xe80] ss:$16 sps:$4 sm:$0xff]  }
 0x1bb   : > { %4583 = vmatpush2.bf16.msra.mxu0 %v5985_v62  ;;  %v6059_v62 = vld [vmem:[%s7658_s7 + $0xc64] ss:$16 sps:$4 sm:$0xff]  }
 0x1bc   : > { %4584 = vmatprep.subr.bf16.mxu0 %v5993_v0  ;;  %v6057_v0 = vld [vmem:[%s7658_s7 + $0xc60] ss:$16 sps:$4 sm:$0xff]  }
 0x1bd   : > { %4624 = vmatpush2.bf16.msra.mxu1 %v5988_v63  ;;  %v6062_v63 = vld [vmem:[%s7658_s7 + $0xe64] ss:$16 sps:$4 sm:$0xff]  }
 0x1be   : > { %4625 = vmatprep.subr.bf16.mxu1 %v5996_v1  ;;  %v6060_v1 = vld [vmem:[%s7658_s7 + $0xe60] ss:$16 sps:$4 sm:$0xff]  }
 0x1bf   : > { %4585 = vmatpush2.bf16.msra.mxu0 %v5991_v4  ;;  %v6065_v4 = vld [vmem:[%s7658_s7 + $0xc44] ss:$16 sps:$4 sm:$0xff]  }
 0x1c0   : > { %4586 = vmatprep.subr.bf16.mxu0 %v5999_v6  ;;  %v6063_v6 = vld [vmem:[%s7658_s7 + $0xc40] ss:$16 sps:$4 sm:$0xff]  }
 0x1c1   : > { %4626 = vmatpush2.bf16.msra.mxu1 %v5994_v5  ;;  %v6068_v5 = vld [vmem:[%s7658_s7 + $0xe44] ss:$16 sps:$4 sm:$0xff]  }
 0x1c2   : > { %4627 = vmatprep.subr.bf16.mxu1 %v6002_v7  ;;  %v6066_v7 = vld [vmem:[%s7658_s7 + $0xe40] ss:$16 sps:$4 sm:$0xff]  }
 0x1c3   : > { %4587 = vmatpush2.bf16.msra.mxu0 %v5997_v8  ;;  %v6071_v8 = vld [vmem:[%s7658_s7 + $0xc24] ss:$16 sps:$4 sm:$0xff]  }
 0x1c4   : > { %4588 = vmatprep.subr.bf16.mxu0 %v6005_v10  ;;  %v6069_v10 = vld [vmem:[%s7658_s7 + $0xc20] ss:$16 sps:$4 sm:$0xff]  }
 0x1c5   : > { %4628 = vmatpush2.bf16.msra.mxu1 %v6000_v9  ;;  %v6074_v9 = vld [vmem:[%s7658_s7 + $0xe24] ss:$16 sps:$4 sm:$0xff]  }
 0x1c6   : > { %4629 = vmatprep.subr.bf16.mxu1 %v6008_v11  ;;  %v6072_v11 = vld [vmem:[%s7658_s7 + $0xe20] ss:$16 sps:$4 sm:$0xff]  }
 0x1c7   : > { %4589 = vmatpush2.bf16.msra.mxu0 %v6003_v14  ;;  %v6077_v14 = vld [vmem:[%s7658_s7 + $0xc04] ss:$16 sps:$4 sm:$0xff]  }
 0x1c8   : > { %4590 = vmatprep.subr.bf16.mxu0 %v6011_v16  ;;  %v6075_v16 = vld [vmem:[%s7658_s7 + $0xc00] ss:$16 sps:$4 sm:$0xff]  }
 0x1c9   : > { %4630 = vmatpush2.bf16.msra.mxu1 %v6006_v15  ;;  %v6080_v15 = vld [vmem:[%s7658_s7 + $0xe04] ss:$16 sps:$4 sm:$0xff]  }
 0x1ca   : > { %4631 = vmatprep.subr.bf16.mxu1 %v6014_v17  ;;  %v6078_v17 = vld [vmem:[%s7658_s7 + $0xe00] ss:$16 sps:$4 sm:$0xff]  }
 0x1cb   : > { %4591 = vmatpush2.bf16.msra.mxu0 %v6009_v20  ;;  %v6083_v20 = vld [vmem:[%s7658_s7 + $0xde4] ss:$16 sps:$4 sm:$0xff]  }
 0x1cc   : > { %4592 = vmatprep.subr.bf16.mxu0 %v6017_v22  ;;  %v6081_v22 = vld [vmem:[%s7658_s7 + $0xde0] ss:$16 sps:$4 sm:$0xff]  }
 0x1cd   : > { %4632 = vmatpush2.bf16.msra.mxu1 %v6012_v21  ;;  %v6086_v21 = vld [vmem:[%s7658_s7 + $0xfe4] ss:$16 sps:$4 sm:$0xff]  }
 0x1ce   : > { %4633 = vmatprep.subr.bf16.mxu1 %v6020_v23  ;;  %v6084_v23 = vld [vmem:[%s7658_s7 + $0xfe0] ss:$16 sps:$4 sm:$0xff]  }
 0x1cf   : > { %4593 = vmatpush2.bf16.msra.mxu0 %v6015_v26  ;;  %v6089_v26 = vld [vmem:[%s7658_s7 + $0xdc4] ss:$16 sps:$4 sm:$0xff]  }
 0x1d0   : > { %4594 = vmatprep.subr.bf16.mxu0 %v6023_v28  ;;  %v6087_v28 = vld [vmem:[%s7658_s7 + $0xdc0] ss:$16 sps:$4 sm:$0xff]  }
 0x1d1   : > { %4634 = vmatpush2.bf16.msra.mxu1 %v6018_v27  ;;  %v6092_v27 = vld [vmem:[%s7658_s7 + $0xfc4] ss:$16 sps:$4 sm:$0xff]  }
 0x1d2   : > { %4635 = vmatprep.subr.bf16.mxu1 %v6026_v29  ;;  %v6090_v29 = vld [vmem:[%s7658_s7 + $0xfc0] ss:$16 sps:$4 sm:$0xff]  }
 0x1d3   : > { %4595 = vmatpush2.bf16.msra.mxu0 %v6021_v30  ;;  %v6095_v30 = vld [vmem:[%s7658_s7 + $0xda4] ss:$16 sps:$4 sm:$0xff]  }
 0x1d4   : > { %4596 = vmatprep.subr.bf16.mxu0 %v6029_v34  ;;  %v6093_v34 = vld [vmem:[%s7658_s7 + $0xda0] ss:$16 sps:$4 sm:$0xff]  }
 0x1d5   : > { %4636 = vmatpush2.bf16.msra.mxu1 %v6024_v31  ;;  %v6098_v31 = vld [vmem:[%s7658_s7 + $0xfa4] ss:$16 sps:$4 sm:$0xff]  }
 0x1d6   : > { %4637 = vmatprep.subr.bf16.mxu1 %v6032_v35  ;;  %v6096_v35 = vld [vmem:[%s7658_s7 + $0xfa0] ss:$16 sps:$4 sm:$0xff]  }
 0x1d7   : > { %4597 = vmatpush2.bf16.msra.mxu0 %v6027_v36  ;;  %v6101_v36 = vld [vmem:[%s7658_s7 + $0xd84] ss:$16 sps:$4 sm:$0xff]  }
 0x1d8   : > { %4648 = vmatprep.subr.bf16.mxu0 %v6035_v40  ;;  %v6107_v40 = vld [vmem:[%s7658_s7 + $0xd64] ss:$16 sps:$4 sm:$0xff]  }
 0x1d9   : > { %4638 = vmatpush2.bf16.msra.mxu1 %v6030_v37  ;;  %v6104_v37 = vld [vmem:[%s7658_s7 + $0xf84] ss:$16 sps:$4 sm:$0xff]  }
 0x1da   : > { %4689 = vmatprep.subr.bf16.mxu1 %v6038_v41  ;;  %4599 = vmatmul.mubr.bf16.vlgmr.msra.gmra.mxu0 %v7911_v43  ;;  %v6110_v41 = vld [vmem:[%s7658_s7 + $0xf64] ss:$16 sps:$4 sm:$0xff]  }
 0x1db   : > { %4649 = vmatpush1.bf16.msra.mxu0 %v6033_v42  ;;  %4680 = vmatprep.mubr.bf16.mxu0 %v7924_v50  ;;  %v6105_v42 = vld [vmem:[%s7658_s7 + $0xd60] ss:$16 sps:$4 sm:$0xff]  }
 0x1dc   : > { %4640 = vmatmul.mubr.bf16.vlgmr.msra.gmra.mxu1 %v7913_v44  ;;  %4650 = vmatprep.subr.bf16.mxu0 %v6041_v48  ;;  %v6111_v48 = vld [vmem:[%s7658_s7 + $0xd40] ss:$16 sps:$4 sm:$0xff]  }
 0x1dd   : > { %4690 = vmatpush1.bf16.msra.mxu1 %v6036_v47  ;;  %4721 = vmatprep.mubr.bf16.mxu1 %v7926_v51  ;;  %v6116_v47 = vld [vmem:[%s7658_s7 + $0xf44] ss:$16 sps:$4 sm:$0xff]  }
 0x1de   : > { %4691 = vmatprep.subr.bf16.mxu1 %v6044_v49  ;;  %v6114_v49 = vld [vmem:[%s7658_s7 + $0xf40] ss:$16 sps:$4 sm:$0xff]  }
 0x1df   : > { %4651 = vmatpush1.bf16.msra.mxu0 %v6039_v52  ;;  %v6119_v52 = vld [vmem:[%s7658_s7 + $0xd24] ss:$16 sps:$4 sm:$0xff]  }
 0x1e0   : > { %4652 = vmatprep.subr.bf16.mxu0 %v6047_v54  ;;  %v6122_v54 = vld [vmem:[%s7658_s7 + $0xf24] ss:$16 sps:$4 sm:$0xff]  }
 0x1e1   : > { %4692 = vmatpush1.bf16.msra.mxu1 %v6042_v53  ;;  %v1822_v53 = vlaneseq }
 0x1e2   : > { %4693 = vmatprep.subr.bf16.mxu1 %v6050_v55  ;;  %v6117_v55 = vld [vmem:[%s7658_s7 + $0xd20] ss:$16 sps:$4 sm:$0xff]  }
 0x1e3   : > { %4653 = vmatpush1.bf16.msra.mxu0 %v6045_v56  ;;  %v6120_v56 = vld [vmem:[%s7658_s7 + $0xf20] ss:$16 sps:$4 sm:$0xff]  }
 0x1e4   : > { %4654 = vmatprep.subr.bf16.mxu0 %v6053_v58  ;;  %v7996_v58 = vshrl.u32 %v1822_v53, 7  ;;  %v6159_v53 = vld [vmem:[%s7658_s7 + $0x48] ss:$16 sps:$4 sm:$0xff]  }
 0x1e5   : > { %4694 = vmatpush1.bf16.msra.mxu1 %v6048_v57  ;;  %v6125_v57 = vld [vmem:[%s7658_s7 + $0xd04] ss:$16 sps:$4 sm:$0xff]  }
 0x1e6   : > { %4695 = vmatprep.subr.bf16.mxu1 %v6056_v59  ;;  %v6128_v59 = vld [vmem:[%s7658_s7 + $0xf04] ss:$16 sps:$4 sm:$0xff]  }
 0x1e7   : > { %4655 = vmatpush1.bf16.msra.mxu0 %v6051_v60  ;;  %v6123_v60 = vld [vmem:[%s7658_s7 + $0xd00] ss:$16 sps:$4 sm:$0xff]  }
 0x1e8   : > { %4656 = vmatprep.subr.bf16.mxu0 %v6059_v62  ;;  %v1820_v62 = vld [vmem:[%s7994_s19] sm:$0xf] }
 0x1e9   : > { %4696 = vmatpush1.bf16.msra.mxu1 %v6054_v61  ;;  %v6126_v61 = vld [vmem:[%s7658_s7 + $0xf00] ss:$16 sps:$4 sm:$0xff]  }
 0x1ea   : > { %4697 = vmatprep.subr.bf16.mxu1 %v6062_v63  ;;  %v1288_v63 = vld [vmem:[%s8340_s0 + $0x60] sm:$0xff] }
 0x1eb   : > { %4657 = vmatpush1.bf16.msra.mxu0 %v6057_v0  ;;  %v1824_v0 = vsub.s32 0, %v7996_v58 }
 0x1ec   : > { %4658 = vmatprep.subr.bf16.mxu0 %v6065_v4  ;;  %v6131_v4 = vld [vmem:[%s7658_s7 + $0xec] ss:$16 sps:$4 sm:$0xff]  }
 0x1ed   : > { %4698 = vmatpush1.bf16.msra.mxu1 %v6060_v1  ;;  %v1290_v1 = vld [vmem:[%s8340_s0 + $0x70] sm:$0xff] }
 0x1ee   : > { %4699 = vmatprep.subr.bf16.mxu1 %v6068_v5  ;;  %v6134_v5 = vld [vmem:[%s7658_s7 + $0x2ec] ss:$16 sps:$4 sm:$0xff]  }
 0x1ef   : > { %4659 = vmatpush1.bf16.msra.mxu0 %v6063_v6  ;;  %v1828_v6 = vsub.s32 1, %v7996_v58 }
 0x1f0   : > { %4660 = vmatprep.subr.bf16.mxu0 %v6071_v8  ;;  %v8014_v8 = vpack.c.bf16 %v1290_v1, %v1290_v1  ;;  %v6182_v1 = vld [vmem:[%s7658_s7 + $0x3ec] ss:$16 sps:$4 sm:$0xff]  }
 0x1f1   : > { %4700 = vmatpush1.bf16.msra.mxu1 %v6066_v7  ;;  %v8012_v7 = vpack.c.bf16 %v1288_v63, %v1288_v63  ;;  %v6174_v63 = vld [vmem:[%s7658_s7 + $0x208] ss:$16 sps:$4 sm:$0xff]  }
 0x1f2   : > { %4701 = vmatprep.subr.bf16.mxu1 %v6074_v9  ;;  %v6129_v9 = vld [vmem:[%s7658_s7 + $0xe8] ss:$16 sps:$4 sm:$0xff]  }
 0x1f3   : > { %4661 = vmatpush1.bf16.msra.mxu0 %v6069_v10  ;;  %v1825_v10 = vrot.slane %v1820_v62, %v1824_v0  ;;  %v6179_v0 = vld [vmem:[%s7658_s7 + $0x1ec] ss:$16 sps:$4 sm:$0xff]  }
 0x1f4   : > { %4662 = vmatprep.subr.bf16.mxu0 %v6077_v14  ;;  %v6137_v14 = vld [vmem:[%s7658_s7 + $0xcc] ss:$16 sps:$4 sm:$0xff]  }
 0x1f5   : > { %4702 = vmatpush1.bf16.msra.mxu1 %v6072_v11  ;;  %v6132_v11 = vld [vmem:[%s7658_s7 + $0x2e8] ss:$16 sps:$4 sm:$0xff]  }
 0x1f6   : > { %4703 = vmatprep.subr.bf16.mxu1 %v6080_v15  ;;  %v6140_v15 = vld [vmem:[%s7658_s7 + $0x2cc] ss:$16 sps:$4 sm:$0xff]  }
 0x1f7   : > { %4663 = vmatpush1.bf16.msra.mxu0 %v6075_v16  ;;  %v1829_v16 = vrot.slane %v1820_v62, %v1828_v6  ;;  %v6171_v62 = vld [vmem:[%s7658_s7 + $0x8] ss:$16 sps:$4 sm:$0xff]   ;;  %v6185_v6 = vld [vmem:[%s7658_s7 + $0x1cc] ss:$16 sps:$4 sm:$0xff]  }
 0x1f8   : > { %4664 = vmatprep.subr.bf16.mxu0 %v6083_v20 }
 0x1f9   : > { %4704 = vmatpush1.bf16.msra.mxu1 %v6078_v17 }
 0x1fa   : > { %4705 = vmatprep.subr.bf16.mxu1 %v6086_v21  ;;  %v6135_v21 = vld [vmem:[%s7658_s7 + $0xc8] ss:$16 sps:$4 sm:$0xff]  }
 0x1fb   : > { %4665 = vmatpush2.bf16.msra.mxu0 %v6081_v22 }
 0x1fc   : > { %4666 = vmatprep.subr.bf16.mxu0 %v6089_v26  ;;  %v6143_v26 = vld [vmem:[%s7658_s7 + $0xac] ss:$16 sps:$4 sm:$0xff]  }
 0x1fd   : > { %4706 = vmatpush2.bf16.msra.mxu1 %v6084_v23  ;;  %v6138_v23 = vld [vmem:[%s7658_s7 + $0x2c8] ss:$16 sps:$4 sm:$0xff]  }
 0x1fe   : > { %4707 = vmatprep.subr.bf16.mxu1 %v6092_v27 }
 0x1ff   : > { %4667 = vmatpush2.bf16.msra.mxu0 %v6087_v28 }
 0x200   : > { %4668 = vmatprep.subr.bf16.mxu0 %v6095_v30 }
 0x201   : > { %4708 = vmatpush2.bf16.msra.mxu1 %v6090_v29  ;;  %v6146_v29 = vld [vmem:[%s7658_s7 + $0x2ac] ss:$16 sps:$4 sm:$0xff]  }
 0x202   : > { %4709 = vmatprep.subr.bf16.mxu1 %v6098_v31 }
 0x203   : > { %4669 = vmatpush2.bf16.msra.mxu0 %v6093_v34 }
 0x204   : > { %4670 = vmatprep.subr.bf16.mxu0 %v6101_v36  ;;  %v6141_v36 = vld [vmem:[%s7658_s7 + $0xa8] ss:$16 sps:$4 sm:$0xff]  }
 0x205   : > { %4710 = vmatpush2.bf16.msra.mxu1 %v6096_v35 }
 0x206   : > { %4711 = vmatprep.subr.bf16.mxu1 %v6104_v37 }
 0x207   : > { %4671 = vmatpush2.bf16.msra.mxu0 %v6099_v38  ;;  %v6144_v38 = vld [vmem:[%s7658_s7 + $0x2a8] ss:$16 sps:$4 sm:$0xff]  }
 0x208   : > { %4672 = vmatprep.subr.bf16.mxu0 %v6107_v40 }
 0x209   : > { %4712 = vmatpush2.bf16.msra.mxu1 %v6102_v39  ;;  %v6149_v39 = vld [vmem:[%s7658_s7 + $0x8c] ss:$16 sps:$4 sm:$0xff]  }
 0x20a   : > { %4713 = vmatprep.subr.bf16.mxu1 %v6110_v41 }
 0x20b   : > { %4673 = vmatpush2.bf16.msra.mxu0 %v6105_v42  ;;  %v6150_v42 = vld [vmem:[%s7658_s7 + $0x288] ss:$16 sps:$4 sm:$0xff]  }
 0x20c   : > { %4674 = vmatprep.subr.bf16.mxu0 %v6113_v46  ;;  %v6158_v46 = vld [vmem:[%s7658_s7 + $0x26c] ss:$16 sps:$4 sm:$0xff]  }
 0x20d   : > { %4714 = vmatpush2.bf16.msra.mxu1 %v6108_v45  ;;  %v6155_v45 = vld [vmem:[%s7658_s7 + $0x6c] ss:$16 sps:$4 sm:$0xff]  }
 0x20e   : > { %4715 = vmatprep.subr.bf16.mxu1 %v6116_v47  ;;  %v6153_v47 = vld [vmem:[%s7658_s7 + $0x68] ss:$16 sps:$4 sm:$0xff]  }
 0x20f   : > { %4675 = vmatpush2.bf16.msra.mxu0 %v6111_v48  ;;  %v6156_v48 = vld [vmem:[%s7658_s7 + $0x268] ss:$16 sps:$4 sm:$0xff]  }
 0x210   : > { %4676 = vmatprep.subr.bf16.mxu0 %v6119_v52  ;;  %v6164_v52 = vld [vmem:[%s7658_s7 + $0x24c] ss:$16 sps:$4 sm:$0xff]  }
 0x211   : > { %4716 = vmatpush2.bf16.msra.mxu1 %v6114_v49  ;;  %v6161_v49 = vld [vmem:[%s7658_s7 + $0x4c] ss:$16 sps:$4 sm:$0xff]  }
 0x212   : > { %4717 = vmatprep.subr.bf16.mxu1 %v6122_v54  ;;  %v6162_v54 = vld [vmem:[%s7658_s7 + $0x248] ss:$16 sps:$4 sm:$0xff]  }
 0x213   : > { %4677 = vmatpush2.bf16.msra.mxu0 %v6117_v55  ;;  %v6167_v55 = vld [vmem:[%s7658_s7 + $0x2c] ss:$16 sps:$4 sm:$0xff]  }
 0x214   : > { %4678 = vmatprep.subr.bf16.mxu0 %v6125_v57  ;;  %v6165_v57 = vld [vmem:[%s7658_s7 + $0x28] ss:$16 sps:$4 sm:$0xff]  }
 0x215   : > { %4718 = vmatpush2.bf16.msra.mxu1 %v6120_v56  ;;  %v6170_v56 = vld [vmem:[%s7658_s7 + $0x22c] ss:$16 sps:$4 sm:$0xff]  }
 0x216   : > { %4719 = vmatprep.subr.bf16.mxu1 %v6128_v59  ;;  %v6168_v59 = vld [vmem:[%s7658_s7 + $0x228] ss:$16 sps:$4 sm:$0xff]  }
 0x217   : > { %4679 = vmatpush2.bf16.msra.mxu0 %v6123_v60  ;;  %v6173_v60 = vld [vmem:[%s7658_s7 + $0xc] ss:$16 sps:$4 sm:$0xff]  }
 0x218   : > { %4730 = vmatprep.subr.bf16.mxu0 %v6131_v4  ;;  %v6177_v4 = vld [vmem:[%s7658_s7 + $0x1e8] ss:$16 sps:$4 sm:$0xff]  }
 0x219   : > { %4720 = vmatpush2.bf16.msra.mxu1 %v6126_v61  ;;  %v6176_v61 = vld [vmem:[%s7658_s7 + $0x20c] ss:$16 sps:$4 sm:$0xff]  }
 0x21a   : > { %4771 = vmatprep.subr.bf16.mxu1 %v6134_v5  ;;  %v4436_v17 = vpop.f32.mrf.mxu0  ;;  %4681 = vmatmul.mubr.bf16.vlgmr.msra.gmra.mxu0 %v8012_v7  ;;  %v6180_v5 = vld [vmem:[%s7658_s7 + $0x3e8] ss:$16 sps:$4 sm:$0xff]  }
 0x21b   : > { %v4437_v22 = vadd.f32 %v4436_v17, %v1825_v10  ;;  %4731 = vmatpush1.bf16.msra.mxu0 %v6129_v9  ;;  %4762 = vmatprep.mubr.bf16.mxu0 %v7654_v2  ;;  %v6152_v2 = vld [vmem:[%s7658_s7 + $0x28c] ss:$16 sps:$4 sm:$0xff]   ;;  %v6183_v10 = vld [vmem:[%s7658_s7 + $0x1c8] ss:$16 sps:$4 sm:$0xff]  }
 0x21c   : > { %v4477_v20 = vpop.f32.mrf.mxu1  ;;  %4722 = vmatmul.mubr.bf16.vlgmr.msra.gmra.mxu1 %v8014_v8  ;;  %v4438_v27 = vpop.f32.mrf.mxu0  ;;  %4732 = vmatprep.subr.bf16.mxu0 %v6137_v14  ;;  %v6188_v9 = vld [vmem:[%s7658_s7 + $0x3cc] ss:$16 sps:$4 sm:$0xff]   ;;  %v6192_v17 = vld [vmem:[%s7658_s7 + $0x3a8] ss:$16 sps:$4 sm:$0xff]  }
 0x21d   : > { %4772 = vmatpush1.bf16.msra.mxu1 %v6132_v11  ;;  %v8026_v30 = vadd.f32 %v4477_v20, %v4437_v22  ;;  %v4439_v31 = vadd.f32 %v4438_v27, %v1829_v16  ;;  %4803 = vmatprep.mubr.bf16.mxu1 %v7656_v3  ;;  %v6147_v3 = vld [vmem:[%s7658_s7 + $0x88] ss:$16 sps:$4 sm:$0xff]   ;;  %v6191_v14 = vld [vmem:[%s7658_s7 + $0x1ac] ss:$16 sps:$4 sm:$0xff]  }
 0x21e   : > { %v4479_v28 = vpop.f32.mrf.mxu1  ;;  %4773 = vmatprep.subr.bf16.mxu1 %v6140_v15  ;;  %v4440_v34 = vpop.f32.mrf.mxu0  ;;  %v6186_v11 = vld [vmem:[%s7658_s7 + $0x3c8] ss:$16 sps:$4 sm:$0xff]   ;;  %v6194_v15 = vld [vmem:[%s7658_s7 + $0x3ac] ss:$16 sps:$4 sm:$0xff]  }
 0x21f   : > { %v8031_v37 = vadd.f32 %v4479_v28, %v4439_v31  ;;  %4733 = vmatpush1.bf16.msra.mxu0 %v6135_v21  ;;  %v6189_v16 = vld [vmem:[%s7658_s7 + $0x1a8] ss:$16 sps:$4 sm:$0xff]   ;;  %v6197_v20 = vld [vmem:[%s7658_s7 + $0x18c] ss:$16 sps:$4 sm:$0xff]  }
 0x220   : > { %v4481_v35 = vpop.f32.mrf.mxu1  ;;  %v4441_v40 = vpop.f32.mrf.mxu0  ;;  %4734 = vmatprep.subr.bf16.mxu0 %v6143_v26  ;;  %v6200_v21 = vld [vmem:[%s7658_s7 + $0x38c] ss:$16 sps:$4 sm:$0xff]   ;;  %v6195_v22 = vld [vmem:[%s7658_s7 + $0x188] ss:$16 sps:$4 sm:$0xff]  }
 0x221   : > { %4774 = vmatpush1.bf16.msra.mxu1 %v6138_v23  ;;  %v6198_v23 = vld [vmem:[%s7658_s7 + $0x388] ss:$16 sps:$4 sm:$0xff]   ;;  %v6203_v26 = vld [vmem:[%s7658_s7 + $0x16c] ss:$16 sps:$4 sm:$0xff]  }
 0x222   : > { %v4482_v41 = vpop.f32.mrf.mxu1  ;;  %4775 = vmatprep.subr.bf16.mxu1 %v6146_v29  ;;  %v6206_v27 = vld [vmem:[%s7658_s7 + $0x36c] ss:$16 sps:$4 sm:$0xff]   ;;  %v6201_v28 = vld [vmem:[%s7658_s7 + $0x168] ss:$16 sps:$4 sm:$0xff]  }
 0x223   : > { %4735 = vmatpush1.bf16.msra.mxu0 %v6141_v36  ;;  %v6204_v29 = vld [vmem:[%s7658_s7 + $0x368] ss:$16 sps:$4 sm:$0xff]   ;;  %v6209_v31 = vld [vmem:[%s7658_s7 + $0x14c] ss:$16 sps:$4 sm:$0xff]  }
 0x224   : > { %4736 = vmatprep.subr.bf16.mxu0 %v6149_v39  ;;  %v6212_v34 = vld [vmem:[%s7658_s7 + $0x34c] ss:$16 sps:$4 sm:$0xff]   ;;  %v6207_v35 = vld [vmem:[%s7658_s7 + $0x148] ss:$16 sps:$4 sm:$0xff]  }
 0x225   : > { %4776 = vmatpush1.bf16.msra.mxu1 %v6144_v38  ;;  %v6210_v36 = vld [vmem:[%s7658_s7 + $0x348] ss:$16 sps:$4 sm:$0xff]   ;;  %v6215_v38 = vld [vmem:[%s7658_s7 + $0x12c] ss:$16 sps:$4 sm:$0xff]  }
 0x226   : > { %4777 = vmatprep.subr.bf16.mxu1 %v6152_v2  ;;  %v6218_v39 = vld [vmem:[%s7658_s7 + $0x32c] ss:$16 sps:$4 sm:$0xff]   ;;  %v6213_v40 = vld [vmem:[%s7658_s7 + $0x128] ss:$16 sps:$4 sm:$0xff]  }
 0x227   : > { %4737 = vmatpush1.bf16.msra.mxu0 %v6147_v3  ;;  %v6216_v41 = vld [vmem:[%s7658_s7 + $0x328] ss:$16 sps:$4 sm:$0xff]   ;;  %v6221_v2 = vld [vmem:[%s7658_s7 + $0x10c] ss:$16 sps:$4 sm:$0xff]  }
 0x228   : > { %4738 = vmatprep.subr.bf16.mxu0 %v6155_v45  ;;  %v6224_v3 = vld [vmem:[%s7658_s7 + $0x30c] ss:$16 sps:$4 sm:$0xff]   ;;  %v6222_v45 = vld [vmem:[%s7658_s7 + $0x308] ss:$16 sps:$4 sm:$0xff]  }
 0x229   : > { %4778 = vmatpush1.bf16.msra.mxu1 %v6150_v42  ;;  %v6219_v42 = vld [vmem:[%s7658_s7 + $0x108] ss:$16 sps:$4 sm:$0xff]  }
 0x22a   : > { %4779 = vmatprep.subr.bf16.mxu1 %v6158_v46  ;;  %v6227_v46 = vld [vmem:[%s7658_s7 + $0x4ec] ss:$16 sps:$4 sm:$0xff]  }
 0x22b   : > { %4739 = vmatpush1.bf16.msra.mxu0 %v6153_v47  ;;  %v6230_v47 = vld [vmem:[%s7658_s7 + $0x6ec] ss:$16 sps:$4 sm:$0xff]  }
 0x22c   : > { %4740 = vmatprep.subr.bf16.mxu0 %v6161_v49  ;;  %v6228_v49 = vld [vmem:[%s7658_s7 + $0x6e8] ss:$16 sps:$4 sm:$0xff]  }
 0x22d   : > { %4780 = vmatpush1.bf16.msra.mxu1 %v6156_v48  ;;  %v6225_v48 = vld [vmem:[%s7658_s7 + $0x4e8] ss:$16 sps:$4 sm:$0xff]  }
 0x22e   : > { %4781 = vmatprep.subr.bf16.mxu1 %v6164_v52  ;;  %v6233_v52 = vld [vmem:[%s7658_s7 + $0x4cc] ss:$16 sps:$4 sm:$0xff]  }
 0x22f   : > { %4741 = vmatpush1.bf16.msra.mxu0 %v6159_v53  ;;  %v6236_v53 = vld [vmem:[%s7658_s7 + $0x6cc] ss:$16 sps:$4 sm:$0xff]  }
 0x230   : > { %4742 = vmatprep.subr.bf16.mxu0 %v6167_v55  ;;  %v6234_v55 = vld [vmem:[%s7658_s7 + $0x6c8] ss:$16 sps:$4 sm:$0xff]  }
 0x231   : > { %4782 = vmatpush1.bf16.msra.mxu1 %v6162_v54  ;;  %v6231_v54 = vld [vmem:[%s7658_s7 + $0x4c8] ss:$16 sps:$4 sm:$0xff]  }
 0x232   : > { %4783 = vmatprep.subr.bf16.mxu1 %v6170_v56 }
 0x233   : > { %4743 = vmatpush1.bf16.msra.mxu0 %v6165_v57 }
 0x234   : > { %4744 = vmatprep.subr.bf16.mxu0 %v6173_v60 }
 0x235   : > { %4784 = vmatpush1.bf16.msra.mxu1 %v6168_v59 }
 0x236   : > { %4785 = vmatprep.subr.bf16.mxu1 %v6176_v61 }
 0x237   : > { %4745 = vmatpush1.bf16.msra.mxu0 %v6171_v62  ;;  %v6239_v62 = vld [vmem:[%s7658_s7 + $0x4ac] ss:$16 sps:$4 sm:$0xff]  }
 0x238   : > { %4746 = vmatprep.subr.bf16.mxu0 %v6179_v0 }
 0x239   : > { %4786 = vmatpush1.bf16.msra.mxu1 %v6174_v63  ;;  %v6242_v63 = vld [vmem:[%s7658_s7 + $0x6ac] ss:$16 sps:$4 sm:$0xff]  }
 0x23a   : > { %4787 = vmatprep.subr.bf16.mxu1 %v6182_v1 }
 0x23b   : > { %4747 = vmatpush2.bf16.msra.mxu0 %v6177_v4  ;;  %v6237_v4 = vld [vmem:[%s7658_s7 + $0x4a8] ss:$16 sps:$4 sm:$0xff]  }
 0x23c   : > { %4748 = vmatprep.subr.bf16.mxu0 %v6185_v6 }
 0x23d   : > { %4788 = vmatpush2.bf16.msra.mxu1 %v6180_v5  ;;  %v6240_v5 = vld [vmem:[%s7658_s7 + $0x6a8] ss:$16 sps:$4 sm:$0xff]  }
 0x23e   : > { %4789 = vmatprep.subr.bf16.mxu1 %v6188_v9 }
 0x23f   : > { %4749 = vmatpush2.bf16.msra.mxu0 %v6183_v10  ;;  %v6246_v10 = vld [vmem:[%s7658_s7 + $0x688] ss:$16 sps:$4 sm:$0xff]  }
 0x240   : > { %4750 = vmatprep.subr.bf16.mxu0 %v6191_v14  ;;  %v6254_v14 = vld [vmem:[%s7658_s7 + $0x66c] ss:$16 sps:$4 sm:$0xff]  }
 0x241   : > { %4790 = vmatpush2.bf16.msra.mxu1 %v6186_v11  ;;  %v6251_v11 = vld [vmem:[%s7658_s7 + $0x46c] ss:$16 sps:$4 sm:$0xff]  }
 0x242   : > { %4791 = vmatprep.subr.bf16.mxu1 %v6194_v15  ;;  %v6249_v15 = vld [vmem:[%s7658_s7 + $0x468] ss:$16 sps:$4 sm:$0xff]  }
 0x243   : > { %4751 = vmatpush2.bf16.msra.mxu0 %v6189_v16  ;;  %v6252_v16 = vld [vmem:[%s7658_s7 + $0x668] ss:$16 sps:$4 sm:$0xff]  }
 0x244   : > { %4752 = vmatprep.subr.bf16.mxu0 %v6197_v20  ;;  %v6260_v20 = vld [vmem:[%s7658_s7 + $0x64c] ss:$16 sps:$4 sm:$0xff]  }
 0x245   : > { %4792 = vmatpush2.bf16.msra.mxu1 %v6192_v17  ;;  %v6257_v17 = vld [vmem:[%s7658_s7 + $0x44c] ss:$16 sps:$4 sm:$0xff]  }
 0x246   : > { %4793 = vmatprep.subr.bf16.mxu1 %v6200_v21  ;;  %v6255_v21 = vld [vmem:[%s7658_s7 + $0x448] ss:$16 sps:$4 sm:$0xff]  }
 0x247   : > { %4753 = vmatpush2.bf16.msra.mxu0 %v6195_v22  ;;  %v6258_v22 = vld [vmem:[%s7658_s7 + $0x648] ss:$16 sps:$4 sm:$0xff]  }
 0x248   : > { %4754 = vmatprep.subr.bf16.mxu0 %v6203_v26  ;;  %v6266_v26 = vld [vmem:[%s7658_s7 + $0x62c] ss:$16 sps:$4 sm:$0xff]  }
 0x249   : > { %4794 = vmatpush2.bf16.msra.mxu1 %v6198_v23  ;;  %v6263_v23 = vld [vmem:[%s7658_s7 + $0x42c] ss:$16 sps:$4 sm:$0xff]  }
 0x24a   : > { %4795 = vmatprep.subr.bf16.mxu1 %v6206_v27  ;;  %v6261_v27 = vld [vmem:[%s7658_s7 + $0x428] ss:$16 sps:$4 sm:$0xff]  }
 0x24b   : > { %4755 = vmatpush2.bf16.msra.mxu0 %v6201_v28  ;;  %v6264_v28 = vld [vmem:[%s7658_s7 + $0x628] ss:$16 sps:$4 sm:$0xff]  }
 0x24c   : > { %4756 = vmatprep.subr.bf16.mxu0 %v6209_v31  ;;  %v6272_v31 = vld [vmem:[%s7658_s7 + $0x60c] ss:$16 sps:$4 sm:$0xff]  }
 0x24d   : > { %4796 = vmatpush2.bf16.msra.mxu1 %v6204_v29  ;;  %v6269_v29 = vld [vmem:[%s7658_s7 + $0x40c] ss:$16 sps:$4 sm:$0xff]  }
 0x24e   : > { %4797 = vmatprep.subr.bf16.mxu1 %v6212_v34  ;;  %v6267_v34 = vld [vmem:[%s7658_s7 + $0x408] ss:$16 sps:$4 sm:$0xff]  }
 0x24f   : > { %4757 = vmatpush2.bf16.msra.mxu0 %v6207_v35  ;;  %v6270_v35 = vld [vmem:[%s7658_s7 + $0x608] ss:$16 sps:$4 sm:$0xff]  }
 0x250   : > { %4758 = vmatprep.subr.bf16.mxu0 %v6215_v38  ;;  %v6278_v38 = vld [vmem:[%s7658_s7 + $0x7ec] ss:$16 sps:$4 sm:$0xff]  }
 0x251   : > { %4798 = vmatpush2.bf16.msra.mxu1 %v6210_v36  ;;  %v6275_v36 = vld [vmem:[%s7658_s7 + $0x5ec] ss:$16 sps:$4 sm:$0xff]  }
 0x252   : > { %4799 = vmatprep.subr.bf16.mxu1 %v6218_v39  ;;  %v6273_v39 = vld [vmem:[%s7658_s7 + $0x5e8] ss:$16 sps:$4 sm:$0xff]  }
 0x253   : > { %4759 = vmatpush2.bf16.msra.mxu0 %v6213_v40  ;;  %v6276_v40 = vld [vmem:[%s7658_s7 + $0x7e8] ss:$16 sps:$4 sm:$0xff]  }
 0x254   : > { %4760 = vmatprep.subr.bf16.mxu0 %v6221_v2  ;;  %v6284_v2 = vld [vmem:[%s7658_s7 + $0x7cc] ss:$16 sps:$4 sm:$0xff]  }
 0x255   : > { %4800 = vmatpush2.bf16.msra.mxu1 %v6216_v41  ;;  %v6281_v41 = vld [vmem:[%s7658_s7 + $0x5cc] ss:$16 sps:$4 sm:$0xff]  }
 0x256   : > { %4801 = vmatprep.subr.bf16.mxu1 %v6224_v3  ;;  %v6279_v3 = vld [vmem:[%s7658_s7 + $0x5c8] ss:$16 sps:$4 sm:$0xff]  }
 0x257   : > { %4761 = vmatpush2.bf16.msra.mxu0 %v6219_v42  ;;  %v6282_v42 = vld [vmem:[%s7658_s7 + $0x7c8] ss:$16 sps:$4 sm:$0xff]  }
 0x258   : > { %4812 = vmatprep.subr.bf16.mxu0 %v6227_v46  ;;  %v6290_v46 = vld [vmem:[%s7658_s7 + $0x7ac] ss:$16 sps:$4 sm:$0xff]  }
 0x259   : > { %4802 = vmatpush2.bf16.msra.mxu1 %v6222_v45  ;;  %v6287_v45 = vld [vmem:[%s7658_s7 + $0x5ac] ss:$16 sps:$4 sm:$0xff]  }
 0x25a   : > { %4853 = vmatprep.subr.bf16.mxu1 %v6230_v47  ;;  %v4518_v56 = vpop.f32.mrf.mxu0  ;;  %4763 = vmatmul.mubr.bf16.vlgmr.msra.gmra.mxu0 %v7740_v12  ;;  %v6285_v47 = vld [vmem:[%s7658_s7 + $0x5a8] ss:$16 sps:$4 sm:$0xff]  }
 0x25b   : > { %v4519_v59 = vadd.f32 %v4518_v56, %v8026_v30  ;;  %4813 = vmatpush1.bf16.msra.mxu0 %v6225_v48  ;;  %4844 = vmatprep.mubr.bf16.mxu0 %v7748_v18  ;;  %v6245_v18 = vld [vmem:[%s7658_s7 + $0x48c] ss:$16 sps:$4 sm:$0xff]   ;;  %v6288_v48 = vld [vmem:[%s7658_s7 + $0x7a8] ss:$16 sps:$4 sm:$0xff]  }
 0x25c   : > { %v4559_v57 = vpop.f32.mrf.mxu1  ;;  %4804 = vmatmul.mubr.bf16.vlgmr.msra.gmra.mxu1 %v7742_v13  ;;  %v4520_v60 = vpop.f32.mrf.mxu0  ;;  %4814 = vmatprep.subr.bf16.mxu0 %v6233_v52  ;;  %v6296_v52 = vld [vmem:[%s7658_s7 + $0x78c] ss:$16 sps:$4 sm:$0xff]  }
 0x25d   : > { %4854 = vmatpush1.bf16.msra.mxu1 %v6228_v49  ;;  %v8099_v0 = vadd.f32 %v4559_v57, %v4519_v59  ;;  %v4521_v12 = vadd.f32 %v4520_v60, %v8031_v37  ;;  %4885 = vmatprep.mubr.bf16.mxu1 %v7750_v19  ;;  %v6248_v19 = vld [vmem:[%s7658_s7 + $0x68c] ss:$16 sps:$4 sm:$0xff]   ;;  %v6243_v37 = vld [vmem:[%s7658_s7 + $0x488] ss:$16 sps:$4 sm:$0xff]  }
 0x25e   : > { %v4561_v61 = vpop.f32.mrf.mxu1  ;;  %4855 = vmatprep.subr.bf16.mxu1 %v6236_v53  ;;  %v4522_v13 = vpop.f32.mrf.mxu0  ;;  %v6293_v49 = vld [vmem:[%s7658_s7 + $0x58c] ss:$16 sps:$4 sm:$0xff]   ;;  %v6291_v53 = vld [vmem:[%s7658_s7 + $0x588] ss:$16 sps:$4 sm:$0xff]  }
 0x25f   : > { %v8104_v1 = vadd.f32 %v4561_v61, %v4521_v12  ;;  %4815 = vmatpush1.bf16.msra.mxu0 %v6231_v54  ;;  %v6294_v54 = vld [vmem:[%s7658_s7 + $0x788] ss:$16 sps:$4 sm:$0xff]   ;;  %v6302_v56 = vld [vmem:[%s7658_s7 + $0x76c] ss:$16 sps:$4 sm:$0xff]  }
 0x260   : > { %v4563_v30 = vpop.f32.mrf.mxu1  ;;  %v4523_v6 = vpop.f32.mrf.mxu0  ;;  %4816 = vmatprep.subr.bf16.mxu0 %v6239_v62  ;;  %v6297_v57 = vld [vmem:[%s7658_s7 + $0x568] ss:$16 sps:$4 sm:$0xff]   ;;  %v6305_v60 = vld [vmem:[%s7658_s7 + $0x54c] ss:$16 sps:$4 sm:$0xff]  }
 0x261   : > { %4856 = vmatpush1.bf16.msra.mxu1 %v6234_v55  ;;  %v6299_v55 = vld [vmem:[%s7658_s7 + $0x56c] ss:$16 sps:$4 sm:$0xff]   ;;  %v6300_v59 = vld [vmem:[%s7658_s7 + $0x768] ss:$16 sps:$4 sm:$0xff]  }
 0x262   : > { %v4564_v9 = vpop.f32.mrf.mxu1  ;;  %4857 = vmatprep.subr.bf16.mxu1 %v6242_v63  ;;  %v6308_v61 = vld [vmem:[%s7658_s7 + $0x74c] ss:$16 sps:$4 sm:$0xff]   ;;  %v6303_v62 = vld [vmem:[%s7658_s7 + $0x548] ss:$16 sps:$4 sm:$0xff]  }
 0x263   : > { %4817 = vmatpush1.bf16.msra.mxu0 %v6237_v4  ;;  %v6306_v63 = vld [vmem:[%s7658_s7 + $0x748] ss:$16 sps:$4 sm:$0xff]   ;;  %v6311_v12 = vld [vmem:[%s7658_s7 + $0x52c] ss:$16 sps:$4 sm:$0xff]  }
 0x264   : > { %4818 = vmatprep.subr.bf16.mxu0 %v6245_v18  ;;  %v6314_v13 = vld [vmem:[%s7658_s7 + $0x72c] ss:$16 sps:$4 sm:$0xff]   ;;  %v6309_v30 = vld [vmem:[%s7658_s7 + $0x528] ss:$16 sps:$4 sm:$0xff]  }
 0x265   : > { %4858 = vmatpush1.bf16.msra.mxu1 %v6240_v5  ;;  %v6312_v4 = vld [vmem:[%s7658_s7 + $0x728] ss:$16 sps:$4 sm:$0xff]   ;;  %v6317_v5 = vld [vmem:[%s7658_s7 + $0x50c] ss:$16 sps:$4 sm:$0xff]  }
 0x266   : > { %4859 = vmatprep.subr.bf16.mxu1 %v6248_v19  ;;  %v6320_v6 = vld [vmem:[%s7658_s7 + $0x70c] ss:$16 sps:$4 sm:$0xff]   ;;  %v6315_v9 = vld [vmem:[%s7658_s7 + $0x508] ss:$16 sps:$4 sm:$0xff]  }
 0x267   : > { %4819 = vmatpush1.bf16.msra.mxu0 %v6243_v37  ;;  %v6318_v18 = vld [vmem:[%s7658_s7 + $0x708] ss:$16 sps:$4 sm:$0xff]   ;;  %v6323_v19 = vld [vmem:[%s7658_s7 + $0x8ec] ss:$16 sps:$4 sm:$0xff]  }
 0x268   : > { %4820 = vmatprep.subr.bf16.mxu0 %v6251_v11  ;;  %v6326_v37 = vld [vmem:[%s7658_s7 + $0xaec] ss:$16 sps:$4 sm:$0xff]   ;;  %v6324_v11 = vld [vmem:[%s7658_s7 + $0xae8] ss:$16 sps:$4 sm:$0xff]  }
 0x269   : > { %4860 = vmatpush1.bf16.msra.mxu1 %v6246_v10  ;;  %v6321_v10 = vld [vmem:[%s7658_s7 + $0x8e8] ss:$16 sps:$4 sm:$0xff]  }
 0x26a   : > { %4861 = vmatprep.subr.bf16.mxu1 %v6254_v14  ;;  %v6329_v14 = vld [vmem:[%s7658_s7 + $0x8cc] ss:$16 sps:$4 sm:$0xff]  }
 0x26b   : > { %4821 = vmatpush1.bf16.msra.mxu0 %v6249_v15  ;;  %v6332_v15 = vld [vmem:[%s7658_s7 + $0xacc] ss:$16 sps:$4 sm:$0xff]  }
 0x26c   : > { %4822 = vmatprep.subr.bf16.mxu0 %v6257_v17 }
 0x26d   : > { %4862 = vmatpush1.bf16.msra.mxu1 %v6252_v16 }
 0x26e   : > { %4863 = vmatprep.subr.bf16.mxu1 %v6260_v20  ;;  %v6327_v20 = vld [vmem:[%s7658_s7 + $0x8c8] ss:$16 sps:$4 sm:$0xff]  }
 0x26f   : > { %4823 = vmatpush1.bf16.msra.mxu0 %v6255_v21  ;;  %v6330_v21 = vld [vmem:[%s7658_s7 + $0xac8] ss:$16 sps:$4 sm:$0xff]  }
 0x270   : > { %4824 = vmatprep.subr.bf16.mxu0 %v6263_v23 }
 0x271   : > { %4864 = vmatpush1.bf16.msra.mxu1 %v6258_v22 }
 0x272   : > { %4865 = vmatprep.subr.bf16.mxu1 %v6266_v26  ;;  %v6335_v26 = vld [vmem:[%s7658_s7 + $0x8ac] ss:$16 sps:$4 sm:$0xff]  }
 0x273   : > { %4825 = vmatpush1.bf16.msra.mxu0 %v6261_v27  ;;  %v6338_v27 = vld [vmem:[%s7658_s7 + $0xaac] ss:$16 sps:$4 sm:$0xff]  }
 0x274   : > { %4826 = vmatprep.subr.bf16.mxu0 %v6269_v29  ;;  %v6336_v29 = vld [vmem:[%s7658_s7 + $0xaa8] ss:$16 sps:$4 sm:$0xff]  }
 0x275   : > { %4866 = vmatpush1.bf16.msra.mxu1 %v6264_v28  ;;  %v6333_v28 = vld [vmem:[%s7658_s7 + $0x8a8] ss:$16 sps:$4 sm:$0xff]  }
 0x276   : > { %4867 = vmatprep.subr.bf16.mxu1 %v6272_v31 }
 0x277   : > { %4827 = vmatpush1.bf16.msra.mxu0 %v6267_v34 }
 0x278   : > { %4828 = vmatprep.subr.bf16.mxu0 %v6275_v36  ;;  %v6342_v36 = vld [vmem:[%s7658_s7 + $0xa88] ss:$16 sps:$4 sm:$0xff]  }
 0x279   : > { %4868 = vmatpush1.bf16.msra.mxu1 %v6270_v35  ;;  %v6341_v35 = vld [vmem:[%s7658_s7 + $0x88c] ss:$16 sps:$4 sm:$0xff]  }
 0x27a   : > { %4869 = vmatprep.subr.bf16.mxu1 %v6278_v38  ;;  %v6347_v38 = vld [vmem:[%s7658_s7 + $0x86c] ss:$16 sps:$4 sm:$0xff]  }
 0x27b   : > { %4829 = vmatpush2.bf16.msra.mxu0 %v6273_v39  ;;  %v6350_v39 = vld [vmem:[%s7658_s7 + $0xa6c] ss:$16 sps:$4 sm:$0xff]  }
 0x27c   : > { %4830 = vmatprep.subr.bf16.mxu0 %v6281_v41  ;;  %v6348_v41 = vld [vmem:[%s7658_s7 + $0xa68] ss:$16 sps:$4 sm:$0xff]  }
 0x27d   : > { %4870 = vmatpush2.bf16.msra.mxu1 %v6276_v40  ;;  %v6345_v40 = vld [vmem:[%s7658_s7 + $0x868] ss:$16 sps:$4 sm:$0xff]  }
 0x27e   : > { %4871 = vmatprep.subr.bf16.mxu1 %v6284_v2  ;;  %v6353_v2 = vld [vmem:[%s7658_s7 + $0x84c] ss:$16 sps:$4 sm:$0xff]  }
 0x27f   : > { %4831 = vmatpush2.bf16.msra.mxu0 %v6279_v3  ;;  %v6356_v3 = vld [vmem:[%s7658_s7 + $0xa4c] ss:$16 sps:$4 sm:$0xff]  }
 0x280   : > { %4832 = vmatprep.subr.bf16.mxu0 %v6287_v45  ;;  %v6354_v45 = vld [vmem:[%s7658_s7 + $0xa48] ss:$16 sps:$4 sm:$0xff]  }
 0x281   : > { %4872 = vmatpush2.bf16.msra.mxu1 %v6282_v42  ;;  %v6351_v42 = vld [vmem:[%s7658_s7 + $0x848] ss:$16 sps:$4 sm:$0xff]  }
 0x282   : > { %4873 = vmatprep.subr.bf16.mxu1 %v6290_v46  ;;  %v6359_v46 = vld [vmem:[%s7658_s7 + $0x82c] ss:$16 sps:$4 sm:$0xff]  }
 0x283   : > { %4833 = vmatpush2.bf16.msra.mxu0 %v6285_v47  ;;  %v6362_v47 = vld [vmem:[%s7658_s7 + $0xa2c] ss:$16 sps:$4 sm:$0xff]  }
 0x284   : > { %4834 = vmatprep.subr.bf16.mxu0 %v6293_v49  ;;  %v6360_v49 = vld [vmem:[%s7658_s7 + $0xa28] ss:$16 sps:$4 sm:$0xff]  }
 0x285   : > { %4874 = vmatpush2.bf16.msra.mxu1 %v6288_v48  ;;  %v6357_v48 = vld [vmem:[%s7658_s7 + $0x828] ss:$16 sps:$4 sm:$0xff]  }
 0x286   : > { %4875 = vmatprep.subr.bf16.mxu1 %v6296_v52  ;;  %v6365_v52 = vld [vmem:[%s7658_s7 + $0x80c] ss:$16 sps:$4 sm:$0xff]  }
 0x287   : > { %4835 = vmatpush2.bf16.msra.mxu0 %v6291_v53  ;;  %v6368_v53 = vld [vmem:[%s7658_s7 + $0xa0c] ss:$16 sps:$4 sm:$0xff]  }
 0x288   : > { %4836 = vmatprep.subr.bf16.mxu0 %v6299_v55  ;;  %v6366_v55 = vld [vmem:[%s7658_s7 + $0xa08] ss:$16 sps:$4 sm:$0xff]  }
 0x289   : > { %4876 = vmatpush2.bf16.msra.mxu1 %v6294_v54  ;;  %v6363_v54 = vld [vmem:[%s7658_s7 + $0x808] ss:$16 sps:$4 sm:$0xff]  }
 0x28a   : > { %4877 = vmatprep.subr.bf16.mxu1 %v6302_v56  ;;  %v6371_v56 = vld [vmem:[%s7658_s7 + $0x9ec] ss:$16 sps:$4 sm:$0xff]  }
 0x28b   : > { %4837 = vmatpush2.bf16.msra.mxu0 %v6297_v57  ;;  %v6374_v57 = vld [vmem:[%s7658_s7 + $0xbec] ss:$16 sps:$4 sm:$0xff]  }
 0x28c   : > { %4838 = vmatprep.subr.bf16.mxu0 %v6305_v60  ;;  %v6372_v60 = vld [vmem:[%s7658_s7 + $0xbe8] ss:$16 sps:$4 sm:$0xff]  }
 0x28d   : > { %4878 = vmatpush2.bf16.msra.mxu1 %v6300_v59  ;;  %v6369_v59 = vld [vmem:[%s7658_s7 + $0x9e8] ss:$16 sps:$4 sm:$0xff]  }
 0x28e   : > { %4879 = vmatprep.subr.bf16.mxu1 %v6308_v61  ;;  %v6377_v61 = vld [vmem:[%s7658_s7 + $0x9cc] ss:$16 sps:$4 sm:$0xff]  }
 0x28f   : > { %4839 = vmatpush2.bf16.msra.mxu0 %v6303_v62  ;;  %v6380_v62 = vld [vmem:[%s7658_s7 + $0xbcc] ss:$16 sps:$4 sm:$0xff]  }
 0x290   : > { %4840 = vmatprep.subr.bf16.mxu0 %v6311_v12  ;;  %v6378_v12 = vld [vmem:[%s7658_s7 + $0xbc8] ss:$16 sps:$4 sm:$0xff]  }
 0x291   : > { %4880 = vmatpush2.bf16.msra.mxu1 %v6306_v63  ;;  %v6375_v63 = vld [vmem:[%s7658_s7 + $0x9c8] ss:$16 sps:$4 sm:$0xff]  }
 0x292   : > { %4881 = vmatprep.subr.bf16.mxu1 %v6314_v13  ;;  %v6383_v13 = vld [vmem:[%s7658_s7 + $0x9ac] ss:$16 sps:$4 sm:$0xff]  }
 0x293   : > { %4841 = vmatpush2.bf16.msra.mxu0 %v6309_v30  ;;  %v6386_v30 = vld [vmem:[%s7658_s7 + $0xbac] ss:$16 sps:$4 sm:$0xff]  }
 0x294   : > { %4842 = vmatprep.subr.bf16.mxu0 %v6317_v5  ;;  %v6384_v5 = vld [vmem:[%s7658_s7 + $0xba8] ss:$16 sps:$4 sm:$0xff]  }
 0x295   : > { %4882 = vmatpush2.bf16.msra.mxu1 %v6312_v4  ;;  %v6381_v4 = vld [vmem:[%s7658_s7 + $0x9a8] ss:$16 sps:$4 sm:$0xff]  }
 0x296   : > { %4883 = vmatprep.subr.bf16.mxu1 %v6320_v6  ;;  %v6389_v6 = vld [vmem:[%s7658_s7 + $0x98c] ss:$16 sps:$4 sm:$0xff]  }
 0x297   : > { %4843 = vmatpush2.bf16.msra.mxu0 %v6315_v9  ;;  %v6392_v9 = vld [vmem:[%s7658_s7 + $0xb8c] ss:$16 sps:$4 sm:$0xff]  }
 0x298   : > { %4894 = vmatprep.subr.bf16.mxu0 %v6323_v19  ;;  %v6390_v19 = vld [vmem:[%s7658_s7 + $0xb88] ss:$16 sps:$4 sm:$0xff]  }
 0x299   : > { %4884 = vmatpush2.bf16.msra.mxu1 %v6318_v18  ;;  %v6387_v18 = vld [vmem:[%s7658_s7 + $0x988] ss:$16 sps:$4 sm:$0xff]  }
 0x29a   : > { %4935 = vmatprep.subr.bf16.mxu1 %v6326_v37  ;;  %v8166_v16 = vpop.f32.mrf.mxu0  ;;  %4845 = vmatmul.mubr.bf16.vlgmr.msra.gmra.mxu0 %v7822_v24  ;;  %v6395_v37 = vld [vmem:[%s7658_s7 + $0x96c] ss:$16 sps:$4 sm:$0xff]  }
 0x29b   : > { %4895 = vmatpush1.bf16.msra.mxu0 %v6321_v10  ;;  %4926 = vmatprep.mubr.bf16.mxu0 %v7836_v32  ;;  %v6344_v32 = vld [vmem:[%s7658_s7 + $0xa8c] ss:$16 sps:$4 sm:$0xff]  }
 0x29c   : > { %v8168_v17 = vpop.f32.mrf.mxu1  ;;  %4886 = vmatmul.mubr.bf16.vlgmr.msra.gmra.mxu1 %v7824_v25  ;;  %v8174_v22 = vpop.f32.mrf.mxu0  ;;  %4896 = vmatprep.subr.bf16.mxu0 %v6329_v14  ;;  %v6398_v10 = vld [vmem:[%s7658_s7 + $0xb6c] ss:$16 sps:$4 sm:$0xff]   ;;  %v6396_v14 = vld [vmem:[%s7658_s7 + $0xb68] ss:$16 sps:$4 sm:$0xff]  }
 0x29d   : > { %4936 = vmatpush1.bf16.msra.mxu1 %v6324_v11  ;;  %4967 = vmatprep.mubr.bf16.mxu1 %v7838_v33  ;;  %v6339_v33 = vld [vmem:[%s7658_s7 + $0x888] ss:$16 sps:$4 sm:$0xff]  }
 0x29e   : > { %v8176_v23 = vpop.f32.mrf.mxu1  ;;  %4937 = vmatprep.subr.bf16.mxu1 %v6332_v15  ;;  %v4604_v24 = vpop.f32.mrf.mxu0  ;;  %v6393_v11 = vld [vmem:[%s7658_s7 + $0x968] ss:$16 sps:$4 sm:$0xff]   ;;  %v6401_v15 = vld [vmem:[%s7658_s7 + $0x94c] ss:$16 sps:$4 sm:$0xff]  }
 0x29f   : > { %4897 = vmatpush1.bf16.msra.mxu0 %v6327_v20  ;;  %v6404_v20 = vld [vmem:[%s7658_s7 + $0xb4c] ss:$16 sps:$4 sm:$0xff]  }
 0x2a0   : > { %v4645_v25 = vpop.f32.mrf.mxu1  ;;  %v4605_v31 = vpop.f32.mrf.mxu0  ;;  %4898 = vmatprep.subr.bf16.mxu0 %v6335_v26  ;;  %v6402_v26 = vld [vmem:[%s7658_s7 + $0xb48] ss:$16 sps:$4 sm:$0xff]   ;;  %v6410_v24 = vld [vmem:[%s7658_s7 + $0xb2c] ss:$16 sps:$4 sm:$0xff]  }
 0x2a1   : > { %4938 = vmatpush1.bf16.msra.mxu1 %v6330_v21  ;;  %v6399_v21 = vld [vmem:[%s7658_s7 + $0x948] ss:$16 sps:$4 sm:$0xff]   ;;  %v6416_v31 = vld [vmem:[%s7658_s7 + $0xb0c] ss:$16 sps:$4 sm:$0xff]  }
 0x2a2   : > { %v4646_v34 = vpop.f32.mrf.mxu1  ;;  %4939 = vmatprep.subr.bf16.mxu1 %v6338_v27  ;;  %v6407_v27 = vld [vmem:[%s7658_s7 + $0x92c] ss:$16 sps:$4 sm:$0xff]   ;;  %v6405_v25 = vld [vmem:[%s7658_s7 + $0x928] ss:$16 sps:$4 sm:$0xff]  }
 0x2a3   : > { %4899 = vmatpush1.bf16.msra.mxu0 %v6333_v28  ;;  %v6408_v28 = vld [vmem:[%s7658_s7 + $0xb28] ss:$16 sps:$4 sm:$0xff]  }
 0x2a4   : > { %4900 = vmatprep.subr.bf16.mxu0 %v6341_v35  ;;  %v6411_v34 = vld [vmem:[%s7658_s7 + $0x908] ss:$16 sps:$4 sm:$0xff]  }
 0x2a5   : > { %4940 = vmatpush1.bf16.msra.mxu1 %v6336_v29  ;;  %v6413_v29 = vld [vmem:[%s7658_s7 + $0x90c] ss:$16 sps:$4 sm:$0xff]   ;;  %v6414_v35 = vld [vmem:[%s7658_s7 + $0xb08] ss:$16 sps:$4 sm:$0xff]  }
 0x2a6   : > { %4941 = vmatprep.subr.bf16.mxu1 %v6344_v32  ;;  %v6419_v32 = vld [vmem:[%s7658_s7 + $0xcec] ss:$16 sps:$4 sm:$0xff]  }
 0x2a7   : > { %4901 = vmatpush1.bf16.msra.mxu0 %v6339_v33  ;;  %v6422_v33 = vld [vmem:[%s7658_s7 + $0xeec] ss:$16 sps:$4 sm:$0xff]  }
 0x2a8   : > { %4902 = vmatprep.subr.bf16.mxu0 %v6347_v38  ;;  %v4603_v38 = vadd.f32 %v8174_v22, %v8104_v1  ;;  %v6423_v22 = vld [vmem:[%s7658_s7 + $0xcc8] ss:$16 sps:$4 sm:$0xff]  }
 0x2a9   : > { %4942 = vmatpush1.bf16.msra.mxu1 %v6342_v36  ;;  %v4601_v36 = vadd.f32 %v8166_v16, %v8099_v0 }
 0x2aa   : > { %4943 = vmatprep.subr.bf16.mxu1 %v6350_v39  ;;  %v6417_v39 = vld [vmem:[%s7658_s7 + $0xce8] ss:$16 sps:$4 sm:$0xff]   ;;  %v4644_v1 = vadd.f32 %v8176_v23, %v4603_v38 }
 0x2ab   : > { %4903 = vmatpush1.bf16.msra.mxu0 %v6345_v40  ;;  %v6420_v40 = vld [vmem:[%s7658_s7 + $0xee8] ss:$16 sps:$4 sm:$0xff]  }
 0x2ac   : > { %4904 = vmatprep.subr.bf16.mxu0 %v6353_v2  ;;  %v6428_v2 = vld [vmem:[%s7658_s7 + $0xecc] ss:$16 sps:$4 sm:$0xff]   ;;  %v6483_v38 = vld [vmem:[%s7658_s7 + $0xd88] ss:$16 sps:$4 sm:$0xff]  }
 0x2ad   : > { %4944 = vmatpush1.bf16.msra.mxu1 %v6348_v41  ;;  %v6425_v41 = vld [vmem:[%s7658_s7 + $0xccc] ss:$16 sps:$4 sm:$0xff]  }
 0x2ae   : > { %4945 = vmatprep.subr.bf16.mxu1 %v6356_v3  ;;  %v4642_v3 = vadd.f32 %v8168_v17, %v4601_v36  ;;  %v6431_v17 = vld [vmem:[%s7658_s7 + $0xcac] ss:$16 sps:$4 sm:$0xff]  }
 0x2af   : > { %4905 = vmatpush1.bf16.msra.mxu0 %v6351_v42  ;;  %v6488_v36 = vld [vmem:[%s7658_s7 + $0xf8c] ss:$16 sps:$4 sm:$0xff]  }
 0x2b0   : > { %4906 = vmatprep.subr.bf16.mxu0 %v6359_v46 }
 0x2b1   : > { %4946 = vmatpush1.bf16.msra.mxu1 %v6354_v45  ;;  %v6426_v45 = vld [vmem:[%s7658_s7 + $0xec8] ss:$16 sps:$4 sm:$0xff]  }
 0x2b2   : > { %4947 = vmatprep.subr.bf16.mxu1 %v6362_v47 }
 0x2b3   : > { %4907 = vmatpush1.bf16.msra.mxu0 %v6357_v48  ;;  %v6434_v48 = vld [vmem:[%s7658_s7 + $0xeac] ss:$16 sps:$4 sm:$0xff]  }
 0x2b4   : > { %4908 = vmatprep.subr.bf16.mxu0 %v6365_v52 }
 0x2b5   : > { %4948 = vmatpush1.bf16.msra.mxu1 %v6360_v49 }
 0x2b6   : > { %4949 = vmatprep.subr.bf16.mxu1 %v6368_v53 }
 0x2b7   : > { %4909 = vmatpush1.bf16.msra.mxu0 %v6363_v54  ;;  %v6429_v54 = vld [vmem:[%s7658_s7 + $0xca8] ss:$16 sps:$4 sm:$0xff]  }
 0x2b8   : > { %4910 = vmatprep.subr.bf16.mxu0 %v6371_v56  ;;  %v6437_v56 = vld [vmem:[%s7658_s7 + $0xc8c] ss:$16 sps:$4 sm:$0xff]  }
 0x2b9   : > { %4950 = vmatpush1.bf16.msra.mxu1 %v6366_v55 }
 0x2ba   : > { %4951 = vmatprep.subr.bf16.mxu1 %v6374_v57  ;;  %v6440_v57 = vld [vmem:[%s7658_s7 + $0xe8c] ss:$16 sps:$4 sm:$0xff]  }
 0x2bb   : > { %4911 = vmatpush2.bf16.msra.mxu0 %v6369_v59 }
 0x2bc   : > { %4912 = vmatprep.subr.bf16.mxu0 %v6377_v61  ;;  %v6438_v61 = vld [vmem:[%s7658_s7 + $0xe88] ss:$16 sps:$4 sm:$0xff]  }
 0x2bd   : > { %4952 = vmatpush2.bf16.msra.mxu1 %v6372_v60  ;;  %v6435_v60 = vld [vmem:[%s7658_s7 + $0xc88] ss:$16 sps:$4 sm:$0xff]  }
 0x2be   : > { %4953 = vmatprep.subr.bf16.mxu1 %v6380_v62  ;;  %v6443_v62 = vld [vmem:[%s7658_s7 + $0xc6c] ss:$16 sps:$4 sm:$0xff]  }
 0x2bf   : > { %4913 = vmatpush2.bf16.msra.mxu0 %v6375_v63  ;;  %v6446_v63 = vld [vmem:[%s7658_s7 + $0xe6c] ss:$16 sps:$4 sm:$0xff]  }
 0x2c0   : > { %4914 = vmatprep.subr.bf16.mxu0 %v6383_v13  ;;  %v6444_v13 = vld [vmem:[%s7658_s7 + $0xe68] ss:$16 sps:$4 sm:$0xff]  }
 0x2c1   : > { %4954 = vmatpush2.bf16.msra.mxu1 %v6378_v12  ;;  %v6441_v12 = vld [vmem:[%s7658_s7 + $0xc68] ss:$16 sps:$4 sm:$0xff]  }
 0x2c2   : > { %4955 = vmatprep.subr.bf16.mxu1 %v6386_v30  ;;  %v6449_v30 = vld [vmem:[%s7658_s7 + $0xc4c] ss:$16 sps:$4 sm:$0xff]  }
 0x2c3   : > { %4915 = vmatpush2.bf16.msra.mxu0 %v6381_v4  ;;  %v6452_v4 = vld [vmem:[%s7658_s7 + $0xe4c] ss:$16 sps:$4 sm:$0xff]  }
 0x2c4   : > { %4916 = vmatprep.subr.bf16.mxu0 %v6389_v6  ;;  %v6450_v6 = vld [vmem:[%s7658_s7 + $0xe48] ss:$16 sps:$4 sm:$0xff]  }
 0x2c5   : > { %4956 = vmatpush2.bf16.msra.mxu1 %v6384_v5  ;;  %v6447_v5 = vld [vmem:[%s7658_s7 + $0xc48] ss:$16 sps:$4 sm:$0xff]  }
 0x2c6   : > { %4957 = vmatprep.subr.bf16.mxu1 %v6392_v9  ;;  %v6455_v9 = vld [vmem:[%s7658_s7 + $0xc2c] ss:$16 sps:$4 sm:$0xff]  }
 0x2c7   : > { %4917 = vmatpush2.bf16.msra.mxu0 %v6387_v18  ;;  %v6458_v18 = vld [vmem:[%s7658_s7 + $0xe2c] ss:$16 sps:$4 sm:$0xff]  }
 0x2c8   : > { %4918 = vmatprep.subr.bf16.mxu0 %v6395_v37  ;;  %v6456_v37 = vld [vmem:[%s7658_s7 + $0xe28] ss:$16 sps:$4 sm:$0xff]  }
 0x2c9   : > { %4958 = vmatpush2.bf16.msra.mxu1 %v6390_v19  ;;  %v6453_v19 = vld [vmem:[%s7658_s7 + $0xc28] ss:$16 sps:$4 sm:$0xff]  }
 0x2ca   : > { %4959 = vmatprep.subr.bf16.mxu1 %v6398_v10  ;;  %v6461_v10 = vld [vmem:[%s7658_s7 + $0xc0c] ss:$16 sps:$4 sm:$0xff]  }
 0x2cb   : > { %4919 = vmatpush2.bf16.msra.mxu0 %v6393_v11  ;;  %v6464_v11 = vld [vmem:[%s7658_s7 + $0xe0c] ss:$16 sps:$4 sm:$0xff]  }
 0x2cc   : > { %4920 = vmatprep.subr.bf16.mxu0 %v6401_v15  ;;  %v6462_v15 = vld [vmem:[%s7658_s7 + $0xe08] ss:$16 sps:$4 sm:$0xff]  }
 0x2cd   : > { %4960 = vmatpush2.bf16.msra.mxu1 %v6396_v14  ;;  %v6459_v14 = vld [vmem:[%s7658_s7 + $0xc08] ss:$16 sps:$4 sm:$0xff]  }
 0x2ce   : > { %4961 = vmatprep.subr.bf16.mxu1 %v6404_v20  ;;  %v6467_v20 = vld [vmem:[%s7658_s7 + $0xdec] ss:$16 sps:$4 sm:$0xff]  }
 0x2cf   : > { %4921 = vmatpush2.bf16.msra.mxu0 %v6399_v21  ;;  %v6470_v21 = vld [vmem:[%s7658_s7 + $0xfec] ss:$16 sps:$4 sm:$0xff]  }
 0x2d0   : > { %4922 = vmatprep.subr.bf16.mxu0 %v6407_v27  ;;  %v6468_v27 = vld [vmem:[%s7658_s7 + $0xfe8] ss:$16 sps:$4 sm:$0xff]  }
 0x2d1   : > { %4962 = vmatpush2.bf16.msra.mxu1 %v6402_v26  ;;  %v6465_v26 = vld [vmem:[%s7658_s7 + $0xde8] ss:$16 sps:$4 sm:$0xff]  }
 0x2d2   : > { %4963 = vmatprep.subr.bf16.mxu1 %v6410_v24  ;;  %v6473_v24 = vld [vmem:[%s7658_s7 + $0xdcc] ss:$16 sps:$4 sm:$0xff]  }
 0x2d3   : > { %4923 = vmatpush2.bf16.msra.mxu0 %v6405_v25  ;;  %v6476_v25 = vld [vmem:[%s7658_s7 + $0xfcc] ss:$16 sps:$4 sm:$0xff]  }
 0x2d4   : > { %4924 = vmatprep.subr.bf16.mxu0 %v6413_v29  ;;  %v6474_v29 = vld [vmem:[%s7658_s7 + $0xfc8] ss:$16 sps:$4 sm:$0xff]  }
 0x2d5   : > { %4964 = vmatpush2.bf16.msra.mxu1 %v6408_v28  ;;  %v6471_v28 = vld [vmem:[%s7658_s7 + $0xdc8] ss:$16 sps:$4 sm:$0xff]  }
 0x2d6   : > { %4965 = vmatprep.subr.bf16.mxu1 %v6416_v31  ;;  %v6479_v31 = vld [vmem:[%s7658_s7 + $0xdac] ss:$16 sps:$4 sm:$0xff]  }
 0x2d7   : > { %4925 = vmatpush2.bf16.msra.mxu0 %v6411_v34  ;;  %v6482_v34 = vld [vmem:[%s7658_s7 + $0xfac] ss:$16 sps:$4 sm:$0xff]  }
 0x2d8   : > { %4976 = vmatprep.subr.bf16.mxu0 %v6419_v32  ;;  %v6480_v32 = vld [vmem:[%s7658_s7 + $0xfa8] ss:$16 sps:$4 sm:$0xff]  }
 0x2d9   : > { %4966 = vmatpush2.bf16.msra.mxu1 %v6414_v35  ;;  %v6477_v35 = vld [vmem:[%s7658_s7 + $0xda8] ss:$16 sps:$4 sm:$0xff]  }
 0x2da   : > { %5017 = vmatprep.subr.bf16.mxu1 %v6422_v33  ;;  %v4682_v42 = vpop.f32.mrf.mxu0  ;;  %4927 = vmatmul.mubr.bf16.vlgmr.msra.gmra.mxu0 %v7911_v43  ;;  %v6485_v33 = vld [vmem:[%s7658_s7 + $0xd8c] ss:$16 sps:$4 sm:$0xff]  }
 0x2db   : > { %v4683_v16 = vadd.f32 %v4682_v42, %v4642_v3  ;;  %4977 = vmatpush1.bf16.msra.mxu0 %v6417_v39  ;;  %5008 = vmatprep.mubr.bf16.mxu0 %v7924_v50  ;;  %v6432_v50 = vld [vmem:[%s7658_s7 + $0xea8] ss:$16 sps:$4 sm:$0xff]   ;;  %v6497_v42 = vld [vmem:[%s7658_s7 + $0xd4c] ss:$16 sps:$4 sm:$0xff]  }
 0x2dc   : > { %v4723_v0 = vpop.f32.mrf.mxu1  ;;  %4968 = vmatmul.mubr.bf16.vlgmr.msra.gmra.mxu1 %v7913_v44  ;;  %v4684_v46 = vpop.f32.mrf.mxu0  ;;  %4978 = vmatprep.subr.bf16.mxu0 %v6425_v41  ;;  %v6486_v39 = vld [vmem:[%s7658_s7 + $0xf88] ss:$16 sps:$4 sm:$0xff]   ;;  %v6494_v41 = vld [vmem:[%s7658_s7 + $0xf6c] ss:$16 sps:$4 sm:$0xff]  }
 0x2dd   : > { %5018 = vmatpush1.bf16.msra.mxu1 %v6420_v40  ;;  %v4724_v49 = vadd.f32 %v4723_v0, %v4683_v16  ;;  %v4685_v43 = vadd.f32 %v4684_v46, %v4644_v1  ;;  %5049 = vmatprep.mubr.bf16.mxu1 %v7926_v51  ;;  %v6491_v40 = vld [vmem:[%s7658_s7 + $0xd6c] ss:$16 sps:$4 sm:$0xff]   ;;  %v6492_v3 = vld [vmem:[%s7658_s7 + $0xf68] ss:$16 sps:$4 sm:$0xff]  }
 0x2de   : > { %v4725_v47 = vpop.f32.mrf.mxu1  ;;  %5019 = vmatprep.subr.bf16.mxu1 %v6428_v2  ;;  %v4686_v44 = vpop.f32.mrf.mxu0  ;;  %v6489_v2 = vld [vmem:[%s7658_s7 + $0xd68] ss:$16 sps:$4 sm:$0xff]   ;;  %v6500_v0 = vld [vmem:[%s7658_s7 + $0xf4c] ss:$16 sps:$4 sm:$0xff]  }
 0x2df   : > { %v5058_v52 = vmax.f32 %v4724_v49, 0.0  ;;  %v4726_v53 = vadd.f32 %v4725_v47, %v4685_v43  ;;  %4979 = vmatpush1.bf16.msra.mxu0 %v6423_v22  ;;  %v6495_v1 = vld [vmem:[%s7658_s7 + $0xd48] ss:$16 sps:$4 sm:$0xff]   ;;  %v6503_v22 = vld [vmem:[%s7658_s7 + $0xd2c] ss:$16 sps:$4 sm:$0xff]   ;;  %v1832_v44 = vsub.s32 2, %v7996_v58 }
 0x2e0   : > { %v4727_v23 = vpop.f32.mrf.mxu1  ;;  %v4687_v55 = vpop.f32.mrf.mxu0  ;;  %4980 = vmatprep.subr.bf16.mxu0 %v6431_v17  ;;  %v6498_v16 = vld [vmem:[%s7658_s7 + $0xf48] ss:$16 sps:$4 sm:$0xff]   ;;  %v6509_v17 = vld [vmem:[%s7658_s7 + $0xd0c] ss:$16 sps:$4 sm:$0xff]  }
 0x2e1   : > { %5020 = vmatpush1.bf16.msra.mxu1 %v6426_v45  ;;  %5062 = vst [vmem:[%s8260_s28] sm:$0xff] %v5058_v52  ;;  %v5059_v59 = vmax.f32 %v4726_v53, 0.0  ;;  %v6506_v45 = vld [vmem:[%s7658_s7 + $0xf2c] ss:$16 sps:$4 sm:$0xff]   ;;  %v6501_v46 = vld [vmem:[%s7658_s7 + $0xd28] ss:$16 sps:$4 sm:$0xff]   ;;  %v1836_v23 = vsub.s32 3, %v7996_v58 }
 0x2e2   : > { %v4728_v51 = vpop.f32.mrf.mxu1  ;;  %5021 = vmatprep.subr.bf16.mxu1 %v6434_v48  ;;  %v6504_v47 = vld [vmem:[%s7658_s7 + $0xf28] ss:$16 sps:$4 sm:$0xff]   ;;  %v6512_v48 = vld [vmem:[%s7658_s7 + $0xf0c] ss:$16 sps:$4 sm:$0xff]   ;;  %v6513_v52 = vld [vmem:[%s7994_s19] sm:$0xf] }
 0x2e3   : > { %5063 = vst [vmem:[%s8260_s28 + $0x8] sm:$0xff] %v5059_v59  ;;  %4981 = vmatpush1.bf16.msra.mxu0 %v6429_v54  ;;  %v6507_v49 = vld [vmem:[%s7658_s7 + $0xd08] ss:$16 sps:$4 sm:$0xff]   ;;  %v1833_v53 = vrot.slane %v6513_v52, %v1832_v44  ;;  %v1837_v54 = vrot.slane %v6513_v52, %v1836_v23 }
 0x2e4   : > { %4982 = vmatprep.subr.bf16.mxu0 %v6437_v56  ;;  %v6510_v43 = vld [vmem:[%s7658_s7 + $0xf08] ss:$16 sps:$4 sm:$0xff]  }
 0x2e5   : > { %5022 = vmatpush1.bf16.msra.mxu1 %v6432_v50 }
 0x2e6   : > { %5023 = vmatprep.subr.bf16.mxu1 %v6440_v57 }
 0x2e7   : > { %4983 = vmatpush1.bf16.msra.mxu0 %v6435_v60 }
 0x2e8   : > { %4984 = vmatprep.subr.bf16.mxu0 %v6443_v62 }
 0x2e9   : > { %5024 = vmatpush1.bf16.msra.mxu1 %v6438_v61 }
 0x2ea   : > { %5025 = vmatprep.subr.bf16.mxu1 %v6446_v63 }
 0x2eb   : > { %4985 = vmatpush1.bf16.msra.mxu0 %v6441_v12 }
 0x2ec   : > { %4986 = vmatprep.subr.bf16.mxu0 %v6449_v30 }
 0x2ed   : > { %5026 = vmatpush1.bf16.msra.mxu1 %v6444_v13 }
 0x2ee   : > { %5027 = vmatprep.subr.bf16.mxu1 %v6452_v4 }
 0x2ef   : > { %4987 = vmatpush1.bf16.msra.mxu0 %v6447_v5 }
 0x2f0   : > { %4988 = vmatprep.subr.bf16.mxu0 %v6455_v9 }
 0x2f1   : > { %5028 = vmatpush1.bf16.msra.mxu1 %v6450_v6 }
 0x2f2   : > { %5029 = vmatprep.subr.bf16.mxu1 %v6458_v18 }
 0x2f3   : > { %4989 = vmatpush1.bf16.msra.mxu0 %v6453_v19 }
 0x2f4   : > { %4990 = vmatprep.subr.bf16.mxu0 %v6461_v10 }
 0x2f5   : > { %5030 = vmatpush1.bf16.msra.mxu1 %v6456_v37 }
 0x2f6   : > { %5031 = vmatprep.subr.bf16.mxu1 %v6464_v11 }
 0x2f7   : > { %4991 = vmatpush1.bf16.msra.mxu0 %v6459_v14 }
 0x2f8   : > { %4992 = vmatprep.subr.bf16.mxu0 %v6467_v20 }
 0x2f9   : > { %5032 = vmatpush1.bf16.msra.mxu1 %v6462_v15 }
 0x2fa   : > { %5033 = vmatprep.subr.bf16.mxu1 %v6470_v21 }
 0x2fb   : > { %4993 = vmatpush2.bf16.msra.mxu0 %v6465_v26 }
 0x2fc   : > { %4994 = vmatprep.subr.bf16.mxu0 %v6473_v24 }
 0x2fd   : > { %5034 = vmatpush2.bf16.msra.mxu1 %v6468_v27 }
 0x2fe   : > { %5035 = vmatprep.subr.bf16.mxu1 %v6476_v25 }
 0x2ff   : > { %4995 = vmatpush2.bf16.msra.mxu0 %v6471_v28 }
 0x300   : > { %4996 = vmatprep.subr.bf16.mxu0 %v6479_v31 }
 0x301   : > { %5036 = vmatpush2.bf16.msra.mxu1 %v6474_v29 }
 0x302   : > { %5037 = vmatprep.subr.bf16.mxu1 %v6482_v34 }
 0x303   : > { %4997 = vmatpush2.bf16.msra.mxu0 %v6477_v35 }
 0x304   : > { %4998 = vmatprep.subr.bf16.mxu0 %v6485_v33 }
 0x305   : > { %5038 = vmatpush2.bf16.msra.mxu1 %v6480_v32 }
 0x306   : > { %5039 = vmatprep.subr.bf16.mxu1 %v6488_v36 }
 0x307   : > { %4999 = vmatpush2.bf16.msra.mxu0 %v6483_v38 }
 0x308   : > { %5000 = vmatprep.subr.bf16.mxu0 %v6491_v40 }
 0x309   : > { %5040 = vmatpush2.bf16.msra.mxu1 %v6486_v39 }
 0x30a   : > { %5041 = vmatprep.subr.bf16.mxu1 %v6494_v41 }
 0x30b   : > { %5001 = vmatpush2.bf16.msra.mxu0 %v6489_v2 }
 0x30c   : > { %5002 = vmatprep.subr.bf16.mxu0 %v6497_v42 }
 0x30d   : > { %5042 = vmatpush2.bf16.msra.mxu1 %v6492_v3 }
 0x30e   : > { %5043 = vmatprep.subr.bf16.mxu1 %v6500_v0 }
 0x30f   : > { %5003 = vmatpush2.bf16.msra.mxu0 %v6495_v1 }
 0x310   : > { %5004 = vmatprep.subr.bf16.mxu0 %v6503_v22 }
 0x311   : > { %5044 = vmatpush2.bf16.msra.mxu1 %v6498_v16 }
 0x312   : > { %5045 = vmatprep.subr.bf16.mxu1 %v6506_v45 }
 0x313   : > { %5005 = vmatpush2.bf16.msra.mxu0 %v6501_v46 }
 0x314   : > { %5006 = vmatprep.subr.bf16.mxu0 %v6509_v17 }
 0x315   : > { %5046 = vmatpush2.bf16.msra.mxu1 %v6504_v47 }
 0x316   : > { %5047 = vmatprep.subr.bf16.mxu1 %v6512_v48 }
 0x317   : > { %5007 = vmatpush2.bf16.msra.mxu0 %v6507_v49 }
 0x319   : > { %5048 = vmatpush2.bf16.msra.mxu1 %v6510_v43 }
 0x31a   : > { %v4764_v50 = vpop.f32.mrf.mxu0  ;;  %5009 = vmatmul.mubr.bf16.vlgmr.msra.gmra.mxu0 %v8012_v7 }
 0x31b   : > { %v4765_v51 = vadd.f32 %v4764_v50, %v1833_v53 }
 0x31c   : > { %v4805_v55 = vpop.f32.mrf.mxu1  ;;  %5050 = vmatmul.mubr.bf16.vlgmr.msra.gmra.mxu1 %v8014_v8  ;;  %v4766_v56 = vpop.f32.mrf.mxu0 }
 0x31d   : > { %v4806_v59 = vadd.f32 %v4805_v55, %v4765_v51  ;;  %v4767_v60 = vadd.f32 %v4766_v56, %v1837_v54 }
 0x31e   : > { %v4807_v57 = vpop.f32.mrf.mxu1  ;;  %v4768_v61 = vpop.f32.mrf.mxu0 }
 0x31f   : > { %v4808_v63 = vadd.f32 %v4807_v57, %v4767_v60 }
 0x320   : > { %v4809_v62 = vpop.f32.mrf.mxu1  ;;  %v4769_v58 = vpop.f32.mrf.mxu0 }
 0x322   : > { %v4810_v12 = vpop.f32.mrf.mxu1 }
 0x35a   : > { %v4846_v13 = vpop.f32.mrf.mxu0 }
 0x35b   : > { %v4847_v4 = vadd.f32 %v4846_v13, %v4806_v59 }
 0x35c   : > { %v4887_v30 = vpop.f32.mrf.mxu1  ;;  %v4848_v5 = vpop.f32.mrf.mxu0 }
 0x35d   : > { %v4888_v9 = vadd.f32 %v4887_v30, %v4847_v4  ;;  %v4849_v18 = vadd.f32 %v4848_v5, %v4808_v63 }
 0x35e   : > { %v4889_v6 = vpop.f32.mrf.mxu1  ;;  %v4850_v7 = vpop.f32.mrf.mxu0 }
 0x35f   : > { %v4890_v8 = vadd.f32 %v4889_v6, %v4849_v18 }
 0x360   : > { %v4891_v19 = vpop.f32.mrf.mxu1  ;;  %v4851_v37 = vpop.f32.mrf.mxu0 }
 0x362   : > { %v4892_v10 = vpop.f32.mrf.mxu1 }
 0x39a   : > { %v4928_v11 = vpop.f32.mrf.mxu0 }
 0x39b   : > { %v4929_v25 = vadd.f32 %v4928_v11, %v4888_v9 }
 0x39c   : > { %v4969_v14 = vpop.f32.mrf.mxu1  ;;  %v4930_v15 = vpop.f32.mrf.mxu0 }
 0x39d   : > { %v4931_v28 = vadd.f32 %v4930_v15, %v4890_v8  ;;  %v4970_v29 = vadd.f32 %v4969_v14, %v4929_v25 }
 0x39e   : > { %v4971_v20 = vpop.f32.mrf.mxu1  ;;  %v4932_v21 = vpop.f32.mrf.mxu0 }
 0x39f   : > { %v4972_v35 = vadd.f32 %v4971_v20, %v4931_v28 }
 0x3a0   : > { %v4973_v26 = vpop.f32.mrf.mxu1  ;;  %v4933_v27 = vpop.f32.mrf.mxu0 }
 0x3a2   : > { %v4974_v24 = vpop.f32.mrf.mxu1 }
 0x3da   : > { %v5010_v31 = vpop.f32.mrf.mxu0 }
 0x3db   : > { %v5011_v32 = vadd.f32 %v5010_v31, %v4970_v29 }
 0x3dc   : > { %v5051_v34 = vpop.f32.mrf.mxu1  ;;  %v5012_v33 = vpop.f32.mrf.mxu0 }
 0x3dd   : > { %v5052_v38 = vadd.f32 %v5051_v34, %v5011_v32  ;;  %v5013_v39 = vadd.f32 %v5012_v33, %v4972_v35 }
 0x3de   : > { %v5053_v36 = vpop.f32.mrf.mxu1  ;;  %v5014_v40 = vpop.f32.mrf.mxu0 }
 0x3df   : > { %v5060_v2 = vmax.f32 %v5052_v38, 0.0  ;;  %v5054_v3 = vadd.f32 %v5053_v36, %v5013_v39 }
 0x3e0   : > { %v5055_v41 = vpop.f32.mrf.mxu1  ;;  %v5015_v42 = vpop.f32.mrf.mxu0 }
 0x3e1   : > { %5064 = vst [vmem:[%s8260_s28 + $0x10] sm:$0xff] %v5060_v2  ;;  %v5061_v1 = vmax.f32 %v5054_v3, 0.0 }
 0x3e2   : > { %v5056_v0 = vpop.f32.mrf.mxu1 }
 0x3e3   : > { %5065 = vst [vmem:[%s8260_s28 + $0x18] sm:$0xff] %v5061_v1 }
 0x3e4 PF: > { %s13_s16 = sadd.s32 1, %s6552_s16   ;;  %s8344_s12 = smov %s6540_s13 }
 0x3e5   : > { %p10_p10 = scmp.ge.s32.totalorder %s13_s16, 4   ;;  %s8345_s13 = smov %s6609_s20 }
 0x3e6   : > { %s8346_s14 = smov %s6548_s15  ;;  %s8347_s15 = smov %s8349_s17 }
 0x3e7   :  { %12 = sbr.rel (!%p10_p10) target bundleno = 3 (0x3), region = 96 }

// kernel: encoder2_forward.10
= control target key start
LH: loop header
LB: loop body
LE: loop exit
PB: predicated region body
PF: predicated region fallthrough
CT: control target
= control target key end

     0   :  { %s1751_s1 = inlined_call_operand.vmem [shape: bf16[512,512], index: 1, kind: input, shape index: {}]   ;;  %s1752_s0 = inlined_call_operand.vmem [shape: f32[8,512], index: 0, kind: input, shape index: {}]   ;;  %s1753_s2 = inlined_call_operand.vmem [shape: f32[1,512], index: 2, kind: input, shape index: {}]   ;;  %s1754_s3 = inlined_call_operand.vmem [shape: f32[8,512], index: 3, kind: output, shape index: {}]  }
   0x1   :  { %v1116_v0 = vld [vmem:[%s1751_s1 + $0xe4] ss:$16 sps:$4 sm:$0xff]   ;;  %v1120_v2 = vld [vmem:[%s1751_s1 + $0xe0] ss:$16 sps:$4 sm:$0xff]   ;;  %v15_v46 = vld [vmem:[%s1752_s0 + $0x8] sm:$0xff] }
   0x2   :  { %v1118_v1 = vld [vmem:[%s1751_s1 + $0x2e4] ss:$16 sps:$4 sm:$0xff]   ;;  %812 = vmatprep.subr.bf16.mxu0 %v1116_v0  ;;  %v1121_v3 = vld [vmem:[%s1751_s1 + $0x2e0] ss:$16 sps:$4 sm:$0xff]   ;;  %v1475_v49 = vpack.c.bf16 %v15_v46, %v15_v46  ;;  %v17_v50 = vld [vmem:[%s1752_s0 + $0x18] sm:$0xff] }
   0x3   :  { %853 = vmatprep.subr.bf16.mxu1 %v1118_v1  ;;  %v1122_v4 = vld [vmem:[%s1751_s1 + $0xc4] ss:$16 sps:$4 sm:$0xff]   ;;  %813 = vmatpush1.bf16.msra.mxu0 %v1120_v2  ;;  %v1126_v6 = vld [vmem:[%s1751_s1 + $0xc0] ss:$16 sps:$4 sm:$0xff]   ;;  %v21_v52 = vpack.c.bf16 %v17_v50, %v17_v50  ;;  %v1266_v46 = vld [vmem:[%s1751_s1 + $0x1c8] ss:$16 sps:$4 sm:$0xff]  }
   0x4   :  { %854 = vmatpush1.bf16.msra.mxu1 %v1121_v3  ;;  %v1124_v5 = vld [vmem:[%s1751_s1 + $0x2c4] ss:$16 sps:$4 sm:$0xff]   ;;  %814 = vmatprep.subr.bf16.mxu0 %v1122_v4  ;;  %v1127_v7 = vld [vmem:[%s1751_s1 + $0x2c0] ss:$16 sps:$4 sm:$0xff]   ;;  %v1272_v50 = vld [vmem:[%s1751_s1 + $0x1a8] ss:$16 sps:$4 sm:$0xff]  }
   0x5   :  { %855 = vmatprep.subr.bf16.mxu1 %v1124_v5  ;;  %v1128_v8 = vld [vmem:[%s1751_s1 + $0xa4] ss:$16 sps:$4 sm:$0xff]   ;;  %v1132_v10 = vld [vmem:[%s1751_s1 + $0xa0] ss:$16 sps:$4 sm:$0xff]   ;;  %844 = vmatprep.mubr.bf16.mxu0 %v1475_v49 }
   0x6   :  { %v1130_v9 = vld [vmem:[%s1751_s1 + $0x2a4] ss:$16 sps:$4 sm:$0xff]   ;;  %v1133_v11 = vld [vmem:[%s1751_s1 + $0x2a0] ss:$16 sps:$4 sm:$0xff]   ;;  %885 = vmatprep.mubr.bf16.mxu1 %v21_v52 }
   0x7   :  { %815 = vmatpush1.bf16.msra.mxu0 %v1126_v6  ;;  %v1134_v12 = vld [vmem:[%s1751_s1 + $0x84] ss:$16 sps:$4 sm:$0xff]   ;;  %v1138_v14 = vld [vmem:[%s1751_s1 + $0x80] ss:$16 sps:$4 sm:$0xff]   ;;  %v1214_v6 = vld [vmem:[%s1751_s1 + $0xec] ss:$16 sps:$4 sm:$0xff]  }
   0x8   :  { %856 = vmatpush1.bf16.msra.mxu1 %v1127_v7  ;;  %816 = vmatprep.subr.bf16.mxu0 %v1128_v8  ;;  %v1136_v13 = vld [vmem:[%s1751_s1 + $0x284] ss:$16 sps:$4 sm:$0xff]   ;;  %v1139_v15 = vld [vmem:[%s1751_s1 + $0x280] ss:$16 sps:$4 sm:$0xff]   ;;  %v1217_v7 = vld [vmem:[%s1751_s1 + $0x2ec] ss:$16 sps:$4 sm:$0xff]  }
   0x9   :  { %857 = vmatprep.subr.bf16.mxu1 %v1130_v9  ;;  %v1140_v16 = vld [vmem:[%s1751_s1 + $0x64] ss:$16 sps:$4 sm:$0xff]   ;;  %v1144_v18 = vld [vmem:[%s1751_s1 + $0x60] ss:$16 sps:$4 sm:$0xff]  }
   0xa   :  { %v1142_v17 = vld [vmem:[%s1751_s1 + $0x264] ss:$16 sps:$4 sm:$0xff]   ;;  %v1145_v19 = vld [vmem:[%s1751_s1 + $0x260] ss:$16 sps:$4 sm:$0xff]  }
   0xb   :  { %817 = vmatpush1.bf16.msra.mxu0 %v1132_v10  ;;  %v1146_v20 = vld [vmem:[%s1751_s1 + $0x44] ss:$16 sps:$4 sm:$0xff]   ;;  %v1150_v22 = vld [vmem:[%s1751_s1 + $0x40] ss:$16 sps:$4 sm:$0xff]   ;;  %v1212_v10 = vld [vmem:[%s1751_s1 + $0xe8] ss:$16 sps:$4 sm:$0xff]  }
   0xc   :  { %858 = vmatpush1.bf16.msra.mxu1 %v1133_v11  ;;  %818 = vmatprep.subr.bf16.mxu0 %v1134_v12  ;;  %v1148_v21 = vld [vmem:[%s1751_s1 + $0x244] ss:$16 sps:$4 sm:$0xff]   ;;  %v1151_v23 = vld [vmem:[%s1751_s1 + $0x240] ss:$16 sps:$4 sm:$0xff]   ;;  %v1215_v11 = vld [vmem:[%s1751_s1 + $0x2e8] ss:$16 sps:$4 sm:$0xff]  }
   0xd   :  { %859 = vmatprep.subr.bf16.mxu1 %v1136_v13  ;;  %v1152_v24 = vld [vmem:[%s1751_s1 + $0x24] ss:$16 sps:$4 sm:$0xff]   ;;  %v1156_v26 = vld [vmem:[%s1751_s1 + $0x20] ss:$16 sps:$4 sm:$0xff]   ;;  %v1220_v12 = vld [vmem:[%s1751_s1 + $0xcc] ss:$16 sps:$4 sm:$0xff]  }
   0xe   :  { %v1154_v25 = vld [vmem:[%s1751_s1 + $0x224] ss:$16 sps:$4 sm:$0xff]   ;;  %v1157_v27 = vld [vmem:[%s1751_s1 + $0x220] ss:$16 sps:$4 sm:$0xff]   ;;  %v1223_v13 = vld [vmem:[%s1751_s1 + $0x2cc] ss:$16 sps:$4 sm:$0xff]  }
   0xf   :  { %819 = vmatpush1.bf16.msra.mxu0 %v1138_v14  ;;  %v1158_v28 = vld [vmem:[%s1751_s1 + $0x4] ss:$16 sps:$4 sm:$0xff]   ;;  %v1162_v30 = vld [vmem:[%s1751_s1] ss:$16 sps:$4 sm:$0xff]   ;;  %v1218_v14 = vld [vmem:[%s1751_s1 + $0xc8] ss:$16 sps:$4 sm:$0xff]  }
  0x10   :  { %860 = vmatpush1.bf16.msra.mxu1 %v1139_v15  ;;  %820 = vmatprep.subr.bf16.mxu0 %v1140_v16  ;;  %v1160_v29 = vld [vmem:[%s1751_s1 + $0x204] ss:$16 sps:$4 sm:$0xff]   ;;  %v1163_v31 = vld [vmem:[%s1751_s1 + $0x200] ss:$16 sps:$4 sm:$0xff]   ;;  %v1221_v15 = vld [vmem:[%s1751_s1 + $0x2c8] ss:$16 sps:$4 sm:$0xff]  }
  0x11   :  { %861 = vmatprep.subr.bf16.mxu1 %v1142_v17  ;;  %v1164_v32 = vld [vmem:[%s1751_s1 + $0x1e4] ss:$16 sps:$4 sm:$0xff]   ;;  %v1168_v34 = vld [vmem:[%s1751_s1 + $0x1e0] ss:$16 sps:$4 sm:$0xff]   ;;  %v1226_v16 = vld [vmem:[%s1751_s1 + $0xac] ss:$16 sps:$4 sm:$0xff]  }
  0x12   :  { %v1166_v33 = vld [vmem:[%s1751_s1 + $0x3e4] ss:$16 sps:$4 sm:$0xff]   ;;  %v1169_v35 = vld [vmem:[%s1751_s1 + $0x3e0] ss:$16 sps:$4 sm:$0xff]   ;;  %v1229_v17 = vld [vmem:[%s1751_s1 + $0x2ac] ss:$16 sps:$4 sm:$0xff]  }
  0x13   :  { %821 = vmatpush1.bf16.msra.mxu0 %v1144_v18  ;;  %v1170_v36 = vld [vmem:[%s1751_s1 + $0x1c4] ss:$16 sps:$4 sm:$0xff]   ;;  %v1174_v38 = vld [vmem:[%s1751_s1 + $0x1c0] ss:$16 sps:$4 sm:$0xff]   ;;  %v1224_v18 = vld [vmem:[%s1751_s1 + $0xa8] ss:$16 sps:$4 sm:$0xff]  }
  0x14   :  { %862 = vmatpush1.bf16.msra.mxu1 %v1145_v19  ;;  %822 = vmatprep.subr.bf16.mxu0 %v1146_v20  ;;  %v1172_v37 = vld [vmem:[%s1751_s1 + $0x3c4] ss:$16 sps:$4 sm:$0xff]   ;;  %v1175_v39 = vld [vmem:[%s1751_s1 + $0x3c0] ss:$16 sps:$4 sm:$0xff]   ;;  %v1227_v19 = vld [vmem:[%s1751_s1 + $0x2a8] ss:$16 sps:$4 sm:$0xff]  }
  0x15   :  { %863 = vmatprep.subr.bf16.mxu1 %v1148_v21  ;;  %v1176_v40 = vld [vmem:[%s1751_s1 + $0x1a4] ss:$16 sps:$4 sm:$0xff]   ;;  %v1180_v42 = vld [vmem:[%s1751_s1 + $0x1a0] ss:$16 sps:$4 sm:$0xff]   ;;  %v1232_v20 = vld [vmem:[%s1751_s1 + $0x8c] ss:$16 sps:$4 sm:$0xff]  }
  0x16   :  { %v1178_v41 = vld [vmem:[%s1751_s1 + $0x3a4] ss:$16 sps:$4 sm:$0xff]   ;;  %v1181_v43 = vld [vmem:[%s1751_s1 + $0x3a0] ss:$16 sps:$4 sm:$0xff]   ;;  %v1235_v21 = vld [vmem:[%s1751_s1 + $0x28c] ss:$16 sps:$4 sm:$0xff]  }
  0x17   :  { %823 = vmatpush1.bf16.msra.mxu0 %v1150_v22  ;;  %v1182_v44 = vld [vmem:[%s1751_s1 + $0x184] ss:$16 sps:$4 sm:$0xff]   ;;  %v1186_v47 = vld [vmem:[%s1751_s1 + $0x180] ss:$16 sps:$4 sm:$0xff]   ;;  %v1230_v22 = vld [vmem:[%s1751_s1 + $0x88] ss:$16 sps:$4 sm:$0xff]  }
  0x18   :  { %864 = vmatpush1.bf16.msra.mxu1 %v1151_v23  ;;  %824 = vmatprep.subr.bf16.mxu0 %v1152_v24  ;;  %v1184_v45 = vld [vmem:[%s1751_s1 + $0x384] ss:$16 sps:$4 sm:$0xff]   ;;  %v1187_v48 = vld [vmem:[%s1751_s1 + $0x380] ss:$16 sps:$4 sm:$0xff]   ;;  %v1233_v23 = vld [vmem:[%s1751_s1 + $0x288] ss:$16 sps:$4 sm:$0xff]  }
  0x19   :  { %865 = vmatprep.subr.bf16.mxu1 %v1154_v25  ;;  %v1188_v51 = vld [vmem:[%s1751_s1 + $0x164] ss:$16 sps:$4 sm:$0xff]   ;;  %v1192_v54 = vld [vmem:[%s1751_s1 + $0x160] ss:$16 sps:$4 sm:$0xff]   ;;  %v1238_v24 = vld [vmem:[%s1751_s1 + $0x6c] ss:$16 sps:$4 sm:$0xff]  }
  0x1a   :  { %v1190_v53 = vld [vmem:[%s1751_s1 + $0x364] ss:$16 sps:$4 sm:$0xff]   ;;  %v1193_v55 = vld [vmem:[%s1751_s1 + $0x360] ss:$16 sps:$4 sm:$0xff]   ;;  %v1241_v25 = vld [vmem:[%s1751_s1 + $0x26c] ss:$16 sps:$4 sm:$0xff]  }
  0x1b   :  { %825 = vmatpush1.bf16.msra.mxu0 %v1156_v26  ;;  %v1194_v56 = vld [vmem:[%s1751_s1 + $0x144] ss:$16 sps:$4 sm:$0xff]   ;;  %v1198_v58 = vld [vmem:[%s1751_s1 + $0x140] ss:$16 sps:$4 sm:$0xff]   ;;  %v1236_v26 = vld [vmem:[%s1751_s1 + $0x68] ss:$16 sps:$4 sm:$0xff]  }
  0x1c   :  { %866 = vmatpush1.bf16.msra.mxu1 %v1157_v27  ;;  %826 = vmatprep.subr.bf16.mxu0 %v1158_v28  ;;  %v1196_v57 = vld [vmem:[%s1751_s1 + $0x344] ss:$16 sps:$4 sm:$0xff]   ;;  %v1199_v59 = vld [vmem:[%s1751_s1 + $0x340] ss:$16 sps:$4 sm:$0xff]   ;;  %v1239_v27 = vld [vmem:[%s1751_s1 + $0x268] ss:$16 sps:$4 sm:$0xff]  }
  0x1d   :  { %867 = vmatprep.subr.bf16.mxu1 %v1160_v29  ;;  %v1200_v60 = vld [vmem:[%s1751_s1 + $0x124] ss:$16 sps:$4 sm:$0xff]   ;;  %v1204_v62 = vld [vmem:[%s1751_s1 + $0x120] ss:$16 sps:$4 sm:$0xff]   ;;  %v1244_v28 = vld [vmem:[%s1751_s1 + $0x4c] ss:$16 sps:$4 sm:$0xff]  }
  0x1e   :  { %v1202_v61 = vld [vmem:[%s1751_s1 + $0x324] ss:$16 sps:$4 sm:$0xff]   ;;  %v1205_v63 = vld [vmem:[%s1751_s1 + $0x320] ss:$16 sps:$4 sm:$0xff]   ;;  %v1247_v29 = vld [vmem:[%s1751_s1 + $0x24c] ss:$16 sps:$4 sm:$0xff]  }
  0x1f   :  { %827 = vmatpush1.bf16.msra.mxu0 %v1162_v30  ;;  %v1206_v0 = vld [vmem:[%s1751_s1 + $0x104] ss:$16 sps:$4 sm:$0xff]   ;;  %v1210_v2 = vld [vmem:[%s1751_s1 + $0x100] ss:$16 sps:$4 sm:$0xff]   ;;  %v1242_v30 = vld [vmem:[%s1751_s1 + $0x48] ss:$16 sps:$4 sm:$0xff]  }
  0x20   :  { %868 = vmatpush1.bf16.msra.mxu1 %v1163_v31  ;;  %828 = vmatprep.subr.bf16.mxu0 %v1164_v32  ;;  %v1208_v1 = vld [vmem:[%s1751_s1 + $0x304] ss:$16 sps:$4 sm:$0xff]   ;;  %v1211_v3 = vld [vmem:[%s1751_s1 + $0x300] ss:$16 sps:$4 sm:$0xff]   ;;  %v1245_v31 = vld [vmem:[%s1751_s1 + $0x248] ss:$16 sps:$4 sm:$0xff]  }
  0x21   :  { %869 = vmatprep.subr.bf16.mxu1 %v1166_v33  ;;  %v14_v4 = vld [vmem:[%s1752_s0] sm:$0xff]  ;;  %v16_v5 = vld [vmem:[%s1752_s0 + $0x10] sm:$0xff]  ;;  %v1250_v32 = vld [vmem:[%s1751_s1 + $0x2c] ss:$16 sps:$4 sm:$0xff]  }
  0x22   :  { %v1541_v8 = vpack.c.bf16 %v14_v4, %v14_v4  ;;  %v1543_v9 = vpack.c.bf16 %v16_v5, %v16_v5  ;;  %v1253_v33 = vld [vmem:[%s1751_s1 + $0x22c] ss:$16 sps:$4 sm:$0xff]  }
  0x23   :  { %829 = vmatpush2.bf16.msra.mxu0 %v1168_v34  ;;  %v1248_v34 = vld [vmem:[%s1751_s1 + $0x28] ss:$16 sps:$4 sm:$0xff]   ;;  %v1304_v4 = vld [vmem:[%s1751_s1 + $0x10c] ss:$16 sps:$4 sm:$0xff]  }
  0x24   :  { %870 = vmatpush2.bf16.msra.mxu1 %v1169_v35  ;;  %830 = vmatprep.subr.bf16.mxu0 %v1170_v36  ;;  %v1251_v35 = vld [vmem:[%s1751_s1 + $0x228] ss:$16 sps:$4 sm:$0xff]   ;;  %v1256_v36 = vld [vmem:[%s1751_s1 + $0xc] ss:$16 sps:$4 sm:$0xff]  }
  0x25   :  { %871 = vmatprep.subr.bf16.mxu1 %v1172_v37  ;;  %v1259_v37 = vld [vmem:[%s1751_s1 + $0x20c] ss:$16 sps:$4 sm:$0xff]  }
  0x26   :  { %v1307_v5 = vld [vmem:[%s1751_s1 + $0x30c] ss:$16 sps:$4 sm:$0xff]  }
  0x27   :  { %831 = vmatpush2.bf16.msra.mxu0 %v1174_v38  ;;  %v1254_v38 = vld [vmem:[%s1751_s1 + $0x8] ss:$16 sps:$4 sm:$0xff]  }
  0x28   :  { %872 = vmatpush2.bf16.msra.mxu1 %v1175_v39  ;;  %832 = vmatprep.subr.bf16.mxu0 %v1176_v40  ;;  %v1257_v39 = vld [vmem:[%s1751_s1 + $0x208] ss:$16 sps:$4 sm:$0xff]   ;;  %v1262_v40 = vld [vmem:[%s1751_s1 + $0x1ec] ss:$16 sps:$4 sm:$0xff]  }
  0x29   :  { %873 = vmatprep.subr.bf16.mxu1 %v1178_v41  ;;  %v1265_v41 = vld [vmem:[%s1751_s1 + $0x3ec] ss:$16 sps:$4 sm:$0xff]  }
  0x2b   :  { %833 = vmatpush2.bf16.msra.mxu0 %v1180_v42  ;;  %v1260_v42 = vld [vmem:[%s1751_s1 + $0x1e8] ss:$16 sps:$4 sm:$0xff]  }
  0x2c   :  { %874 = vmatpush2.bf16.msra.mxu1 %v1181_v43  ;;  %834 = vmatprep.subr.bf16.mxu0 %v1182_v44  ;;  %v1263_v43 = vld [vmem:[%s1751_s1 + $0x3e8] ss:$16 sps:$4 sm:$0xff]   ;;  %v1268_v44 = vld [vmem:[%s1751_s1 + $0x1cc] ss:$16 sps:$4 sm:$0xff]  }
  0x2d   :  { %875 = vmatprep.subr.bf16.mxu1 %v1184_v45  ;;  %v1271_v45 = vld [vmem:[%s1751_s1 + $0x3cc] ss:$16 sps:$4 sm:$0xff]  }
  0x2f   :  { %835 = vmatpush2.bf16.msra.mxu0 %v1186_v47  ;;  %v1269_v47 = vld [vmem:[%s1751_s1 + $0x3c8] ss:$16 sps:$4 sm:$0xff]  }
  0x30   :  { %876 = vmatpush2.bf16.msra.mxu1 %v1187_v48  ;;  %836 = vmatprep.subr.bf16.mxu0 %v1188_v51  ;;  %v1274_v48 = vld [vmem:[%s1751_s1 + $0x1ac] ss:$16 sps:$4 sm:$0xff]   ;;  %v1275_v51 = vld [vmem:[%s1751_s1 + $0x3a8] ss:$16 sps:$4 sm:$0xff]  }
  0x31   :  { %877 = vmatprep.subr.bf16.mxu1 %v1190_v53  ;;  %v1283_v53 = vld [vmem:[%s1751_s1 + $0x38c] ss:$16 sps:$4 sm:$0xff]  }
  0x33   :  { %837 = vmatpush2.bf16.msra.mxu0 %v1192_v54  ;;  %v1278_v54 = vld [vmem:[%s1751_s1 + $0x188] ss:$16 sps:$4 sm:$0xff]  }
  0x34   :  { %878 = vmatpush2.bf16.msra.mxu1 %v1193_v55  ;;  %838 = vmatprep.subr.bf16.mxu0 %v1194_v56  ;;  %v1281_v55 = vld [vmem:[%s1751_s1 + $0x388] ss:$16 sps:$4 sm:$0xff]   ;;  %v1286_v56 = vld [vmem:[%s1751_s1 + $0x16c] ss:$16 sps:$4 sm:$0xff]  }
  0x35   :  { %879 = vmatprep.subr.bf16.mxu1 %v1196_v57  ;;  %v1289_v57 = vld [vmem:[%s1751_s1 + $0x36c] ss:$16 sps:$4 sm:$0xff]  }
  0x37   :  { %839 = vmatpush2.bf16.msra.mxu0 %v1198_v58  ;;  %v1284_v58 = vld [vmem:[%s1751_s1 + $0x168] ss:$16 sps:$4 sm:$0xff]  }
  0x38   :  { %880 = vmatpush2.bf16.msra.mxu1 %v1199_v59  ;;  %840 = vmatprep.subr.bf16.mxu0 %v1200_v60  ;;  %v1287_v59 = vld [vmem:[%s1751_s1 + $0x368] ss:$16 sps:$4 sm:$0xff]   ;;  %v1292_v60 = vld [vmem:[%s1751_s1 + $0x14c] ss:$16 sps:$4 sm:$0xff]  }
  0x39   :  { %881 = vmatprep.subr.bf16.mxu1 %v1202_v61  ;;  %v1295_v61 = vld [vmem:[%s1751_s1 + $0x34c] ss:$16 sps:$4 sm:$0xff]  }
  0x3b   :  { %841 = vmatpush2.bf16.msra.mxu0 %v1204_v62  ;;  %v1290_v62 = vld [vmem:[%s1751_s1 + $0x148] ss:$16 sps:$4 sm:$0xff]  }
  0x3c   :  { %882 = vmatpush2.bf16.msra.mxu1 %v1205_v63  ;;  %842 = vmatprep.subr.bf16.mxu0 %v1206_v0  ;;  %v1293_v63 = vld [vmem:[%s1751_s1 + $0x348] ss:$16 sps:$4 sm:$0xff]   ;;  %v1298_v0 = vld [vmem:[%s1751_s1 + $0x12c] ss:$16 sps:$4 sm:$0xff]  }
  0x3d   :  { %883 = vmatprep.subr.bf16.mxu1 %v1208_v1  ;;  %v1301_v1 = vld [vmem:[%s1751_s1 + $0x32c] ss:$16 sps:$4 sm:$0xff]  }
  0x3f   :  { %843 = vmatpush2.bf16.msra.mxu0 %v1210_v2  ;;  %v1296_v2 = vld [vmem:[%s1751_s1 + $0x128] ss:$16 sps:$4 sm:$0xff]  }
  0x40   :  { %884 = vmatpush2.bf16.msra.mxu1 %v1211_v3  ;;  %894 = vmatprep.subr.bf16.mxu0 %v1214_v6  ;;  %v1299_v3 = vld [vmem:[%s1751_s1 + $0x328] ss:$16 sps:$4 sm:$0xff]  }
  0x41   :  { %935 = vmatprep.subr.bf16.mxu1 %v1217_v7  ;;  %v1302_v6 = vld [vmem:[%s1751_s1 + $0x108] ss:$16 sps:$4 sm:$0xff]  }
  0x42   :  { %845 = vmatmul.mubr.bf16.vlgmr.msra.gmra.mxu0 %v1541_v8  ;;  %v1305_v7 = vld [vmem:[%s1751_s1 + $0x308] ss:$16 sps:$4 sm:$0xff]  }
  0x43   :  { %886 = vmatmul.mubr.bf16.vlgmr.msra.gmra.mxu1 %v1543_v9  ;;  %895 = vmatpush1.bf16.msra.mxu0 %v1212_v10  ;;  %v152_v10 = vlaneseq }
  0x44   :  { %936 = vmatpush1.bf16.msra.mxu1 %v1215_v11  ;;  %896 = vmatprep.subr.bf16.mxu0 %v1220_v12 }
  0x45   :  { %937 = vmatprep.subr.bf16.mxu1 %v1223_v13  ;;  %926 = vmatprep.mubr.bf16.mxu0 %v1475_v49  ;;  %v1277_v49 = vld [vmem:[%s1751_s1 + $0x3ac] ss:$16 sps:$4 sm:$0xff]   ;;  %v153_v11 = vshrl.u32 %v152_v10, 7  ;;  %v150_v13 = vld [vmem:[%s1753_s2] sm:$0xf] }
  0x46   :  { %967 = vmatprep.mubr.bf16.mxu1 %v21_v52  ;;  %v1280_v52 = vld [vmem:[%s1751_s1 + $0x18c] ss:$16 sps:$4 sm:$0xff]  }
  0x47   :  { %897 = vmatpush1.bf16.msra.mxu0 %v1218_v14  ;;  %v154_v12 = vsub.s32 0, %v153_v11  ;;  %v158_v14 = vsub.s32 1, %v153_v11 }
  0x48   :  { %938 = vmatpush1.bf16.msra.mxu1 %v1221_v15  ;;  %898 = vmatprep.subr.bf16.mxu0 %v1226_v16 }
  0x49   :  { %939 = vmatprep.subr.bf16.mxu1 %v1229_v17  ;;  %v155_v15 = vrot.slane %v150_v13, %v154_v12  ;;  %v159_v16 = vrot.slane %v150_v13, %v158_v14 }
  0x4b   :  { %899 = vmatpush1.bf16.msra.mxu0 %v1224_v18 }
  0x4c   :  { %940 = vmatpush1.bf16.msra.mxu1 %v1227_v19  ;;  %900 = vmatprep.subr.bf16.mxu0 %v1232_v20 }
  0x4d   :  { %941 = vmatprep.subr.bf16.mxu1 %v1235_v21 }
  0x4f   :  { %901 = vmatpush1.bf16.msra.mxu0 %v1230_v22 }
  0x50   :  { %942 = vmatpush1.bf16.msra.mxu1 %v1233_v23  ;;  %902 = vmatprep.subr.bf16.mxu0 %v1238_v24 }
  0x51   :  { %943 = vmatprep.subr.bf16.mxu1 %v1241_v25 }
  0x53   :  { %903 = vmatpush1.bf16.msra.mxu0 %v1236_v26 }
  0x54   :  { %944 = vmatpush1.bf16.msra.mxu1 %v1239_v27  ;;  %904 = vmatprep.subr.bf16.mxu0 %v1244_v28 }
  0x55   :  { %945 = vmatprep.subr.bf16.mxu1 %v1247_v29  ;;  %v162_v29 = vsub.s32 2, %v153_v11 }
  0x57   :  { %905 = vmatpush1.bf16.msra.mxu0 %v1242_v30  ;;  %v166_v30 = vsub.s32 3, %v153_v11 }
  0x58   :  { %946 = vmatpush1.bf16.msra.mxu1 %v1245_v31  ;;  %906 = vmatprep.subr.bf16.mxu0 %v1250_v32  ;;  %v163_v31 = vrot.slane %v150_v13, %v162_v29 }
  0x59   :  { %947 = vmatprep.subr.bf16.mxu1 %v1253_v33  ;;  %v167_v32 = vrot.slane %v150_v13, %v166_v30 }
  0x5b   :  { %907 = vmatpush1.bf16.msra.mxu0 %v1248_v34 }
  0x5c   :  { %948 = vmatpush1.bf16.msra.mxu1 %v1251_v35  ;;  %908 = vmatprep.subr.bf16.mxu0 %v1256_v36 }
  0x5d   :  { %949 = vmatprep.subr.bf16.mxu1 %v1259_v37 }
  0x5f   :  { %909 = vmatpush1.bf16.msra.mxu0 %v1254_v38 }
  0x60   :  { %950 = vmatpush1.bf16.msra.mxu1 %v1257_v39  ;;  %910 = vmatprep.subr.bf16.mxu0 %v1262_v40 }
  0x61   :  { %951 = vmatprep.subr.bf16.mxu1 %v1265_v41 }
  0x63   :  { %911 = vmatpush2.bf16.msra.mxu0 %v1260_v42 }
  0x64   :  { %952 = vmatpush2.bf16.msra.mxu1 %v1263_v43  ;;  %912 = vmatprep.subr.bf16.mxu0 %v1268_v44 }
  0x65   :  { %953 = vmatprep.subr.bf16.mxu1 %v1271_v45 }
  0x67   :  { %913 = vmatpush2.bf16.msra.mxu0 %v1266_v46 }
  0x68   :  { %954 = vmatpush2.bf16.msra.mxu1 %v1269_v47  ;;  %914 = vmatprep.subr.bf16.mxu0 %v1274_v48 }
  0x69   :  { %955 = vmatprep.subr.bf16.mxu1 %v1277_v49 }
  0x6b   :  { %915 = vmatpush2.bf16.msra.mxu0 %v1272_v50 }
  0x6c   :  { %956 = vmatpush2.bf16.msra.mxu1 %v1275_v51  ;;  %916 = vmatprep.subr.bf16.mxu0 %v1280_v52 }
  0x6d   :  { %957 = vmatprep.subr.bf16.mxu1 %v1283_v53 }
  0x6f   :  { %917 = vmatpush2.bf16.msra.mxu0 %v1278_v54 }
  0x70   :  { %958 = vmatpush2.bf16.msra.mxu1 %v1281_v55  ;;  %918 = vmatprep.subr.bf16.mxu0 %v1286_v56 }
  0x71   :  { %959 = vmatprep.subr.bf16.mxu1 %v1289_v57 }
  0x73   :  { %919 = vmatpush2.bf16.msra.mxu0 %v1284_v58 }
  0x74   :  { %960 = vmatpush2.bf16.msra.mxu1 %v1287_v59  ;;  %920 = vmatprep.subr.bf16.mxu0 %v1292_v60 }
  0x75   :  { %961 = vmatprep.subr.bf16.mxu1 %v1295_v61 }
  0x77   :  { %921 = vmatpush2.bf16.msra.mxu0 %v1290_v62 }
  0x78   :  { %962 = vmatpush2.bf16.msra.mxu1 %v1293_v63  ;;  %922 = vmatprep.subr.bf16.mxu0 %v1298_v0 }
  0x79   :  { %963 = vmatprep.subr.bf16.mxu1 %v1301_v1 }
  0x7b   :  { %923 = vmatpush2.bf16.msra.mxu0 %v1296_v2 }
  0x7c   :  { %964 = vmatpush2.bf16.msra.mxu1 %v1299_v3  ;;  %924 = vmatprep.subr.bf16.mxu0 %v1304_v4 }
  0x7d   :  { %965 = vmatprep.subr.bf16.mxu1 %v1307_v5 }
  0x7f   :  { %925 = vmatpush2.bf16.msra.mxu0 %v1302_v6 }
  0x80   :  { %966 = vmatpush2.bf16.msra.mxu1 %v1305_v7 }
  0x82   :  { %927 = vmatmul.mubr.bf16.vlgmr.msra.gmra.mxu0 %v1541_v8 }
  0x83   :  { %968 = vmatmul.mubr.bf16.vlgmr.msra.gmra.mxu1 %v1543_v9 }
 0x102   :  { %v846_v17 = vpop.f32.mrf.mxu0 }
 0x103   :  { %v887_v18 = vpop.f32.mrf.mxu1  ;;  %v847_v19 = vadd.f32 %v846_v17, %v155_v15 }
 0x104   :  { %v848_v20 = vpop.f32.mrf.mxu0 }
 0x105   :  { %v889_v21 = vpop.f32.mrf.mxu1  ;;  %v888_v22 = vadd.f32 %v887_v18, %v847_v19  ;;  %v849_v23 = vadd.f32 %v848_v20, %v159_v16 }
 0x106   :  { %v850_v8 = vpop.f32.mrf.mxu0 }
 0x107   :  { %v891_v24 = vpop.f32.mrf.mxu1  ;;  %v976_v9 = vmax.f32 %v888_v22, 0.0  ;;  %v890_v25 = vadd.f32 %v889_v21, %v849_v23 }
 0x108   :  { %v851_v26 = vpop.f32.mrf.mxu0 }
 0x109   :  { %v892_v27 = vpop.f32.mrf.mxu1  ;;  %980 = vst [vmem:[%s1754_s3] sm:$0xff] %v976_v9  ;;  %v977_v28 = vmax.f32 %v890_v25, 0.0 }
 0x10b   :  { %981 = vst [vmem:[%s1754_s3 + $0x8] sm:$0xff] %v977_v28 }
 0x142   :  { %v928_v33 = vpop.f32.mrf.mxu0 }
 0x143   :  { %v969_v34 = vpop.f32.mrf.mxu1  ;;  %v929_v35 = vadd.f32 %v928_v33, %v163_v31 }
 0x144   :  { %v930_v36 = vpop.f32.mrf.mxu0 }
 0x145   :  { %v971_v37 = vpop.f32.mrf.mxu1  ;;  %v970_v38 = vadd.f32 %v969_v34, %v929_v35  ;;  %v931_v39 = vadd.f32 %v930_v36, %v167_v32 }
 0x146   :  { %v932_v40 = vpop.f32.mrf.mxu0 }
 0x147   :  { %v973_v41 = vpop.f32.mrf.mxu1  ;;  %v978_v42 = vmax.f32 %v970_v38, 0.0  ;;  %v972_v43 = vadd.f32 %v971_v37, %v931_v39 }
 0x148   :  { %v933_v44 = vpop.f32.mrf.mxu0 }
 0x149   :  { %v974_v45 = vpop.f32.mrf.mxu1  ;;  %982 = vst [vmem:[%s1754_s3 + $0x10] sm:$0xff] %v978_v42  ;;  %v979_v46 = vmax.f32 %v972_v43, 0.0 }
 0x14b   :  { %983 = vst [vmem:[%s1754_s3 + $0x18] sm:$0xff] %v979_v46 }

// kernel: encoder2_forward.6
= control target key start
LH: loop header
LB: loop body
LE: loop exit
PB: predicated region body
PF: predicated region fallthrough
CT: control target
= control target key end

     0   :  { %8 = vsyncpa [#allocation3], 0  ;;  %s9339_s0 = inlined_call_operand.vmem [shape: f32[8,3072], index: 0, kind: input, shape index: {}]   ;;  %s9340_s1 = inlined_call_operand.hbm [shape: bf16[3072,2048], index: 1, kind: input, shape index: {}]   ;;  %s9341_s2 = inlined_call_operand.hbm [shape: f32[1,2048], index: 2, kind: input, shape index: {}]   ;;  %s9342_s3 = inlined_call_operand.vmem [shape: f32[8,2048], index: 3, kind: output, shape index: {}]  }
   0x1   :  { %10 = vsyncpa [#allocation3 + $0x1], 0 }
   0x2   :  { %11 = vsyncpa [#allocation5], 0 }
   0x3   :  { %13 = vsyncpa [#allocation5 + $0x1], 0  ;;  %s8215_s12 = smov 0   ;;  %s8217_s13 = smov 0  }
   0x4   :  { %s8219_s14 = smov 0   ;;  %s8221_s15 = smov 0  }
   0x5   :  { %s8223_s16 = smov 0   ;;  %s8225_s17 = smov 0  }
   0x6 LB: > { %s6074_s18 = sadd.s32 4294967295, %s8188_s17   ;;  %s28_s19 = sadd.s32 1, %s8184_s16  ;;  %s8188_s17 = sphi %s8225_s17, %s19_s17   ;;  %s8184_s16 = sphi %s8223_s16, %s9350_s16   ;;  %s8180_s15 = sphi %s8221_s15, %s9349_s15   ;;  %s8176_s14 = sphi %s8219_s14, %s9348_s14   ;;  %s8172_s13 = sphi %s8217_s13, %s9347_s13   ;;  %s8168_s12 = sphi %s8215_s12, %s9346_s12  }
   0x7   : > { %p29_p0 = scmp.ge.s32.totalorder %s28_s19, 4  ;;  %s64_s20 = sadd.s32 1, %s8176_s14 }
   0x8   : > { %p71_p1 = scmp.ne.s32.totalorder %s8176_s14, %s8172_s13  ;;  %p72_p2 = scmp.eq.s32.totalorder %s8188_s17, 0 }
   0x9   : > { %s9352_s19 = smov (%p29_p0, %s28_s19), 0  ;;  %p77_p4 = scmp.ne.s32.totalorder %s8172_s13, %s8168_s12 }
   0xa   : > { %p73_p3 = por %p72_p2, %p71_p1  ;;  %s61_s21 = ssub.s32 %s8184_s16, %s9352_s19 }
   0xb   : > { %p78_p5 = scmp.eq.s32.totalorder %s6074_s18, 0  ;;  %p62_p6 = scmp.eq.s32.totalorder %s61_s21, 0 }
   0xc   : > { %p6873_p8 = scmp.lt.s32.totalorder %s8188_s17, 4  ;;  %s8263_s24 = sand.u32 1, %s8176_s14  }
   0xd   : > { %p8254_p7 = por %p78_p5, %p77_p4  ;;  %s6858_s25 = sshll.u32 %s8184_s16, 8 }
   0xe   : > { %s8260_s23 = scalar_select %p62_p6, %s8176_s14, %s64_s20  }
   0xf   : > { %s6860_s26 = smul.u32 6144, %s8263_s24  ;;  %s173_s29 = scalar_lea.hbm %s9340_s1, %s6858_s25 }
  0x10   : > { %p8270_p9 = pnand %p6873_p8, %p73_p3  ;;  %p6084_p10 = scmp.ge.s32.totalorder %s8188_s17, 1 }
  0x11   : > { %s167_s4 = scalar_lea.vmem [#allocation2], %s6860_s26  ;;  %s164_s6 = scalar_lea.sflag [#allocation3], %s8263_s24 }
  0x12   : > { %s174_s5 = sshll.u32 %s167_s4, 4  ;;  %p8080_p11 = pneg %p8270_p9  ;;  %s175_s5 = int_to_ptr.vmem [resolvable:$true] %s174_s5 }
  0x13   : > { %s8091_s7 = scalar_lea.vmem %s175_s5, 98304  ;;  %s8190_s8 = smov [#allocation2]  }
  0x14   : > { %p8092_p12 = scmp.ne.s32.totalorder %s175_s5, %s8091_s7  ;;  %s8096_s9 = sshll.u32 %s8190_s8, 4  ;;  %s8097_s9 = int_to_ptr.vmem [resolvable:$false] %s8096_s9 }
  0x15   : > { %s8098_s10 = scalar_lea.vmem %s8097_s9, 196608  ;;  %p8099_p1 = scmp.lt.s32.totalorder %s175_s5, %s8097_s9 }
  0x16   : > { %p8094_p13 = pnand %p8092_p12, %p8080_p11  ;;  %p8100_p2 = scmp.lt.s32.totalorder %s8098_s10, %s8091_s7 }
  0x18   : > { %p8095_p0 = pneg %p8094_p13  ;;  %p8101_p3 = por %p8100_p2, %p8099_p1 }
  0x1a   : > { %p8102_p4 = pnand %p8101_p3, %p8095_p0 }
  0x1c   : > { %8105 = shalt.err (!%p8102_p4)
}
  0x1d   : > { %s8191_s11 = smov 1024   ;;  %s8192_s12 = smov 256  }
  0x1e   : > { %s8193_s18 = smov 16   ;;  %p201_p5 = scmp.lt.s32.totalorder %s8188_s17, 5 }
  0x1f   : > { %6869 = dma.hbm_to_vmem [thread:$0]  (!%p8270_p9), %s173_s29, 98304, %s175_s5, %s164_s6, %s8191_s11, %s8192_s12, %s8193_s18  }
  0x20   : > { %s6081_s20 = sshll.u32 %s8263_s24, 2  ;;  %s6859_s21 = sshll.u32 %s8184_s16, 6 }
  0x21   : > { %p8288_p6 = pnand %p6084_p10, %p201_p5  ;;  %s194_s28 = scalar_lea.hbm %s9341_s2, %s6859_s21 }
  0x22   : > { %s188_s4 = scalar_lea.vmem [#allocation4], %s6081_s20  ;;  %s185_s8 = scalar_lea.sflag [#allocation5], %s8263_s24 }
  0x23   : > { %s196_s7 = sshll.u32 %s188_s4, 4  ;;  %s8194_s29 = smov [#allocation4]   ;;  %s197_s7 = int_to_ptr.vmem [resolvable:$true] %s196_s7 }
  0x24   : > { %s8119_s9 = scalar_lea.vmem %s197_s7, 64  ;;  %s8124_s5 = sshll.u32 %s8194_s29, 4  ;;  %s8125_s5 = int_to_ptr.vmem [resolvable:$false] %s8124_s5 }
  0x25   : > { %p8120_p8 = scmp.ne.s32.totalorder %s197_s7, %s8119_s9  ;;  %s8126_s6 = scalar_lea.vmem %s8125_s5, 128 }
  0x26   : > { %p8127_p10 = scmp.lt.s32.totalorder %s197_s7, %s8125_s5  ;;  %p8128_p0 = scmp.lt.s32.totalorder %s8126_s6, %s8119_s9 }
  0x27   : > { %p8122_p12 = pnand %p8120_p8, %p8080_p11 }
  0x28   : > { %p8129_p1 = por %p8128_p0, %p8127_p10 }
  0x29   : > { %p8123_p13 = pneg %p8122_p12 }
  0x2b   : > { %p8130_p2 = pnand %p8129_p1, %p8123_p13 }
  0x2d   : > { %8133 = shalt.err (!%p8130_p2)
}
  0x2e   : > { %6872 = dma.hbm_to_vmem [thread:$0]  (!%p8270_p9), %s194_s28, 64, %s197_s7, %s185_s8  }
  0x2f   : > { %205 = sbr.rel (%p8288_p6) target bundleno = 1027 (0x403), region = 32  ;;  %s207_s24 = sand.u32 (!%p8288_p6), 1, %s8172_s13  }
  0x30   : > { %s6861_s10 = smul.u32 (!%p8288_p6), 6144, %s207_s24  ;;  %s208_s11 = scalar_lea.sflag (!%p8288_p6), [#allocation3], %s207_s24 }
  0x32   : > { %s8304_s12 = scalar_lea.vmem (!%p8288_p6), [#allocation2], %s6861_s10 }
  0x34   : > { %8159 = dma.done.wait (%p8254_p7), %s208_s11, 98304  }
  0x35   : > { %8161 = vsyncadd (%p8254_p7), %s208_s11, 4294868992  ;;  %s6085_s18 = sshll.u32 %s207_s24, 2  ;;  %s217_s20 = scalar_lea.sflag [#allocation5], %s207_s24 }
  0x36   : > { %s8310_s30 = scalar_lea.vmem [#allocation4], %s6085_s18 }
  0x37   : > { %8163 = dma.done.wait (%p8254_p7), %s217_s20, 64  }
  0x38   : > { %8165 = vsyncadd (%p8254_p7), %s217_s20, 4294967232  ;;  %v6925_v0 = vld [vmem:[%s8304_s12 + $0xe4] ss:$16 sps:$4 sm:$0xff]   ;;  %v6929_v2 = vld [vmem:[%s8304_s12 + $0xe0] ss:$16 sps:$4 sm:$0xff]   ;;  %s6086_s6 = sshll.u32 %s8180_s15, 2 }
  0x39   : > { %v6927_v1 = vld [vmem:[%s8304_s12 + $0x2e4] ss:$16 sps:$4 sm:$0xff]   ;;  %4952 = vmatprep.subr.bf16.mxu0 %v6925_v0  ;;  %v6930_v3 = vld [vmem:[%s8304_s12 + $0x2e0] ss:$16 sps:$4 sm:$0xff]   ;;  %v275_v46 = vld [vmem:[%s9339_s0 + $0x8] sm:$0xff]  ;;  %p267_p7 = scmp.lt.s32.totalorder %s6086_s6, 15 }
  0x3a   : > { %4993 = vmatprep.subr.bf16.mxu1 %v6927_v1  ;;  %v6931_v4 = vld [vmem:[%s8304_s12 + $0xc4] ss:$16 sps:$4 sm:$0xff]   ;;  %4953 = vmatpush1.bf16.msra.mxu0 %v6929_v2  ;;  %v6935_v6 = vld [vmem:[%s8304_s12 + $0xc0] ss:$16 sps:$4 sm:$0xff]   ;;  %v8367_v49 = vpack.c.bf16 %v275_v46, %v275_v46  ;;  %v277_v50 = vld [vmem:[%s9339_s0 + $0x18] sm:$0xff] }
  0x3b   : > { %4994 = vmatpush1.bf16.msra.mxu1 %v6930_v3  ;;  %v6933_v5 = vld [vmem:[%s8304_s12 + $0x2c4] ss:$16 sps:$4 sm:$0xff]   ;;  %4954 = vmatprep.subr.bf16.mxu0 %v6931_v4  ;;  %v6936_v7 = vld [vmem:[%s8304_s12 + $0x2c0] ss:$16 sps:$4 sm:$0xff]   ;;  %v8373_v52 = vpack.c.bf16 %v277_v50, %v277_v50  ;;  %s9354_s6 = smov (!%p267_p7, %s6086_s6), 15 }
  0x3c   : > { %4995 = vmatprep.subr.bf16.mxu1 %v6933_v5  ;;  %v6937_v8 = vld [vmem:[%s8304_s12 + $0xa4] ss:$16 sps:$4 sm:$0xff]   ;;  %v6941_v10 = vld [vmem:[%s8304_s12 + $0xa0] ss:$16 sps:$4 sm:$0xff]   ;;  %4984 = vmatprep.mubr.bf16.mxu0 %v8367_v49  ;;  %s6087_s15 = sshll.u32 %s9354_s6, 3 }
  0x3d   : > { %v6939_v9 = vld [vmem:[%s8304_s12 + $0x2a4] ss:$16 sps:$4 sm:$0xff]   ;;  %v6942_v11 = vld [vmem:[%s8304_s12 + $0x2a0] ss:$16 sps:$4 sm:$0xff]   ;;  %5025 = vmatprep.mubr.bf16.mxu1 %v8373_v52  ;;  %s9108_s11 = scalar_lea.vmem %s9342_s3, %s6087_s15 }
  0x3e   : > { %4955 = vmatpush1.bf16.msra.mxu0 %v6935_v6  ;;  %v6943_v12 = vld [vmem:[%s8304_s12 + $0x84] ss:$16 sps:$4 sm:$0xff]   ;;  %v6947_v14 = vld [vmem:[%s8304_s12 + $0x80] ss:$16 sps:$4 sm:$0xff]  }
  0x3f   : > { %4996 = vmatpush1.bf16.msra.mxu1 %v6936_v7  ;;  %4956 = vmatprep.subr.bf16.mxu0 %v6937_v8  ;;  %v6945_v13 = vld [vmem:[%s8304_s12 + $0x284] ss:$16 sps:$4 sm:$0xff]   ;;  %v6948_v15 = vld [vmem:[%s8304_s12 + $0x280] ss:$16 sps:$4 sm:$0xff]  }
  0x40   : > { %4997 = vmatprep.subr.bf16.mxu1 %v6939_v9  ;;  %v6949_v16 = vld [vmem:[%s8304_s12 + $0x64] ss:$16 sps:$4 sm:$0xff]   ;;  %v6953_v18 = vld [vmem:[%s8304_s12 + $0x60] ss:$16 sps:$4 sm:$0xff]  }
  0x41   : > { %v6951_v17 = vld [vmem:[%s8304_s12 + $0x264] ss:$16 sps:$4 sm:$0xff]   ;;  %v6954_v19 = vld [vmem:[%s8304_s12 + $0x260] ss:$16 sps:$4 sm:$0xff]  }
  0x42   : > { %4957 = vmatpush1.bf16.msra.mxu0 %v6941_v10  ;;  %v6955_v20 = vld [vmem:[%s8304_s12 + $0x44] ss:$16 sps:$4 sm:$0xff]   ;;  %v6959_v22 = vld [vmem:[%s8304_s12 + $0x40] ss:$16 sps:$4 sm:$0xff]  }
  0x43   : > { %4998 = vmatpush1.bf16.msra.mxu1 %v6942_v11  ;;  %4958 = vmatprep.subr.bf16.mxu0 %v6943_v12  ;;  %v6957_v21 = vld [vmem:[%s8304_s12 + $0x244] ss:$16 sps:$4 sm:$0xff]   ;;  %v6960_v23 = vld [vmem:[%s8304_s12 + $0x240] ss:$16 sps:$4 sm:$0xff]  }
  0x44   : > { %4999 = vmatprep.subr.bf16.mxu1 %v6945_v13  ;;  %v6961_v24 = vld [vmem:[%s8304_s12 + $0x24] ss:$16 sps:$4 sm:$0xff]   ;;  %v6965_v26 = vld [vmem:[%s8304_s12 + $0x20] ss:$16 sps:$4 sm:$0xff]  }
  0x45   : > { %v6963_v25 = vld [vmem:[%s8304_s12 + $0x224] ss:$16 sps:$4 sm:$0xff]   ;;  %v6966_v27 = vld [vmem:[%s8304_s12 + $0x220] ss:$16 sps:$4 sm:$0xff]  }
  0x46   : > { %4959 = vmatpush1.bf16.msra.mxu0 %v6947_v14  ;;  %v6967_v28 = vld [vmem:[%s8304_s12 + $0x4] ss:$16 sps:$4 sm:$0xff]   ;;  %v6971_v30 = vld [vmem:[%s8304_s12] ss:$16 sps:$4 sm:$0xff]  }
  0x47   : > { %5000 = vmatpush1.bf16.msra.mxu1 %v6948_v15  ;;  %4960 = vmatprep.subr.bf16.mxu0 %v6949_v16  ;;  %v6969_v29 = vld [vmem:[%s8304_s12 + $0x204] ss:$16 sps:$4 sm:$0xff]   ;;  %v6972_v31 = vld [vmem:[%s8304_s12 + $0x200] ss:$16 sps:$4 sm:$0xff]  }
  0x48   : > { %5001 = vmatprep.subr.bf16.mxu1 %v6951_v17  ;;  %v6973_v32 = vld [vmem:[%s8304_s12 + $0x1e4] ss:$16 sps:$4 sm:$0xff]   ;;  %v6977_v34 = vld [vmem:[%s8304_s12 + $0x1e0] ss:$16 sps:$4 sm:$0xff]  }
  0x49   : > { %v6975_v33 = vld [vmem:[%s8304_s12 + $0x3e4] ss:$16 sps:$4 sm:$0xff]   ;;  %v6978_v35 = vld [vmem:[%s8304_s12 + $0x3e0] ss:$16 sps:$4 sm:$0xff]  }
  0x4a   : > { %4961 = vmatpush1.bf16.msra.mxu0 %v6953_v18  ;;  %v6979_v36 = vld [vmem:[%s8304_s12 + $0x1c4] ss:$16 sps:$4 sm:$0xff]   ;;  %v6983_v38 = vld [vmem:[%s8304_s12 + $0x1c0] ss:$16 sps:$4 sm:$0xff]  }
  0x4b   : > { %5002 = vmatpush1.bf16.msra.mxu1 %v6954_v19  ;;  %4962 = vmatprep.subr.bf16.mxu0 %v6955_v20  ;;  %v6981_v37 = vld [vmem:[%s8304_s12 + $0x3c4] ss:$16 sps:$4 sm:$0xff]   ;;  %v6984_v39 = vld [vmem:[%s8304_s12 + $0x3c0] ss:$16 sps:$4 sm:$0xff]  }
  0x4c   : > { %5003 = vmatprep.subr.bf16.mxu1 %v6957_v21  ;;  %v6985_v40 = vld [vmem:[%s8304_s12 + $0x1a4] ss:$16 sps:$4 sm:$0xff]   ;;  %v6989_v42 = vld [vmem:[%s8304_s12 + $0x1a0] ss:$16 sps:$4 sm:$0xff]  }
  0x4d   : > { %v6987_v41 = vld [vmem:[%s8304_s12 + $0x3a4] ss:$16 sps:$4 sm:$0xff]   ;;  %v6990_v43 = vld [vmem:[%s8304_s12 + $0x3a0] ss:$16 sps:$4 sm:$0xff]  }
  0x4e   : > { %4963 = vmatpush1.bf16.msra.mxu0 %v6959_v22  ;;  %v6991_v44 = vld [vmem:[%s8304_s12 + $0x184] ss:$16 sps:$4 sm:$0xff]   ;;  %v6995_v47 = vld [vmem:[%s8304_s12 + $0x180] ss:$16 sps:$4 sm:$0xff]  }
  0x4f   : > { %5004 = vmatpush1.bf16.msra.mxu1 %v6960_v23  ;;  %4964 = vmatprep.subr.bf16.mxu0 %v6961_v24  ;;  %v6993_v45 = vld [vmem:[%s8304_s12 + $0x384] ss:$16 sps:$4 sm:$0xff]   ;;  %v6996_v48 = vld [vmem:[%s8304_s12 + $0x380] ss:$16 sps:$4 sm:$0xff]  }
  0x50   : > { %5005 = vmatprep.subr.bf16.mxu1 %v6963_v25  ;;  %v6997_v51 = vld [vmem:[%s8304_s12 + $0x164] ss:$16 sps:$4 sm:$0xff]   ;;  %v7001_v54 = vld [vmem:[%s8304_s12 + $0x160] ss:$16 sps:$4 sm:$0xff]  }
  0x51   : > { %v6999_v53 = vld [vmem:[%s8304_s12 + $0x364] ss:$16 sps:$4 sm:$0xff]   ;;  %v7002_v55 = vld [vmem:[%s8304_s12 + $0x360] ss:$16 sps:$4 sm:$0xff]  }
  0x52   : > { %4965 = vmatpush1.bf16.msra.mxu0 %v6965_v26  ;;  %v7003_v56 = vld [vmem:[%s8304_s12 + $0x144] ss:$16 sps:$4 sm:$0xff]   ;;  %v7007_v58 = vld [vmem:[%s8304_s12 + $0x140] ss:$16 sps:$4 sm:$0xff]  }
  0x53   : > { %5006 = vmatpush1.bf16.msra.mxu1 %v6966_v27  ;;  %4966 = vmatprep.subr.bf16.mxu0 %v6967_v28  ;;  %v7005_v57 = vld [vmem:[%s8304_s12 + $0x344] ss:$16 sps:$4 sm:$0xff]   ;;  %v7008_v59 = vld [vmem:[%s8304_s12 + $0x340] ss:$16 sps:$4 sm:$0xff]  }
  0x54   : > { %5007 = vmatprep.subr.bf16.mxu1 %v6969_v29  ;;  %v7009_v60 = vld [vmem:[%s8304_s12 + $0x124] ss:$16 sps:$4 sm:$0xff]   ;;  %v7013_v62 = vld [vmem:[%s8304_s12 + $0x120] ss:$16 sps:$4 sm:$0xff]  }
  0x55   : > { %v7011_v61 = vld [vmem:[%s8304_s12 + $0x324] ss:$16 sps:$4 sm:$0xff]   ;;  %v7014_v63 = vld [vmem:[%s8304_s12 + $0x320] ss:$16 sps:$4 sm:$0xff]  }
  0x56   : > { %4967 = vmatpush1.bf16.msra.mxu0 %v6971_v30  ;;  %v7015_v0 = vld [vmem:[%s8304_s12 + $0x104] ss:$16 sps:$4 sm:$0xff]   ;;  %v7019_v2 = vld [vmem:[%s8304_s12 + $0x100] ss:$16 sps:$4 sm:$0xff]  }
  0x57   : > { %5008 = vmatpush1.bf16.msra.mxu1 %v6972_v31  ;;  %4968 = vmatprep.subr.bf16.mxu0 %v6973_v32  ;;  %v7017_v1 = vld [vmem:[%s8304_s12 + $0x304] ss:$16 sps:$4 sm:$0xff]   ;;  %v7020_v3 = vld [vmem:[%s8304_s12 + $0x300] ss:$16 sps:$4 sm:$0xff]  }
  0x58   : > { %5009 = vmatprep.subr.bf16.mxu1 %v6975_v33  ;;  %v274_v4 = vld [vmem:[%s9339_s0] sm:$0xff]  ;;  %v276_v5 = vld [vmem:[%s9339_s0 + $0x10] sm:$0xff] }
  0x59   : > { %v7023_v6 = vld [vmem:[%s8304_s12 + $0x4e4] ss:$16 sps:$4 sm:$0xff]   ;;  %v8400_v8 = vpack.c.bf16 %v274_v4, %v274_v4  ;;  %v8402_v9 = vpack.c.bf16 %v276_v5, %v276_v5  ;;  %v7021_v10 = vld [vmem:[%s8304_s12 + $0x4e0] ss:$16 sps:$4 sm:$0xff]  }
  0x5a   : > { %4969 = vmatpush2.bf16.msra.mxu0 %v6977_v34  ;;  %v7026_v7 = vld [vmem:[%s8304_s12 + $0x6e4] ss:$16 sps:$4 sm:$0xff]   ;;  %v7024_v11 = vld [vmem:[%s8304_s12 + $0x6e0] ss:$16 sps:$4 sm:$0xff]   ;;  %v279_v34 = vld [vmem:[%s9339_s0 + $0x28] sm:$0xff] }
  0x5b   : > { %5010 = vmatpush2.bf16.msra.mxu1 %v6978_v35  ;;  %4970 = vmatprep.subr.bf16.mxu0 %v6979_v36  ;;  %v7029_v12 = vld [vmem:[%s8304_s12 + $0x4c4] ss:$16 sps:$4 sm:$0xff]   ;;  %v7027_v14 = vld [vmem:[%s8304_s12 + $0x4c0] ss:$16 sps:$4 sm:$0xff]  }
  0x5c   : > { %5011 = vmatprep.subr.bf16.mxu1 %v6981_v37  ;;  %v7032_v13 = vld [vmem:[%s8304_s12 + $0x6c4] ss:$16 sps:$4 sm:$0xff]   ;;  %v7030_v15 = vld [vmem:[%s8304_s12 + $0x6c0] ss:$16 sps:$4 sm:$0xff]   ;;  %v8435_v37 = vpack.c.bf16 %v279_v34, %v279_v34 }
  0x5d   : > { %v7035_v16 = vld [vmem:[%s8304_s12 + $0x4a4] ss:$16 sps:$4 sm:$0xff]   ;;  %v7033_v18 = vld [vmem:[%s8304_s12 + $0x4a0] ss:$16 sps:$4 sm:$0xff]  }
  0x5e   : > { %4971 = vmatpush2.bf16.msra.mxu0 %v6983_v38  ;;  %v7038_v17 = vld [vmem:[%s8304_s12 + $0x6a4] ss:$16 sps:$4 sm:$0xff]   ;;  %v7036_v19 = vld [vmem:[%s8304_s12 + $0x6a0] ss:$16 sps:$4 sm:$0xff]   ;;  %v281_v38 = vld [vmem:[%s9339_s0 + $0x38] sm:$0xff] }
  0x5f   : > { %5012 = vmatpush2.bf16.msra.mxu1 %v6984_v39  ;;  %4972 = vmatprep.subr.bf16.mxu0 %v6985_v40  ;;  %v7041_v20 = vld [vmem:[%s8304_s12 + $0x484] ss:$16 sps:$4 sm:$0xff]   ;;  %v7039_v22 = vld [vmem:[%s8304_s12 + $0x480] ss:$16 sps:$4 sm:$0xff]   ;;  %v8441_v40 = vpack.c.bf16 %v281_v38, %v281_v38 }
  0x60   : > { %5013 = vmatprep.subr.bf16.mxu1 %v6987_v41  ;;  %v7044_v21 = vld [vmem:[%s8304_s12 + $0x684] ss:$16 sps:$4 sm:$0xff]   ;;  %v7042_v23 = vld [vmem:[%s8304_s12 + $0x680] ss:$16 sps:$4 sm:$0xff]  }
  0x61   : > { %v7047_v24 = vld [vmem:[%s8304_s12 + $0x464] ss:$16 sps:$4 sm:$0xff]   ;;  %v7045_v26 = vld [vmem:[%s8304_s12 + $0x460] ss:$16 sps:$4 sm:$0xff]  }
  0x62   : > { %4973 = vmatpush2.bf16.msra.mxu0 %v6989_v42  ;;  %v7050_v25 = vld [vmem:[%s8304_s12 + $0x664] ss:$16 sps:$4 sm:$0xff]   ;;  %v7048_v27 = vld [vmem:[%s8304_s12 + $0x660] ss:$16 sps:$4 sm:$0xff]  }
  0x63   : > { %5014 = vmatpush2.bf16.msra.mxu1 %v6990_v43  ;;  %4974 = vmatprep.subr.bf16.mxu0 %v6991_v44  ;;  %v7053_v28 = vld [vmem:[%s8304_s12 + $0x444] ss:$16 sps:$4 sm:$0xff]   ;;  %v7051_v30 = vld [vmem:[%s8304_s12 + $0x440] ss:$16 sps:$4 sm:$0xff]  }
  0x64   : > { %5015 = vmatprep.subr.bf16.mxu1 %v6993_v45  ;;  %v7056_v29 = vld [vmem:[%s8304_s12 + $0x644] ss:$16 sps:$4 sm:$0xff]   ;;  %v7054_v31 = vld [vmem:[%s8304_s12 + $0x640] ss:$16 sps:$4 sm:$0xff]  }
  0x65   : > { %v7059_v32 = vld [vmem:[%s8304_s12 + $0x424] ss:$16 sps:$4 sm:$0xff]   ;;  %v7057_v35 = vld [vmem:[%s8304_s12 + $0x420] ss:$16 sps:$4 sm:$0xff]  }
  0x66   : > { %4975 = vmatpush2.bf16.msra.mxu0 %v6995_v47  ;;  %v7062_v33 = vld [vmem:[%s8304_s12 + $0x624] ss:$16 sps:$4 sm:$0xff]   ;;  %v7060_v36 = vld [vmem:[%s8304_s12 + $0x620] ss:$16 sps:$4 sm:$0xff]  }
  0x67   : > { %5016 = vmatpush2.bf16.msra.mxu1 %v6996_v48  ;;  %4976 = vmatprep.subr.bf16.mxu0 %v6997_v51  ;;  %v7065_v39 = vld [vmem:[%s8304_s12 + $0x404] ss:$16 sps:$4 sm:$0xff]   ;;  %v7063_v42 = vld [vmem:[%s8304_s12 + $0x400] ss:$16 sps:$4 sm:$0xff]  }
  0x68   : > { %5017 = vmatprep.subr.bf16.mxu1 %v6999_v53  ;;  %v7068_v41 = vld [vmem:[%s8304_s12 + $0x604] ss:$16 sps:$4 sm:$0xff]   ;;  %v7066_v43 = vld [vmem:[%s8304_s12 + $0x600] ss:$16 sps:$4 sm:$0xff]  }
  0x69   : > { %v7071_v44 = vld [vmem:[%s8304_s12 + $0x5e4] ss:$16 sps:$4 sm:$0xff]   ;;  %v7069_v46 = vld [vmem:[%s8304_s12 + $0x5e0] ss:$16 sps:$4 sm:$0xff]  }
  0x6a   : > { %4977 = vmatpush2.bf16.msra.mxu0 %v7001_v54  ;;  %v7074_v45 = vld [vmem:[%s8304_s12 + $0x7e4] ss:$16 sps:$4 sm:$0xff]   ;;  %v7072_v47 = vld [vmem:[%s8304_s12 + $0x7e0] ss:$16 sps:$4 sm:$0xff]  }
  0x6b   : > { %5018 = vmatpush2.bf16.msra.mxu1 %v7002_v55  ;;  %4978 = vmatprep.subr.bf16.mxu0 %v7003_v56  ;;  %v7077_v48 = vld [vmem:[%s8304_s12 + $0x5c4] ss:$16 sps:$4 sm:$0xff]   ;;  %v7075_v51 = vld [vmem:[%s8304_s12 + $0x5c0] ss:$16 sps:$4 sm:$0xff]  }
  0x6c   : > { %5019 = vmatprep.subr.bf16.mxu1 %v7005_v57  ;;  %v7080_v50 = vld [vmem:[%s8304_s12 + $0x7c4] ss:$16 sps:$4 sm:$0xff]   ;;  %v7078_v53 = vld [vmem:[%s8304_s12 + $0x7c0] ss:$16 sps:$4 sm:$0xff]  }
  0x6d   : > { %v7083_v54 = vld [vmem:[%s8304_s12 + $0x5a4] ss:$16 sps:$4 sm:$0xff]   ;;  %v7081_v56 = vld [vmem:[%s8304_s12 + $0x5a0] ss:$16 sps:$4 sm:$0xff]  }
  0x6e   : > { %4979 = vmatpush2.bf16.msra.mxu0 %v7007_v58  ;;  %v7086_v55 = vld [vmem:[%s8304_s12 + $0x7a4] ss:$16 sps:$4 sm:$0xff]   ;;  %v7084_v57 = vld [vmem:[%s8304_s12 + $0x7a0] ss:$16 sps:$4 sm:$0xff]  }
  0x6f   : > { %5020 = vmatpush2.bf16.msra.mxu1 %v7008_v59  ;;  %4980 = vmatprep.subr.bf16.mxu0 %v7009_v60  ;;  %v7089_v58 = vld [vmem:[%s8304_s12 + $0x584] ss:$16 sps:$4 sm:$0xff]   ;;  %v7087_v60 = vld [vmem:[%s8304_s12 + $0x580] ss:$16 sps:$4 sm:$0xff]  }
  0x70   : > { %5021 = vmatprep.subr.bf16.mxu1 %v7011_v61  ;;  %v7092_v59 = vld [vmem:[%s8304_s12 + $0x784] ss:$16 sps:$4 sm:$0xff]   ;;  %v7090_v61 = vld [vmem:[%s8304_s12 + $0x780] ss:$16 sps:$4 sm:$0xff]  }
  0x71   : > { %v7099_v4 = vld [vmem:[%s8304_s12 + $0x540] ss:$16 sps:$4 sm:$0xff]   ;;  %v7140_v38 = vld [vmem:[%s8304_s12 + $0xa84] ss:$16 sps:$4 sm:$0xff]  }
  0x72   : > { %4981 = vmatpush2.bf16.msra.mxu0 %v7013_v62  ;;  %v7095_v62 = vld [vmem:[%s8304_s12 + $0x564] ss:$16 sps:$4 sm:$0xff]   ;;  %v7102_v5 = vld [vmem:[%s8304_s12 + $0x740] ss:$16 sps:$4 sm:$0xff]  }
  0x73   : > { %5022 = vmatpush2.bf16.msra.mxu1 %v7014_v63  ;;  %4982 = vmatprep.subr.bf16.mxu0 %v7015_v0  ;;  %v7098_v63 = vld [vmem:[%s8304_s12 + $0x764] ss:$16 sps:$4 sm:$0xff]   ;;  %v7093_v0 = vld [vmem:[%s8304_s12 + $0x560] ss:$16 sps:$4 sm:$0xff]  }
  0x74   : > { %5023 = vmatprep.subr.bf16.mxu1 %v7017_v1  ;;  %v7096_v1 = vld [vmem:[%s8304_s12 + $0x760] ss:$16 sps:$4 sm:$0xff]  }
  0x75   : > { %v7129_v34 = vld [vmem:[%s8304_s12 + $0x8a0] ss:$16 sps:$4 sm:$0xff]  }
  0x76   : > { %4983 = vmatpush2.bf16.msra.mxu0 %v7019_v2  ;;  %v7101_v2 = vld [vmem:[%s8304_s12 + $0x544] ss:$16 sps:$4 sm:$0xff]  }
  0x77   : > { %5024 = vmatpush2.bf16.msra.mxu1 %v7020_v3  ;;  %5034 = vmatprep.subr.bf16.mxu0 %v7023_v6  ;;  %v7104_v3 = vld [vmem:[%s8304_s12 + $0x744] ss:$16 sps:$4 sm:$0xff]  }
  0x78   : > { %5075 = vmatprep.subr.bf16.mxu1 %v7026_v7  ;;  %v7107_v6 = vld [vmem:[%s8304_s12 + $0x524] ss:$16 sps:$4 sm:$0xff]  }
  0x79   : > { %4985 = vmatmul.mubr.bf16.vlgmr.msra.gmra.mxu0 %v8400_v8  ;;  %v7110_v7 = vld [vmem:[%s8304_s12 + $0x724] ss:$16 sps:$4 sm:$0xff]  }
  0x7a   : > { %5026 = vmatmul.mubr.bf16.vlgmr.msra.gmra.mxu1 %v8402_v9  ;;  %5035 = vmatpush1.bf16.msra.mxu0 %v7021_v10  ;;  %v7105_v10 = vld [vmem:[%s8304_s12 + $0x520] ss:$16 sps:$4 sm:$0xff]  }
  0x7b   : > { %5076 = vmatpush1.bf16.msra.mxu1 %v7024_v11  ;;  %5036 = vmatprep.subr.bf16.mxu0 %v7029_v12  ;;  %v7108_v11 = vld [vmem:[%s8304_s12 + $0x720] ss:$16 sps:$4 sm:$0xff]   ;;  %v7113_v12 = vld [vmem:[%s8304_s12 + $0x504] ss:$16 sps:$4 sm:$0xff]  }
  0x7c   : > { %5077 = vmatprep.subr.bf16.mxu1 %v7032_v13  ;;  %5066 = vmatprep.mubr.bf16.mxu0 %v8435_v37  ;;  %v7116_v13 = vld [vmem:[%s8304_s12 + $0x704] ss:$16 sps:$4 sm:$0xff]  }
  0x7d   : > { %5107 = vmatprep.mubr.bf16.mxu1 %v8441_v40 }
  0x7e   : > { %5037 = vmatpush1.bf16.msra.mxu0 %v7027_v14  ;;  %v7111_v14 = vld [vmem:[%s8304_s12 + $0x500] ss:$16 sps:$4 sm:$0xff]  }
  0x7f   : > { %5078 = vmatpush1.bf16.msra.mxu1 %v7030_v15  ;;  %5038 = vmatprep.subr.bf16.mxu0 %v7035_v16  ;;  %v7114_v15 = vld [vmem:[%s8304_s12 + $0x700] ss:$16 sps:$4 sm:$0xff]  }
  0x80   : > { %5079 = vmatprep.subr.bf16.mxu1 %v7038_v17  ;;  %v278_v16 = vld [vmem:[%s9339_s0 + $0x20] sm:$0xff]  ;;  %v280_v17 = vld [vmem:[%s9339_s0 + $0x30] sm:$0xff] }
  0x82   : > { %5039 = vmatpush1.bf16.msra.mxu0 %v7033_v18  ;;  %v7119_v18 = vld [vmem:[%s8304_s12 + $0x8e4] ss:$16 sps:$4 sm:$0xff]  }
  0x83   : > { %5080 = vmatpush1.bf16.msra.mxu1 %v7036_v19  ;;  %5040 = vmatprep.subr.bf16.mxu0 %v7041_v20  ;;  %v7122_v19 = vld [vmem:[%s8304_s12 + $0xae4] ss:$16 sps:$4 sm:$0xff]   ;;  %v8488_v20 = vpack.c.bf16 %v278_v16, %v278_v16  ;;  %v7189_v16 = vld [vmem:[%s8304_s12 + $0x960] ss:$16 sps:$4 sm:$0xff]  }
  0x84   : > { %5081 = vmatprep.subr.bf16.mxu1 %v7044_v21  ;;  %v8490_v21 = vpack.c.bf16 %v280_v17, %v280_v17  ;;  %v7192_v17 = vld [vmem:[%s8304_s12 + $0xb60] ss:$16 sps:$4 sm:$0xff]  }
  0x86   : > { %5041 = vmatpush1.bf16.msra.mxu0 %v7039_v22  ;;  %v7117_v22 = vld [vmem:[%s8304_s12 + $0x8e0] ss:$16 sps:$4 sm:$0xff]  }
  0x87   : > { %5082 = vmatpush1.bf16.msra.mxu1 %v7042_v23  ;;  %5042 = vmatprep.subr.bf16.mxu0 %v7047_v24  ;;  %v7120_v23 = vld [vmem:[%s8304_s12 + $0xae0] ss:$16 sps:$4 sm:$0xff]   ;;  %v7125_v24 = vld [vmem:[%s8304_s12 + $0x8c4] ss:$16 sps:$4 sm:$0xff]  }
  0x88   : > { %5083 = vmatprep.subr.bf16.mxu1 %v7050_v25  ;;  %v7128_v25 = vld [vmem:[%s8304_s12 + $0xac4] ss:$16 sps:$4 sm:$0xff]  }
  0x8a   : > { %5043 = vmatpush1.bf16.msra.mxu0 %v7045_v26  ;;  %v283_v26 = vld [vmem:[%s9339_s0 + $0x48] sm:$0xff] }
  0x8b   : > { %5084 = vmatpush1.bf16.msra.mxu1 %v7048_v27  ;;  %5044 = vmatprep.subr.bf16.mxu0 %v7053_v28  ;;  %v7123_v27 = vld [vmem:[%s8304_s12 + $0x8c0] ss:$16 sps:$4 sm:$0xff]  }
  0x8c   : > { %5085 = vmatprep.subr.bf16.mxu1 %v7056_v29  ;;  %v7126_v28 = vld [vmem:[%s8304_s12 + $0xac0] ss:$16 sps:$4 sm:$0xff]   ;;  %v8503_v29 = vpack.c.bf16 %v283_v26, %v283_v26 }
  0x8d   : > { %v7201_v26 = vld [vmem:[%s8304_s12 + $0x920] ss:$16 sps:$4 sm:$0xff]  }
  0x8e   : > { %5045 = vmatpush1.bf16.msra.mxu0 %v7051_v30  ;;  %v285_v30 = vld [vmem:[%s9339_s0 + $0x58] sm:$0xff] }
  0x8f   : > { %5086 = vmatpush1.bf16.msra.mxu1 %v7054_v31  ;;  %5046 = vmatprep.subr.bf16.mxu0 %v7059_v32  ;;  %v7131_v31 = vld [vmem:[%s8304_s12 + $0x8a4] ss:$16 sps:$4 sm:$0xff]   ;;  %v8509_v32 = vpack.c.bf16 %v285_v30, %v285_v30 }
  0x90   : > { %5087 = vmatprep.subr.bf16.mxu1 %v7062_v33  ;;  %v7134_v33 = vld [vmem:[%s8304_s12 + $0xaa4] ss:$16 sps:$4 sm:$0xff]  }
  0x91   : > { %v7212_v30 = vld [vmem:[%s8304_s12 + $0xb04] ss:$16 sps:$4 sm:$0xff]  }
  0x92   : > { %5047 = vmatpush1.bf16.msra.mxu0 %v7057_v35  ;;  %v7132_v35 = vld [vmem:[%s8304_s12 + $0xaa0] ss:$16 sps:$4 sm:$0xff]  }
  0x93   : > { %5088 = vmatpush1.bf16.msra.mxu1 %v7060_v36  ;;  %5048 = vmatprep.subr.bf16.mxu0 %v7065_v39  ;;  %v7137_v36 = vld [vmem:[%s8304_s12 + $0x884] ss:$16 sps:$4 sm:$0xff]   ;;  %v7135_v39 = vld [vmem:[%s8304_s12 + $0x880] ss:$16 sps:$4 sm:$0xff]  }
  0x94   : > { %5089 = vmatprep.subr.bf16.mxu1 %v7068_v41  ;;  %v7138_v41 = vld [vmem:[%s8304_s12 + $0xa80] ss:$16 sps:$4 sm:$0xff]  }
  0x96   : > { %5049 = vmatpush1.bf16.msra.mxu0 %v7063_v42  ;;  %v7143_v42 = vld [vmem:[%s8304_s12 + $0x864] ss:$16 sps:$4 sm:$0xff]  }
  0x97   : > { %5090 = vmatpush1.bf16.msra.mxu1 %v7066_v43  ;;  %5050 = vmatprep.subr.bf16.mxu0 %v7071_v44  ;;  %v7146_v43 = vld [vmem:[%s8304_s12 + $0xa64] ss:$16 sps:$4 sm:$0xff]   ;;  %v7141_v44 = vld [vmem:[%s8304_s12 + $0x860] ss:$16 sps:$4 sm:$0xff]  }
  0x98   : > { %5091 = vmatprep.subr.bf16.mxu1 %v7074_v45  ;;  %v7144_v45 = vld [vmem:[%s8304_s12 + $0xa60] ss:$16 sps:$4 sm:$0xff]  }
  0x9a   : > { %5051 = vmatpush2.bf16.msra.mxu0 %v7069_v46  ;;  %v7149_v46 = vld [vmem:[%s8304_s12 + $0x844] ss:$16 sps:$4 sm:$0xff]  }
  0x9b   : > { %5092 = vmatpush2.bf16.msra.mxu1 %v7072_v47  ;;  %5052 = vmatprep.subr.bf16.mxu0 %v7077_v48  ;;  %v7152_v47 = vld [vmem:[%s8304_s12 + $0xa44] ss:$16 sps:$4 sm:$0xff]   ;;  %v7147_v48 = vld [vmem:[%s8304_s12 + $0x840] ss:$16 sps:$4 sm:$0xff]  }
  0x9c   : > { %5093 = vmatprep.subr.bf16.mxu1 %v7080_v50  ;;  %v7150_v50 = vld [vmem:[%s8304_s12 + $0xa40] ss:$16 sps:$4 sm:$0xff]  }
  0x9e   : > { %5053 = vmatpush2.bf16.msra.mxu0 %v7075_v51  ;;  %v7155_v51 = vld [vmem:[%s8304_s12 + $0x824] ss:$16 sps:$4 sm:$0xff]  }
  0x9f   : > { %5094 = vmatpush2.bf16.msra.mxu1 %v7078_v53  ;;  %5054 = vmatprep.subr.bf16.mxu0 %v7083_v54  ;;  %v7158_v53 = vld [vmem:[%s8304_s12 + $0xa24] ss:$16 sps:$4 sm:$0xff]   ;;  %v7153_v54 = vld [vmem:[%s8304_s12 + $0x820] ss:$16 sps:$4 sm:$0xff]  }
  0xa0   : > { %5095 = vmatprep.subr.bf16.mxu1 %v7086_v55  ;;  %v7156_v55 = vld [vmem:[%s8304_s12 + $0xa20] ss:$16 sps:$4 sm:$0xff]  }
  0xa2   : > { %5055 = vmatpush2.bf16.msra.mxu0 %v7081_v56  ;;  %v7161_v56 = vld [vmem:[%s8304_s12 + $0x804] ss:$16 sps:$4 sm:$0xff]  }
  0xa3   : > { %5096 = vmatpush2.bf16.msra.mxu1 %v7084_v57  ;;  %5056 = vmatprep.subr.bf16.mxu0 %v7089_v58  ;;  %v7164_v57 = vld [vmem:[%s8304_s12 + $0xa04] ss:$16 sps:$4 sm:$0xff]   ;;  %v7159_v58 = vld [vmem:[%s8304_s12 + $0x800] ss:$16 sps:$4 sm:$0xff]  }
  0xa4   : > { %5097 = vmatprep.subr.bf16.mxu1 %v7092_v59  ;;  %v7162_v59 = vld [vmem:[%s8304_s12 + $0xa00] ss:$16 sps:$4 sm:$0xff]  }
  0xa6   : > { %5057 = vmatpush2.bf16.msra.mxu0 %v7087_v60  ;;  %v7167_v60 = vld [vmem:[%s8304_s12 + $0x9e4] ss:$16 sps:$4 sm:$0xff]  }
  0xa7   : > { %5098 = vmatpush2.bf16.msra.mxu1 %v7090_v61  ;;  %5058 = vmatprep.subr.bf16.mxu0 %v7095_v62  ;;  %v7170_v61 = vld [vmem:[%s8304_s12 + $0xbe4] ss:$16 sps:$4 sm:$0xff]   ;;  %v7165_v62 = vld [vmem:[%s8304_s12 + $0x9e0] ss:$16 sps:$4 sm:$0xff]  }
  0xa8   : > { %5099 = vmatprep.subr.bf16.mxu1 %v7098_v63  ;;  %v7168_v63 = vld [vmem:[%s8304_s12 + $0xbe0] ss:$16 sps:$4 sm:$0xff]  }
  0xaa   : > { %5059 = vmatpush2.bf16.msra.mxu0 %v7093_v0  ;;  %v7173_v0 = vld [vmem:[%s8304_s12 + $0x9c4] ss:$16 sps:$4 sm:$0xff]  }
  0xab   : > { %5100 = vmatpush2.bf16.msra.mxu1 %v7096_v1  ;;  %5060 = vmatprep.subr.bf16.mxu0 %v7101_v2  ;;  %v7176_v1 = vld [vmem:[%s8304_s12 + $0xbc4] ss:$16 sps:$4 sm:$0xff]   ;;  %v7171_v2 = vld [vmem:[%s8304_s12 + $0x9c0] ss:$16 sps:$4 sm:$0xff]  }
  0xac   : > { %5101 = vmatprep.subr.bf16.mxu1 %v7104_v3  ;;  %v7174_v3 = vld [vmem:[%s8304_s12 + $0xbc0] ss:$16 sps:$4 sm:$0xff]  }
  0xae   : > { %5061 = vmatpush2.bf16.msra.mxu0 %v7099_v4  ;;  %v7179_v4 = vld [vmem:[%s8304_s12 + $0x9a4] ss:$16 sps:$4 sm:$0xff]  }
  0xaf   : > { %5102 = vmatpush2.bf16.msra.mxu1 %v7102_v5  ;;  %5062 = vmatprep.subr.bf16.mxu0 %v7107_v6  ;;  %v7182_v5 = vld [vmem:[%s8304_s12 + $0xba4] ss:$16 sps:$4 sm:$0xff]   ;;  %v7177_v6 = vld [vmem:[%s8304_s12 + $0x9a0] ss:$16 sps:$4 sm:$0xff]  }
  0xb0   : > { %5103 = vmatprep.subr.bf16.mxu1 %v7110_v7  ;;  %v7180_v7 = vld [vmem:[%s8304_s12 + $0xba0] ss:$16 sps:$4 sm:$0xff]  }
  0xb2   : > { %5063 = vmatpush2.bf16.msra.mxu0 %v7105_v10  ;;  %v7185_v10 = vld [vmem:[%s8304_s12 + $0x984] ss:$16 sps:$4 sm:$0xff]  }
  0xb3   : > { %5104 = vmatpush2.bf16.msra.mxu1 %v7108_v11  ;;  %5064 = vmatprep.subr.bf16.mxu0 %v7113_v12  ;;  %v7188_v11 = vld [vmem:[%s8304_s12 + $0xb84] ss:$16 sps:$4 sm:$0xff]   ;;  %v7183_v12 = vld [vmem:[%s8304_s12 + $0x980] ss:$16 sps:$4 sm:$0xff]  }
  0xb4   : > { %5105 = vmatprep.subr.bf16.mxu1 %v7116_v13  ;;  %v7186_v13 = vld [vmem:[%s8304_s12 + $0xb80] ss:$16 sps:$4 sm:$0xff]  }
  0xb6   : > { %5065 = vmatpush2.bf16.msra.mxu0 %v7111_v14  ;;  %v7191_v14 = vld [vmem:[%s8304_s12 + $0x964] ss:$16 sps:$4 sm:$0xff]  }
  0xb7   : > { %5106 = vmatpush2.bf16.msra.mxu1 %v7114_v15  ;;  %5116 = vmatprep.subr.bf16.mxu0 %v7119_v18  ;;  %v7194_v15 = vld [vmem:[%s8304_s12 + $0xb64] ss:$16 sps:$4 sm:$0xff]  }
  0xb8   : > { %5157 = vmatprep.subr.bf16.mxu1 %v7122_v19  ;;  %v7197_v18 = vld [vmem:[%s8304_s12 + $0x944] ss:$16 sps:$4 sm:$0xff]  }
  0xb9   : > { %5067 = vmatmul.mubr.bf16.vlgmr.msra.gmra.mxu0 %v8488_v20  ;;  %v7200_v19 = vld [vmem:[%s8304_s12 + $0xb44] ss:$16 sps:$4 sm:$0xff]  }
  0xba   : > { %5108 = vmatmul.mubr.bf16.vlgmr.msra.gmra.mxu1 %v8490_v21  ;;  %5117 = vmatpush1.bf16.msra.mxu0 %v7117_v22  ;;  %v7195_v22 = vld [vmem:[%s8304_s12 + $0x940] ss:$16 sps:$4 sm:$0xff]  }
  0xbb   : > { %5158 = vmatpush1.bf16.msra.mxu1 %v7120_v23  ;;  %5118 = vmatprep.subr.bf16.mxu0 %v7125_v24  ;;  %v7198_v23 = vld [vmem:[%s8304_s12 + $0xb40] ss:$16 sps:$4 sm:$0xff]   ;;  %v7203_v24 = vld [vmem:[%s8304_s12 + $0x924] ss:$16 sps:$4 sm:$0xff]  }
  0xbc   : > { %5159 = vmatprep.subr.bf16.mxu1 %v7128_v25  ;;  %5148 = vmatprep.mubr.bf16.mxu0 %v8503_v29  ;;  %v7206_v25 = vld [vmem:[%s8304_s12 + $0xb24] ss:$16 sps:$4 sm:$0xff]  }
  0xbd   : > { %5189 = vmatprep.mubr.bf16.mxu1 %v8509_v32 }
  0xbe   : > { %5119 = vmatpush1.bf16.msra.mxu0 %v7123_v27  ;;  %v7204_v27 = vld [vmem:[%s8304_s12 + $0xb20] ss:$16 sps:$4 sm:$0xff]  }
  0xbf   : > { %5160 = vmatpush1.bf16.msra.mxu1 %v7126_v28  ;;  %5120 = vmatprep.subr.bf16.mxu0 %v7131_v31  ;;  %v7209_v28 = vld [vmem:[%s8304_s12 + $0x904] ss:$16 sps:$4 sm:$0xff]   ;;  %v7207_v31 = vld [vmem:[%s8304_s12 + $0x900] ss:$16 sps:$4 sm:$0xff]  }
  0xc0   : > { %5161 = vmatprep.subr.bf16.mxu1 %v7134_v33  ;;  %v7210_v33 = vld [vmem:[%s8304_s12 + $0xb00] ss:$16 sps:$4 sm:$0xff]  }
  0xc2   : > { %5121 = vmatpush1.bf16.msra.mxu0 %v7129_v34  ;;  %v282_v34 = vld [vmem:[%s9339_s0 + $0x40] sm:$0xff] }
  0xc3   : > { %5162 = vmatpush1.bf16.msra.mxu1 %v7132_v35  ;;  %5122 = vmatprep.subr.bf16.mxu0 %v7137_v36  ;;  %v284_v35 = vld [vmem:[%s9339_s0 + $0x50] sm:$0xff] }
  0xc4   : > { %5163 = vmatprep.subr.bf16.mxu1 %v7140_v38  ;;  %v7215_v36 = vld [vmem:[%s8304_s12 + $0xce4] ss:$16 sps:$4 sm:$0xff]  }
  0xc5   : > { %v7218_v38 = vld [vmem:[%s8304_s12 + $0xee4] ss:$16 sps:$4 sm:$0xff]  }
  0xc6   : > { %5123 = vmatpush1.bf16.msra.mxu0 %v7135_v39  ;;  %v7213_v39 = vld [vmem:[%s8304_s12 + $0xce0] ss:$16 sps:$4 sm:$0xff]  }
  0xc7   : > { %5164 = vmatpush1.bf16.msra.mxu1 %v7138_v41  ;;  %5124 = vmatprep.subr.bf16.mxu0 %v7143_v42  ;;  %v287_v41 = vld [vmem:[%s9339_s0 + $0x68] sm:$0xff]  ;;  %v8580_v42 = vpack.c.bf16 %v282_v34, %v282_v34  ;;  %v7279_v34 = vld [vmem:[%s8304_s12 + $0xd80] ss:$16 sps:$4 sm:$0xff]  }
  0xc8   : > { %5165 = vmatprep.subr.bf16.mxu1 %v7146_v43  ;;  %v8582_v43 = vpack.c.bf16 %v284_v35, %v284_v35  ;;  %v7282_v35 = vld [vmem:[%s8304_s12 + $0xf80] ss:$16 sps:$4 sm:$0xff]  }
  0xca   : > { %5125 = vmatpush1.bf16.msra.mxu0 %v7141_v44  ;;  %v289_v44 = vld [vmem:[%s9339_s0 + $0x78] sm:$0xff] }
  0xcb   : > { %5166 = vmatpush1.bf16.msra.mxu1 %v7144_v45  ;;  %5126 = vmatprep.subr.bf16.mxu0 %v7149_v46  ;;  %v7216_v45 = vld [vmem:[%s8304_s12 + $0xee0] ss:$16 sps:$4 sm:$0xff]   ;;  %v7221_v46 = vld [vmem:[%s8304_s12 + $0xcc4] ss:$16 sps:$4 sm:$0xff]  }
  0xcc   : > { %5167 = vmatprep.subr.bf16.mxu1 %v7152_v47  ;;  %v7224_v47 = vld [vmem:[%s8304_s12 + $0xec4] ss:$16 sps:$4 sm:$0xff]  }
  0xce   : > { %5127 = vmatpush1.bf16.msra.mxu0 %v7147_v48  ;;  %v8590_v48 = vpack.c.bf16 %v287_v41, %v287_v41  ;;  %v7288_v41 = vld [vmem:[%s8304_s12 + $0xf60] ss:$16 sps:$4 sm:$0xff]  }
  0xcf   : > { %5168 = vmatpush1.bf16.msra.mxu1 %v7150_v50  ;;  %5128 = vmatprep.subr.bf16.mxu0 %v7155_v51  ;;  %v8592_v50 = vpack.c.bf16 %v289_v44, %v289_v44  ;;  %v7219_v51 = vld [vmem:[%s8304_s12 + $0xcc0] ss:$16 sps:$4 sm:$0xff]   ;;  %v7293_v44 = vld [vmem:[%s8304_s12 + $0xd44] ss:$16 sps:$4 sm:$0xff]  }
  0xd0   : > { %5169 = vmatprep.subr.bf16.mxu1 %v7158_v53  ;;  %v7222_v53 = vld [vmem:[%s8304_s12 + $0xec0] ss:$16 sps:$4 sm:$0xff]  }
  0xd2   : > { %5129 = vmatpush1.bf16.msra.mxu0 %v7153_v54  ;;  %v7227_v54 = vld [vmem:[%s8304_s12 + $0xca4] ss:$16 sps:$4 sm:$0xff]  }
  0xd3   : > { %5170 = vmatpush1.bf16.msra.mxu1 %v7156_v55  ;;  %5130 = vmatprep.subr.bf16.mxu0 %v7161_v56  ;;  %v7230_v55 = vld [vmem:[%s8304_s12 + $0xea4] ss:$16 sps:$4 sm:$0xff]   ;;  %v7225_v56 = vld [vmem:[%s8304_s12 + $0xca0] ss:$16 sps:$4 sm:$0xff]  }
  0xd4   : > { %5171 = vmatprep.subr.bf16.mxu1 %v7164_v57  ;;  %v7228_v57 = vld [vmem:[%s8304_s12 + $0xea0] ss:$16 sps:$4 sm:$0xff]  }
  0xd6   : > { %5131 = vmatpush1.bf16.msra.mxu0 %v7159_v58  ;;  %v7233_v58 = vld [vmem:[%s8304_s12 + $0xc84] ss:$16 sps:$4 sm:$0xff]  }
  0xd7   : > { %5172 = vmatpush1.bf16.msra.mxu1 %v7162_v59  ;;  %5132 = vmatprep.subr.bf16.mxu0 %v7167_v60  ;;  %v7236_v59 = vld [vmem:[%s8304_s12 + $0xe84] ss:$16 sps:$4 sm:$0xff]   ;;  %v7231_v60 = vld [vmem:[%s8304_s12 + $0xc80] ss:$16 sps:$4 sm:$0xff]  }
  0xd8   : > { %5173 = vmatprep.subr.bf16.mxu1 %v7170_v61  ;;  %v7234_v61 = vld [vmem:[%s8304_s12 + $0xe80] ss:$16 sps:$4 sm:$0xff]  }
  0xda   : > { %5133 = vmatpush2.bf16.msra.mxu0 %v7165_v62  ;;  %v7239_v62 = vld [vmem:[%s8304_s12 + $0xc64] ss:$16 sps:$4 sm:$0xff]  }
  0xdb   : > { %5174 = vmatpush2.bf16.msra.mxu1 %v7168_v63  ;;  %5134 = vmatprep.subr.bf16.mxu0 %v7173_v0  ;;  %v7242_v63 = vld [vmem:[%s8304_s12 + $0xe64] ss:$16 sps:$4 sm:$0xff]   ;;  %v7237_v0 = vld [vmem:[%s8304_s12 + $0xc60] ss:$16 sps:$4 sm:$0xff]  }
  0xdc   : > { %5175 = vmatprep.subr.bf16.mxu1 %v7176_v1  ;;  %v7240_v1 = vld [vmem:[%s8304_s12 + $0xe60] ss:$16 sps:$4 sm:$0xff]  }
  0xde   : > { %5135 = vmatpush2.bf16.msra.mxu0 %v7171_v2  ;;  %v7245_v2 = vld [vmem:[%s8304_s12 + $0xc44] ss:$16 sps:$4 sm:$0xff]  }
  0xdf   : > { %5176 = vmatpush2.bf16.msra.mxu1 %v7174_v3  ;;  %5136 = vmatprep.subr.bf16.mxu0 %v7179_v4  ;;  %v7248_v3 = vld [vmem:[%s8304_s12 + $0xe44] ss:$16 sps:$4 sm:$0xff]   ;;  %v7243_v4 = vld [vmem:[%s8304_s12 + $0xc40] ss:$16 sps:$4 sm:$0xff]  }
  0xe0   : > { %5177 = vmatprep.subr.bf16.mxu1 %v7182_v5  ;;  %v7246_v5 = vld [vmem:[%s8304_s12 + $0xe40] ss:$16 sps:$4 sm:$0xff]  }
  0xe2   : > { %5137 = vmatpush2.bf16.msra.mxu0 %v7177_v6  ;;  %v7251_v6 = vld [vmem:[%s8304_s12 + $0xc24] ss:$16 sps:$4 sm:$0xff]  }
  0xe3   : > { %5178 = vmatpush2.bf16.msra.mxu1 %v7180_v7  ;;  %5138 = vmatprep.subr.bf16.mxu0 %v7185_v10  ;;  %v7254_v7 = vld [vmem:[%s8304_s12 + $0xe24] ss:$16 sps:$4 sm:$0xff]   ;;  %v7249_v10 = vld [vmem:[%s8304_s12 + $0xc20] ss:$16 sps:$4 sm:$0xff]  }
  0xe4   : > { %5179 = vmatprep.subr.bf16.mxu1 %v7188_v11  ;;  %v7252_v11 = vld [vmem:[%s8304_s12 + $0xe20] ss:$16 sps:$4 sm:$0xff]  }
  0xe6   : > { %5139 = vmatpush2.bf16.msra.mxu0 %v7183_v12  ;;  %v7257_v12 = vld [vmem:[%s8304_s12 + $0xc04] ss:$16 sps:$4 sm:$0xff]  }
  0xe7   : > { %5180 = vmatpush2.bf16.msra.mxu1 %v7186_v13  ;;  %5140 = vmatprep.subr.bf16.mxu0 %v7191_v14  ;;  %v7260_v13 = vld [vmem:[%s8304_s12 + $0xe04] ss:$16 sps:$4 sm:$0xff]   ;;  %v7255_v14 = vld [vmem:[%s8304_s12 + $0xc00] ss:$16 sps:$4 sm:$0xff]  }
  0xe8   : > { %5181 = vmatprep.subr.bf16.mxu1 %v7194_v15  ;;  %v7258_v15 = vld [vmem:[%s8304_s12 + $0xe00] ss:$16 sps:$4 sm:$0xff]  }
  0xea   : > { %5141 = vmatpush2.bf16.msra.mxu0 %v7189_v16  ;;  %v7263_v16 = vld [vmem:[%s8304_s12 + $0xde4] ss:$16 sps:$4 sm:$0xff]  }
  0xeb   : > { %5182 = vmatpush2.bf16.msra.mxu1 %v7192_v17  ;;  %5142 = vmatprep.subr.bf16.mxu0 %v7197_v18  ;;  %v7266_v17 = vld [vmem:[%s8304_s12 + $0xfe4] ss:$16 sps:$4 sm:$0xff]   ;;  %v7261_v18 = vld [vmem:[%s8304_s12 + $0xde0] ss:$16 sps:$4 sm:$0xff]  }
  0xec   : > { %5183 = vmatprep.subr.bf16.mxu1 %v7200_v19  ;;  %v7264_v19 = vld [vmem:[%s8304_s12 + $0xfe0] ss:$16 sps:$4 sm:$0xff]  }
  0xee   : > { %5143 = vmatpush2.bf16.msra.mxu0 %v7195_v22  ;;  %v7269_v22 = vld [vmem:[%s8304_s12 + $0xdc4] ss:$16 sps:$4 sm:$0xff]  }
  0xef   : > { %5184 = vmatpush2.bf16.msra.mxu1 %v7198_v23  ;;  %5144 = vmatprep.subr.bf16.mxu0 %v7203_v24  ;;  %v7272_v23 = vld [vmem:[%s8304_s12 + $0xfc4] ss:$16 sps:$4 sm:$0xff]   ;;  %v7267_v24 = vld [vmem:[%s8304_s12 + $0xdc0] ss:$16 sps:$4 sm:$0xff]  }
  0xf0   : > { %5185 = vmatprep.subr.bf16.mxu1 %v7206_v25  ;;  %v7270_v25 = vld [vmem:[%s8304_s12 + $0xfc0] ss:$16 sps:$4 sm:$0xff]  }
  0xf2   : > { %5145 = vmatpush2.bf16.msra.mxu0 %v7201_v26  ;;  %v7275_v26 = vld [vmem:[%s8304_s12 + $0xda4] ss:$16 sps:$4 sm:$0xff]  }
  0xf3   : > { %5186 = vmatpush2.bf16.msra.mxu1 %v7204_v27  ;;  %5146 = vmatprep.subr.bf16.mxu0 %v7209_v28  ;;  %v7278_v27 = vld [vmem:[%s8304_s12 + $0xfa4] ss:$16 sps:$4 sm:$0xff]   ;;  %v7273_v28 = vld [vmem:[%s8304_s12 + $0xda0] ss:$16 sps:$4 sm:$0xff]  }
  0xf4   : > { %5187 = vmatprep.subr.bf16.mxu1 %v7212_v30  ;;  %v7276_v30 = vld [vmem:[%s8304_s12 + $0xfa0] ss:$16 sps:$4 sm:$0xff]  }
  0xf6   : > { %5147 = vmatpush2.bf16.msra.mxu0 %v7207_v31  ;;  %v7281_v31 = vld [vmem:[%s8304_s12 + $0xd84] ss:$16 sps:$4 sm:$0xff]  }
  0xf7   : > { %5188 = vmatpush2.bf16.msra.mxu1 %v7210_v33  ;;  %5198 = vmatprep.subr.bf16.mxu0 %v7215_v36  ;;  %v7284_v33 = vld [vmem:[%s8304_s12 + $0xf84] ss:$16 sps:$4 sm:$0xff]  }
  0xf8   : > { %5239 = vmatprep.subr.bf16.mxu1 %v7218_v38  ;;  %v7287_v36 = vld [vmem:[%s8304_s12 + $0xd64] ss:$16 sps:$4 sm:$0xff]  }
  0xf9   : > { %5149 = vmatmul.mubr.bf16.vlgmr.msra.gmra.mxu0 %v8580_v42  ;;  %v7290_v38 = vld [vmem:[%s8304_s12 + $0xf64] ss:$16 sps:$4 sm:$0xff]  }
  0xfa   : > { %5190 = vmatmul.mubr.bf16.vlgmr.msra.gmra.mxu1 %v8582_v43  ;;  %5199 = vmatpush1.bf16.msra.mxu0 %v7213_v39  ;;  %v7285_v39 = vld [vmem:[%s8304_s12 + $0xd60] ss:$16 sps:$4 sm:$0xff]  }
  0xfb   : > { %5240 = vmatpush1.bf16.msra.mxu1 %v7216_v45  ;;  %5200 = vmatprep.subr.bf16.mxu0 %v7221_v46  ;;  %v7296_v45 = vld [vmem:[%s8304_s12 + $0xf44] ss:$16 sps:$4 sm:$0xff]   ;;  %v7291_v46 = vld [vmem:[%s8304_s12 + $0xd40] ss:$16 sps:$4 sm:$0xff]  }
  0xfc   : > { %5241 = vmatprep.subr.bf16.mxu1 %v7224_v47  ;;  %5230 = vmatprep.mubr.bf16.mxu0 %v8590_v48  ;;  %v7294_v47 = vld [vmem:[%s8304_s12 + $0xf40] ss:$16 sps:$4 sm:$0xff]  }
  0xfd   : > { %5271 = vmatprep.mubr.bf16.mxu1 %v8592_v50 }
  0xfe   : > { %5201 = vmatpush1.bf16.msra.mxu0 %v7219_v51  ;;  %v1092_v51 = vlaneseq }
  0xff   : > { %5242 = vmatpush1.bf16.msra.mxu1 %v7222_v53  ;;  %5202 = vmatprep.subr.bf16.mxu0 %v7227_v54  ;;  %v7299_v53 = vld [vmem:[%s8304_s12 + $0xd24] ss:$16 sps:$4 sm:$0xff]  }
 0x100   : > { %5243 = vmatprep.subr.bf16.mxu1 %v7230_v55  ;;  %v7302_v54 = vld [vmem:[%s8304_s12 + $0xf24] ss:$16 sps:$4 sm:$0xff]   ;;  %v7297_v55 = vld [vmem:[%s8304_s12 + $0xd20] ss:$16 sps:$4 sm:$0xff]  }
 0x102   : > { %5203 = vmatpush1.bf16.msra.mxu0 %v7225_v56  ;;  %v7300_v56 = vld [vmem:[%s8304_s12 + $0xf20] ss:$16 sps:$4 sm:$0xff]  }
 0x103   : > { %5244 = vmatpush1.bf16.msra.mxu1 %v7228_v57  ;;  %5204 = vmatprep.subr.bf16.mxu0 %v7233_v58  ;;  %v8652_v57 = vshrl.u32 %v1092_v51, 7  ;;  %v7305_v58 = vld [vmem:[%s8304_s12 + $0xd04] ss:$16 sps:$4 sm:$0xff]   ;;  %v7330_v51 = vld [vmem:[%s8304_s12 + $0x1280] ss:$16 sps:$4 sm:$0xff]  }
 0x104   : > { %5245 = vmatprep.subr.bf16.mxu1 %v7236_v59  ;;  %v7308_v59 = vld [vmem:[%s8304_s12 + $0xf04] ss:$16 sps:$4 sm:$0xff]  }
 0x106   : > { %5205 = vmatpush1.bf16.msra.mxu0 %v7231_v60  ;;  %v7303_v60 = vld [vmem:[%s8304_s12 + $0xd00] ss:$16 sps:$4 sm:$0xff]  }
 0x107   : > { %5246 = vmatpush1.bf16.msra.mxu1 %v7234_v61  ;;  %5206 = vmatprep.subr.bf16.mxu0 %v7239_v62  ;;  %v7306_v61 = vld [vmem:[%s8304_s12 + $0xf00] ss:$16 sps:$4 sm:$0xff]  }
 0x108   : > { %5247 = vmatprep.subr.bf16.mxu1 %v7242_v63  ;;  %v1090_v62 = vld [vmem:[%s8310_s30] sm:$0xf] }
 0x109   : > { %v286_v63 = vld [vmem:[%s9339_s0 + $0x60] sm:$0xff] }
 0x10a   : > { %5207 = vmatpush1.bf16.msra.mxu0 %v7237_v0  ;;  %v1094_v0 = vsub.s32 0, %v8652_v57 }
 0x10b   : > { %5248 = vmatpush1.bf16.msra.mxu1 %v7240_v1  ;;  %5208 = vmatprep.subr.bf16.mxu0 %v7245_v2  ;;  %v288_v1 = vld [vmem:[%s9339_s0 + $0x70] sm:$0xff] }
 0x10c   : > { %5249 = vmatprep.subr.bf16.mxu1 %v7248_v3  ;;  %v7311_v2 = vld [vmem:[%s8304_s12 + $0x10e4] ss:$16 sps:$4 sm:$0xff]  }
 0x10d   : > { %v7314_v3 = vld [vmem:[%s8304_s12 + $0x12e4] ss:$16 sps:$4 sm:$0xff]  }
 0x10e   : > { %5209 = vmatpush1.bf16.msra.mxu0 %v7243_v4  ;;  %v7309_v4 = vld [vmem:[%s8304_s12 + $0x10e0] ss:$16 sps:$4 sm:$0xff]  }
 0x10f   : > { %5250 = vmatpush1.bf16.msra.mxu1 %v7246_v5  ;;  %5210 = vmatprep.subr.bf16.mxu0 %v7251_v6  ;;  %v1098_v5 = vsub.s32 1, %v8652_v57  ;;  %v291_v6 = vld [vmem:[%s9339_s0 + $0x88] sm:$0xff] }
 0x110   : > { %5251 = vmatprep.subr.bf16.mxu1 %v7254_v7  ;;  %v8673_v7 = vpack.c.bf16 %v286_v63, %v286_v63  ;;  %v7350_v63 = vld [vmem:[%s8304_s12 + $0x1224] ss:$16 sps:$4 sm:$0xff]  }
 0x112   : > { %5211 = vmatpush1.bf16.msra.mxu0 %v7249_v10  ;;  %v8675_v10 = vpack.c.bf16 %v288_v1, %v288_v1  ;;  %v7348_v1 = vld [vmem:[%s8304_s12 + $0x1220] ss:$16 sps:$4 sm:$0xff]  }
 0x113   : > { %5252 = vmatpush1.bf16.msra.mxu1 %v7252_v11  ;;  %5212 = vmatprep.subr.bf16.mxu0 %v7257_v12  ;;  %v293_v11 = vld [vmem:[%s9339_s0 + $0x98] sm:$0xff]  ;;  %v1095_v12 = vrot.slane %v1090_v62, %v1094_v0  ;;  %v7345_v0 = vld [vmem:[%s8304_s12 + $0x1020] ss:$16 sps:$4 sm:$0xff]  }
 0x114   : > { %5253 = vmatprep.subr.bf16.mxu1 %v7260_v13  ;;  %v7312_v13 = vld [vmem:[%s8304_s12 + $0x12e0] ss:$16 sps:$4 sm:$0xff]  }
 0x116   : > { %5213 = vmatpush1.bf16.msra.mxu0 %v7255_v14  ;;  %v7317_v14 = vld [vmem:[%s8304_s12 + $0x10c4] ss:$16 sps:$4 sm:$0xff]  }
 0x117   : > { %5254 = vmatpush1.bf16.msra.mxu1 %v7258_v15  ;;  %5214 = vmatprep.subr.bf16.mxu0 %v7263_v16  ;;  %v7320_v15 = vld [vmem:[%s8304_s12 + $0x12c4] ss:$16 sps:$4 sm:$0xff]   ;;  %v1099_v16 = vrot.slane %v1090_v62, %v1098_v5  ;;  %v7354_v5 = vld [vmem:[%s8304_s12 + $0x1200] ss:$16 sps:$4 sm:$0xff]  }
 0x118   : > { %5255 = vmatprep.subr.bf16.mxu1 %v7266_v17  ;;  %v8683_v17 = vpack.c.bf16 %v291_v6, %v291_v6  ;;  %v7347_v62 = vld [vmem:[%s8304_s12 + $0x1024] ss:$16 sps:$4 sm:$0xff]  }
 0x119   : > { %v7359_v6 = vld [vmem:[%s8304_s12 + $0x11e4] ss:$16 sps:$4 sm:$0xff]  }
 0x11a   : > { %5215 = vmatpush2.bf16.msra.mxu0 %v7261_v18  ;;  %v8685_v18 = vpack.c.bf16 %v293_v11, %v293_v11  ;;  %v7362_v11 = vld [vmem:[%s8304_s12 + $0x13e4] ss:$16 sps:$4 sm:$0xff]  }
 0x11b   : > { %5256 = vmatpush2.bf16.msra.mxu1 %v7264_v19  ;;  %5216 = vmatprep.subr.bf16.mxu0 %v7269_v22 }
 0x11c   : > { %5257 = vmatprep.subr.bf16.mxu1 %v7272_v23  ;;  %v7315_v23 = vld [vmem:[%s8304_s12 + $0x10c0] ss:$16 sps:$4 sm:$0xff]  }
 0x11e   : > { %5217 = vmatpush2.bf16.msra.mxu0 %v7267_v24 }
 0x11f   : > { %5258 = vmatpush2.bf16.msra.mxu1 %v7270_v25  ;;  %5218 = vmatprep.subr.bf16.mxu0 %v7275_v26  ;;  %v7318_v25 = vld [vmem:[%s8304_s12 + $0x12c0] ss:$16 sps:$4 sm:$0xff]  }
 0x120   : > { %5259 = vmatprep.subr.bf16.mxu1 %v7278_v27 }
 0x122   : > { %5219 = vmatpush2.bf16.msra.mxu0 %v7273_v28  ;;  %v7323_v28 = vld [vmem:[%s8304_s12 + $0x10a4] ss:$16 sps:$4 sm:$0xff]  }
 0x123   : > { %5260 = vmatpush2.bf16.msra.mxu1 %v7276_v30  ;;  %5220 = vmatprep.subr.bf16.mxu0 %v7281_v31  ;;  %v7326_v30 = vld [vmem:[%s8304_s12 + $0x12a4] ss:$16 sps:$4 sm:$0xff]  }
 0x124   : > { %5261 = vmatprep.subr.bf16.mxu1 %v7284_v33 }
 0x126   : > { %5221 = vmatpush2.bf16.msra.mxu0 %v7279_v34 }
 0x127   : > { %5262 = vmatpush2.bf16.msra.mxu1 %v7282_v35  ;;  %5222 = vmatprep.subr.bf16.mxu0 %v7287_v36  ;;  %v7321_v36 = vld [vmem:[%s8304_s12 + $0x10a0] ss:$16 sps:$4 sm:$0xff]  }
 0x128   : > { %5263 = vmatprep.subr.bf16.mxu1 %v7290_v38 }
 0x12a   : > { %5223 = vmatpush2.bf16.msra.mxu0 %v7285_v39  ;;  %v7324_v39 = vld [vmem:[%s8304_s12 + $0x12a0] ss:$16 sps:$4 sm:$0xff]  }
 0x12b   : > { %5264 = vmatpush2.bf16.msra.mxu1 %v7288_v41  ;;  %5224 = vmatprep.subr.bf16.mxu0 %v7293_v44 }
 0x12c   : > { %5265 = vmatprep.subr.bf16.mxu1 %v7296_v45  ;;  %v7329_v45 = vld [vmem:[%s8304_s12 + $0x1084] ss:$16 sps:$4 sm:$0xff]  }
 0x12e   : > { %5225 = vmatpush2.bf16.msra.mxu0 %v7291_v46  ;;  %v7332_v46 = vld [vmem:[%s8304_s12 + $0x1284] ss:$16 sps:$4 sm:$0xff]  }
 0x12f   : > { %5266 = vmatpush2.bf16.msra.mxu1 %v7294_v47  ;;  %5226 = vmatprep.subr.bf16.mxu0 %v7299_v53  ;;  %v7327_v47 = vld [vmem:[%s8304_s12 + $0x1080] ss:$16 sps:$4 sm:$0xff]   ;;  %v7335_v53 = vld [vmem:[%s8304_s12 + $0x1064] ss:$16 sps:$4 sm:$0xff]  }
 0x130   : > { %5267 = vmatprep.subr.bf16.mxu1 %v7302_v54  ;;  %v7338_v54 = vld [vmem:[%s8304_s12 + $0x1264] ss:$16 sps:$4 sm:$0xff]  }
 0x132   : > { %5227 = vmatpush2.bf16.msra.mxu0 %v7297_v55  ;;  %v7333_v55 = vld [vmem:[%s8304_s12 + $0x1060] ss:$16 sps:$4 sm:$0xff]  }
 0x133   : > { %5268 = vmatpush2.bf16.msra.mxu1 %v7300_v56  ;;  %5228 = vmatprep.subr.bf16.mxu0 %v7305_v58  ;;  %v7336_v56 = vld [vmem:[%s8304_s12 + $0x1260] ss:$16 sps:$4 sm:$0xff]   ;;  %v7341_v58 = vld [vmem:[%s8304_s12 + $0x1044] ss:$16 sps:$4 sm:$0xff]  }
 0x134   : > { %5269 = vmatprep.subr.bf16.mxu1 %v7308_v59  ;;  %v7344_v59 = vld [vmem:[%s8304_s12 + $0x1244] ss:$16 sps:$4 sm:$0xff]  }
 0x136   : > { %5229 = vmatpush2.bf16.msra.mxu0 %v7303_v60  ;;  %v7339_v60 = vld [vmem:[%s8304_s12 + $0x1040] ss:$16 sps:$4 sm:$0xff]  }
 0x137   : > { %5270 = vmatpush2.bf16.msra.mxu1 %v7306_v61  ;;  %5280 = vmatprep.subr.bf16.mxu0 %v7311_v2  ;;  %v7342_v61 = vld [vmem:[%s8304_s12 + $0x1240] ss:$16 sps:$4 sm:$0xff]   ;;  %v7353_v2 = vld [vmem:[%s8304_s12 + $0x1004] ss:$16 sps:$4 sm:$0xff]  }
 0x138   : > { %5321 = vmatprep.subr.bf16.mxu1 %v7314_v3  ;;  %v7356_v3 = vld [vmem:[%s8304_s12 + $0x1204] ss:$16 sps:$4 sm:$0xff]  }
 0x139   : > { %v4986_v19 = vpop.f32.mrf.mxu0  ;;  %5231 = vmatmul.mubr.bf16.vlgmr.msra.gmra.mxu0 %v8673_v7 }
 0x13a   : > { %v5027_v22 = vpop.f32.mrf.mxu1  ;;  %5272 = vmatmul.mubr.bf16.vlgmr.msra.gmra.mxu1 %v8675_v10  ;;  %v4987_v24 = vadd.f32 %v4986_v19, %v1095_v12  ;;  %5281 = vmatpush1.bf16.msra.mxu0 %v7309_v4  ;;  %v7351_v4 = vld [vmem:[%s8304_s12 + $0x1000] ss:$16 sps:$4 sm:$0xff]  }
 0x13b   : > { %5322 = vmatpush1.bf16.msra.mxu1 %v7312_v13  ;;  %v4988_v26 = vpop.f32.mrf.mxu0  ;;  %5282 = vmatprep.subr.bf16.mxu0 %v7317_v14  ;;  %v7357_v12 = vld [vmem:[%s8304_s12 + $0x11e0] ss:$16 sps:$4 sm:$0xff]   ;;  %v7365_v14 = vld [vmem:[%s8304_s12 + $0x11c4] ss:$16 sps:$4 sm:$0xff]  }
 0x13c   : > { %v5029_v27 = vpop.f32.mrf.mxu1  ;;  %5323 = vmatprep.subr.bf16.mxu1 %v7320_v15  ;;  %v8693_v31 = vadd.f32 %v5027_v22, %v4987_v24  ;;  %v4989_v33 = vadd.f32 %v4988_v26, %v1099_v16  ;;  %5312 = vmatprep.mubr.bf16.mxu0 %v8683_v17  ;;  %v7360_v13 = vld [vmem:[%s8304_s12 + $0x13e0] ss:$16 sps:$4 sm:$0xff]   ;;  %v7368_v15 = vld [vmem:[%s8304_s12 + $0x13c4] ss:$16 sps:$4 sm:$0xff]  }
 0x13d   : > { %5353 = vmatprep.mubr.bf16.mxu1 %v8685_v18  ;;  %v4990_v34 = vpop.f32.mrf.mxu0  ;;  %v7363_v16 = vld [vmem:[%s8304_s12 + $0x11c0] ss:$16 sps:$4 sm:$0xff]   ;;  %v7371_v22 = vld [vmem:[%s8304_s12 + $0x11a4] ss:$16 sps:$4 sm:$0xff]  }
 0x13e   : > { %v5031_v35 = vpop.f32.mrf.mxu1  ;;  %v8698_v38 = vadd.f32 %v5029_v27, %v4989_v33  ;;  %5283 = vmatpush1.bf16.msra.mxu0 %v7315_v23  ;;  %v7366_v19 = vld [vmem:[%s8304_s12 + $0x13c0] ss:$16 sps:$4 sm:$0xff]   ;;  %v7374_v23 = vld [vmem:[%s8304_s12 + $0x13a4] ss:$16 sps:$4 sm:$0xff]  }
 0x13f   : > { %5324 = vmatpush1.bf16.msra.mxu1 %v7318_v25  ;;  %v4991_v41 = vpop.f32.mrf.mxu0  ;;  %5284 = vmatprep.subr.bf16.mxu0 %v7323_v28  ;;  %v7369_v24 = vld [vmem:[%s8304_s12 + $0x11a0] ss:$16 sps:$4 sm:$0xff]   ;;  %v7377_v26 = vld [vmem:[%s8304_s12 + $0x1184] ss:$16 sps:$4 sm:$0xff]  }
 0x140   : > { %v5032_v44 = vpop.f32.mrf.mxu1  ;;  %5325 = vmatprep.subr.bf16.mxu1 %v7326_v30  ;;  %v7372_v25 = vld [vmem:[%s8304_s12 + $0x13a0] ss:$16 sps:$4 sm:$0xff]   ;;  %v7380_v27 = vld [vmem:[%s8304_s12 + $0x1384] ss:$16 sps:$4 sm:$0xff]  }
 0x141   : > { %v7375_v28 = vld [vmem:[%s8304_s12 + $0x1180] ss:$16 sps:$4 sm:$0xff]   ;;  %v7383_v33 = vld [vmem:[%s8304_s12 + $0x1164] ss:$16 sps:$4 sm:$0xff]  }
 0x142   : > { %5285 = vmatpush1.bf16.msra.mxu0 %v7321_v36  ;;  %v7378_v30 = vld [vmem:[%s8304_s12 + $0x1380] ss:$16 sps:$4 sm:$0xff]   ;;  %v7386_v34 = vld [vmem:[%s8304_s12 + $0x1364] ss:$16 sps:$4 sm:$0xff]  }
 0x143   : > { %5326 = vmatpush1.bf16.msra.mxu1 %v7324_v39  ;;  %5286 = vmatprep.subr.bf16.mxu0 %v7329_v45  ;;  %v7381_v35 = vld [vmem:[%s8304_s12 + $0x1160] ss:$16 sps:$4 sm:$0xff]   ;;  %v7389_v39 = vld [vmem:[%s8304_s12 + $0x1144] ss:$16 sps:$4 sm:$0xff]  }
 0x144   : > { %5327 = vmatprep.subr.bf16.mxu1 %v7332_v46  ;;  %v7384_v36 = vld [vmem:[%s8304_s12 + $0x1360] ss:$16 sps:$4 sm:$0xff]   ;;  %v7392_v41 = vld [vmem:[%s8304_s12 + $0x1344] ss:$16 sps:$4 sm:$0xff]  }
 0x145   : > { %v7387_v44 = vld [vmem:[%s8304_s12 + $0x1140] ss:$16 sps:$4 sm:$0xff]   ;;  %v7395_v46 = vld [vmem:[%s8304_s12 + $0x1124] ss:$16 sps:$4 sm:$0xff]  }
 0x146   : > { %5287 = vmatpush1.bf16.msra.mxu0 %v7327_v47  ;;  %v7390_v45 = vld [vmem:[%s8304_s12 + $0x1340] ss:$16 sps:$4 sm:$0xff]   ;;  %v7398_v47 = vld [vmem:[%s8304_s12 + $0x1324] ss:$16 sps:$4 sm:$0xff]  }
 0x147   : > { %5328 = vmatpush1.bf16.msra.mxu1 %v7330_v51  ;;  %5288 = vmatprep.subr.bf16.mxu0 %v7335_v53  ;;  %v7393_v51 = vld [vmem:[%s8304_s12 + $0x1120] ss:$16 sps:$4 sm:$0xff]  }
 0x148   : > { %5329 = vmatprep.subr.bf16.mxu1 %v7338_v54  ;;  %v7396_v53 = vld [vmem:[%s8304_s12 + $0x1320] ss:$16 sps:$4 sm:$0xff]   ;;  %v7401_v54 = vld [vmem:[%s8304_s12 + $0x1104] ss:$16 sps:$4 sm:$0xff]  }
 0x14a   : > { %5289 = vmatpush1.bf16.msra.mxu0 %v7333_v55  ;;  %v7404_v55 = vld [vmem:[%s8304_s12 + $0x1304] ss:$16 sps:$4 sm:$0xff]  }
 0x14b   : > { %5330 = vmatpush1.bf16.msra.mxu1 %v7336_v56  ;;  %5290 = vmatprep.subr.bf16.mxu0 %v7341_v58  ;;  %v7399_v56 = vld [vmem:[%s8304_s12 + $0x1100] ss:$16 sps:$4 sm:$0xff]  }
 0x14c   : > { %5331 = vmatprep.subr.bf16.mxu1 %v7344_v59  ;;  %v7402_v58 = vld [vmem:[%s8304_s12 + $0x1300] ss:$16 sps:$4 sm:$0xff]  }
 0x14d   : > { %v290_v59 = vld [vmem:[%s9339_s0 + $0x80] sm:$0xff] }
 0x14e   : > { %5291 = vmatpush1.bf16.msra.mxu0 %v7339_v60  ;;  %v292_v60 = vld [vmem:[%s9339_s0 + $0x90] sm:$0xff] }
 0x14f   : > { %5332 = vmatpush1.bf16.msra.mxu1 %v7342_v61  ;;  %5292 = vmatprep.subr.bf16.mxu0 %v7347_v62  ;;  %v7407_v61 = vld [vmem:[%s8304_s12 + $0x14e4] ss:$16 sps:$4 sm:$0xff]  }
 0x150   : > { %5333 = vmatprep.subr.bf16.mxu1 %v7350_v63  ;;  %v7410_v62 = vld [vmem:[%s8304_s12 + $0x16e4] ss:$16 sps:$4 sm:$0xff]   ;;  %v295_v63 = vld [vmem:[%s9339_s0 + $0xa8] sm:$0xff] }
 0x152   : > { %5293 = vmatpush1.bf16.msra.mxu0 %v7345_v0  ;;  %v297_v0 = vld [vmem:[%s9339_s0 + $0xb8] sm:$0xff] }
 0x153   : > { %5334 = vmatpush1.bf16.msra.mxu1 %v7348_v1  ;;  %5294 = vmatprep.subr.bf16.mxu0 %v7353_v2  ;;  %v7405_v1 = vld [vmem:[%s8304_s12 + $0x14e0] ss:$16 sps:$4 sm:$0xff]  }
 0x154   : > { %5335 = vmatprep.subr.bf16.mxu1 %v7356_v3  ;;  %v7408_v2 = vld [vmem:[%s8304_s12 + $0x16e0] ss:$16 sps:$4 sm:$0xff]   ;;  %v8769_v3 = vpack.c.bf16 %v290_v59, %v290_v59  ;;  %v7446_v59 = vld [vmem:[%s8304_s12 + $0x1624] ss:$16 sps:$4 sm:$0xff]  }
 0x156   : > { %5295 = vmatpush1.bf16.msra.mxu0 %v7351_v4  ;;  %v8771_v4 = vpack.c.bf16 %v292_v60, %v292_v60  ;;  %v7441_v60 = vld [vmem:[%s8304_s12 + $0x1420] ss:$16 sps:$4 sm:$0xff]  }
 0x157   : > { %5336 = vmatpush1.bf16.msra.mxu1 %v7354_v5  ;;  %5296 = vmatprep.subr.bf16.mxu0 %v7359_v6  ;;  %v7413_v5 = vld [vmem:[%s8304_s12 + $0x14c4] ss:$16 sps:$4 sm:$0xff]  }
 0x158   : > { %5337 = vmatprep.subr.bf16.mxu1 %v7362_v11  ;;  %v7416_v6 = vld [vmem:[%s8304_s12 + $0x16c4] ss:$16 sps:$4 sm:$0xff]   ;;  %v7411_v11 = vld [vmem:[%s8304_s12 + $0x14c0] ss:$16 sps:$4 sm:$0xff]  }
 0x15a   : > { %5297 = vmatpush2.bf16.msra.mxu0 %v7357_v12  ;;  %v7414_v12 = vld [vmem:[%s8304_s12 + $0x16c0] ss:$16 sps:$4 sm:$0xff]  }
 0x15b   : > { %5338 = vmatpush2.bf16.msra.mxu1 %v7360_v13  ;;  %5298 = vmatprep.subr.bf16.mxu0 %v7365_v14  ;;  %v8777_v13 = vpack.c.bf16 %v295_v63, %v295_v63  ;;  %v8779_v14 = vpack.c.bf16 %v297_v0, %v297_v0  ;;  %v7452_v63 = vld [vmem:[%s8304_s12 + $0x1604] ss:$16 sps:$4 sm:$0xff]   ;;  %v7447_v0 = vld [vmem:[%s8304_s12 + $0x1400] ss:$16 sps:$4 sm:$0xff]  }
 0x15c   : > { %5339 = vmatprep.subr.bf16.mxu1 %v7368_v15 }
 0x15e   : > { %5299 = vmatpush2.bf16.msra.mxu0 %v7363_v16 }
 0x15f   : > { %5340 = vmatpush2.bf16.msra.mxu1 %v7366_v19  ;;  %5300 = vmatprep.subr.bf16.mxu0 %v7371_v22 }
 0x160   : > { %5341 = vmatprep.subr.bf16.mxu1 %v7374_v23 }
 0x162   : > { %5301 = vmatpush2.bf16.msra.mxu0 %v7369_v24  ;;  %v7419_v24 = vld [vmem:[%s8304_s12 + $0x14a4] ss:$16 sps:$4 sm:$0xff]  }
 0x163   : > { %5342 = vmatpush2.bf16.msra.mxu1 %v7372_v25  ;;  %5302 = vmatprep.subr.bf16.mxu0 %v7377_v26  ;;  %v7422_v25 = vld [vmem:[%s8304_s12 + $0x16a4] ss:$16 sps:$4 sm:$0xff]  }
 0x164   : > { %5343 = vmatprep.subr.bf16.mxu1 %v7380_v27 }
 0x166   : > { %5303 = vmatpush2.bf16.msra.mxu0 %v7375_v28  ;;  %v7417_v28 = vld [vmem:[%s8304_s12 + $0x14a0] ss:$16 sps:$4 sm:$0xff]  }
 0x167   : > { %5344 = vmatpush2.bf16.msra.mxu1 %v7378_v30  ;;  %5304 = vmatprep.subr.bf16.mxu0 %v7383_v33  ;;  %v7420_v30 = vld [vmem:[%s8304_s12 + $0x16a0] ss:$16 sps:$4 sm:$0xff]  }
 0x168   : > { %5345 = vmatprep.subr.bf16.mxu1 %v7386_v34 }
 0x16a   : > { %5305 = vmatpush2.bf16.msra.mxu0 %v7381_v35 }
 0x16b   : > { %5346 = vmatpush2.bf16.msra.mxu1 %v7384_v36  ;;  %5306 = vmatprep.subr.bf16.mxu0 %v7389_v39  ;;  %v7428_v39 = vld [vmem:[%s8304_s12 + $0x1684] ss:$16 sps:$4 sm:$0xff]  }
 0x16c   : > { %5347 = vmatprep.subr.bf16.mxu1 %v7392_v41  ;;  %v7423_v41 = vld [vmem:[%s8304_s12 + $0x1480] ss:$16 sps:$4 sm:$0xff]  }
 0x16e   : > { %5307 = vmatpush2.bf16.msra.mxu0 %v7387_v44  ;;  %v7426_v44 = vld [vmem:[%s8304_s12 + $0x1680] ss:$16 sps:$4 sm:$0xff]  }
 0x16f   : > { %5348 = vmatpush2.bf16.msra.mxu1 %v7390_v45  ;;  %5308 = vmatprep.subr.bf16.mxu0 %v7395_v46  ;;  %v7431_v45 = vld [vmem:[%s8304_s12 + $0x1464] ss:$16 sps:$4 sm:$0xff]  }
 0x170   : > { %5349 = vmatprep.subr.bf16.mxu1 %v7398_v47  ;;  %v7434_v46 = vld [vmem:[%s8304_s12 + $0x1664] ss:$16 sps:$4 sm:$0xff]   ;;  %v7429_v47 = vld [vmem:[%s8304_s12 + $0x1460] ss:$16 sps:$4 sm:$0xff]  }
 0x172   : > { %5309 = vmatpush2.bf16.msra.mxu0 %v7393_v51  ;;  %v7432_v51 = vld [vmem:[%s8304_s12 + $0x1660] ss:$16 sps:$4 sm:$0xff]  }
 0x173   : > { %5350 = vmatpush2.bf16.msra.mxu1 %v7396_v53  ;;  %5310 = vmatprep.subr.bf16.mxu0 %v7401_v54  ;;  %v7437_v53 = vld [vmem:[%s8304_s12 + $0x1444] ss:$16 sps:$4 sm:$0xff]  }
 0x174   : > { %5351 = vmatprep.subr.bf16.mxu1 %v7404_v55  ;;  %v7440_v54 = vld [vmem:[%s8304_s12 + $0x1644] ss:$16 sps:$4 sm:$0xff]   ;;  %v7435_v55 = vld [vmem:[%s8304_s12 + $0x1440] ss:$16 sps:$4 sm:$0xff]  }
 0x176   : > { %5311 = vmatpush2.bf16.msra.mxu0 %v7399_v56  ;;  %v7438_v56 = vld [vmem:[%s8304_s12 + $0x1640] ss:$16 sps:$4 sm:$0xff]  }
 0x177   : > { %5352 = vmatpush2.bf16.msra.mxu1 %v7402_v58  ;;  %5362 = vmatprep.subr.bf16.mxu0 %v7407_v61  ;;  %v7443_v58 = vld [vmem:[%s8304_s12 + $0x1424] ss:$16 sps:$4 sm:$0xff]   ;;  %v7444_v61 = vld [vmem:[%s8304_s12 + $0x1620] ss:$16 sps:$4 sm:$0xff]  }
 0x178   : > { %5403 = vmatprep.subr.bf16.mxu1 %v7410_v62  ;;  %v7449_v62 = vld [vmem:[%s8304_s12 + $0x1404] ss:$16 sps:$4 sm:$0xff]  }
 0x179   : > { %v5068_v15 = vpop.f32.mrf.mxu0  ;;  %5313 = vmatmul.mubr.bf16.vlgmr.msra.gmra.mxu0 %v8769_v3 }
 0x17a   : > { %v5109_v16 = vpop.f32.mrf.mxu1  ;;  %5354 = vmatmul.mubr.bf16.vlgmr.msra.gmra.mxu1 %v8771_v4  ;;  %v5069_v19 = vadd.f32 %v5068_v15, %v8693_v31  ;;  %5363 = vmatpush1.bf16.msra.mxu0 %v7405_v1  ;;  %v7450_v1 = vld [vmem:[%s8304_s12 + $0x1600] ss:$16 sps:$4 sm:$0xff]   ;;  %v7464_v15 = vld [vmem:[%s8304_s12 + $0x17c4] ss:$16 sps:$4 sm:$0xff]  }
 0x17b   : > { %5404 = vmatpush1.bf16.msra.mxu1 %v7408_v2  ;;  %v5070_v22 = vpop.f32.mrf.mxu0  ;;  %5364 = vmatprep.subr.bf16.mxu0 %v7413_v5  ;;  %v7455_v2 = vld [vmem:[%s8304_s12 + $0x15e4] ss:$16 sps:$4 sm:$0xff]  }
 0x17c   : > { %v5111_v23 = vpop.f32.mrf.mxu1  ;;  %5405 = vmatprep.subr.bf16.mxu1 %v7416_v6  ;;  %v8786_v26 = vadd.f32 %v5109_v16, %v5069_v19  ;;  %v5071_v27 = vadd.f32 %v5070_v22, %v8698_v38  ;;  %5394 = vmatprep.mubr.bf16.mxu0 %v8777_v13  ;;  %v7425_v38 = vld [vmem:[%s8304_s12 + $0x1484] ss:$16 sps:$4 sm:$0xff]   ;;  %v7453_v6 = vld [vmem:[%s8304_s12 + $0x15e0] ss:$16 sps:$4 sm:$0xff]  }
 0x17d   : > { %5435 = vmatprep.mubr.bf16.mxu1 %v8779_v14  ;;  %v5072_v31 = vpop.f32.mrf.mxu0  ;;  %v7458_v5 = vld [vmem:[%s8304_s12 + $0x17e4] ss:$16 sps:$4 sm:$0xff]   ;;  %v7459_v16 = vld [vmem:[%s8304_s12 + $0x15c0] ss:$16 sps:$4 sm:$0xff]  }
 0x17e   : > { %v5113_v33 = vpop.f32.mrf.mxu1  ;;  %v8793_v34 = vadd.f32 %v5111_v23, %v5071_v27  ;;  %5365 = vmatpush1.bf16.msra.mxu0 %v7411_v11  ;;  %v7456_v11 = vld [vmem:[%s8304_s12 + $0x17e0] ss:$16 sps:$4 sm:$0xff]   ;;  %v7467_v22 = vld [vmem:[%s8304_s12 + $0x15a4] ss:$16 sps:$4 sm:$0xff]  }
 0x17f   : > { %5406 = vmatpush1.bf16.msra.mxu1 %v7414_v12  ;;  %v5073_v35 = vpop.f32.mrf.mxu0  ;;  %5366 = vmatprep.subr.bf16.mxu0 %v7419_v24  ;;  %v7461_v12 = vld [vmem:[%s8304_s12 + $0x15c4] ss:$16 sps:$4 sm:$0xff]   ;;  %v7462_v19 = vld [vmem:[%s8304_s12 + $0x17c0] ss:$16 sps:$4 sm:$0xff]  }
 0x180   : > { %v5114_v36 = vpop.f32.mrf.mxu1  ;;  %5407 = vmatprep.subr.bf16.mxu1 %v7422_v25  ;;  %v7470_v23 = vld [vmem:[%s8304_s12 + $0x17a4] ss:$16 sps:$4 sm:$0xff]   ;;  %v7465_v24 = vld [vmem:[%s8304_s12 + $0x15a0] ss:$16 sps:$4 sm:$0xff]  }
 0x181   : > { %v7468_v25 = vld [vmem:[%s8304_s12 + $0x17a0] ss:$16 sps:$4 sm:$0xff]   ;;  %v7473_v27 = vld [vmem:[%s8304_s12 + $0x1584] ss:$16 sps:$4 sm:$0xff]  }
 0x182   : > { %5367 = vmatpush1.bf16.msra.mxu0 %v7417_v28  ;;  %v7476_v28 = vld [vmem:[%s8304_s12 + $0x1784] ss:$16 sps:$4 sm:$0xff]   ;;  %v7474_v31 = vld [vmem:[%s8304_s12 + $0x1780] ss:$16 sps:$4 sm:$0xff]  }
 0x183   : > { %5408 = vmatpush1.bf16.msra.mxu1 %v7420_v30  ;;  %5368 = vmatprep.subr.bf16.mxu0 %v7425_v38  ;;  %v7471_v30 = vld [vmem:[%s8304_s12 + $0x1580] ss:$16 sps:$4 sm:$0xff]   ;;  %v7479_v33 = vld [vmem:[%s8304_s12 + $0x1564] ss:$16 sps:$4 sm:$0xff]  }
 0x184   : > { %5409 = vmatprep.subr.bf16.mxu1 %v7428_v39  ;;  %v7482_v35 = vld [vmem:[%s8304_s12 + $0x1764] ss:$16 sps:$4 sm:$0xff]   ;;  %v7477_v36 = vld [vmem:[%s8304_s12 + $0x1560] ss:$16 sps:$4 sm:$0xff]  }
 0x185   : > { %v7480_v38 = vld [vmem:[%s8304_s12 + $0x1760] ss:$16 sps:$4 sm:$0xff]   ;;  %v7485_v39 = vld [vmem:[%s8304_s12 + $0x1544] ss:$16 sps:$4 sm:$0xff]  }
 0x186   : > { %5369 = vmatpush1.bf16.msra.mxu0 %v7423_v41  ;;  %v7488_v41 = vld [vmem:[%s8304_s12 + $0x1744] ss:$16 sps:$4 sm:$0xff]  }
 0x187   : > { %5410 = vmatpush1.bf16.msra.mxu1 %v7426_v44  ;;  %5370 = vmatprep.subr.bf16.mxu0 %v7431_v45  ;;  %v7483_v44 = vld [vmem:[%s8304_s12 + $0x1540] ss:$16 sps:$4 sm:$0xff]  }
 0x188   : > { %5411 = vmatprep.subr.bf16.mxu1 %v7434_v46  ;;  %v7486_v45 = vld [vmem:[%s8304_s12 + $0x1740] ss:$16 sps:$4 sm:$0xff]   ;;  %v7491_v46 = vld [vmem:[%s8304_s12 + $0x1524] ss:$16 sps:$4 sm:$0xff]  }
 0x18a   : > { %5371 = vmatpush1.bf16.msra.mxu0 %v7429_v47  ;;  %v7494_v47 = vld [vmem:[%s8304_s12 + $0x1724] ss:$16 sps:$4 sm:$0xff]  }
 0x18b   : > { %5412 = vmatpush1.bf16.msra.mxu1 %v7432_v51  ;;  %5372 = vmatprep.subr.bf16.mxu0 %v7437_v53  ;;  %v7489_v51 = vld [vmem:[%s8304_s12 + $0x1520] ss:$16 sps:$4 sm:$0xff]  }
 0x18c   : > { %5413 = vmatprep.subr.bf16.mxu1 %v7440_v54  ;;  %v7492_v53 = vld [vmem:[%s8304_s12 + $0x1720] ss:$16 sps:$4 sm:$0xff]   ;;  %v7497_v54 = vld [vmem:[%s8304_s12 + $0x1504] ss:$16 sps:$4 sm:$0xff]  }
 0x18e   : > { %5373 = vmatpush1.bf16.msra.mxu0 %v7435_v55  ;;  %v7500_v55 = vld [vmem:[%s8304_s12 + $0x1704] ss:$16 sps:$4 sm:$0xff]  }
 0x18f   : > { %5414 = vmatpush1.bf16.msra.mxu1 %v7438_v56  ;;  %5374 = vmatprep.subr.bf16.mxu0 %v7443_v58  ;;  %v7495_v56 = vld [vmem:[%s8304_s12 + $0x1500] ss:$16 sps:$4 sm:$0xff]  }
 0x190   : > { %5415 = vmatprep.subr.bf16.mxu1 %v7446_v59  ;;  %v7498_v58 = vld [vmem:[%s8304_s12 + $0x1700] ss:$16 sps:$4 sm:$0xff]  }
 0x191   : > { %v294_v59 = vld [vmem:[%s9339_s0 + $0xa0] sm:$0xff] }
 0x192   : > { %5375 = vmatpush1.bf16.msra.mxu0 %v7441_v60  ;;  %v296_v60 = vld [vmem:[%s9339_s0 + $0xb0] sm:$0xff] }
 0x193   : > { %5416 = vmatpush1.bf16.msra.mxu1 %v7444_v61  ;;  %5376 = vmatprep.subr.bf16.mxu0 %v7449_v62  ;;  %v7503_v61 = vld [vmem:[%s8304_s12 + $0xec] ss:$16 sps:$4 sm:$0xff]  }
 0x194   : > { %5417 = vmatprep.subr.bf16.mxu1 %v7452_v63  ;;  %v7506_v62 = vld [vmem:[%s8304_s12 + $0x2ec] ss:$16 sps:$4 sm:$0xff]   ;;  %v7501_v63 = vld [vmem:[%s8304_s12 + $0xe8] ss:$16 sps:$4 sm:$0xff]  }
 0x196   : > { %5377 = vmatpush1.bf16.msra.mxu0 %v7447_v0  ;;  %v7504_v0 = vld [vmem:[%s8304_s12 + $0x2e8] ss:$16 sps:$4 sm:$0xff]  }
 0x197   : > { %5418 = vmatpush1.bf16.msra.mxu1 %v7450_v1  ;;  %5378 = vmatprep.subr.bf16.mxu0 %v7455_v2  ;;  %v8857_v1 = vpack.c.bf16 %v294_v59, %v294_v59  ;;  %v8859_v2 = vpack.c.bf16 %v296_v60, %v296_v60  ;;  %v7540_v59 = vld [vmem:[%s8304_s12 + $0x228] ss:$16 sps:$4 sm:$0xff]   ;;  %v7545_v60 = vld [vmem:[%s8304_s12 + $0xc] ss:$16 sps:$4 sm:$0xff]  }
 0x198   : > { %5419 = vmatprep.subr.bf16.mxu1 %v7458_v5  ;;  %v7509_v5 = vld [vmem:[%s8304_s12 + $0xcc] ss:$16 sps:$4 sm:$0xff]  }
 0x19a   : > { %5379 = vmatpush2.bf16.msra.mxu0 %v7453_v6  ;;  %v7512_v6 = vld [vmem:[%s8304_s12 + $0x2cc] ss:$16 sps:$4 sm:$0xff]  }
 0x19b   : > { %5420 = vmatpush2.bf16.msra.mxu1 %v7456_v11  ;;  %5380 = vmatprep.subr.bf16.mxu0 %v7461_v12  ;;  %v7507_v11 = vld [vmem:[%s8304_s12 + $0xc8] ss:$16 sps:$4 sm:$0xff]  }
 0x19c   : > { %5421 = vmatprep.subr.bf16.mxu1 %v7464_v15  ;;  %v7510_v12 = vld [vmem:[%s8304_s12 + $0x2c8] ss:$16 sps:$4 sm:$0xff]  }
 0x19e   : > { %5381 = vmatpush2.bf16.msra.mxu0 %v7459_v16 }
 0x19f   : > { %5422 = vmatpush2.bf16.msra.mxu1 %v7462_v19  ;;  %5382 = vmatprep.subr.bf16.mxu0 %v7467_v22 }
 0x1a0   : > { %5423 = vmatprep.subr.bf16.mxu1 %v7470_v23 }
 0x1a2   : > { %5383 = vmatpush2.bf16.msra.mxu0 %v7465_v24  ;;  %v7515_v24 = vld [vmem:[%s8304_s12 + $0xac] ss:$16 sps:$4 sm:$0xff]  }
 0x1a3   : > { %5424 = vmatpush2.bf16.msra.mxu1 %v7468_v25  ;;  %5384 = vmatprep.subr.bf16.mxu0 %v7473_v27  ;;  %v7518_v25 = vld [vmem:[%s8304_s12 + $0x2ac] ss:$16 sps:$4 sm:$0xff]  }
 0x1a4   : > { %5425 = vmatprep.subr.bf16.mxu1 %v7476_v28 }
 0x1a6   : > { %5385 = vmatpush2.bf16.msra.mxu0 %v7471_v30  ;;  %v7513_v30 = vld [vmem:[%s8304_s12 + $0xa8] ss:$16 sps:$4 sm:$0xff]  }
 0x1a7   : > { %5426 = vmatpush2.bf16.msra.mxu1 %v7474_v31  ;;  %5386 = vmatprep.subr.bf16.mxu0 %v7479_v33  ;;  %v7516_v31 = vld [vmem:[%s8304_s12 + $0x2a8] ss:$16 sps:$4 sm:$0xff]  }
 0x1a8   : > { %5427 = vmatprep.subr.bf16.mxu1 %v7482_v35 }
 0x1aa   : > { %5387 = vmatpush2.bf16.msra.mxu0 %v7477_v36 }
 0x1ab   : > { %5428 = vmatpush2.bf16.msra.mxu1 %v7480_v38  ;;  %5388 = vmatprep.subr.bf16.mxu0 %v7485_v39  ;;  %v7522_v39 = vld [vmem:[%s8304_s12 + $0x288] ss:$16 sps:$4 sm:$0xff]  }
 0x1ac   : > { %5429 = vmatprep.subr.bf16.mxu1 %v7488_v41  ;;  %v7527_v41 = vld [vmem:[%s8304_s12 + $0x6c] ss:$16 sps:$4 sm:$0xff]  }
 0x1ae   : > { %5389 = vmatpush2.bf16.msra.mxu0 %v7483_v44  ;;  %v7530_v44 = vld [vmem:[%s8304_s12 + $0x26c] ss:$16 sps:$4 sm:$0xff]  }
 0x1af   : > { %5430 = vmatpush2.bf16.msra.mxu1 %v7486_v45  ;;  %5390 = vmatprep.subr.bf16.mxu0 %v7491_v46  ;;  %v7525_v45 = vld [vmem:[%s8304_s12 + $0x68] ss:$16 sps:$4 sm:$0xff]  }
 0x1b0   : > { %5431 = vmatprep.subr.bf16.mxu1 %v7494_v47  ;;  %v7528_v46 = vld [vmem:[%s8304_s12 + $0x268] ss:$16 sps:$4 sm:$0xff]   ;;  %v7533_v47 = vld [vmem:[%s8304_s12 + $0x4c] ss:$16 sps:$4 sm:$0xff]  }
 0x1b2   : > { %5391 = vmatpush2.bf16.msra.mxu0 %v7489_v51  ;;  %v7536_v51 = vld [vmem:[%s8304_s12 + $0x24c] ss:$16 sps:$4 sm:$0xff]  }
 0x1b3   : > { %5432 = vmatpush2.bf16.msra.mxu1 %v7492_v53  ;;  %5392 = vmatprep.subr.bf16.mxu0 %v7497_v54  ;;  %v7531_v53 = vld [vmem:[%s8304_s12 + $0x48] ss:$16 sps:$4 sm:$0xff]  }
 0x1b4   : > { %5433 = vmatprep.subr.bf16.mxu1 %v7500_v55  ;;  %v7534_v54 = vld [vmem:[%s8304_s12 + $0x248] ss:$16 sps:$4 sm:$0xff]   ;;  %v7539_v55 = vld [vmem:[%s8304_s12 + $0x2c] ss:$16 sps:$4 sm:$0xff]  }
 0x1b6   : > { %5393 = vmatpush2.bf16.msra.mxu0 %v7495_v56  ;;  %v7542_v56 = vld [vmem:[%s8304_s12 + $0x22c] ss:$16 sps:$4 sm:$0xff]  }
 0x1b7   : > { %5434 = vmatpush2.bf16.msra.mxu1 %v7498_v58  ;;  %5444 = vmatprep.subr.bf16.mxu0 %v7503_v61  ;;  %v7537_v58 = vld [vmem:[%s8304_s12 + $0x28] ss:$16 sps:$4 sm:$0xff]   ;;  %v7548_v61 = vld [vmem:[%s8304_s12 + $0x20c] ss:$16 sps:$4 sm:$0xff]  }
 0x1b8   : > { %5485 = vmatprep.subr.bf16.mxu1 %v7506_v62  ;;  %v7543_v62 = vld [vmem:[%s8304_s12 + $0x8] ss:$16 sps:$4 sm:$0xff]  }
 0x1b9   : > { %v5150_v15 = vpop.f32.mrf.mxu0  ;;  %5395 = vmatmul.mubr.bf16.vlgmr.msra.gmra.mxu0 %v8857_v1 }
 0x1ba   : > { %v5191_v16 = vpop.f32.mrf.mxu1  ;;  %5436 = vmatmul.mubr.bf16.vlgmr.msra.gmra.mxu1 %v8859_v2  ;;  %v5151_v19 = vadd.f32 %v5150_v15, %v8786_v26  ;;  %5445 = vmatpush1.bf16.msra.mxu0 %v7501_v63  ;;  %v7546_v63 = vld [vmem:[%s8304_s12 + $0x208] ss:$16 sps:$4 sm:$0xff]   ;;  %v7560_v15 = vld [vmem:[%s8304_s12 + $0x3cc] ss:$16 sps:$4 sm:$0xff]  }
 0x1bb   : > { %5486 = vmatpush1.bf16.msra.mxu1 %v7504_v0  ;;  %v5152_v22 = vpop.f32.mrf.mxu0  ;;  %5446 = vmatprep.subr.bf16.mxu0 %v7509_v5  ;;  %v7551_v0 = vld [vmem:[%s8304_s12 + $0x1ec] ss:$16 sps:$4 sm:$0xff]  }
 0x1bc   : > { %v5193_v23 = vpop.f32.mrf.mxu1  ;;  %5487 = vmatprep.subr.bf16.mxu1 %v7512_v6  ;;  %v8870_v27 = vadd.f32 %v5191_v16, %v5151_v19  ;;  %v5153_v28 = vadd.f32 %v5152_v22, %v8793_v34  ;;  %5476 = vmatprep.mubr.bf16.mxu0 %v8367_v49  ;;  %v7521_v34 = vld [vmem:[%s8304_s12 + $0x8c] ss:$16 sps:$4 sm:$0xff]   ;;  %v7549_v6 = vld [vmem:[%s8304_s12 + $0x1e8] ss:$16 sps:$4 sm:$0xff]  }
 0x1bd   : > { %5517 = vmatprep.mubr.bf16.mxu1 %v8373_v52  ;;  %v5154_v26 = vpop.f32.mrf.mxu0  ;;  %v7524_v49 = vld [vmem:[%s8304_s12 + $0x28c] ss:$16 sps:$4 sm:$0xff]   ;;  %v7519_v52 = vld [vmem:[%s8304_s12 + $0x88] ss:$16 sps:$4 sm:$0xff]  }
 0x1be   : > { %v5195_v33 = vpop.f32.mrf.mxu1  ;;  %v8877_v35 = vadd.f32 %v5193_v23, %v5153_v28  ;;  %5447 = vmatpush1.bf16.msra.mxu0 %v7507_v11  ;;  %v7554_v5 = vld [vmem:[%s8304_s12 + $0x3ec] ss:$16 sps:$4 sm:$0xff]   ;;  %v7552_v11 = vld [vmem:[%s8304_s12 + $0x3e8] ss:$16 sps:$4 sm:$0xff]  }
 0x1bf   : > { %5488 = vmatpush1.bf16.msra.mxu1 %v7510_v12  ;;  %v5155_v36 = vpop.f32.mrf.mxu0  ;;  %5448 = vmatprep.subr.bf16.mxu0 %v7515_v24  ;;  %v7557_v12 = vld [vmem:[%s8304_s12 + $0x1cc] ss:$16 sps:$4 sm:$0xff]   ;;  %v7555_v16 = vld [vmem:[%s8304_s12 + $0x1c8] ss:$16 sps:$4 sm:$0xff]  }
 0x1c0   : > { %v5196_v38 = vpop.f32.mrf.mxu1  ;;  %5489 = vmatprep.subr.bf16.mxu1 %v7518_v25  ;;  %v7558_v19 = vld [vmem:[%s8304_s12 + $0x3c8] ss:$16 sps:$4 sm:$0xff]   ;;  %v7563_v22 = vld [vmem:[%s8304_s12 + $0x1ac] ss:$16 sps:$4 sm:$0xff]  }
 0x1c1   : > { %v7566_v23 = vld [vmem:[%s8304_s12 + $0x3ac] ss:$16 sps:$4 sm:$0xff]   ;;  %v7561_v24 = vld [vmem:[%s8304_s12 + $0x1a8] ss:$16 sps:$4 sm:$0xff]  }
 0x1c2   : > { %5449 = vmatpush1.bf16.msra.mxu0 %v7513_v30  ;;  %v7564_v25 = vld [vmem:[%s8304_s12 + $0x3a8] ss:$16 sps:$4 sm:$0xff]   ;;  %v7569_v28 = vld [vmem:[%s8304_s12 + $0x18c] ss:$16 sps:$4 sm:$0xff]  }
 0x1c3   : > { %5490 = vmatpush1.bf16.msra.mxu1 %v7516_v31  ;;  %5450 = vmatprep.subr.bf16.mxu0 %v7521_v34  ;;  %v7572_v30 = vld [vmem:[%s8304_s12 + $0x38c] ss:$16 sps:$4 sm:$0xff]   ;;  %v7567_v31 = vld [vmem:[%s8304_s12 + $0x188] ss:$16 sps:$4 sm:$0xff]  }
 0x1c4   : > { %5491 = vmatprep.subr.bf16.mxu1 %v7524_v49  ;;  %v7570_v26 = vld [vmem:[%s8304_s12 + $0x388] ss:$16 sps:$4 sm:$0xff]   ;;  %v7575_v33 = vld [vmem:[%s8304_s12 + $0x16c] ss:$16 sps:$4 sm:$0xff]  }
 0x1c5   : > { %v7578_v36 = vld [vmem:[%s8304_s12 + $0x36c] ss:$16 sps:$4 sm:$0xff]   ;;  %v7573_v38 = vld [vmem:[%s8304_s12 + $0x168] ss:$16 sps:$4 sm:$0xff]  }
 0x1c6   : > { %5451 = vmatpush1.bf16.msra.mxu0 %v7519_v52  ;;  %v7576_v34 = vld [vmem:[%s8304_s12 + $0x368] ss:$16 sps:$4 sm:$0xff]   ;;  %v7581_v49 = vld [vmem:[%s8304_s12 + $0x14c] ss:$16 sps:$4 sm:$0xff]  }
 0x1c7   : > { %5492 = vmatpush1.bf16.msra.mxu1 %v7522_v39  ;;  %5452 = vmatprep.subr.bf16.mxu0 %v7527_v41  ;;  %v7584_v52 = vld [vmem:[%s8304_s12 + $0x34c] ss:$16 sps:$4 sm:$0xff]   ;;  %v7579_v39 = vld [vmem:[%s8304_s12 + $0x148] ss:$16 sps:$4 sm:$0xff]  }
 0x1c8   : > { %5493 = vmatprep.subr.bf16.mxu1 %v7530_v44  ;;  %v7582_v41 = vld [vmem:[%s8304_s12 + $0x348] ss:$16 sps:$4 sm:$0xff]   ;;  %v7587_v44 = vld [vmem:[%s8304_s12 + $0x12c] ss:$16 sps:$4 sm:$0xff]  }
 0x1ca   : > { %5453 = vmatpush1.bf16.msra.mxu0 %v7525_v45  ;;  %v7590_v45 = vld [vmem:[%s8304_s12 + $0x32c] ss:$16 sps:$4 sm:$0xff]  }
 0x1cb   : > { %5494 = vmatpush1.bf16.msra.mxu1 %v7528_v46  ;;  %5454 = vmatprep.subr.bf16.mxu0 %v7533_v47  ;;  %v7585_v46 = vld [vmem:[%s8304_s12 + $0x128] ss:$16 sps:$4 sm:$0xff]  }
 0x1cc   : > { %5495 = vmatprep.subr.bf16.mxu1 %v7536_v51  ;;  %v7588_v47 = vld [vmem:[%s8304_s12 + $0x328] ss:$16 sps:$4 sm:$0xff]   ;;  %v7593_v51 = vld [vmem:[%s8304_s12 + $0x10c] ss:$16 sps:$4 sm:$0xff]  }
 0x1ce   : > { %5455 = vmatpush1.bf16.msra.mxu0 %v7531_v53  ;;  %v7596_v53 = vld [vmem:[%s8304_s12 + $0x30c] ss:$16 sps:$4 sm:$0xff]  }
 0x1cf   : > { %5496 = vmatpush1.bf16.msra.mxu1 %v7534_v54  ;;  %5456 = vmatprep.subr.bf16.mxu0 %v7539_v55  ;;  %v7591_v54 = vld [vmem:[%s8304_s12 + $0x108] ss:$16 sps:$4 sm:$0xff]  }
 0x1d0   : > { %5497 = vmatprep.subr.bf16.mxu1 %v7542_v56  ;;  %v7594_v55 = vld [vmem:[%s8304_s12 + $0x308] ss:$16 sps:$4 sm:$0xff]   ;;  %v7599_v56 = vld [vmem:[%s8304_s12 + $0x4ec] ss:$16 sps:$4 sm:$0xff]  }
 0x1d2   : > { %5457 = vmatpush1.bf16.msra.mxu0 %v7537_v58  ;;  %v7602_v58 = vld [vmem:[%s8304_s12 + $0x6ec] ss:$16 sps:$4 sm:$0xff]  }
 0x1d3   : > { %5498 = vmatpush1.bf16.msra.mxu1 %v7540_v59  ;;  %5458 = vmatprep.subr.bf16.mxu0 %v7545_v60  ;;  %v7597_v59 = vld [vmem:[%s8304_s12 + $0x4e8] ss:$16 sps:$4 sm:$0xff]  }
 0x1d4   : > { %5499 = vmatprep.subr.bf16.mxu1 %v7548_v61  ;;  %v7600_v60 = vld [vmem:[%s8304_s12 + $0x6e8] ss:$16 sps:$4 sm:$0xff]   ;;  %v7605_v61 = vld [vmem:[%s8304_s12 + $0x4cc] ss:$16 sps:$4 sm:$0xff]  }
 0x1d6   : > { %5459 = vmatpush1.bf16.msra.mxu0 %v7543_v62  ;;  %v7608_v62 = vld [vmem:[%s8304_s12 + $0x6cc] ss:$16 sps:$4 sm:$0xff]  }
 0x1d7   : > { %5500 = vmatpush1.bf16.msra.mxu1 %v7546_v63  ;;  %5460 = vmatprep.subr.bf16.mxu0 %v7551_v0  ;;  %v7603_v63 = vld [vmem:[%s8304_s12 + $0x4c8] ss:$16 sps:$4 sm:$0xff]  }
 0x1d8   : > { %5501 = vmatprep.subr.bf16.mxu1 %v7554_v5  ;;  %v7606_v0 = vld [vmem:[%s8304_s12 + $0x6c8] ss:$16 sps:$4 sm:$0xff]  }
 0x1da   : > { %5461 = vmatpush2.bf16.msra.mxu0 %v7549_v6 }
 0x1db   : > { %5502 = vmatpush2.bf16.msra.mxu1 %v7552_v11  ;;  %5462 = vmatprep.subr.bf16.mxu0 %v7557_v12 }
 0x1dc   : > { %5503 = vmatprep.subr.bf16.mxu1 %v7560_v15 }
 0x1de   : > { %5463 = vmatpush2.bf16.msra.mxu0 %v7555_v16  ;;  %v7611_v16 = vld [vmem:[%s8304_s12 + $0x4ac] ss:$16 sps:$4 sm:$0xff]  }
 0x1df   : > { %5504 = vmatpush2.bf16.msra.mxu1 %v7558_v19  ;;  %5464 = vmatprep.subr.bf16.mxu0 %v7563_v22  ;;  %v7614_v19 = vld [vmem:[%s8304_s12 + $0x6ac] ss:$16 sps:$4 sm:$0xff]  }
 0x1e0   : > { %5505 = vmatprep.subr.bf16.mxu1 %v7566_v23 }
 0x1e2   : > { %5465 = vmatpush2.bf16.msra.mxu0 %v7561_v24  ;;  %v7609_v24 = vld [vmem:[%s8304_s12 + $0x4a8] ss:$16 sps:$4 sm:$0xff]  }
 0x1e3   : > { %5506 = vmatpush2.bf16.msra.mxu1 %v7564_v25  ;;  %5466 = vmatprep.subr.bf16.mxu0 %v7569_v28 }
 0x1e4   : > { %5507 = vmatprep.subr.bf16.mxu1 %v7572_v30 }
 0x1e6   : > { %5467 = vmatpush2.bf16.msra.mxu0 %v7567_v31  ;;  %v7618_v31 = vld [vmem:[%s8304_s12 + $0x688] ss:$16 sps:$4 sm:$0xff]  }
 0x1e7   : > { %5508 = vmatpush2.bf16.msra.mxu1 %v7570_v26  ;;  %5468 = vmatprep.subr.bf16.mxu0 %v7575_v33  ;;  %v7623_v26 = vld [vmem:[%s8304_s12 + $0x46c] ss:$16 sps:$4 sm:$0xff]  }
 0x1e8   : > { %5509 = vmatprep.subr.bf16.mxu1 %v7578_v36  ;;  %v7626_v33 = vld [vmem:[%s8304_s12 + $0x66c] ss:$16 sps:$4 sm:$0xff]   ;;  %v7621_v36 = vld [vmem:[%s8304_s12 + $0x468] ss:$16 sps:$4 sm:$0xff]  }
 0x1ea   : > { %5469 = vmatpush2.bf16.msra.mxu0 %v7573_v38  ;;  %v7624_v38 = vld [vmem:[%s8304_s12 + $0x668] ss:$16 sps:$4 sm:$0xff]  }
 0x1eb   : > { %5510 = vmatpush2.bf16.msra.mxu1 %v7576_v34  ;;  %5470 = vmatprep.subr.bf16.mxu0 %v7581_v49  ;;  %v7629_v34 = vld [vmem:[%s8304_s12 + $0x44c] ss:$16 sps:$4 sm:$0xff]  }
 0x1ec   : > { %5511 = vmatprep.subr.bf16.mxu1 %v7584_v52  ;;  %v7632_v49 = vld [vmem:[%s8304_s12 + $0x64c] ss:$16 sps:$4 sm:$0xff]   ;;  %v7627_v52 = vld [vmem:[%s8304_s12 + $0x448] ss:$16 sps:$4 sm:$0xff]  }
 0x1ee   : > { %5471 = vmatpush2.bf16.msra.mxu0 %v7579_v39  ;;  %v7630_v39 = vld [vmem:[%s8304_s12 + $0x648] ss:$16 sps:$4 sm:$0xff]  }
 0x1ef   : > { %5512 = vmatpush2.bf16.msra.mxu1 %v7582_v41  ;;  %5472 = vmatprep.subr.bf16.mxu0 %v7587_v44  ;;  %v7635_v41 = vld [vmem:[%s8304_s12 + $0x42c] ss:$16 sps:$4 sm:$0xff]  }
 0x1f0   : > { %5513 = vmatprep.subr.bf16.mxu1 %v7590_v45  ;;  %v7638_v44 = vld [vmem:[%s8304_s12 + $0x62c] ss:$16 sps:$4 sm:$0xff]   ;;  %v7633_v45 = vld [vmem:[%s8304_s12 + $0x428] ss:$16 sps:$4 sm:$0xff]  }
 0x1f2   : > { %5473 = vmatpush2.bf16.msra.mxu0 %v7585_v46  ;;  %v7636_v46 = vld [vmem:[%s8304_s12 + $0x628] ss:$16 sps:$4 sm:$0xff]  }
 0x1f3   : > { %5514 = vmatpush2.bf16.msra.mxu1 %v7588_v47  ;;  %5474 = vmatprep.subr.bf16.mxu0 %v7593_v51  ;;  %v7641_v47 = vld [vmem:[%s8304_s12 + $0x40c] ss:$16 sps:$4 sm:$0xff]  }
 0x1f4   : > { %5515 = vmatprep.subr.bf16.mxu1 %v7596_v53  ;;  %v7644_v51 = vld [vmem:[%s8304_s12 + $0x60c] ss:$16 sps:$4 sm:$0xff]   ;;  %v7639_v53 = vld [vmem:[%s8304_s12 + $0x408] ss:$16 sps:$4 sm:$0xff]  }
 0x1f6   : > { %5475 = vmatpush2.bf16.msra.mxu0 %v7591_v54  ;;  %v7642_v54 = vld [vmem:[%s8304_s12 + $0x608] ss:$16 sps:$4 sm:$0xff]  }
 0x1f7   : > { %5516 = vmatpush2.bf16.msra.mxu1 %v7594_v55  ;;  %5526 = vmatprep.subr.bf16.mxu0 %v7599_v56  ;;  %v7647_v55 = vld [vmem:[%s8304_s12 + $0x5ec] ss:$16 sps:$4 sm:$0xff]  }
 0x1f8   : > { %5567 = vmatprep.subr.bf16.mxu1 %v7602_v58  ;;  %v7650_v56 = vld [vmem:[%s8304_s12 + $0x7ec] ss:$16 sps:$4 sm:$0xff]   ;;  %v7645_v58 = vld [vmem:[%s8304_s12 + $0x5e8] ss:$16 sps:$4 sm:$0xff]  }
 0x1f9   : > { %v5232_v5 = vpop.f32.mrf.mxu0  ;;  %5477 = vmatmul.mubr.bf16.vlgmr.msra.gmra.mxu0 %v8400_v8  ;;  %v7612_v8 = vld [vmem:[%s8304_s12 + $0x6a8] ss:$16 sps:$4 sm:$0xff]  }
 0x1fa   : > { %v5273_v6 = vpop.f32.mrf.mxu1  ;;  %5518 = vmatmul.mubr.bf16.vlgmr.msra.gmra.mxu1 %v8402_v9  ;;  %v5233_v11 = vadd.f32 %v5232_v5, %v8870_v27  ;;  %5527 = vmatpush1.bf16.msra.mxu0 %v7597_v59  ;;  %v7648_v59 = vld [vmem:[%s8304_s12 + $0x7e8] ss:$16 sps:$4 sm:$0xff]   ;;  %v7662_v5 = vld [vmem:[%s8304_s12 + $0x7ac] ss:$16 sps:$4 sm:$0xff]  }
 0x1fb   : > { %5568 = vmatpush1.bf16.msra.mxu1 %v7600_v60  ;;  %v5234_v12 = vpop.f32.mrf.mxu0  ;;  %5528 = vmatprep.subr.bf16.mxu0 %v7605_v61  ;;  %v7653_v60 = vld [vmem:[%s8304_s12 + $0x5cc] ss:$16 sps:$4 sm:$0xff]  }
 0x1fc   : > { %v5275_v15 = vpop.f32.mrf.mxu1  ;;  %5569 = vmatprep.subr.bf16.mxu1 %v7608_v62  ;;  %v8944_v22 = vadd.f32 %v5273_v6, %v5233_v11  ;;  %v5235_v23 = vadd.f32 %v5234_v12, %v8877_v35  ;;  %5558 = vmatprep.mubr.bf16.mxu0 %v8435_v37  ;;  %v7617_v35 = vld [vmem:[%s8304_s12 + $0x48c] ss:$16 sps:$4 sm:$0xff]   ;;  %v7651_v62 = vld [vmem:[%s8304_s12 + $0x5c8] ss:$16 sps:$4 sm:$0xff]  }
 0x1fd   : > { %5599 = vmatprep.mubr.bf16.mxu1 %v8441_v40  ;;  %v5236_v9 = vpop.f32.mrf.mxu0  ;;  %v7620_v37 = vld [vmem:[%s8304_s12 + $0x68c] ss:$16 sps:$4 sm:$0xff]   ;;  %v7615_v40 = vld [vmem:[%s8304_s12 + $0x488] ss:$16 sps:$4 sm:$0xff]  }
 0x1fe   : > { %v5277_v27 = vpop.f32.mrf.mxu1  ;;  %v8951_v25 = vadd.f32 %v5275_v15, %v5235_v23  ;;  %5529 = vmatpush1.bf16.msra.mxu0 %v7603_v63  ;;  %v7656_v61 = vld [vmem:[%s8304_s12 + $0x7cc] ss:$16 sps:$4 sm:$0xff]   ;;  %v7654_v63 = vld [vmem:[%s8304_s12 + $0x7c8] ss:$16 sps:$4 sm:$0xff]  }
 0x1ff   : > { %5570 = vmatpush1.bf16.msra.mxu1 %v7606_v0  ;;  %v5237_v28 = vpop.f32.mrf.mxu0  ;;  %5530 = vmatprep.subr.bf16.mxu0 %v7611_v16  ;;  %v7659_v0 = vld [vmem:[%s8304_s12 + $0x5ac] ss:$16 sps:$4 sm:$0xff]   ;;  %v7657_v6 = vld [vmem:[%s8304_s12 + $0x5a8] ss:$16 sps:$4 sm:$0xff]  }
 0x200   : > { %v5278_v30 = vpop.f32.mrf.mxu1  ;;  %5571 = vmatprep.subr.bf16.mxu1 %v7614_v19  ;;  %v7660_v11 = vld [vmem:[%s8304_s12 + $0x7a8] ss:$16 sps:$4 sm:$0xff]   ;;  %v7665_v12 = vld [vmem:[%s8304_s12 + $0x58c] ss:$16 sps:$4 sm:$0xff]  }
 0x201   : > { %v7668_v15 = vld [vmem:[%s8304_s12 + $0x78c] ss:$16 sps:$4 sm:$0xff]   ;;  %v7663_v16 = vld [vmem:[%s8304_s12 + $0x588] ss:$16 sps:$4 sm:$0xff]  }
 0x202   : > { %5531 = vmatpush1.bf16.msra.mxu0 %v7609_v24  ;;  %v7666_v19 = vld [vmem:[%s8304_s12 + $0x788] ss:$16 sps:$4 sm:$0xff]   ;;  %v7671_v23 = vld [vmem:[%s8304_s12 + $0x56c] ss:$16 sps:$4 sm:$0xff]  }
 0x203   : > { %5572 = vmatpush1.bf16.msra.mxu1 %v7612_v8  ;;  %5532 = vmatprep.subr.bf16.mxu0 %v7617_v35  ;;  %v7674_v24 = vld [vmem:[%s8304_s12 + $0x76c] ss:$16 sps:$4 sm:$0xff]   ;;  %v7669_v8 = vld [vmem:[%s8304_s12 + $0x568] ss:$16 sps:$4 sm:$0xff]  }
 0x204   : > { %5573 = vmatprep.subr.bf16.mxu1 %v7620_v37  ;;  %v7672_v9 = vld [vmem:[%s8304_s12 + $0x768] ss:$16 sps:$4 sm:$0xff]   ;;  %v7677_v27 = vld [vmem:[%s8304_s12 + $0x54c] ss:$16 sps:$4 sm:$0xff]  }
 0x205   : > { %v7680_v28 = vld [vmem:[%s8304_s12 + $0x74c] ss:$16 sps:$4 sm:$0xff]   ;;  %v7675_v30 = vld [vmem:[%s8304_s12 + $0x548] ss:$16 sps:$4 sm:$0xff]  }
 0x206   : > { %5533 = vmatpush1.bf16.msra.mxu0 %v7615_v40  ;;  %v7678_v35 = vld [vmem:[%s8304_s12 + $0x748] ss:$16 sps:$4 sm:$0xff]   ;;  %v7683_v37 = vld [vmem:[%s8304_s12 + $0x52c] ss:$16 sps:$4 sm:$0xff]  }
 0x207   : > { %5574 = vmatpush1.bf16.msra.mxu1 %v7618_v31  ;;  %5534 = vmatprep.subr.bf16.mxu0 %v7623_v26  ;;  %v7686_v40 = vld [vmem:[%s8304_s12 + $0x72c] ss:$16 sps:$4 sm:$0xff]   ;;  %v7681_v31 = vld [vmem:[%s8304_s12 + $0x528] ss:$16 sps:$4 sm:$0xff]  }
 0x208   : > { %5575 = vmatprep.subr.bf16.mxu1 %v7626_v33  ;;  %v7684_v26 = vld [vmem:[%s8304_s12 + $0x728] ss:$16 sps:$4 sm:$0xff]   ;;  %v7689_v33 = vld [vmem:[%s8304_s12 + $0x50c] ss:$16 sps:$4 sm:$0xff]  }
 0x20a   : > { %5535 = vmatpush1.bf16.msra.mxu0 %v7621_v36  ;;  %v7692_v36 = vld [vmem:[%s8304_s12 + $0x70c] ss:$16 sps:$4 sm:$0xff]  }
 0x20b   : > { %5576 = vmatpush1.bf16.msra.mxu1 %v7624_v38  ;;  %5536 = vmatprep.subr.bf16.mxu0 %v7629_v34  ;;  %v7687_v38 = vld [vmem:[%s8304_s12 + $0x508] ss:$16 sps:$4 sm:$0xff]  }
 0x20c   : > { %5577 = vmatprep.subr.bf16.mxu1 %v7632_v49  ;;  %v7690_v34 = vld [vmem:[%s8304_s12 + $0x708] ss:$16 sps:$4 sm:$0xff]   ;;  %v7695_v49 = vld [vmem:[%s8304_s12 + $0x8ec] ss:$16 sps:$4 sm:$0xff]  }
 0x20e   : > { %5537 = vmatpush1.bf16.msra.mxu0 %v7627_v52  ;;  %v7698_v52 = vld [vmem:[%s8304_s12 + $0xaec] ss:$16 sps:$4 sm:$0xff]  }
 0x20f   : > { %5578 = vmatpush1.bf16.msra.mxu1 %v7630_v39  ;;  %5538 = vmatprep.subr.bf16.mxu0 %v7635_v41  ;;  %v7693_v39 = vld [vmem:[%s8304_s12 + $0x8e8] ss:$16 sps:$4 sm:$0xff]  }
 0x210   : > { %5579 = vmatprep.subr.bf16.mxu1 %v7638_v44  ;;  %v7696_v41 = vld [vmem:[%s8304_s12 + $0xae8] ss:$16 sps:$4 sm:$0xff]   ;;  %v7701_v44 = vld [vmem:[%s8304_s12 + $0x8cc] ss:$16 sps:$4 sm:$0xff]  }
 0x212   : > { %5539 = vmatpush1.bf16.msra.mxu0 %v7633_v45  ;;  %v7704_v45 = vld [vmem:[%s8304_s12 + $0xacc] ss:$16 sps:$4 sm:$0xff]  }
 0x213   : > { %5580 = vmatpush1.bf16.msra.mxu1 %v7636_v46  ;;  %5540 = vmatprep.subr.bf16.mxu0 %v7641_v47 }
 0x214   : > { %5581 = vmatprep.subr.bf16.mxu1 %v7644_v51  ;;  %v7699_v51 = vld [vmem:[%s8304_s12 + $0x8c8] ss:$16 sps:$4 sm:$0xff]  }
 0x216   : > { %5541 = vmatpush1.bf16.msra.mxu0 %v7639_v53  ;;  %v7702_v53 = vld [vmem:[%s8304_s12 + $0xac8] ss:$16 sps:$4 sm:$0xff]  }
 0x217   : > { %5582 = vmatpush1.bf16.msra.mxu1 %v7642_v54  ;;  %5542 = vmatprep.subr.bf16.mxu0 %v7647_v55 }
 0x218   : > { %5583 = vmatprep.subr.bf16.mxu1 %v7650_v56  ;;  %v7707_v56 = vld [vmem:[%s8304_s12 + $0x8ac] ss:$16 sps:$4 sm:$0xff]  }
 0x21a   : > { %5543 = vmatpush2.bf16.msra.mxu0 %v7645_v58  ;;  %v7710_v58 = vld [vmem:[%s8304_s12 + $0xaac] ss:$16 sps:$4 sm:$0xff]  }
 0x21b   : > { %5584 = vmatpush2.bf16.msra.mxu1 %v7648_v59  ;;  %5544 = vmatprep.subr.bf16.mxu0 %v7653_v60  ;;  %v7705_v59 = vld [vmem:[%s8304_s12 + $0x8a8] ss:$16 sps:$4 sm:$0xff]  }
 0x21c   : > { %5585 = vmatprep.subr.bf16.mxu1 %v7656_v61  ;;  %v7708_v60 = vld [vmem:[%s8304_s12 + $0xaa8] ss:$16 sps:$4 sm:$0xff]  }
 0x21e   : > { %5545 = vmatpush2.bf16.msra.mxu0 %v7651_v62 }
 0x21f   : > { %5586 = vmatpush2.bf16.msra.mxu1 %v7654_v63  ;;  %5546 = vmatprep.subr.bf16.mxu0 %v7659_v0  ;;  %v7713_v63 = vld [vmem:[%s8304_s12 + $0x88c] ss:$16 sps:$4 sm:$0xff]   ;;  %v7714_v0 = vld [vmem:[%s8304_s12 + $0xa88] ss:$16 sps:$4 sm:$0xff]  }
 0x220   : > { %5587 = vmatprep.subr.bf16.mxu1 %v7662_v5  ;;  %v7719_v5 = vld [vmem:[%s8304_s12 + $0x86c] ss:$16 sps:$4 sm:$0xff]  }
 0x222   : > { %5547 = vmatpush2.bf16.msra.mxu0 %v7657_v6  ;;  %v7722_v6 = vld [vmem:[%s8304_s12 + $0xa6c] ss:$16 sps:$4 sm:$0xff]  }
 0x223   : > { %5588 = vmatpush2.bf16.msra.mxu1 %v7660_v11  ;;  %5548 = vmatprep.subr.bf16.mxu0 %v7665_v12  ;;  %v7717_v11 = vld [vmem:[%s8304_s12 + $0x868] ss:$16 sps:$4 sm:$0xff]  }
 0x224   : > { %5589 = vmatprep.subr.bf16.mxu1 %v7668_v15  ;;  %v7720_v12 = vld [vmem:[%s8304_s12 + $0xa68] ss:$16 sps:$4 sm:$0xff]   ;;  %v7725_v15 = vld [vmem:[%s8304_s12 + $0x84c] ss:$16 sps:$4 sm:$0xff]  }
 0x226   : > { %5549 = vmatpush2.bf16.msra.mxu0 %v7663_v16  ;;  %v7728_v16 = vld [vmem:[%s8304_s12 + $0xa4c] ss:$16 sps:$4 sm:$0xff]  }
 0x227   : > { %5590 = vmatpush2.bf16.msra.mxu1 %v7666_v19  ;;  %5550 = vmatprep.subr.bf16.mxu0 %v7671_v23  ;;  %v7723_v19 = vld [vmem:[%s8304_s12 + $0x848] ss:$16 sps:$4 sm:$0xff]  }
 0x228   : > { %5591 = vmatprep.subr.bf16.mxu1 %v7674_v24  ;;  %v7726_v23 = vld [vmem:[%s8304_s12 + $0xa48] ss:$16 sps:$4 sm:$0xff]   ;;  %v7731_v24 = vld [vmem:[%s8304_s12 + $0x82c] ss:$16 sps:$4 sm:$0xff]  }
 0x22a   : > { %5551 = vmatpush2.bf16.msra.mxu0 %v7669_v8  ;;  %v7734_v8 = vld [vmem:[%s8304_s12 + $0xa2c] ss:$16 sps:$4 sm:$0xff]  }
 0x22b   : > { %5592 = vmatpush2.bf16.msra.mxu1 %v7672_v9  ;;  %5552 = vmatprep.subr.bf16.mxu0 %v7677_v27  ;;  %v7729_v9 = vld [vmem:[%s8304_s12 + $0x828] ss:$16 sps:$4 sm:$0xff]  }
 0x22c   : > { %5593 = vmatprep.subr.bf16.mxu1 %v7680_v28  ;;  %v7732_v27 = vld [vmem:[%s8304_s12 + $0xa28] ss:$16 sps:$4 sm:$0xff]   ;;  %v7737_v28 = vld [vmem:[%s8304_s12 + $0x80c] ss:$16 sps:$4 sm:$0xff]  }
 0x22e   : > { %5553 = vmatpush2.bf16.msra.mxu0 %v7675_v30  ;;  %v7740_v30 = vld [vmem:[%s8304_s12 + $0xa0c] ss:$16 sps:$4 sm:$0xff]  }
 0x22f   : > { %5594 = vmatpush2.bf16.msra.mxu1 %v7678_v35  ;;  %5554 = vmatprep.subr.bf16.mxu0 %v7683_v37  ;;  %v7735_v35 = vld [vmem:[%s8304_s12 + $0x808] ss:$16 sps:$4 sm:$0xff]  }
 0x230   : > { %5595 = vmatprep.subr.bf16.mxu1 %v7686_v40  ;;  %v7738_v37 = vld [vmem:[%s8304_s12 + $0xa08] ss:$16 sps:$4 sm:$0xff]   ;;  %v7743_v40 = vld [vmem:[%s8304_s12 + $0x9ec] ss:$16 sps:$4 sm:$0xff]  }
 0x232   : > { %5555 = vmatpush2.bf16.msra.mxu0 %v7681_v31  ;;  %v7746_v31 = vld [vmem:[%s8304_s12 + $0xbec] ss:$16 sps:$4 sm:$0xff]  }
 0x233   : > { %5596 = vmatpush2.bf16.msra.mxu1 %v7684_v26  ;;  %5556 = vmatprep.subr.bf16.mxu0 %v7689_v33  ;;  %v7741_v26 = vld [vmem:[%s8304_s12 + $0x9e8] ss:$16 sps:$4 sm:$0xff]  }
 0x234   : > { %5597 = vmatprep.subr.bf16.mxu1 %v7692_v36  ;;  %v7744_v33 = vld [vmem:[%s8304_s12 + $0xbe8] ss:$16 sps:$4 sm:$0xff]   ;;  %v7749_v36 = vld [vmem:[%s8304_s12 + $0x9cc] ss:$16 sps:$4 sm:$0xff]  }
 0x236   : > { %5557 = vmatpush2.bf16.msra.mxu0 %v7687_v38  ;;  %v7752_v38 = vld [vmem:[%s8304_s12 + $0xbcc] ss:$16 sps:$4 sm:$0xff]  }
 0x237   : > { %5598 = vmatpush2.bf16.msra.mxu1 %v7690_v34  ;;  %5608 = vmatprep.subr.bf16.mxu0 %v7695_v49  ;;  %v7747_v34 = vld [vmem:[%s8304_s12 + $0x9c8] ss:$16 sps:$4 sm:$0xff]  }
 0x238   : > { %5649 = vmatprep.subr.bf16.mxu1 %v7698_v52  ;;  %v7750_v49 = vld [vmem:[%s8304_s12 + $0xbc8] ss:$16 sps:$4 sm:$0xff]   ;;  %v7755_v52 = vld [vmem:[%s8304_s12 + $0x9ac] ss:$16 sps:$4 sm:$0xff]  }
 0x239   : > { %v9011_v46 = vpop.f32.mrf.mxu0  ;;  %5559 = vmatmul.mubr.bf16.vlgmr.msra.gmra.mxu0 %v8488_v20 }
 0x23a   : > { %v9013_v47 = vpop.f32.mrf.mxu1  ;;  %5600 = vmatmul.mubr.bf16.vlgmr.msra.gmra.mxu1 %v8490_v21  ;;  %5609 = vmatpush1.bf16.msra.mxu0 %v7693_v39  ;;  %v7758_v39 = vld [vmem:[%s8304_s12 + $0xbac] ss:$16 sps:$4 sm:$0xff]  }
 0x23b   : > { %5650 = vmatpush1.bf16.msra.mxu1 %v7696_v41  ;;  %v9019_v54 = vpop.f32.mrf.mxu0  ;;  %5610 = vmatprep.subr.bf16.mxu0 %v7701_v44  ;;  %v7753_v41 = vld [vmem:[%s8304_s12 + $0x9a8] ss:$16 sps:$4 sm:$0xff]  }
 0x23c   : > { %v9021_v55 = vpop.f32.mrf.mxu1  ;;  %5651 = vmatprep.subr.bf16.mxu1 %v7704_v45  ;;  %5640 = vmatprep.mubr.bf16.mxu0 %v8503_v29  ;;  %v7716_v29 = vld [vmem:[%s8304_s12 + $0xa8c] ss:$16 sps:$4 sm:$0xff]   ;;  %v7756_v44 = vld [vmem:[%s8304_s12 + $0xba8] ss:$16 sps:$4 sm:$0xff]  }
 0x23d   : > { %5681 = vmatprep.mubr.bf16.mxu1 %v8509_v32  ;;  %v5318_v20 = vpop.f32.mrf.mxu0  ;;  %v7711_v32 = vld [vmem:[%s8304_s12 + $0x888] ss:$16 sps:$4 sm:$0xff]   ;;  %v7761_v45 = vld [vmem:[%s8304_s12 + $0x98c] ss:$16 sps:$4 sm:$0xff]  }
 0x23e   : > { %v5359_v21 = vpop.f32.mrf.mxu1  ;;  %5611 = vmatpush1.bf16.msra.mxu0 %v7699_v51  ;;  %v7764_v51 = vld [vmem:[%s8304_s12 + $0xb8c] ss:$16 sps:$4 sm:$0xff]  }
 0x23f   : > { %5652 = vmatpush1.bf16.msra.mxu1 %v7702_v53  ;;  %v5319_v61 = vpop.f32.mrf.mxu0  ;;  %5612 = vmatprep.subr.bf16.mxu0 %v7707_v56  ;;  %v7759_v53 = vld [vmem:[%s8304_s12 + $0x988] ss:$16 sps:$4 sm:$0xff]   ;;  %v7770_v20 = vld [vmem:[%s8304_s12 + $0xb6c] ss:$16 sps:$4 sm:$0xff]  }
 0x240   : > { %v5360_v62 = vpop.f32.mrf.mxu1  ;;  %5653 = vmatprep.subr.bf16.mxu1 %v7710_v58  ;;  %v7762_v56 = vld [vmem:[%s8304_s12 + $0xb88] ss:$16 sps:$4 sm:$0xff]   ;;  %v7767_v58 = vld [vmem:[%s8304_s12 + $0x96c] ss:$16 sps:$4 sm:$0xff]  }
 0x241   : > { %v7765_v21 = vld [vmem:[%s8304_s12 + $0x968] ss:$16 sps:$4 sm:$0xff]   ;;  %v7776_v61 = vld [vmem:[%s8304_s12 + $0xb4c] ss:$16 sps:$4 sm:$0xff]  }
 0x242   : > { %5613 = vmatpush1.bf16.msra.mxu0 %v7705_v59  ;;  %v7768_v59 = vld [vmem:[%s8304_s12 + $0xb68] ss:$16 sps:$4 sm:$0xff]  }
 0x243   : > { %5654 = vmatpush1.bf16.msra.mxu1 %v7708_v60  ;;  %5614 = vmatprep.subr.bf16.mxu0 %v7713_v63  ;;  %v7773_v60 = vld [vmem:[%s8304_s12 + $0x94c] ss:$16 sps:$4 sm:$0xff]   ;;  %v7771_v62 = vld [vmem:[%s8304_s12 + $0x948] ss:$16 sps:$4 sm:$0xff]  }
 0x244   : > { %5655 = vmatprep.subr.bf16.mxu1 %v7716_v29  ;;  %v7774_v63 = vld [vmem:[%s8304_s12 + $0xb48] ss:$16 sps:$4 sm:$0xff]   ;;  %v7779_v29 = vld [vmem:[%s8304_s12 + $0x92c] ss:$16 sps:$4 sm:$0xff]  }
 0x246   : > { %5615 = vmatpush1.bf16.msra.mxu0 %v7711_v32  ;;  %v7782_v32 = vld [vmem:[%s8304_s12 + $0xb2c] ss:$16 sps:$4 sm:$0xff]  }
 0x247   : > { %5656 = vmatpush1.bf16.msra.mxu1 %v7714_v0  ;;  %5616 = vmatprep.subr.bf16.mxu0 %v7719_v5  ;;  %v7777_v0 = vld [vmem:[%s8304_s12 + $0x928] ss:$16 sps:$4 sm:$0xff]  }
 0x248   : > { %5657 = vmatprep.subr.bf16.mxu1 %v7722_v6  ;;  %v7780_v5 = vld [vmem:[%s8304_s12 + $0xb28] ss:$16 sps:$4 sm:$0xff]   ;;  %v7785_v6 = vld [vmem:[%s8304_s12 + $0x90c] ss:$16 sps:$4 sm:$0xff]  }
 0x24a   : > { %5617 = vmatpush1.bf16.msra.mxu0 %v7717_v11  ;;  %v7788_v11 = vld [vmem:[%s8304_s12 + $0xb0c] ss:$16 sps:$4 sm:$0xff]  }
 0x24b   : > { %5658 = vmatpush1.bf16.msra.mxu1 %v7720_v12  ;;  %5618 = vmatprep.subr.bf16.mxu0 %v7725_v15  ;;  %v7783_v12 = vld [vmem:[%s8304_s12 + $0x908] ss:$16 sps:$4 sm:$0xff]  }
 0x24c   : > { %5659 = vmatprep.subr.bf16.mxu1 %v7728_v16  ;;  %v7786_v15 = vld [vmem:[%s8304_s12 + $0xb08] ss:$16 sps:$4 sm:$0xff]   ;;  %v7791_v16 = vld [vmem:[%s8304_s12 + $0xcec] ss:$16 sps:$4 sm:$0xff]  }
 0x24e   : > { %5619 = vmatpush1.bf16.msra.mxu0 %v7723_v19  ;;  %v7794_v19 = vld [vmem:[%s8304_s12 + $0xeec] ss:$16 sps:$4 sm:$0xff]  }
 0x24f   : > { %5660 = vmatpush1.bf16.msra.mxu1 %v7726_v23  ;;  %5620 = vmatprep.subr.bf16.mxu0 %v7731_v24  ;;  %v5315_v23 = vadd.f32 %v9011_v46, %v8944_v22  ;;  %v5317_v24 = vadd.f32 %v9019_v54, %v8951_v25 }
 0x250   : > { %5661 = vmatprep.subr.bf16.mxu1 %v7734_v8  ;;  %v7789_v8 = vld [vmem:[%s8304_s12 + $0xce8] ss:$16 sps:$4 sm:$0xff]  }
 0x251   : > { %v5358_v25 = vadd.f32 %v9021_v55, %v5317_v24  ;;  %v7843_v24 = vld [vmem:[%s8304_s12 + $0xdc8] ss:$16 sps:$4 sm:$0xff]  }
 0x252   : > { %5621 = vmatpush1.bf16.msra.mxu0 %v7729_v9  ;;  %v7792_v9 = vld [vmem:[%s8304_s12 + $0xee8] ss:$16 sps:$4 sm:$0xff]  }
 0x253   : > { %5662 = vmatpush1.bf16.msra.mxu1 %v7732_v27  ;;  %5622 = vmatprep.subr.bf16.mxu0 %v7737_v28  ;;  %v7797_v27 = vld [vmem:[%s8304_s12 + $0xccc] ss:$16 sps:$4 sm:$0xff]  }
 0x254   : > { %5663 = vmatprep.subr.bf16.mxu1 %v7740_v30  ;;  %v7800_v28 = vld [vmem:[%s8304_s12 + $0xecc] ss:$16 sps:$4 sm:$0xff]   ;;  %v5356_v30 = vadd.f32 %v9013_v47, %v5315_v23 }
 0x255   : > { %v7803_v47 = vld [vmem:[%s8304_s12 + $0xcac] ss:$16 sps:$4 sm:$0xff]  }
 0x256   : > { %5623 = vmatpush1.bf16.msra.mxu0 %v7735_v35  ;;  %v7795_v35 = vld [vmem:[%s8304_s12 + $0xcc8] ss:$16 sps:$4 sm:$0xff]   ;;  %v7848_v23 = vld [vmem:[%s8304_s12 + $0xfcc] ss:$16 sps:$4 sm:$0xff]  }
 0x257   : > { %5664 = vmatpush1.bf16.msra.mxu1 %v7738_v37  ;;  %5624 = vmatprep.subr.bf16.mxu0 %v7743_v40  ;;  %v7798_v37 = vld [vmem:[%s8304_s12 + $0xec8] ss:$16 sps:$4 sm:$0xff]  }
 0x258   : > { %5665 = vmatprep.subr.bf16.mxu1 %v7746_v31 }
 0x25a   : > { %5625 = vmatpush2.bf16.msra.mxu0 %v7741_v26  ;;  %v7806_v26 = vld [vmem:[%s8304_s12 + $0xeac] ss:$16 sps:$4 sm:$0xff]  }
 0x25b   : > { %5666 = vmatpush2.bf16.msra.mxu1 %v7744_v33  ;;  %5626 = vmatprep.subr.bf16.mxu0 %v7749_v36 }
 0x25c   : > { %5667 = vmatprep.subr.bf16.mxu1 %v7752_v38 }
 0x25e   : > { %5627 = vmatpush2.bf16.msra.mxu0 %v7747_v34  ;;  %v7801_v34 = vld [vmem:[%s8304_s12 + $0xca8] ss:$16 sps:$4 sm:$0xff]  }
 0x25f   : > { %5668 = vmatpush2.bf16.msra.mxu1 %v7750_v49  ;;  %5628 = vmatprep.subr.bf16.mxu0 %v7755_v52  ;;  %v7809_v52 = vld [vmem:[%s8304_s12 + $0xc8c] ss:$16 sps:$4 sm:$0xff]  }
 0x260   : > { %5669 = vmatprep.subr.bf16.mxu1 %v7758_v39  ;;  %v7812_v39 = vld [vmem:[%s8304_s12 + $0xe8c] ss:$16 sps:$4 sm:$0xff]  }
 0x262   : > { %5629 = vmatpush2.bf16.msra.mxu0 %v7753_v41 }
 0x263   : > { %5670 = vmatpush2.bf16.msra.mxu1 %v7756_v44  ;;  %5630 = vmatprep.subr.bf16.mxu0 %v7761_v45  ;;  %v7807_v44 = vld [vmem:[%s8304_s12 + $0xc88] ss:$16 sps:$4 sm:$0xff]  }
 0x264   : > { %5671 = vmatprep.subr.bf16.mxu1 %v7764_v51  ;;  %v7810_v45 = vld [vmem:[%s8304_s12 + $0xe88] ss:$16 sps:$4 sm:$0xff]   ;;  %v7815_v51 = vld [vmem:[%s8304_s12 + $0xc6c] ss:$16 sps:$4 sm:$0xff]  }
 0x266   : > { %5631 = vmatpush2.bf16.msra.mxu0 %v7759_v53  ;;  %v7818_v53 = vld [vmem:[%s8304_s12 + $0xe6c] ss:$16 sps:$4 sm:$0xff]  }
 0x267   : > { %5672 = vmatpush2.bf16.msra.mxu1 %v7762_v56  ;;  %5632 = vmatprep.subr.bf16.mxu0 %v7767_v58  ;;  %v7813_v56 = vld [vmem:[%s8304_s12 + $0xc68] ss:$16 sps:$4 sm:$0xff]  }
 0x268   : > { %5673 = vmatprep.subr.bf16.mxu1 %v7770_v20  ;;  %v7816_v58 = vld [vmem:[%s8304_s12 + $0xe68] ss:$16 sps:$4 sm:$0xff]   ;;  %v7821_v20 = vld [vmem:[%s8304_s12 + $0xc4c] ss:$16 sps:$4 sm:$0xff]  }
 0x26a   : > { %5633 = vmatpush2.bf16.msra.mxu0 %v7765_v21  ;;  %v7824_v21 = vld [vmem:[%s8304_s12 + $0xe4c] ss:$16 sps:$4 sm:$0xff]  }
 0x26b   : > { %5674 = vmatpush2.bf16.msra.mxu1 %v7768_v59  ;;  %5634 = vmatprep.subr.bf16.mxu0 %v7773_v60  ;;  %v7819_v59 = vld [vmem:[%s8304_s12 + $0xc48] ss:$16 sps:$4 sm:$0xff]  }
 0x26c   : > { %5675 = vmatprep.subr.bf16.mxu1 %v7776_v61  ;;  %v7822_v60 = vld [vmem:[%s8304_s12 + $0xe48] ss:$16 sps:$4 sm:$0xff]   ;;  %v7827_v61 = vld [vmem:[%s8304_s12 + $0xc2c] ss:$16 sps:$4 sm:$0xff]  }
 0x26e   : > { %5635 = vmatpush2.bf16.msra.mxu0 %v7771_v62  ;;  %v7830_v62 = vld [vmem:[%s8304_s12 + $0xe2c] ss:$16 sps:$4 sm:$0xff]  }
 0x26f   : > { %5676 = vmatpush2.bf16.msra.mxu1 %v7774_v63  ;;  %5636 = vmatprep.subr.bf16.mxu0 %v7779_v29  ;;  %v7825_v63 = vld [vmem:[%s8304_s12 + $0xc28] ss:$16 sps:$4 sm:$0xff]  }
 0x270   : > { %5677 = vmatprep.subr.bf16.mxu1 %v7782_v32  ;;  %v7828_v29 = vld [vmem:[%s8304_s12 + $0xe28] ss:$16 sps:$4 sm:$0xff]   ;;  %v7833_v32 = vld [vmem:[%s8304_s12 + $0xc0c] ss:$16 sps:$4 sm:$0xff]  }
 0x272   : > { %5637 = vmatpush2.bf16.msra.mxu0 %v7777_v0  ;;  %v7836_v0 = vld [vmem:[%s8304_s12 + $0xe0c] ss:$16 sps:$4 sm:$0xff]  }
 0x273   : > { %5678 = vmatpush2.bf16.msra.mxu1 %v7780_v5  ;;  %5638 = vmatprep.subr.bf16.mxu0 %v7785_v6  ;;  %v7831_v5 = vld [vmem:[%s8304_s12 + $0xc08] ss:$16 sps:$4 sm:$0xff]  }
 0x274   : > { %5679 = vmatprep.subr.bf16.mxu1 %v7788_v11  ;;  %v7834_v6 = vld [vmem:[%s8304_s12 + $0xe08] ss:$16 sps:$4 sm:$0xff]   ;;  %v7839_v11 = vld [vmem:[%s8304_s12 + $0xdec] ss:$16 sps:$4 sm:$0xff]  }
 0x276   : > { %5639 = vmatpush2.bf16.msra.mxu0 %v7783_v12  ;;  %v7842_v12 = vld [vmem:[%s8304_s12 + $0xfec] ss:$16 sps:$4 sm:$0xff]  }
 0x277   : > { %5680 = vmatpush2.bf16.msra.mxu1 %v7786_v15  ;;  %5690 = vmatprep.subr.bf16.mxu0 %v7791_v16  ;;  %v7837_v15 = vld [vmem:[%s8304_s12 + $0xde8] ss:$16 sps:$4 sm:$0xff]  }
 0x278   : > { %5731 = vmatprep.subr.bf16.mxu1 %v7794_v19  ;;  %v7840_v16 = vld [vmem:[%s8304_s12 + $0xfe8] ss:$16 sps:$4 sm:$0xff]   ;;  %v7845_v19 = vld [vmem:[%s8304_s12 + $0xdcc] ss:$16 sps:$4 sm:$0xff]  }
 0x279   : > { %v5396_v22 = vpop.f32.mrf.mxu0  ;;  %5641 = vmatmul.mubr.bf16.vlgmr.msra.gmra.mxu0 %v8580_v42 }
 0x27a   : > { %v5437_v46 = vpop.f32.mrf.mxu1  ;;  %5682 = vmatmul.mubr.bf16.vlgmr.msra.gmra.mxu1 %v8582_v43  ;;  %v5397_v54 = vadd.f32 %v5396_v22, %v5356_v30  ;;  %5691 = vmatpush1.bf16.msra.mxu0 %v7789_v8  ;;  %v7846_v8 = vld [vmem:[%s8304_s12 + $0xfc8] ss:$16 sps:$4 sm:$0xff]   ;;  %v7857_v22 = vld [vmem:[%s8304_s12 + $0xd8c] ss:$16 sps:$4 sm:$0xff]  }
 0x27b   : > { %5732 = vmatpush1.bf16.msra.mxu1 %v7792_v9  ;;  %v5398_v40 = vpop.f32.mrf.mxu0  ;;  %5692 = vmatprep.subr.bf16.mxu0 %v7797_v27  ;;  %v7851_v9 = vld [vmem:[%s8304_s12 + $0xdac] ss:$16 sps:$4 sm:$0xff]   ;;  %v7852_v30 = vld [vmem:[%s8304_s12 + $0xfa8] ss:$16 sps:$4 sm:$0xff]  }
 0x27c   : > { %v5439_v31 = vpop.f32.mrf.mxu1  ;;  %5733 = vmatprep.subr.bf16.mxu1 %v7800_v28  ;;  %v5438_v33 = vadd.f32 %v5437_v46, %v5397_v54  ;;  %v5399_v42 = vadd.f32 %v5398_v40, %v5358_v25  ;;  %5722 = vmatprep.mubr.bf16.mxu0 %v8590_v48  ;;  %v7804_v48 = vld [vmem:[%s8304_s12 + $0xea8] ss:$16 sps:$4 sm:$0xff]   ;;  %v7854_v27 = vld [vmem:[%s8304_s12 + $0xfac] ss:$16 sps:$4 sm:$0xff]  }
 0x27d   : > { %5763 = vmatprep.mubr.bf16.mxu1 %v8592_v50  ;;  %v5400_v43 = vpop.f32.mrf.mxu0  ;;  %v7849_v28 = vld [vmem:[%s8304_s12 + $0xda8] ss:$16 sps:$4 sm:$0xff]   ;;  %v7860_v46 = vld [vmem:[%s8304_s12 + $0xf8c] ss:$16 sps:$4 sm:$0xff]  }
 0x27e   : > { %v5441_v55 = vpop.f32.mrf.mxu1  ;;  %v5936_v36 = vmax.f32 %v5438_v33, 0.0  ;;  %v5440_v38 = vadd.f32 %v5439_v31, %v5399_v42  ;;  %5693 = vmatpush1.bf16.msra.mxu0 %v7795_v35  ;;  %v7855_v25 = vld [vmem:[%s8304_s12 + $0xd88] ss:$16 sps:$4 sm:$0xff]   ;;  %v7863_v35 = vld [vmem:[%s8304_s12 + $0xd6c] ss:$16 sps:$4 sm:$0xff]  }
 0x27f   : > { %5734 = vmatpush1.bf16.msra.mxu1 %v7798_v37  ;;  %v5401_v49 = vpop.f32.mrf.mxu0  ;;  %5694 = vmatprep.subr.bf16.mxu0 %v7803_v47  ;;  %v7858_v54 = vld [vmem:[%s8304_s12 + $0xf88] ss:$16 sps:$4 sm:$0xff]   ;;  %v7866_v37 = vld [vmem:[%s8304_s12 + $0xf6c] ss:$16 sps:$4 sm:$0xff]  }
 0x280   : > { %v5442_v50 = vpop.f32.mrf.mxu1  ;;  %5735 = vmatprep.subr.bf16.mxu1 %v7806_v26  ;;  %5940 = vst [vmem:[%s9108_s11] sm:$0xff] %v5936_v36  ;;  %v5937_v41 = vmax.f32 %v5440_v38, 0.0  ;;  %v7861_v40 = vld [vmem:[%s8304_s12 + $0xd68] ss:$16 sps:$4 sm:$0xff]   ;;  %v7869_v47 = vld [vmem:[%s8304_s12 + $0xd4c] ss:$16 sps:$4 sm:$0xff]  }
 0x281   : > { %v7864_v31 = vld [vmem:[%s8304_s12 + $0xf68] ss:$16 sps:$4 sm:$0xff]   ;;  %v7872_v26 = vld [vmem:[%s8304_s12 + $0xf4c] ss:$16 sps:$4 sm:$0xff]  }
 0x282   : > { %5941 = vst [vmem:[%s9108_s11 + $0x8] sm:$0xff] %v5937_v41  ;;  %5695 = vmatpush1.bf16.msra.mxu0 %v7801_v34  ;;  %v7867_v33 = vld [vmem:[%s8304_s12 + $0xd48] ss:$16 sps:$4 sm:$0xff]   ;;  %v7875_v43 = vld [vmem:[%s8304_s12 + $0xd2c] ss:$16 sps:$4 sm:$0xff]  }
 0x283   : > { %5736 = vmatpush1.bf16.msra.mxu1 %v7804_v48  ;;  %5696 = vmatprep.subr.bf16.mxu0 %v7809_v52  ;;  %v7870_v42 = vld [vmem:[%s8304_s12 + $0xf48] ss:$16 sps:$4 sm:$0xff]   ;;  %v7878_v55 = vld [vmem:[%s8304_s12 + $0xf2c] ss:$16 sps:$4 sm:$0xff]   ;;  %v1102_v52 = vsub.s32 2, %v8652_v57 }
 0x284   : > { %5737 = vmatprep.subr.bf16.mxu1 %v7812_v39  ;;  %v7873_v36 = vld [vmem:[%s8304_s12 + $0xd28] ss:$16 sps:$4 sm:$0xff]   ;;  %v7881_v34 = vld [vmem:[%s8304_s12 + $0xd0c] ss:$16 sps:$4 sm:$0xff]  }
 0x285   : > { %v7876_v38 = vld [vmem:[%s8304_s12 + $0xf28] ss:$16 sps:$4 sm:$0xff]   ;;  %v7884_v48 = vld [vmem:[%s8304_s12 + $0xf0c] ss:$16 sps:$4 sm:$0xff]  }
 0x286   : > { %5697 = vmatpush1.bf16.msra.mxu0 %v7807_v44  ;;  %v7879_v49 = vld [vmem:[%s8304_s12 + $0xd08] ss:$16 sps:$4 sm:$0xff]   ;;  %v7887_v39 = vld [vmem:[%s8304_s12 + $0x10ec] ss:$16 sps:$4 sm:$0xff]   ;;  %v1106_v44 = vsub.s32 3, %v8652_v57 }
 0x287   : > { %5738 = vmatpush1.bf16.msra.mxu1 %v7810_v45  ;;  %5698 = vmatprep.subr.bf16.mxu0 %v7815_v51  ;;  %v7882_v50 = vld [vmem:[%s8304_s12 + $0xf08] ss:$16 sps:$4 sm:$0xff]   ;;  %v7890_v41 = vld [vmem:[%s8304_s12 + $0x12ec] ss:$16 sps:$4 sm:$0xff]   ;;  %v8077_v45 = vld [vmem:[%s8310_s30] sm:$0xf] }
 0x288   : > { %5739 = vmatprep.subr.bf16.mxu1 %v7818_v53  ;;  %v1103_v51 = vrot.slane %v8077_v45, %v1102_v52  ;;  %v7885_v53 = vld [vmem:[%s8304_s12 + $0x10e8] ss:$16 sps:$4 sm:$0xff]   ;;  %v7950_v52 = vld [vmem:[%s8304_s12 + $0x13ac] ss:$16 sps:$4 sm:$0xff]  }
 0x28a   : > { %5699 = vmatpush1.bf16.msra.mxu0 %v7813_v56  ;;  %v7888_v56 = vld [vmem:[%s8304_s12 + $0x12e8] ss:$16 sps:$4 sm:$0xff]  }
 0x28b   : > { %5740 = vmatpush1.bf16.msra.mxu1 %v7816_v58  ;;  %5700 = vmatprep.subr.bf16.mxu0 %v7821_v20  ;;  %v7893_v58 = vld [vmem:[%s8304_s12 + $0x10cc] ss:$16 sps:$4 sm:$0xff]  }
 0x28c   : > { %5741 = vmatprep.subr.bf16.mxu1 %v7824_v21  ;;  %v7896_v20 = vld [vmem:[%s8304_s12 + $0x12cc] ss:$16 sps:$4 sm:$0xff]   ;;  %v1107_v21 = vrot.slane %v8077_v45, %v1106_v44 }
 0x28d   : > { %v7953_v44 = vld [vmem:[%s8304_s12 + $0x118c] ss:$16 sps:$4 sm:$0xff]  }
 0x28e   : > { %5701 = vmatpush1.bf16.msra.mxu0 %v7819_v59  ;;  %v7956_v45 = vld [vmem:[%s8304_s12 + $0x138c] ss:$16 sps:$4 sm:$0xff]  }
 0x28f   : > { %5742 = vmatpush1.bf16.msra.mxu1 %v7822_v60  ;;  %5702 = vmatprep.subr.bf16.mxu0 %v7827_v61  ;;  %v7891_v61 = vld [vmem:[%s8304_s12 + $0x10c8] ss:$16 sps:$4 sm:$0xff]  }
 0x290   : > { %5743 = vmatprep.subr.bf16.mxu1 %v7830_v62  ;;  %v7894_v62 = vld [vmem:[%s8304_s12 + $0x12c8] ss:$16 sps:$4 sm:$0xff]  }
 0x292   : > { %5703 = vmatpush1.bf16.msra.mxu0 %v7825_v63 }
 0x293   : > { %5744 = vmatpush1.bf16.msra.mxu1 %v7828_v29  ;;  %5704 = vmatprep.subr.bf16.mxu0 %v7833_v32  ;;  %v7899_v32 = vld [vmem:[%s8304_s12 + $0x10ac] ss:$16 sps:$4 sm:$0xff]  }
 0x294   : > { %5745 = vmatprep.subr.bf16.mxu1 %v7836_v0  ;;  %v7902_v0 = vld [vmem:[%s8304_s12 + $0x12ac] ss:$16 sps:$4 sm:$0xff]  }
 0x296   : > { %5705 = vmatpush1.bf16.msra.mxu0 %v7831_v5 }
 0x297   : > { %5746 = vmatpush1.bf16.msra.mxu1 %v7834_v6  ;;  %5706 = vmatprep.subr.bf16.mxu0 %v7839_v11 }
 0x298   : > { %5747 = vmatprep.subr.bf16.mxu1 %v7842_v12  ;;  %v7897_v12 = vld [vmem:[%s8304_s12 + $0x10a8] ss:$16 sps:$4 sm:$0xff]  }
 0x29a   : > { %5707 = vmatpush2.bf16.msra.mxu0 %v7837_v15  ;;  %v7900_v15 = vld [vmem:[%s8304_s12 + $0x12a8] ss:$16 sps:$4 sm:$0xff]  }
 0x29b   : > { %5748 = vmatpush2.bf16.msra.mxu1 %v7840_v16  ;;  %5708 = vmatprep.subr.bf16.mxu0 %v7845_v19 }
 0x29c   : > { %5749 = vmatprep.subr.bf16.mxu1 %v7848_v23  ;;  %v7903_v23 = vld [vmem:[%s8304_s12 + $0x1088] ss:$16 sps:$4 sm:$0xff]  }
 0x29e   : > { %5709 = vmatpush2.bf16.msra.mxu0 %v7843_v24  ;;  %v7906_v24 = vld [vmem:[%s8304_s12 + $0x1288] ss:$16 sps:$4 sm:$0xff]  }
 0x29f   : > { %5750 = vmatpush2.bf16.msra.mxu1 %v7846_v8  ;;  %5710 = vmatprep.subr.bf16.mxu0 %v7851_v9  ;;  %v7911_v8 = vld [vmem:[%s8304_s12 + $0x106c] ss:$16 sps:$4 sm:$0xff]  }
 0x2a0   : > { %5751 = vmatprep.subr.bf16.mxu1 %v7854_v27  ;;  %v7914_v9 = vld [vmem:[%s8304_s12 + $0x126c] ss:$16 sps:$4 sm:$0xff]   ;;  %v7909_v27 = vld [vmem:[%s8304_s12 + $0x1068] ss:$16 sps:$4 sm:$0xff]  }
 0x2a2   : > { %5711 = vmatpush2.bf16.msra.mxu0 %v7849_v28  ;;  %v7912_v28 = vld [vmem:[%s8304_s12 + $0x1268] ss:$16 sps:$4 sm:$0xff]  }
 0x2a3   : > { %5752 = vmatpush2.bf16.msra.mxu1 %v7852_v30  ;;  %5712 = vmatprep.subr.bf16.mxu0 %v7857_v22  ;;  %v7917_v30 = vld [vmem:[%s8304_s12 + $0x104c] ss:$16 sps:$4 sm:$0xff]  }
 0x2a4   : > { %5753 = vmatprep.subr.bf16.mxu1 %v7860_v46  ;;  %v7920_v22 = vld [vmem:[%s8304_s12 + $0x124c] ss:$16 sps:$4 sm:$0xff]   ;;  %v7915_v46 = vld [vmem:[%s8304_s12 + $0x1048] ss:$16 sps:$4 sm:$0xff]  }
 0x2a6   : > { %5713 = vmatpush2.bf16.msra.mxu0 %v7855_v25  ;;  %v7918_v25 = vld [vmem:[%s8304_s12 + $0x1248] ss:$16 sps:$4 sm:$0xff]  }
 0x2a7   : > { %5754 = vmatpush2.bf16.msra.mxu1 %v7858_v54  ;;  %5714 = vmatprep.subr.bf16.mxu0 %v7863_v35  ;;  %v7923_v54 = vld [vmem:[%s8304_s12 + $0x102c] ss:$16 sps:$4 sm:$0xff]  }
 0x2a8   : > { %5755 = vmatprep.subr.bf16.mxu1 %v7866_v37  ;;  %v7926_v35 = vld [vmem:[%s8304_s12 + $0x122c] ss:$16 sps:$4 sm:$0xff]   ;;  %v7921_v37 = vld [vmem:[%s8304_s12 + $0x1028] ss:$16 sps:$4 sm:$0xff]  }
 0x2aa   : > { %5715 = vmatpush2.bf16.msra.mxu0 %v7861_v40  ;;  %v7924_v40 = vld [vmem:[%s8304_s12 + $0x1228] ss:$16 sps:$4 sm:$0xff]  }
 0x2ab   : > { %5756 = vmatpush2.bf16.msra.mxu1 %v7864_v31  ;;  %5716 = vmatprep.subr.bf16.mxu0 %v7869_v47  ;;  %v7929_v31 = vld [vmem:[%s8304_s12 + $0x100c] ss:$16 sps:$4 sm:$0xff]  }
 0x2ac   : > { %5757 = vmatprep.subr.bf16.mxu1 %v7872_v26  ;;  %v7932_v47 = vld [vmem:[%s8304_s12 + $0x120c] ss:$16 sps:$4 sm:$0xff]   ;;  %v7927_v26 = vld [vmem:[%s8304_s12 + $0x1008] ss:$16 sps:$4 sm:$0xff]  }
 0x2ae   : > { %5717 = vmatpush2.bf16.msra.mxu0 %v7867_v33  ;;  %v7930_v33 = vld [vmem:[%s8304_s12 + $0x1208] ss:$16 sps:$4 sm:$0xff]  }
 0x2af   : > { %5758 = vmatpush2.bf16.msra.mxu1 %v7870_v42  ;;  %5718 = vmatprep.subr.bf16.mxu0 %v7875_v43  ;;  %v7935_v42 = vld [vmem:[%s8304_s12 + $0x11ec] ss:$16 sps:$4 sm:$0xff]  }
 0x2b0   : > { %5759 = vmatprep.subr.bf16.mxu1 %v7878_v55  ;;  %v7938_v43 = vld [vmem:[%s8304_s12 + $0x13ec] ss:$16 sps:$4 sm:$0xff]   ;;  %v7933_v55 = vld [vmem:[%s8304_s12 + $0x11e8] ss:$16 sps:$4 sm:$0xff]  }
 0x2b2   : > { %5719 = vmatpush2.bf16.msra.mxu0 %v7873_v36  ;;  %v7936_v36 = vld [vmem:[%s8304_s12 + $0x13e8] ss:$16 sps:$4 sm:$0xff]  }
 0x2b3   : > { %5760 = vmatpush2.bf16.msra.mxu1 %v7876_v38  ;;  %5720 = vmatprep.subr.bf16.mxu0 %v7881_v34  ;;  %v7941_v38 = vld [vmem:[%s8304_s12 + $0x11cc] ss:$16 sps:$4 sm:$0xff]  }
 0x2b4   : > { %5761 = vmatprep.subr.bf16.mxu1 %v7884_v48  ;;  %v7944_v34 = vld [vmem:[%s8304_s12 + $0x13cc] ss:$16 sps:$4 sm:$0xff]   ;;  %v7939_v48 = vld [vmem:[%s8304_s12 + $0x11c8] ss:$16 sps:$4 sm:$0xff]  }
 0x2b6   : > { %5721 = vmatpush2.bf16.msra.mxu0 %v7879_v49  ;;  %v7942_v49 = vld [vmem:[%s8304_s12 + $0x13c8] ss:$16 sps:$4 sm:$0xff]  }
 0x2b7   : > { %5762 = vmatpush2.bf16.msra.mxu1 %v7882_v50  ;;  %5772 = vmatprep.subr.bf16.mxu0 %v7887_v39  ;;  %v7947_v50 = vld [vmem:[%s8304_s12 + $0x11ac] ss:$16 sps:$4 sm:$0xff]   ;;  %v7945_v39 = vld [vmem:[%s8304_s12 + $0x11a8] ss:$16 sps:$4 sm:$0xff]  }
 0x2b8   : > { %5813 = vmatprep.subr.bf16.mxu1 %v7890_v41  ;;  %v7948_v41 = vld [vmem:[%s8304_s12 + $0x13a8] ss:$16 sps:$4 sm:$0xff]  }
 0x2b9   : > { %v5478_v59 = vpop.f32.mrf.mxu0  ;;  %5723 = vmatmul.mubr.bf16.vlgmr.msra.gmra.mxu0 %v8673_v7 }
 0x2ba   : > { %v5519_v60 = vpop.f32.mrf.mxu1  ;;  %5764 = vmatmul.mubr.bf16.vlgmr.msra.gmra.mxu1 %v8675_v10  ;;  %v5479_v57 = vadd.f32 %v5478_v59, %v1103_v51  ;;  %5773 = vmatpush1.bf16.msra.mxu0 %v7885_v53  ;;  %v7951_v51 = vld [vmem:[%s8304_s12 + $0x1188] ss:$16 sps:$4 sm:$0xff]   ;;  %v7965_v59 = vld [vmem:[%s8304_s12 + $0x114c] ss:$16 sps:$4 sm:$0xff]  }
 0x2bb   : > { %5814 = vmatpush1.bf16.msra.mxu1 %v7888_v56  ;;  %v5480_v63 = vpop.f32.mrf.mxu0  ;;  %5774 = vmatprep.subr.bf16.mxu0 %v7893_v58  ;;  %v7954_v53 = vld [vmem:[%s8304_s12 + $0x1388] ss:$16 sps:$4 sm:$0xff]   ;;  %v7959_v56 = vld [vmem:[%s8304_s12 + $0x116c] ss:$16 sps:$4 sm:$0xff]  }
 0x2bc   : > { %v5521_v29 = vpop.f32.mrf.mxu1  ;;  %5815 = vmatprep.subr.bf16.mxu1 %v7896_v20  ;;  %v9181_v5 = vadd.f32 %v5519_v60, %v5479_v57  ;;  %v5481_v7 = vadd.f32 %v5480_v63, %v1107_v21  ;;  %5804 = vmatprep.mubr.bf16.mxu0 %v8683_v17  ;;  %v7905_v17 = vld [vmem:[%s8304_s12 + $0x108c] ss:$16 sps:$4 sm:$0xff]   ;;  %v7957_v20 = vld [vmem:[%s8304_s12 + $0x1168] ss:$16 sps:$4 sm:$0xff]  }
 0x2bd   : > { %5845 = vmatprep.mubr.bf16.mxu1 %v8685_v18  ;;  %v5482_v10 = vpop.f32.mrf.mxu0  ;;  %v7908_v18 = vld [vmem:[%s8304_s12 + $0x128c] ss:$16 sps:$4 sm:$0xff]   ;;  %v7960_v21 = vld [vmem:[%s8304_s12 + $0x1368] ss:$16 sps:$4 sm:$0xff]  }
 0x2be   : > { %v5523_v6 = vpop.f32.mrf.mxu1  ;;  %v9185_v11 = vadd.f32 %v5521_v29, %v5481_v7  ;;  %5775 = vmatpush1.bf16.msra.mxu0 %v7891_v61  ;;  %v7962_v58 = vld [vmem:[%s8304_s12 + $0x136c] ss:$16 sps:$4 sm:$0xff]   ;;  %v7963_v57 = vld [vmem:[%s8304_s12 + $0x1148] ss:$16 sps:$4 sm:$0xff]  }
 0x2bf   : > { %5816 = vmatpush1.bf16.msra.mxu1 %v7894_v62  ;;  %v5483_v16 = vpop.f32.mrf.mxu0  ;;  %5776 = vmatprep.subr.bf16.mxu0 %v7899_v32  ;;  %v7968_v60 = vld [vmem:[%s8304_s12 + $0x134c] ss:$16 sps:$4 sm:$0xff]   ;;  %v7966_v61 = vld [vmem:[%s8304_s12 + $0x1348] ss:$16 sps:$4 sm:$0xff]  }
 0x2c0   : > { %v5524_v19 = vpop.f32.mrf.mxu1  ;;  %5817 = vmatprep.subr.bf16.mxu1 %v7902_v0  ;;  %v7971_v62 = vld [vmem:[%s8304_s12 + $0x112c] ss:$16 sps:$4 sm:$0xff]   ;;  %v7969_v29 = vld [vmem:[%s8304_s12 + $0x1128] ss:$16 sps:$4 sm:$0xff]  }
 0x2c1   : > { %v7974_v63 = vld [vmem:[%s8304_s12 + $0x132c] ss:$16 sps:$4 sm:$0xff]   ;;  %v7972_v32 = vld [vmem:[%s8304_s12 + $0x1328] ss:$16 sps:$4 sm:$0xff]  }
 0x2c2   : > { %5777 = vmatpush1.bf16.msra.mxu0 %v7897_v12  ;;  %v7977_v0 = vld [vmem:[%s8304_s12 + $0x110c] ss:$16 sps:$4 sm:$0xff]   ;;  %v7975_v10 = vld [vmem:[%s8304_s12 + $0x1108] ss:$16 sps:$4 sm:$0xff]  }
 0x2c3   : > { %5818 = vmatpush1.bf16.msra.mxu1 %v7900_v15  ;;  %5778 = vmatprep.subr.bf16.mxu0 %v7905_v17  ;;  %v7980_v7 = vld [vmem:[%s8304_s12 + $0x130c] ss:$16 sps:$4 sm:$0xff]   ;;  %v7978_v6 = vld [vmem:[%s8304_s12 + $0x1308] ss:$16 sps:$4 sm:$0xff]  }
 0x2c4   : > { %5819 = vmatprep.subr.bf16.mxu1 %v7908_v18  ;;  %v7983_v12 = vld [vmem:[%s8304_s12 + $0x14ec] ss:$16 sps:$4 sm:$0xff]   ;;  %v7981_v16 = vld [vmem:[%s8304_s12 + $0x14e8] ss:$16 sps:$4 sm:$0xff]  }
 0x2c5   : > { %v7986_v15 = vld [vmem:[%s8304_s12 + $0x16ec] ss:$16 sps:$4 sm:$0xff]   ;;  %v7984_v19 = vld [vmem:[%s8304_s12 + $0x16e8] ss:$16 sps:$4 sm:$0xff]  }
 0x2c6   : > { %5779 = vmatpush1.bf16.msra.mxu0 %v7903_v23  ;;  %v7989_v17 = vld [vmem:[%s8304_s12 + $0x14cc] ss:$16 sps:$4 sm:$0xff]  }
 0x2c7   : > { %5820 = vmatpush1.bf16.msra.mxu1 %v7906_v24  ;;  %5780 = vmatprep.subr.bf16.mxu0 %v7911_v8  ;;  %v7992_v18 = vld [vmem:[%s8304_s12 + $0x16cc] ss:$16 sps:$4 sm:$0xff]  }
 0x2c8   : > { %5821 = vmatprep.subr.bf16.mxu1 %v7914_v9  ;;  %v7987_v9 = vld [vmem:[%s8304_s12 + $0x14c8] ss:$16 sps:$4 sm:$0xff]  }
 0x2ca   : > { %5781 = vmatpush1.bf16.msra.mxu0 %v7909_v27  ;;  %v7990_v27 = vld [vmem:[%s8304_s12 + $0x16c8] ss:$16 sps:$4 sm:$0xff]  }
 0x2cb   : > { %5822 = vmatpush1.bf16.msra.mxu1 %v7912_v28  ;;  %5782 = vmatprep.subr.bf16.mxu0 %v7917_v30 }
 0x2cc   : > { %5823 = vmatprep.subr.bf16.mxu1 %v7920_v22  ;;  %v7995_v22 = vld [vmem:[%s8304_s12 + $0x14ac] ss:$16 sps:$4 sm:$0xff]  }
 0x2ce   : > { %5783 = vmatpush1.bf16.msra.mxu0 %v7915_v46  ;;  %v7998_v46 = vld [vmem:[%s8304_s12 + $0x16ac] ss:$16 sps:$4 sm:$0xff]  }
 0x2cf   : > { %5824 = vmatpush1.bf16.msra.mxu1 %v7918_v25  ;;  %5784 = vmatprep.subr.bf16.mxu0 %v7923_v54 }
 0x2d0   : > { %5825 = vmatprep.subr.bf16.mxu1 %v7926_v35  ;;  %v7993_v35 = vld [vmem:[%s8304_s12 + $0x14a8] ss:$16 sps:$4 sm:$0xff]  }
 0x2d2   : > { %5785 = vmatpush1.bf16.msra.mxu0 %v7921_v37  ;;  %v7996_v37 = vld [vmem:[%s8304_s12 + $0x16a8] ss:$16 sps:$4 sm:$0xff]  }
 0x2d3   : > { %5826 = vmatpush1.bf16.msra.mxu1 %v7924_v40  ;;  %5786 = vmatprep.subr.bf16.mxu0 %v7929_v31 }
 0x2d4   : > { %5827 = vmatprep.subr.bf16.mxu1 %v7932_v47  ;;  %v8002_v47 = vld [vmem:[%s8304_s12 + $0x1688] ss:$16 sps:$4 sm:$0xff]  }
 0x2d6   : > { %5787 = vmatpush1.bf16.msra.mxu0 %v7927_v26  ;;  %v8007_v26 = vld [vmem:[%s8304_s12 + $0x146c] ss:$16 sps:$4 sm:$0xff]  }
 0x2d7   : > { %5828 = vmatpush1.bf16.msra.mxu1 %v7930_v33  ;;  %5788 = vmatprep.subr.bf16.mxu0 %v7935_v42  ;;  %v8010_v33 = vld [vmem:[%s8304_s12 + $0x166c] ss:$16 sps:$4 sm:$0xff]   ;;  %v8005_v42 = vld [vmem:[%s8304_s12 + $0x1468] ss:$16 sps:$4 sm:$0xff]  }
 0x2d8   : > { %5829 = vmatprep.subr.bf16.mxu1 %v7938_v43  ;;  %v8008_v43 = vld [vmem:[%s8304_s12 + $0x1668] ss:$16 sps:$4 sm:$0xff]  }
 0x2da   : > { %5789 = vmatpush2.bf16.msra.mxu0 %v7933_v55  ;;  %v8013_v55 = vld [vmem:[%s8304_s12 + $0x144c] ss:$16 sps:$4 sm:$0xff]  }
 0x2db   : > { %5830 = vmatpush2.bf16.msra.mxu1 %v7936_v36  ;;  %5790 = vmatprep.subr.bf16.mxu0 %v7941_v38  ;;  %v8016_v36 = vld [vmem:[%s8304_s12 + $0x164c] ss:$16 sps:$4 sm:$0xff]   ;;  %v8011_v38 = vld [vmem:[%s8304_s12 + $0x1448] ss:$16 sps:$4 sm:$0xff]  }
 0x2dc   : > { %5831 = vmatprep.subr.bf16.mxu1 %v7944_v34  ;;  %v8014_v34 = vld [vmem:[%s8304_s12 + $0x1648] ss:$16 sps:$4 sm:$0xff]  }
 0x2de   : > { %5791 = vmatpush2.bf16.msra.mxu0 %v7939_v48  ;;  %v8019_v48 = vld [vmem:[%s8304_s12 + $0x142c] ss:$16 sps:$4 sm:$0xff]  }
 0x2df   : > { %5832 = vmatpush2.bf16.msra.mxu1 %v7942_v49  ;;  %5792 = vmatprep.subr.bf16.mxu0 %v7947_v50  ;;  %v8022_v49 = vld [vmem:[%s8304_s12 + $0x162c] ss:$16 sps:$4 sm:$0xff]   ;;  %v8017_v50 = vld [vmem:[%s8304_s12 + $0x1428] ss:$16 sps:$4 sm:$0xff]  }
 0x2e0   : > { %5833 = vmatprep.subr.bf16.mxu1 %v7950_v52  ;;  %v8020_v52 = vld [vmem:[%s8304_s12 + $0x1628] ss:$16 sps:$4 sm:$0xff]  }
 0x2e2   : > { %5793 = vmatpush2.bf16.msra.mxu0 %v7945_v39  ;;  %v8025_v39 = vld [vmem:[%s8304_s12 + $0x140c] ss:$16 sps:$4 sm:$0xff]  }
 0x2e3   : > { %5834 = vmatpush2.bf16.msra.mxu1 %v7948_v41  ;;  %5794 = vmatprep.subr.bf16.mxu0 %v7953_v44  ;;  %v8028_v41 = vld [vmem:[%s8304_s12 + $0x160c] ss:$16 sps:$4 sm:$0xff]   ;;  %v8023_v44 = vld [vmem:[%s8304_s12 + $0x1408] ss:$16 sps:$4 sm:$0xff]  }
 0x2e4   : > { %5835 = vmatprep.subr.bf16.mxu1 %v7956_v45  ;;  %v8026_v45 = vld [vmem:[%s8304_s12 + $0x1608] ss:$16 sps:$4 sm:$0xff]  }
 0x2e6   : > { %5795 = vmatpush2.bf16.msra.mxu0 %v7951_v51  ;;  %v8031_v51 = vld [vmem:[%s8304_s12 + $0x15ec] ss:$16 sps:$4 sm:$0xff]  }
 0x2e7   : > { %5836 = vmatpush2.bf16.msra.mxu1 %v7954_v53  ;;  %5796 = vmatprep.subr.bf16.mxu0 %v7959_v56  ;;  %v8034_v53 = vld [vmem:[%s8304_s12 + $0x17ec] ss:$16 sps:$4 sm:$0xff]   ;;  %v8029_v56 = vld [vmem:[%s8304_s12 + $0x15e8] ss:$16 sps:$4 sm:$0xff]  }
 0x2e8   : > { %5837 = vmatprep.subr.bf16.mxu1 %v7962_v58  ;;  %v8032_v58 = vld [vmem:[%s8304_s12 + $0x17e8] ss:$16 sps:$4 sm:$0xff]  }
 0x2ea   : > { %5797 = vmatpush2.bf16.msra.mxu0 %v7957_v20  ;;  %v8037_v20 = vld [vmem:[%s8304_s12 + $0x15cc] ss:$16 sps:$4 sm:$0xff]  }
 0x2eb   : > { %5838 = vmatpush2.bf16.msra.mxu1 %v7960_v21  ;;  %5798 = vmatprep.subr.bf16.mxu0 %v7965_v59  ;;  %v8040_v21 = vld [vmem:[%s8304_s12 + $0x17cc] ss:$16 sps:$4 sm:$0xff]   ;;  %v8035_v59 = vld [vmem:[%s8304_s12 + $0x15c8] ss:$16 sps:$4 sm:$0xff]  }
 0x2ec   : > { %5839 = vmatprep.subr.bf16.mxu1 %v7968_v60  ;;  %v8038_v60 = vld [vmem:[%s8304_s12 + $0x17c8] ss:$16 sps:$4 sm:$0xff]  }
 0x2ee   : > { %5799 = vmatpush2.bf16.msra.mxu0 %v7963_v57  ;;  %v8043_v57 = vld [vmem:[%s8304_s12 + $0x15ac] ss:$16 sps:$4 sm:$0xff]  }
 0x2ef   : > { %5840 = vmatpush2.bf16.msra.mxu1 %v7966_v61  ;;  %5800 = vmatprep.subr.bf16.mxu0 %v7971_v62  ;;  %v8046_v61 = vld [vmem:[%s8304_s12 + $0x17ac] ss:$16 sps:$4 sm:$0xff]   ;;  %v8041_v62 = vld [vmem:[%s8304_s12 + $0x15a8] ss:$16 sps:$4 sm:$0xff]  }
 0x2f0   : > { %5841 = vmatprep.subr.bf16.mxu1 %v7974_v63  ;;  %v8044_v63 = vld [vmem:[%s8304_s12 + $0x17a8] ss:$16 sps:$4 sm:$0xff]  }
 0x2f2   : > { %5801 = vmatpush2.bf16.msra.mxu0 %v7969_v29  ;;  %v8049_v29 = vld [vmem:[%s8304_s12 + $0x158c] ss:$16 sps:$4 sm:$0xff]  }
 0x2f3   : > { %5842 = vmatpush2.bf16.msra.mxu1 %v7972_v32  ;;  %5802 = vmatprep.subr.bf16.mxu0 %v7977_v0  ;;  %v8052_v32 = vld [vmem:[%s8304_s12 + $0x178c] ss:$16 sps:$4 sm:$0xff]   ;;  %v8047_v0 = vld [vmem:[%s8304_s12 + $0x1588] ss:$16 sps:$4 sm:$0xff]  }
 0x2f4   : > { %5843 = vmatprep.subr.bf16.mxu1 %v7980_v7  ;;  %v8050_v7 = vld [vmem:[%s8304_s12 + $0x1788] ss:$16 sps:$4 sm:$0xff]  }
 0x2f6   : > { %5803 = vmatpush2.bf16.msra.mxu0 %v7975_v10  ;;  %v8055_v10 = vld [vmem:[%s8304_s12 + $0x156c] ss:$16 sps:$4 sm:$0xff]  }
 0x2f7   : > { %5844 = vmatpush2.bf16.msra.mxu1 %v7978_v6  ;;  %5854 = vmatprep.subr.bf16.mxu0 %v7983_v12  ;;  %v8058_v6 = vld [vmem:[%s8304_s12 + $0x176c] ss:$16 sps:$4 sm:$0xff]   ;;  %v8053_v12 = vld [vmem:[%s8304_s12 + $0x1568] ss:$16 sps:$4 sm:$0xff]  }
 0x2f8   : > { %5895 = vmatprep.subr.bf16.mxu1 %v7986_v15  ;;  %v8056_v15 = vld [vmem:[%s8304_s12 + $0x1768] ss:$16 sps:$4 sm:$0xff]  }
 0x2f9   : > { %v5560_v23 = vpop.f32.mrf.mxu0  ;;  %5805 = vmatmul.mubr.bf16.vlgmr.msra.gmra.mxu0 %v8769_v3 }
 0x2fa   : > { %v5601_v24 = vpop.f32.mrf.mxu1  ;;  %5846 = vmatmul.mubr.bf16.vlgmr.msra.gmra.mxu1 %v8771_v4  ;;  %v5561_v8 = vadd.f32 %v5560_v23, %v9181_v5  ;;  %5855 = vmatpush1.bf16.msra.mxu0 %v7981_v16  ;;  %v8061_v16 = vld [vmem:[%s8304_s12 + $0x154c] ss:$16 sps:$4 sm:$0xff]  }
 0x2fb   : > { %5896 = vmatpush1.bf16.msra.mxu1 %v7984_v19  ;;  %v5562_v28 = vpop.f32.mrf.mxu0  ;;  %5856 = vmatprep.subr.bf16.mxu0 %v7989_v17  ;;  %v8064_v19 = vld [vmem:[%s8304_s12 + $0x174c] ss:$16 sps:$4 sm:$0xff]   ;;  %v8059_v17 = vld [vmem:[%s8304_s12 + $0x1548] ss:$16 sps:$4 sm:$0xff]  }
 0x2fc   : > { %v5603_v30 = vpop.f32.mrf.mxu1  ;;  %5897 = vmatprep.subr.bf16.mxu1 %v7992_v18  ;;  %v9254_v25 = vadd.f32 %v5601_v24, %v5561_v8  ;;  %v5563_v3 = vadd.f32 %v5562_v28, %v9185_v11  ;;  %5886 = vmatprep.mubr.bf16.mxu0 %v8777_v13  ;;  %v8001_v13 = vld [vmem:[%s8304_s12 + $0x148c] ss:$16 sps:$4 sm:$0xff]   ;;  %v7999_v11 = vld [vmem:[%s8304_s12 + $0x1488] ss:$16 sps:$4 sm:$0xff]  }
 0x2fd   : > { %5927 = vmatprep.mubr.bf16.mxu1 %v8779_v14  ;;  %v5564_v4 = vpop.f32.mrf.mxu0  ;;  %v8004_v14 = vld [vmem:[%s8304_s12 + $0x168c] ss:$16 sps:$4 sm:$0xff]   ;;  %v8062_v18 = vld [vmem:[%s8304_s12 + $0x1748] ss:$16 sps:$4 sm:$0xff]  }
 0x2fe   : > { %v5605_v5 = vpop.f32.mrf.mxu1  ;;  %v9259_v54 = vadd.f32 %v5603_v30, %v5563_v3  ;;  %5857 = vmatpush1.bf16.msra.mxu0 %v7987_v9  ;;  %v8067_v23 = vld [vmem:[%s8304_s12 + $0x152c] ss:$16 sps:$4 sm:$0xff]   ;;  %v8065_v8 = vld [vmem:[%s8304_s12 + $0x1528] ss:$16 sps:$4 sm:$0xff]  }
 0x2ff   : > { %5898 = vmatpush1.bf16.msra.mxu1 %v7990_v27  ;;  %v5565_v40 = vpop.f32.mrf.mxu0  ;;  %5858 = vmatprep.subr.bf16.mxu0 %v7995_v22  ;;  %v8070_v24 = vld [vmem:[%s8304_s12 + $0x172c] ss:$16 sps:$4 sm:$0xff]   ;;  %v8068_v9 = vld [vmem:[%s8304_s12 + $0x1728] ss:$16 sps:$4 sm:$0xff]  }
 0x300   : > { %v5606_v31 = vpop.f32.mrf.mxu1  ;;  %5899 = vmatprep.subr.bf16.mxu1 %v7998_v46  ;;  %v8073_v27 = vld [vmem:[%s8304_s12 + $0x150c] ss:$16 sps:$4 sm:$0xff]   ;;  %v8071_v30 = vld [vmem:[%s8304_s12 + $0x1508] ss:$16 sps:$4 sm:$0xff]  }
 0x301   : > { %v8076_v28 = vld [vmem:[%s8304_s12 + $0x170c] ss:$16 sps:$4 sm:$0xff]   ;;  %v8074_v22 = vld [vmem:[%s8304_s12 + $0x1708] ss:$16 sps:$4 sm:$0xff]  }
 0x302   : > { %5859 = vmatpush1.bf16.msra.mxu0 %v7993_v35 }
 0x303   : > { %5900 = vmatpush1.bf16.msra.mxu1 %v7996_v37  ;;  %5860 = vmatprep.subr.bf16.mxu0 %v8001_v13 }
 0x304   : > { %5901 = vmatprep.subr.bf16.mxu1 %v8004_v14 }
 0x306   : > { %5861 = vmatpush1.bf16.msra.mxu0 %v7999_v11 }
 0x307   : > { %5902 = vmatpush1.bf16.msra.mxu1 %v8002_v47  ;;  %5862 = vmatprep.subr.bf16.mxu0 %v8007_v26 }
 0x308   : > { %5903 = vmatprep.subr.bf16.mxu1 %v8010_v33 }
 0x30a   : > { %5863 = vmatpush1.bf16.msra.mxu0 %v8005_v42 }
 0x30b   : > { %5904 = vmatpush1.bf16.msra.mxu1 %v8008_v43  ;;  %5864 = vmatprep.subr.bf16.mxu0 %v8013_v55 }
 0x30c   : > { %5905 = vmatprep.subr.bf16.mxu1 %v8016_v36 }
 0x30e   : > { %5865 = vmatpush1.bf16.msra.mxu0 %v8011_v38 }
 0x30f   : > { %5906 = vmatpush1.bf16.msra.mxu1 %v8014_v34  ;;  %5866 = vmatprep.subr.bf16.mxu0 %v8019_v48 }
 0x310   : > { %5907 = vmatprep.subr.bf16.mxu1 %v8022_v49 }
 0x312   : > { %5867 = vmatpush1.bf16.msra.mxu0 %v8017_v50 }
 0x313   : > { %5908 = vmatpush1.bf16.msra.mxu1 %v8020_v52  ;;  %5868 = vmatprep.subr.bf16.mxu0 %v8025_v39 }
 0x314   : > { %5909 = vmatprep.subr.bf16.mxu1 %v8028_v41 }
 0x316   : > { %5869 = vmatpush1.bf16.msra.mxu0 %v8023_v44 }
 0x317   : > { %5910 = vmatpush1.bf16.msra.mxu1 %v8026_v45  ;;  %5870 = vmatprep.subr.bf16.mxu0 %v8031_v51 }
 0x318   : > { %5911 = vmatprep.subr.bf16.mxu1 %v8034_v53 }
 0x31a   : > { %5871 = vmatpush2.bf16.msra.mxu0 %v8029_v56 }
 0x31b   : > { %5912 = vmatpush2.bf16.msra.mxu1 %v8032_v58  ;;  %5872 = vmatprep.subr.bf16.mxu0 %v8037_v20 }
 0x31c   : > { %5913 = vmatprep.subr.bf16.mxu1 %v8040_v21 }
 0x31e   : > { %5873 = vmatpush2.bf16.msra.mxu0 %v8035_v59 }
 0x31f   : > { %5914 = vmatpush2.bf16.msra.mxu1 %v8038_v60  ;;  %5874 = vmatprep.subr.bf16.mxu0 %v8043_v57 }
 0x320   : > { %5915 = vmatprep.subr.bf16.mxu1 %v8046_v61 }
 0x322   : > { %5875 = vmatpush2.bf16.msra.mxu0 %v8041_v62 }
 0x323   : > { %5916 = vmatpush2.bf16.msra.mxu1 %v8044_v63  ;;  %5876 = vmatprep.subr.bf16.mxu0 %v8049_v29 }
 0x324   : > { %5917 = vmatprep.subr.bf16.mxu1 %v8052_v32 }
 0x326   : > { %5877 = vmatpush2.bf16.msra.mxu0 %v8047_v0 }
 0x327   : > { %5918 = vmatpush2.bf16.msra.mxu1 %v8050_v7  ;;  %5878 = vmatprep.subr.bf16.mxu0 %v8055_v10 }
 0x328   : > { %5919 = vmatprep.subr.bf16.mxu1 %v8058_v6 }
 0x32a   : > { %5879 = vmatpush2.bf16.msra.mxu0 %v8053_v12 }
 0x32b   : > { %5920 = vmatpush2.bf16.msra.mxu1 %v8056_v15  ;;  %5880 = vmatprep.subr.bf16.mxu0 %v8061_v16 }
 0x32c   : > { %5921 = vmatprep.subr.bf16.mxu1 %v8064_v19 }
 0x32e   : > { %5881 = vmatpush2.bf16.msra.mxu0 %v8059_v17 }
 0x32f   : > { %5922 = vmatpush2.bf16.msra.mxu1 %v8062_v18  ;;  %5882 = vmatprep.subr.bf16.mxu0 %v8067_v23 }
 0x330   : > { %5923 = vmatprep.subr.bf16.mxu1 %v8070_v24 }
 0x332   : > { %5883 = vmatpush2.bf16.msra.mxu0 %v8065_v8 }
 0x333   : > { %5924 = vmatpush2.bf16.msra.mxu1 %v8068_v9  ;;  %5884 = vmatprep.subr.bf16.mxu0 %v8073_v27 }
 0x334   : > { %5925 = vmatprep.subr.bf16.mxu1 %v8076_v28 }
 0x336   : > { %5885 = vmatpush2.bf16.msra.mxu0 %v8071_v30 }
 0x337   : > { %5926 = vmatpush2.bf16.msra.mxu1 %v8074_v22 }
 0x339   : > { %v5642_v46 = vpop.f32.mrf.mxu0  ;;  %5887 = vmatmul.mubr.bf16.vlgmr.msra.gmra.mxu0 %v8857_v1 }
 0x33a   : > { %v5683_v3 = vpop.f32.mrf.mxu1  ;;  %5928 = vmatmul.mubr.bf16.vlgmr.msra.gmra.mxu1 %v8859_v2  ;;  %v5643_v4 = vadd.f32 %v5642_v46, %v9254_v25 }
 0x33b   : > { %v5644_v5 = vpop.f32.mrf.mxu0 }
 0x33c   : > { %v5685_v35 = vpop.f32.mrf.mxu1  ;;  %v5684_v37 = vadd.f32 %v5683_v3, %v5643_v4  ;;  %v5645_v40 = vadd.f32 %v5644_v5, %v9259_v54 }
 0x33d   : > { %v5646_v31 = vpop.f32.mrf.mxu0 }
 0x33e   : > { %v5687_v13 = vpop.f32.mrf.mxu1  ;;  %v5686_v14 = vadd.f32 %v5685_v35, %v5645_v40 }
 0x33f   : > { %v5647_v11 = vpop.f32.mrf.mxu0 }
 0x340   : > { %v5688_v47 = vpop.f32.mrf.mxu1 }
 0x379   : > { %v5724_v26 = vpop.f32.mrf.mxu0 }
 0x37a   : > { %v5765_v33 = vpop.f32.mrf.mxu1  ;;  %v5725_v42 = vadd.f32 %v5724_v26, %v5684_v37 }
 0x37b   : > { %v5726_v43 = vpop.f32.mrf.mxu0 }
 0x37c   : > { %v5767_v55 = vpop.f32.mrf.mxu1  ;;  %v5766_v1 = vadd.f32 %v5765_v33, %v5725_v42  ;;  %v5727_v36 = vadd.f32 %v5726_v43, %v5686_v14 }
 0x37d   : > { %v5728_v2 = vpop.f32.mrf.mxu0 }
 0x37e   : > { %v5769_v38 = vpop.f32.mrf.mxu1  ;;  %v5768_v25 = vadd.f32 %v5767_v55, %v5727_v36 }
 0x37f   : > { %v5729_v34 = vpop.f32.mrf.mxu0 }
 0x380   : > { %v5770_v48 = vpop.f32.mrf.mxu1 }
 0x3b9   : > { %v5806_v49 = vpop.f32.mrf.mxu0 }
 0x3ba   : > { %v5847_v50 = vpop.f32.mrf.mxu1  ;;  %v5807_v51 = vadd.f32 %v5806_v49, %v5766_v1 }
 0x3bb   : > { %v5808_v54 = vpop.f32.mrf.mxu0 }
 0x3bc   : > { %v5849_v52 = vpop.f32.mrf.mxu1  ;;  %v5809_v53 = vadd.f32 %v5808_v54, %v5768_v25  ;;  %v5848_v56 = vadd.f32 %v5847_v50, %v5807_v51 }
 0x3bd   : > { %v5810_v39 = vpop.f32.mrf.mxu0 }
 0x3be   : > { %v5851_v41 = vpop.f32.mrf.mxu1  ;;  %v5850_v21 = vadd.f32 %v5849_v52, %v5809_v53 }
 0x3bf   : > { %v5811_v44 = vpop.f32.mrf.mxu0 }
 0x3c0   : > { %v5852_v45 = vpop.f32.mrf.mxu1 }
 0x3f9   : > { %v5888_v58 = vpop.f32.mrf.mxu0 }
 0x3fa   : > { %v5929_v20 = vpop.f32.mrf.mxu1  ;;  %v5889_v59 = vadd.f32 %v5888_v58, %v5848_v56 }
 0x3fb   : > { %v5890_v60 = vpop.f32.mrf.mxu0 }
 0x3fc   : > { %v5931_v57 = vpop.f32.mrf.mxu1  ;;  %v5930_v61 = vadd.f32 %v5929_v20, %v5889_v59  ;;  %v5891_v62 = vadd.f32 %v5890_v60, %v5850_v21 }
 0x3fd   : > { %v5892_v63 = vpop.f32.mrf.mxu0 }
 0x3fe   : > { %v5933_v29 = vpop.f32.mrf.mxu1  ;;  %v5938_v32 = vmax.f32 %v5930_v61, 0.0  ;;  %v5932_v0 = vadd.f32 %v5931_v57, %v5891_v62 }
 0x3ff   : > { %v5893_v7 = vpop.f32.mrf.mxu0 }
 0x400   : > { %v5934_v10 = vpop.f32.mrf.mxu1  ;;  %5942 = vst [vmem:[%s9108_s11 + $0x10] sm:$0xff] %v5938_v32  ;;  %v5939_v6 = vmax.f32 %v5932_v0, 0.0 }
 0x402   : > { %5943 = vst [vmem:[%s9108_s11 + $0x18] sm:$0xff] %v5939_v6 }
 0x403 PF: > { %s19_s17 = sadd.s32 1, %s8188_s17   ;;  %s9346_s12 = smov %s8172_s13 }
 0x404   : > { %p16_p9 = scmp.ge.s32.totalorder %s19_s17, 6   ;;  %s9347_s13 = smov %s8176_s14 }
 0x405   : > { %s9348_s14 = smov %s8260_s23  ;;  %s9349_s15 = smov %s8184_s16 }
 0x406   : > { %s9350_s16 = smov %s9352_s19  ;;  %18 = sbr.rel (!%p16_p9) target bundleno = 6 (0x6), region = 88 }
 0x40b   :  { %5974 = vsyncpa [#allocation3], 1 }
 0x40c   :  { %5976 = vsyncpa [#allocation3 + $0x1], 1 }
 0x40d   :  { %5977 = vsyncpa [#allocation5], 1 }
 0x40e   :  { %5979 = vsyncpa [#allocation5 + $0x1], 1 }

// kernel: encoder2_forward.11
= control target key start
LH: loop header
LB: loop body
LE: loop exit
PB: predicated region body
PF: predicated region fallthrough
CT: control target
= control target key end

     0   :  { %s899_s1 = inlined_call_operand.vmem [shape: bf16[512,256], index: 1, kind: input, shape index: {}]   ;;  %s900_s0 = inlined_call_operand.vmem [shape: f32[8,512], index: 0, kind: input, shape index: {}]   ;;  %s901_s2 = inlined_call_operand.vmem [shape: f32[1,256], index: 2, kind: input, shape index: {}]   ;;  %s902_s3 = inlined_call_operand.vmem [shape: f32[8,256], index: 3, kind: output, shape index: {}]  }
   0x1   :  { %v570_v0 = vld [vmem:[%s899_s1 + $0x74] ss:$8 sps:$4 sm:$0xff]   ;;  %v574_v2 = vld [vmem:[%s899_s1 + $0x70] ss:$8 sps:$4 sm:$0xff]   ;;  %v576_v4 = vld [vmem:[%s899_s1 + $0x64] ss:$8 sps:$4 sm:$0xff]  }
   0x2   :  { %v572_v1 = vld [vmem:[%s899_s1 + $0x174] ss:$8 sps:$4 sm:$0xff]   ;;  %418 = vmatprep.subr.bf16.mxu0 %v570_v0  ;;  %v575_v3 = vld [vmem:[%s899_s1 + $0x170] ss:$8 sps:$4 sm:$0xff]   ;;  %v578_v5 = vld [vmem:[%s899_s1 + $0x164] ss:$8 sps:$4 sm:$0xff]  }
   0x3   :  { %459 = vmatprep.subr.bf16.mxu1 %v572_v1  ;;  %419 = vmatpush1.bf16.msra.mxu0 %v574_v2  ;;  %v580_v6 = vld [vmem:[%s899_s1 + $0x60] ss:$8 sps:$4 sm:$0xff]   ;;  %v582_v8 = vld [vmem:[%s899_s1 + $0x54] ss:$8 sps:$4 sm:$0xff]   ;;  %v586_v10 = vld [vmem:[%s899_s1 + $0x50] ss:$8 sps:$4 sm:$0xff]  }
   0x4   :  { %460 = vmatpush1.bf16.msra.mxu1 %v575_v3  ;;  %420 = vmatprep.subr.bf16.mxu0 %v576_v4  ;;  %v581_v7 = vld [vmem:[%s899_s1 + $0x160] ss:$8 sps:$4 sm:$0xff]   ;;  %v584_v9 = vld [vmem:[%s899_s1 + $0x154] ss:$8 sps:$4 sm:$0xff]   ;;  %v587_v11 = vld [vmem:[%s899_s1 + $0x150] ss:$8 sps:$4 sm:$0xff]  }
   0x5   :  { %461 = vmatprep.subr.bf16.mxu1 %v578_v5  ;;  %v588_v12 = vld [vmem:[%s899_s1 + $0x44] ss:$8 sps:$4 sm:$0xff]   ;;  %v592_v14 = vld [vmem:[%s899_s1 + $0x40] ss:$8 sps:$4 sm:$0xff]   ;;  %v594_v16 = vld [vmem:[%s899_s1 + $0x34] ss:$8 sps:$4 sm:$0xff]  }
   0x6   :  { %v590_v13 = vld [vmem:[%s899_s1 + $0x144] ss:$8 sps:$4 sm:$0xff]   ;;  %v593_v15 = vld [vmem:[%s899_s1 + $0x140] ss:$8 sps:$4 sm:$0xff]   ;;  %v596_v17 = vld [vmem:[%s899_s1 + $0x134] ss:$8 sps:$4 sm:$0xff]  }
   0x7   :  { %421 = vmatpush1.bf16.msra.mxu0 %v580_v6  ;;  %v598_v18 = vld [vmem:[%s899_s1 + $0x30] ss:$8 sps:$4 sm:$0xff]   ;;  %v600_v20 = vld [vmem:[%s899_s1 + $0x24] ss:$8 sps:$4 sm:$0xff]   ;;  %v604_v22 = vld [vmem:[%s899_s1 + $0x20] ss:$8 sps:$4 sm:$0xff]  }
   0x8   :  { %462 = vmatpush1.bf16.msra.mxu1 %v581_v7  ;;  %422 = vmatprep.subr.bf16.mxu0 %v582_v8  ;;  %v599_v19 = vld [vmem:[%s899_s1 + $0x130] ss:$8 sps:$4 sm:$0xff]   ;;  %v602_v21 = vld [vmem:[%s899_s1 + $0x124] ss:$8 sps:$4 sm:$0xff]   ;;  %v605_v23 = vld [vmem:[%s899_s1 + $0x120] ss:$8 sps:$4 sm:$0xff]   ;;  %v88_v8 = vlaneseq }
   0x9   :  { %463 = vmatprep.subr.bf16.mxu1 %v584_v9  ;;  %v606_v24 = vld [vmem:[%s899_s1 + $0x14] ss:$8 sps:$4 sm:$0xff]   ;;  %v610_v26 = vld [vmem:[%s899_s1 + $0x10] ss:$8 sps:$4 sm:$0xff]   ;;  %v612_v28 = vld [vmem:[%s899_s1 + $0x4] ss:$8 sps:$4 sm:$0xff]  }
   0xa   :  { %v608_v25 = vld [vmem:[%s899_s1 + $0x114] ss:$8 sps:$4 sm:$0xff]   ;;  %v611_v27 = vld [vmem:[%s899_s1 + $0x110] ss:$8 sps:$4 sm:$0xff]   ;;  %v614_v29 = vld [vmem:[%s899_s1 + $0x104] ss:$8 sps:$4 sm:$0xff]  }
   0xb   :  { %423 = vmatpush1.bf16.msra.mxu0 %v586_v10  ;;  %v616_v30 = vld [vmem:[%s899_s1] ss:$8 sps:$4 sm:$0xff]   ;;  %v618_v32 = vld [vmem:[%s899_s1 + $0xf4] ss:$8 sps:$4 sm:$0xff]   ;;  %v622_v34 = vld [vmem:[%s899_s1 + $0xf0] ss:$8 sps:$4 sm:$0xff]  }
   0xc   :  { %464 = vmatpush1.bf16.msra.mxu1 %v587_v11  ;;  %424 = vmatprep.subr.bf16.mxu0 %v588_v12  ;;  %v617_v31 = vld [vmem:[%s899_s1 + $0x100] ss:$8 sps:$4 sm:$0xff]   ;;  %v620_v33 = vld [vmem:[%s899_s1 + $0x1f4] ss:$8 sps:$4 sm:$0xff]   ;;  %v623_v35 = vld [vmem:[%s899_s1 + $0x1f0] ss:$8 sps:$4 sm:$0xff]  }
   0xd   :  { %465 = vmatprep.subr.bf16.mxu1 %v590_v13  ;;  %v624_v36 = vld [vmem:[%s899_s1 + $0xe4] ss:$8 sps:$4 sm:$0xff]   ;;  %v628_v38 = vld [vmem:[%s899_s1 + $0xe0] ss:$8 sps:$4 sm:$0xff]   ;;  %v630_v40 = vld [vmem:[%s899_s1 + $0xd4] ss:$8 sps:$4 sm:$0xff]  }
   0xe   :  { %v626_v37 = vld [vmem:[%s899_s1 + $0x1e4] ss:$8 sps:$4 sm:$0xff]   ;;  %v629_v39 = vld [vmem:[%s899_s1 + $0x1e0] ss:$8 sps:$4 sm:$0xff]   ;;  %v632_v41 = vld [vmem:[%s899_s1 + $0x1d4] ss:$8 sps:$4 sm:$0xff]  }
   0xf   :  { %425 = vmatpush1.bf16.msra.mxu0 %v592_v14  ;;  %v634_v42 = vld [vmem:[%s899_s1 + $0xd0] ss:$8 sps:$4 sm:$0xff]   ;;  %v636_v44 = vld [vmem:[%s899_s1 + $0xc4] ss:$8 sps:$4 sm:$0xff]   ;;  %v640_v49 = vld [vmem:[%s899_s1 + $0xc0] ss:$8 sps:$4 sm:$0xff]  }
  0x10   :  { %466 = vmatpush1.bf16.msra.mxu1 %v593_v15  ;;  %426 = vmatprep.subr.bf16.mxu0 %v594_v16  ;;  %v635_v43 = vld [vmem:[%s899_s1 + $0x1d0] ss:$8 sps:$4 sm:$0xff]   ;;  %v638_v45 = vld [vmem:[%s899_s1 + $0x1c4] ss:$8 sps:$4 sm:$0xff]   ;;  %v641_v50 = vld [vmem:[%s899_s1 + $0x1c0] ss:$8 sps:$4 sm:$0xff]  }
  0x11   :  { %467 = vmatprep.subr.bf16.mxu1 %v596_v17  ;;  %v15_v46 = vld [vmem:[%s900_s0 + $0x8] sm:$0xff]  ;;  %v17_v48 = vld [vmem:[%s900_s0 + $0x18] sm:$0xff]  ;;  %v14_v4 = vld [vmem:[%s900_s0] sm:$0xff]  ;;  %v89_v9 = vshrl.u32 %v88_v8, 7 }
  0x12   :  { %v19_v47 = vpack.c.bf16 %v15_v46, %v15_v46  ;;  %v21_v51 = vpack.c.bf16 %v17_v48, %v17_v48  ;;  %v642_v52 = vld [vmem:[%s899_s1 + $0xb4] ss:$8 sps:$4 sm:$0xff]   ;;  %v646_v54 = vld [vmem:[%s899_s1 + $0xb0] ss:$8 sps:$4 sm:$0xff]   ;;  %v648_v56 = vld [vmem:[%s899_s1 + $0xa4] ss:$8 sps:$4 sm:$0xff]   ;;  %v18_v6 = vpack.c.bf16 %v14_v4, %v14_v4 }
  0x13   :  { %427 = vmatpush1.bf16.msra.mxu0 %v598_v18  ;;  %v644_v53 = vld [vmem:[%s899_s1 + $0x1b4] ss:$8 sps:$4 sm:$0xff]   ;;  %v647_v55 = vld [vmem:[%s899_s1 + $0x1b0] ss:$8 sps:$4 sm:$0xff]   ;;  %v650_v57 = vld [vmem:[%s899_s1 + $0x1a4] ss:$8 sps:$4 sm:$0xff]  }
  0x14   :  { %468 = vmatpush1.bf16.msra.mxu1 %v599_v19  ;;  %428 = vmatprep.subr.bf16.mxu0 %v600_v20  ;;  %v652_v58 = vld [vmem:[%s899_s1 + $0xa0] ss:$8 sps:$4 sm:$0xff]   ;;  %v654_v60 = vld [vmem:[%s899_s1 + $0x94] ss:$8 sps:$4 sm:$0xff]   ;;  %v658_v62 = vld [vmem:[%s899_s1 + $0x90] ss:$8 sps:$4 sm:$0xff]  }
  0x15   :  { %469 = vmatprep.subr.bf16.mxu1 %v602_v21  ;;  %450 = vmatprep.mubr.bf16.mxu0 %v19_v47  ;;  %v653_v59 = vld [vmem:[%s899_s1 + $0x1a0] ss:$8 sps:$4 sm:$0xff]   ;;  %v656_v61 = vld [vmem:[%s899_s1 + $0x194] ss:$8 sps:$4 sm:$0xff]   ;;  %v659_v63 = vld [vmem:[%s899_s1 + $0x190] ss:$8 sps:$4 sm:$0xff]  }
  0x16   :  { %491 = vmatprep.mubr.bf16.mxu1 %v21_v51  ;;  %v660_v0 = vld [vmem:[%s899_s1 + $0x84] ss:$8 sps:$4 sm:$0xff]   ;;  %v664_v2 = vld [vmem:[%s899_s1 + $0x80] ss:$8 sps:$4 sm:$0xff]   ;;  %v16_v5 = vld [vmem:[%s900_s0 + $0x10] sm:$0xff]  ;;  %v90_v10 = vsub.s32 0, %v89_v9 }
  0x17   :  { %429 = vmatpush1.bf16.msra.mxu0 %v604_v22  ;;  %v662_v1 = vld [vmem:[%s899_s1 + $0x184] ss:$8 sps:$4 sm:$0xff]   ;;  %v665_v3 = vld [vmem:[%s899_s1 + $0x180] ss:$8 sps:$4 sm:$0xff]   ;;  %v20_v7 = vpack.c.bf16 %v16_v5, %v16_v5  ;;  %v94_v12 = vsub.s32 1, %v89_v9 }
  0x18   :  { %470 = vmatpush1.bf16.msra.mxu1 %v605_v23  ;;  %430 = vmatprep.subr.bf16.mxu0 %v606_v24  ;;  %v86_v11 = vld [vmem:[%s901_s2] sm:$0x3] }
  0x19   :  { %471 = vmatprep.subr.bf16.mxu1 %v608_v25  ;;  %v91_v13 = vrot.slane %v86_v11, %v90_v10  ;;  %v95_v14 = vrot.slane %v86_v11, %v94_v12 }
  0x1b   :  { %431 = vmatpush1.bf16.msra.mxu0 %v610_v26 }
  0x1c   :  { %472 = vmatpush1.bf16.msra.mxu1 %v611_v27  ;;  %432 = vmatprep.subr.bf16.mxu0 %v612_v28 }
  0x1d   :  { %473 = vmatprep.subr.bf16.mxu1 %v614_v29 }
  0x1f   :  { %433 = vmatpush1.bf16.msra.mxu0 %v616_v30 }
  0x20   :  { %474 = vmatpush1.bf16.msra.mxu1 %v617_v31  ;;  %434 = vmatprep.subr.bf16.mxu0 %v618_v32 }
  0x21   :  { %475 = vmatprep.subr.bf16.mxu1 %v620_v33 }
  0x23   :  { %435 = vmatpush2.bf16.msra.mxu0 %v622_v34 }
  0x24   :  { %476 = vmatpush2.bf16.msra.mxu1 %v623_v35  ;;  %436 = vmatprep.subr.bf16.mxu0 %v624_v36 }
  0x25   :  { %477 = vmatprep.subr.bf16.mxu1 %v626_v37 }
  0x27   :  { %437 = vmatpush2.bf16.msra.mxu0 %v628_v38 }
  0x28   :  { %478 = vmatpush2.bf16.msra.mxu1 %v629_v39  ;;  %438 = vmatprep.subr.bf16.mxu0 %v630_v40 }
  0x29   :  { %479 = vmatprep.subr.bf16.mxu1 %v632_v41 }
  0x2b   :  { %439 = vmatpush2.bf16.msra.mxu0 %v634_v42 }
  0x2c   :  { %480 = vmatpush2.bf16.msra.mxu1 %v635_v43  ;;  %440 = vmatprep.subr.bf16.mxu0 %v636_v44 }
  0x2d   :  { %481 = vmatprep.subr.bf16.mxu1 %v638_v45 }
  0x2f   :  { %441 = vmatpush2.bf16.msra.mxu0 %v640_v49 }
  0x30   :  { %482 = vmatpush2.bf16.msra.mxu1 %v641_v50  ;;  %442 = vmatprep.subr.bf16.mxu0 %v642_v52 }
  0x31   :  { %483 = vmatprep.subr.bf16.mxu1 %v644_v53 }
  0x33   :  { %443 = vmatpush2.bf16.msra.mxu0 %v646_v54 }
  0x34   :  { %484 = vmatpush2.bf16.msra.mxu1 %v647_v55  ;;  %444 = vmatprep.subr.bf16.mxu0 %v648_v56 }
  0x35   :  { %485 = vmatprep.subr.bf16.mxu1 %v650_v57 }
  0x37   :  { %445 = vmatpush2.bf16.msra.mxu0 %v652_v58 }
  0x38   :  { %486 = vmatpush2.bf16.msra.mxu1 %v653_v59  ;;  %446 = vmatprep.subr.bf16.mxu0 %v654_v60 }
  0x39   :  { %487 = vmatprep.subr.bf16.mxu1 %v656_v61 }
  0x3b   :  { %447 = vmatpush2.bf16.msra.mxu0 %v658_v62 }
  0x3c   :  { %488 = vmatpush2.bf16.msra.mxu1 %v659_v63  ;;  %448 = vmatprep.subr.bf16.mxu0 %v660_v0 }
  0x3d   :  { %489 = vmatprep.subr.bf16.mxu1 %v662_v1 }
  0x3f   :  { %449 = vmatpush2.bf16.msra.mxu0 %v664_v2 }
  0x40   :  { %490 = vmatpush2.bf16.msra.mxu1 %v665_v3 }
  0x42   :  { %451 = vmatmul.mubr.bf16.vlgmr.msra.gmra.mxu0 %v18_v6 }
  0x43   :  { %492 = vmatmul.mubr.bf16.vlgmr.msra.gmra.mxu1 %v20_v7 }
 0x102   :  { %v452_v15 = vpop.f32.mrf.mxu0 }
 0x103   :  { %v493_v16 = vpop.f32.mrf.mxu1  ;;  %v453_v17 = vadd.f32 %v452_v15, %v91_v13 }
 0x104   :  { %v454_v18 = vpop.f32.mrf.mxu0 }
 0x105   :  { %v495_v19 = vpop.f32.mrf.mxu1  ;;  %v494_v20 = vadd.f32 %v493_v16, %v453_v17  ;;  %v455_v21 = vadd.f32 %v454_v18, %v95_v14 }
 0x106   :  { %v456_v22 = vpop.f32.mrf.mxu0 }
 0x107   :  { %v497_v23 = vpop.f32.mrf.mxu1  ;;  %500 = vst [vmem:[%s902_s3] sm:$0xff] %v494_v20  ;;  %v496_v24 = vadd.f32 %v495_v19, %v455_v21 }
 0x108   :  { %v457_v25 = vpop.f32.mrf.mxu0 }
 0x109   :  { %v498_v26 = vpop.f32.mrf.mxu1  ;;  %501 = vst [vmem:[%s902_s3 + $0x8] sm:$0xff] %v496_v24 }

</bundles_post_ra>
